<compile_context>
chip_gen: v6e
topology: v6e:2x2x1
jax: 0.10.0
libtpu: 0.0.40
codegen_flags: <defaults>
</compile_context>

<pallas_src>
import functools

import jax
import jax.numpy as jnp
from jax.experimental import pallas as pl
from jax.experimental.pallas import tpu as pltpu

LANE = 128  # pad only the final output dim (fc3 N) to this for lane-dense stores


def _vmem_spec():
    return pl.BlockSpec(memory_space=pltpu.MemorySpace.VMEM)


# ----------------------------------------------------------------------------
# Exact patch gather (pure data movement, bit-exact; replaces
# conv_general_dilated_patches + Precision.HIGHEST).
# Feature order of the flattened patch is (kh, kw, C).
# ----------------------------------------------------------------------------
def conv_patches_nhwc(x, k, s):
    """x: (B, H, W, C) -> (B, OH, OW, k, k, C)."""
    _, H, W, _ = x.shape
    oh = (H - k) // s + 1
    ow = (W - k) // s + 1
    hi = (jnp.arange(oh) * s)[:, None] + jnp.arange(k)[None, :]   # (oh, k)
    wi = (jnp.arange(ow) * s)[:, None] + jnp.arange(k)[None, :]   # (ow, k)
    # advanced indices are contiguous -> result (B, oh, ow, k, k, C)
    return x[:, hi[:, None, :, None], wi[None, :, None, :], :]


# ----------------------------------------------------------------------------
# Kernel A: conv1 as a GEMM.  o = relu(p1 @ w1 + b1)
#   p1: (B*OH1*OW1, 64) f32, w1: (64, 32) f32, b1: (1, 32) f32
# ----------------------------------------------------------------------------
def _conv1_kernel(p_ref, w_ref, b_ref, o_ref):
    acc = jnp.dot(p_ref[...], w_ref[...], preferred_element_type=jnp.float32)
    o_ref[...] = jnp.maximum(acc + b_ref[...], 0.0).astype(o_ref.dtype)


def pallas_conv1(p1, w1, b1):
    M, K = p1.shape
    _, N = w1.shape
    cost = pl.CostEstimate(
        flops=2 * M * K * N + 2 * M * N,
        transcendentals=0,
        bytes_accessed=int(p1.nbytes + w1.nbytes + b1.nbytes + 4 * M * N),
    )
    return pl.pallas_call(
        _conv1_kernel,
        out_shape=jax.ShapeDtypeStruct((M, N), jnp.float32),
        in_specs=[_vmem_spec()] * 3,
        out_specs=_vmem_spec(),
        cost_estimate=cost,
    )(p1, w1, b1)


# ----------------------------------------------------------------------------
# Kernel B: fused conv2 + fc1 + fc2 + fc3.
#   p2 : (B, n_pos*512) f32   -- conv2 patches, spatial-position major
#   w2 : (512, 64)      bf16  -- conv2 weight, rows ordered (kh, kw, c_in)
#   wf1: (n_pos*64, 512) bf16 -- fc1 weight, rows ordered (pos, channel)
#   wf2: (512, 512)     bf16,  wf3: (512, 128) bf16 (N padded to 128)
# conv2 + the fc1 partial sum are interleaved per spatial position, so the
# conv2 output / flatten never materialize outside VMEM/vregs.
# ----------------------------------------------------------------------------
def _conv2_fc_head_kernel(p2_ref, w2_ref, b2_ref,
                          wf1_ref, bf1_ref, wf2_ref, bf2_ref, wf3_ref, bf3_ref,
                          o_ref, *, n_pos, k_per_pos, c2_out):
    B = p2_ref.shape[0]
    n1 = wf1_ref.shape[1]
    w2 = w2_ref[...].astype(jnp.float32)                       # up-cast once, reused
    acc1 = jnp.zeros((B, n1), jnp.float32)
    for p in range(n_pos):                                     # unrolled, static slices
        patch = p2_ref[:, p * k_per_pos:(p + 1) * k_per_pos]   # (B, 512) f32
        y = jnp.dot(patch, w2, preferred_element_type=jnp.float32) + b2_ref[...]
        y = jnp.maximum(y, 0.0)                                # conv2 + ReLU at pos p
        wf1_p = wf1_ref[p * c2_out:(p + 1) * c2_out, :].astype(jnp.float32)
        acc1 = acc1 + jnp.dot(y, wf1_p, preferred_element_type=jnp.float32)
    h1 = jnp.maximum(acc1 + bf1_ref[...], 0.0)                 # fc1 + ReLU
    h2 = jnp.dot(h1, wf2_ref[...].astype(jnp.float32),
                 preferred_element_type=jnp.float32) + bf2_ref[...]
    h2 = jnp.maximum(h2, 0.0)                                  # fc2 + ReLU
    q = jnp.dot(h2, wf3_ref[...].astype(jnp.float32),
                preferred_element_type=jnp.float32) + bf3_ref[...]
    o_ref[...] = q.astype(o_ref.dtype)                         # fc3 (lane-dense 128)


def pallas_conv2_fc_head(p2, w2, b2, wf1, bf1, wf2, bf2, wf3, bf3, *, n_pos):
    B = p2.shape[0]
    k_per_pos, c2_out = w2.shape
    n1, n2, n3 = wf1.shape[1], wf2.shape[1], wf3.shape[1]
    flops = 2 * B * (n_pos * (k_per_pos * c2_out + c2_out * n1) + n1 * n2 + n2 * n3)
    bytes_accessed = int(p2.nbytes + w2.nbytes + b2.nbytes + wf1.nbytes + bf1.nbytes
                         + wf2.nbytes + bf2.nbytes + wf3.nbytes + bf3.nbytes
                         + 4 * B * n3)
    cost = pl.CostEstimate(flops=flops, transcendentals=0, bytes_accessed=bytes_accessed)
    kern = functools.partial(_conv2_fc_head_kernel,
                             n_pos=n_pos, k_per_pos=k_per_pos, c2_out=c2_out)
    return pl.pallas_call(
        kern,
        out_shape=jax.ShapeDtypeStruct((B, n3), jnp.float32),
        in_specs=[_vmem_spec()] * 9,
        out_specs=_vmem_spec(),
        cost_estimate=cost,
    )(p2, w2, b2, wf1, bf1, wf2, bf2, wf3, bf3)


# ----------------------------------------------------------------------------
# Parameters
# ----------------------------------------------------------------------------
def conv_out_dims(input_shape):
    H, W = input_shape
    oh1, ow1 = (H - 8) // 4 + 1, (W - 8) // 4 + 1
    oh2, ow2 = (oh1 - 4) // 2 + 1, (ow1 - 4) // 2 + 1
    return oh1, ow1, oh2, ow2


def init_raw_params(key, input_shape, n_actions, fc1_nodes=512):
    """Deterministic params in the PyTorch layouts (what nn.Module would hold)."""
    _, _, oh2, ow2 = conv_out_dims(input_shape)
    co = 64 * oh2 * ow2
    ks = jax.random.split(key, 10)
    n = lambda k_, shp, scale=0.05: scale * jax.random.normal(k_, shp, jnp.float32)
    return {
        "conv1_w": n(ks[0], (32, 1, 8, 8)),
        "conv1_b": n(ks[1], (32,)),
        "conv2_w": n(ks[2], (64, 32, 4, 4)),
        "conv2_b": n(ks[3], (64,)),
        "fc1_w": n(ks[4], (fc1_nodes, co)),      # PyTorch Linear: (out, in)
        "fc1_b": n(ks[5], (fc1_nodes,)),
        "fc2_w": n(ks[6], (512, 512)),
        "fc2_b": n(ks[7], (512,)),
        "fc3_w": n(ks[8], (n_actions, 512)),
        "fc3_b": n(ks[9], (n_actions,)),
    }


def prepare_params(raw, input_shape):
    """One-time conversion to matmul-ready layouts; big weights stored bf16."""
    _, _, oh2, ow2 = conv_out_dims(input_shape)
    n_pos = oh2 * ow2
    fc1_nodes = raw["fc1_w"].shape[0]
    n_actions = raw["fc3_w"].shape[0]

    # conv1: (32,1,8,8) -> (K=64, N=32), rows ordered (kh, kw).  f32 (tiny: 8 KB).
    w1 = raw["conv1_w"].reshape(32, 64).T
    b1 = raw["conv1_b"][None, :]

    # conv2: (64,32,4,4) -> rows ordered (kh, kw, c_in) to match the patch gather.
    w2 = jnp.transpose(raw["conv2_w"], (2, 3, 1, 0)).reshape(4 * 4 * 32, 64)
    w2 = w2.astype(jnp.bfloat16)
    b2 = raw["conv2_b"][None, :]

    # fc1: PyTorch expects NCHW flatten (index = c*n_pos + p).  The fused kernel
    # consumes rows ordered (p, c), so fold that permutation into the weight.
    w_fc1 = raw["fc1_w"].reshape(fc1_nodes, 64, n_pos)        # (n, c, p)
    w_fc1 = jnp.transpose(w_fc1, (2, 1, 0)).reshape(n_pos * 64, fc1_nodes)
    w_fc1 = w_fc1.astype(jnp.bfloat16)
    b_fc1 = raw["fc1_b"][None, :]

    w_fc2 = raw["fc2_w"].T.astype(jnp.bfloat16)               # (512, 512)
    b_fc2 = raw["fc2_b"][None, :]

    # fc3: pad N from n_actions -> 128 for lane-dense output stores (zeros).
    w_fc3 = jnp.pad(raw["fc3_w"].T, ((0, 0), (0, LANE - n_actions))).astype(jnp.bfloat16)
    b_fc3 = jnp.pad(raw["fc3_b"], (0, LANE - n_actions))[None, :]

    return {
        "w1": w1, "b1": b1, "w2": w2, "b2": b2,
        "w_fc1": w_fc1, "b_fc1": b_fc1,
        "w_fc2": w_fc2, "b_fc2": b_fc2,
        "w_fc3": w_fc3, "b_fc3": b_fc3,
    }


# ----------------------------------------------------------------------------
# Forward pass (jit'ed).  x: (B, 1, H, W) NCHW like the PyTorch module.
# ----------------------------------------------------------------------------
@functools.partial(jax.jit, static_argnames=("n_actions",))
def dqn_forward(params, x, *, n_actions):
    B = x.shape[0]
    x = jnp.transpose(x, (0, 2, 3, 1))                        # NHWC (free: C == 1)

    # Conv1 (1->32, k=8, s=4) + ReLU as one Pallas GEMM (K=64, no pad).
    p1 = conv_patches_nhwc(x, 8, 4)                           # (B, OH1, OW1, 8, 8, 1)
    _, oh1, ow1 = p1.shape[:3]
    p1 = p1.reshape(B * oh1 * ow1, 8 * 8)                     # (B*OH1*OW1, 64)
    y1 = pallas_conv1(p1, params["w1"], params["b1"])         # (B*OH1*OW1, 32)
    y1 = y1.reshape(B, oh1, ow1, 32)                          # true 32 channels

    # Conv2 patches (exact gather), spatial-position-major flatten.
    p2 = conv_patches_nhwc(y1, 4, 2)                          # (B, OH2, OW2, 4, 4, 32)
    _, oh2, ow2 = p2.shape[:3]
    n_pos = oh2 * ow2
    p2 = p2.reshape(B, n_pos * 4 * 4 * 32)                    # (B, n_pos*512)

    # Fused conv2 + fc1 + fc2 + fc3 in a single pallas_call.
    q = pallas_conv2_fc_head(p2, params["w2"], params["b2"],
                             params["w_fc1"], params["b_fc1"],
                             params["w_fc2"], params["b_fc2"],
                             params["w_fc3"], params["b_fc3"],
                             n_pos=n_pos)                     # (B, 128) lane-dense
    return q[:, :n_actions]


# ----------------------------------------------------------------------------
# Pure-JAX reference (PyTorch layouts / semantics, f32) for the correctness check.
# ----------------------------------------------------------------------------
def dqn_reference(raw, x):
    dn = ("NCHW", "OIHW", "NCHW")
    y = jax.lax.conv_general_dilated(x, raw["conv1_w"], (4, 4), "VALID",
                                     dimension_numbers=dn)
    y = jax.nn.relu(y + raw["conv1_b"][None, :, None, None])
    y = jax.lax.conv_general_dilated(y, raw["conv2_w"], (2, 2), "VALID",
                                     dimension_numbers=dn)
    y = jax.nn.relu(y + raw["conv2_b"][None, :, None, None])
    y = y.reshape(x.shape[0], -1)
    y = jax.nn.relu(y @ raw["fc1_w"].T + raw["fc1_b"])
    y = jax.nn.relu(y @ raw["fc2_w"].T + raw["fc2_b"])
    return y @ raw["fc3_w"].T + raw["fc3_b"]


if __name__ == "__main__":
    input_shape = (44, 44)   # -> conv1 out 10x10, conv2 out 4x4, conv_out = 1024
    n_actions = 6
    batch = 2

    key = jax.random.PRNGKey(0)
    kp, kx = jax.random.split(key)
    raw = init_raw_params(kp, input_shape, n_actions)
    params = prepare_params(raw, input_shape)   # one-time weight repack / bf16 cast
    x = jax.random.normal(kx, (batch, 1, *input_shape), jnp.float32)

    q = jax.block_until_ready(dqn_forward(params, x, n_actions=n_actions))
    q_ref = jax.block_until_ready(dqn_reference(raw, x))

    assert q.shape == (batch, n_actions), q.shape
    # Tolerance loosened vs the all-f32 version: conv2/fc weights are stored bf16
    # (f32 accumulation), giving ~1e-3-scale relative deviation from the f32 reference.
    assert jnp.allclose(q, q_ref, atol=1e-2, rtol=1e-2), \
        float(jnp.max(jnp.abs(q - q_ref)))
    print("KERNEL_OK")
</pallas_src>

<mosaic_0001>
module attributes {stable_mosaic.version = 11 : i64} {
  func.func @_conv1_kernel(%arg0: memref<200x64xf32, #tpu.memory_space<vmem>>, %arg1: memref<64x32xf32, #tpu.memory_space<vmem>>, %arg2: memref<1x32xf32, #tpu.memory_space<vmem>>, %arg3: memref<200x32xf32, #tpu.memory_space<vmem>>) attributes {dimension_semantics = [], scalar_prefetch = 0 : i64, scratch_operands = 0 : i64, tpu.core_type = #tpu.core_type<tc>} {
    %c0 = arith.constant 0 : index
    %c0_0 = arith.constant 0 : index
    %0 = vector.load %arg0[%c0, %c0_0] : memref<200x64xf32, #tpu.memory_space<vmem>>, vector<200x64xf32>
    %c0_1 = arith.constant 0 : index
    %c0_2 = arith.constant 0 : index
    %1 = vector.load %arg1[%c0_1, %c0_2] : memref<64x32xf32, #tpu.memory_space<vmem>>, vector<64x32xf32>
    %cst = arith.constant dense<0.000000e+00> : vector<200x32xf32>
    %2 = tpu.matmul %0, %1, %cst {dimension_numbers = #tpu.dot_dimension_numbers<[1], [0], [0], [1], [0, 0, 1, 1], [], []>} : vector<200x64xf32>, vector<64x32xf32>, vector<200x32xf32> -> vector<200x32xf32>
    %c0_3 = arith.constant 0 : index
    %c0_4 = arith.constant 0 : index
    %3 = vector.load %arg2[%c0_3, %c0_4] : memref<1x32xf32, #tpu.memory_space<vmem>>, vector<1x32xf32>
    %4 = vector.broadcast %3 : vector<1x32xf32> to vector<200x32xf32>
    %5 = arith.addf %2, %4 : vector<200x32xf32>
    %cst_5 = arith.constant 0.000000e+00 : f32
    %6 = vector.broadcast %cst_5 : f32 to vector<200x32xf32>
    %7 = arith.maximumf %5, %6 : vector<200x32xf32>
    %c0_6 = arith.constant 0 : index
    %c0_7 = arith.constant 0 : index
    %8 = vector.load %arg3[%c0_6, %c0_7] : memref<200x32xf32, #tpu.memory_space<vmem>>, vector<200x32xf32>
    tpu.vector_store %arg3[%c0_6, %c0_7], %7 {strides = array<i32>} : memref<200x32xf32, #tpu.memory_space<vmem>>, vector<200x32xf32>,
    return
  }
}

module attributes {stable_mosaic.version = 11 : i64} {
  func.func @_conv2_fc_head_kernel(%arg0: memref<2x8192xf32, #tpu.memory_space<vmem>>, %arg1: memref<512x64xbf16, #tpu.memory_space<vmem>>, %arg2: memref<1x64xf32, #tpu.memory_space<vmem>>, %arg3: memref<1024x512xbf16, #tpu.memory_space<vmem>>, %arg4: memref<1x512xf32, #tpu.memory_space<vmem>>, %arg5: memref<512x512xbf16, #tpu.memory_space<vmem>>, %arg6: memref<1x512xf32, #tpu.memory_space<vmem>>, %arg7: memref<512x128xbf16, #tpu.memory_space<vmem>>, %arg8: memref<1x128xf32, #tpu.memory_space<vmem>>, %arg9: memref<2x128xf32, #tpu.memory_space<vmem>>) attributes {dimension_semantics = [], scalar_prefetch = 0 : i64, scratch_operands = 0 : i64, tpu.core_type = #tpu.core_type<tc>} {
    %c0 = arith.constant 0 : index
    %c0_0 = arith.constant 0 : index
    %0 = vector.load %arg1[%c0, %c0_0] : memref<512x64xbf16, #tpu.memory_space<vmem>>, vector<512x64xbf16>
    %1 = arith.extf %0 : vector<512x64xbf16> to vector<512x64xf32>
    %cst = arith.constant 0.000000e+00 : f32
    %2 = vector.broadcast %cst : f32 to vector<2x512xf32>
    %c0_1 = arith.constant 0 : index
    %c0_2 = arith.constant 0 : index
    %3 = vector.load %arg0[%c0_1, %c0_2] : memref<2x8192xf32, #tpu.memory_space<vmem>>, vector<2x512xf32>
    %cst_3 = arith.constant dense<0.000000e+00> : vector<2x64xf32>
    %4 = tpu.matmul %3, %1, %cst_3 {dimension_numbers = #tpu.dot_dimension_numbers<[1], [0], [0], [1], [0, 0, 1, 1], [], []>} : vector<2x512xf32>, vector<512x64xf32>, vector<2x64xf32> -> vector<2x64xf32>
    %c0_4 = arith.constant 0 : index
    %c0_5 = arith.constant 0 : index
    %5 = vector.load %arg2[%c0_4, %c0_5] : memref<1x64xf32, #tpu.memory_space<vmem>>, vector<1x64xf32>
    %6 = vector.broadcast %5 : vector<1x64xf32> to vector<2x64xf32>
    %7 = arith.addf %4, %6 : vector<2x64xf32>
    %cst_6 = arith.constant 0.000000e+00 : f32
    %8 = vector.broadcast %cst_6 : f32 to vector<2x64xf32>
    %9 = arith.maximumf %7, %8 : vector<2x64xf32>
    %c0_7 = arith.constant 0 : index
    %c0_8 = arith.constant 0 : index
    %10 = vector.load %arg3[%c0_7, %c0_8] : memref<1024x512xbf16, #tpu.memory_space<vmem>>, vector<64x512xbf16>
    %11 = arith.extf %10 : vector<64x512xbf16> to vector<64x512xf32>
    %cst_9 = arith.constant dense<0.000000e+00> : vector<2x512xf32>
    %12 = tpu.matmul %9, %11, %cst_9 {dimension_numbers = #tpu.dot_dimension_numbers<[1], [0], [0], [1], [0, 0, 1, 1], [], []>} : vector<2x64xf32>, vector<64x512xf32>, vector<2x512xf32> -> vector<2x512xf32>
    %13 = arith.addf %2, %12 : vector<2x512xf32>
    %c0_10 = arith.constant 0 : index
    %c512 = arith.constant 512 : index
    %14 = vector.load %arg0[%c0_10, %c512] : memref<2x8192xf32, #tpu.memory_space<vmem>>, vector<2x512xf32>
    %cst_11 = arith.constant dense<0.000000e+00> : vector<2x64xf32>
    %15 = tpu.matmul %14, %1, %cst_11 {dimension_numbers = #tpu.dot_dimension_numbers<[1], [0], [0], [1], [0, 0, 1, 1], [], []>} : vector<2x512xf32>, vector<512x64xf32>, vector<2x64xf32> -> vector<2x64xf32>
    %c0_12 = arith.constant 0 : index
    %c0_13 = arith.constant 0 : index
    %16 = vector.load %arg2[%c0_12, %c0_13] : memref<1x64xf32, #tpu.memory_space<vmem>>, vector<1x64xf32>
    %17 = vector.broadcast %16 : vector<1x64xf32> to vector<2x64xf32>
    %18 = arith.addf %15, %17 : vector<2x64xf32>
    %cst_14 = arith.constant 0.000000e+00 : f32
    %19 = vector.broadcast %cst_14 : f32 to vector<2x64xf32>
    %20 = arith.maximumf %18, %19 : vector<2x64xf32>
    %c64 = arith.constant 64 : index
    %c0_15 = arith.constant 0 : index
    %21 = vector.load %arg3[%c64, %c0_15] : memref<1024x512xbf16, #tpu.memory_space<vmem>>, vector<64x512xbf16>
    %22 = arith.extf %21 : vector<64x512xbf16> to vector<64x512xf32>
    %cst_16 = arith.constant dense<0.000000e+00> : vector<2x512xf32>
    %23 = tpu.matmul %20, %22, %cst_16 {dimension_numbers = #tpu.dot_dimension_numbers<[1], [0], [0], [1], [0, 0, 1, 1], [], []>} : vector<2x64xf32>, vector<64x512xf32>, vector<2x512xf32> -> vector<2x512xf32>
    %24 = arith.addf %13, %23 : vector<2x512xf32>
    %c0_17 = arith.constant 0 : index
    %c1024 = arith.constant 1024 : index
    %25 = vector.load %arg0[%c0_17, %c1024] : memref<2x8192xf32, #tpu.memory_space<vmem>>, vector<2x512xf32>
    %cst_18 = arith.constant dense<0.000000e+00> : vector<2x64xf32>
    %26 = tpu.matmul %25, %1, %cst_18 {dimension_numbers = #tpu.dot_dimension_numbers<[1], [0], [0], [1], [0, 0, 1, 1], [], []>} : vector<2x512xf32>, vector<512x64xf32>, vector<2x64xf32> -> vector<2x64xf32>
    %c0_19 = arith.constant 0 : index
    %c0_20 = arith.constant 0 : index
    %27 = vector.load %arg2[%c0_19, %c0_20] : memref<1x64xf32, #tpu.memory_space<vmem>>, vector<1x64xf32>
    %28 = vector.broadcast %27 : vector<1x64xf32> to vector<2x64xf32>
    %29 = arith.addf %26, %28 : vector<2x64xf32>
    %cst_21 = arith.constant 0.000000e+00 : f32
    %30 = vector.broadcast %cst_21 : f32 to vector<2x64xf32>
    %31 = arith.maximumf %29, %30 : vector<2x64xf32>
    %c128 = arith.constant 128 : index
    %c0_22 = arith.constant 0 : index
    %32 = vector.load %arg3[%c128, %c0_22] : memref<1024x512xbf16, #tpu.memory_space<vmem>>, vector<64x512xbf16>
    %33 = arith.extf %32 : vector<64x512xbf16> to vector<64x512xf32>
    %cst_23 = arith.constant dense<0.000000e+00> : vector<2x512xf32>
    %34 = tpu.matmul %31, %33, %cst_23 {dimension_numbers = #tpu.dot_dimension_numbers<[1], [0], [0], [1], [0, 0, 1, 1], [], []>} : vector<2x64xf32>, vector<64x512xf32>, vector<2x512xf32> -> vector<2x512xf32>
    %35 = arith.addf %24, %34 : vector<2x512xf32>
    %c0_24 = arith.constant 0 : index
    %c1536 = arith.constant 1536 : index
    %36 = vector.load %arg0[%c0_24, %c1536] : memref<2x8192xf32, #tpu.memory_space<vmem>>, vector<2x512xf32>
    %cst_25 = arith.constant dense<0.000000e+00> : vector<2x64xf32>
    %37 = tpu.matmul %36, %1, %cst_25 {dimension_numbers = #tpu.dot_dimension_numbers<[1], [0], [0], [1], [0, 0, 1, 1], [], []>} : vector<2x512xf32>, vector<512x64xf32>, vector<2x64xf32> -> vector<2x64xf32>
    %c0_26 = arith.constant 0 : index
    %c0_27 = arith.constant 0 : index
    %38 = vector.load %arg2[%c0_26, %c0_27] : memref<1x64xf32, #tpu.memory_space<vmem>>, vector<1x64xf32>
    %39 = vector.broadcast %38 : vector<1x64xf32> to vector<2x64xf32>
    %40 = arith.addf %37, %39 : vector<2x64xf32>
    %cst_28 = arith.constant 0.000000e+00 : f32
    %41 = vector.broadcast %cst_28 : f32 to vector<2x64xf32>
    %42 = arith.maximumf %40, %41 : vector<2x64xf32>
    %c192 = arith.constant 192 : index
    %c0_29 = arith.constant 0 : index
    %43 = vector.load %arg3[%c192, %c0_29] : memref<1024x512xbf16, #tpu.memory_space<vmem>>, vector<64x512xbf16>
    %44 = arith.extf %43 : vector<64x512xbf16> to vector<64x512xf32>
    %cst_30 = arith.constant dense<0.000000e+00> : vector<2x512xf32>
    %45 = tpu.matmul %42, %44, %cst_30 {dimension_numbers = #tpu.dot_dimension_numbers<[1], [0], [0], [1], [0, 0, 1, 1], [], []>} : vector<2x64xf32>, vector<64x512xf32>, vector<2x512xf32> -> vector<2x512xf32>
    %46 = arith.addf %35, %45 : vector<2x512xf32>
    %c0_31 = arith.constant 0 : index
    %c2048 = arith.constant 2048 : index
    %47 = vector.load %arg0[%c0_31, %c2048] : memref<2x8192xf32, #tpu.memory_space<vmem>>, vector<2x512xf32>
    %cst_32 = arith.constant dense<0.000000e+00> : vector<2x64xf32>
    %48 = tpu.matmul %47, %1, %cst_32 {dimension_numbers = #tpu.dot_dimension_numbers<[1], [0], [0], [1], [0, 0, 1, 1], [], []>} : vector<2x512xf32>, vector<512x64xf32>, vector<2x64xf32> -> vector<2x64xf32>
    %c0_33 = arith.constant 0 : index
    %c0_34 = arith.constant 0 : index
    %49 = vector.load %arg2[%c0_33, %c0_34] : memref<1x64xf32, #tpu.memory_space<vmem>>, vector<1x64xf32>
    %50 = vector.broadcast %49 : vector<1x64xf32> to vector<2x64xf32>
    %51 = arith.addf %48, %50 : vector<2x64xf32>
    %cst_35 = arith.constant 0.000000e+00 : f32
    %52 = vector.broadcast %cst_35 : f32 to vector<2x64xf32>
    %53 = arith.maximumf %51, %52 : vector<2x64xf32>
    %c256 = arith.constant 256 : index
    %c0_36 = arith.constant 0 : index
    %54 = vector.load %arg3[%c256, %c0_36] : memref<1024x512xbf16, #tpu.memory_space<vmem>>, vector<64x512xbf16>
    %55 = arith.extf %54 : vector<64x512xbf16> to vector<64x512xf32>
    %cst_37 = arith.constant dense<0.000000e+00> : vector<2x512xf32>
    %56 = tpu.matmul %53, %55, %cst_37 {dimension_numbers = #tpu.dot_dimension_numbers<[1], [0], [0], [1], [0, 0, 1, 1], [], []>} : vector<2x64xf32>, vector<64x512xf32>, vector<2x512xf32> -> vector<2x512xf32>
    %57 = arith.addf %46, %56 : vector<2x512xf32>
    %c0_38 = arith.constant 0 : index
    %c2560 = arith.constant 2560 : index
    %58 = vector.load %arg0[%c0_38, %c2560] : memref<2x8192xf32, #tpu.memory_space<vmem>>, vector<2x512xf32>
    %cst_39 = arith.constant dense<0.000000e+00> : vector<2x64xf32>
    %59 = tpu.matmul %58, %1, %cst_39 {dimension_numbers = #tpu.dot_dimension_numbers<[1], [0], [0], [1], [0, 0, 1, 1], [], []>} : vector<2x512xf32>, vector<512x64xf32>, vector<2x64xf32> -> vector<2x64xf32>
    %c0_40 = arith.constant 0 : index
    %c0_41 = arith.constant 0 : index
    %60 = vector.load %arg2[%c0_40, %c0_41] : memref<1x64xf32, #tpu.memory_space<vmem>>, vector<1x64xf32>
    %61 = vector.broadcast %60 : vector<1x64xf32> to vector<2x64xf32>
    %62 = arith.addf %59, %61 : vector<2x64xf32>
    %cst_42 = arith.constant 0.000000e+00 : f32
    %63 = vector.broadcast %cst_42 : f32 to vector<2x64xf32>
    %64 = arith.maximumf %62, %63 : vector<2x64xf32>
    %c320 = arith.constant 320 : index
    %c0_43 = arith.constant 0 : index
    %65 = vector.load %arg3[%c320, %c0_43] : memref<1024x512xbf16, #tpu.memory_space<vmem>>, vector<64x512xbf16>
    %66 = arith.extf %65 : vector<64x512xbf16> to vector<64x512xf32>
    %cst_44 = arith.constant dense<0.000000e+00> : vector<2x512xf32>
    %67 = tpu.matmul %64, %66, %cst_44 {dimension_numbers = #tpu.dot_dimension_numbers<[1], [0], [0], [1], [0, 0, 1, 1], [], []>} : vector<2x64xf32>, vector<64x512xf32>, vector<2x512xf32> -> vector<2x512xf32>
    %68 = arith.addf %57, %67 : vector<2x512xf32>
    %c0_45 = arith.constant 0 : index
    %c3072 = arith.constant 3072 : index
    %69 = vector.load %arg0[%c0_45, %c3072] : memref<2x8192xf32, #tpu.memory_space<vmem>>, vector<2x512xf32>
    %cst_46 = arith.constant dense<0.000000e+00> : vector<2x64xf32>
    %70 = tpu.matmul %69, %1, %cst_46 {dimension_numbers = #tpu.dot_dimension_numbers<[1], [0], [0], [1], [0, 0, 1, 1], [], []>} : vector<2x512xf32>, vector<512x64xf32>, vector<2x64xf32> -> vector<2x64xf32>
    %c0_47 = arith.constant 0 : index
    %c0_48 = arith.constant 0 : index
    %71 = vector.load %arg2[%c0_47, %c0_48] : memref<1x64xf32, #tpu.memory_space<vmem>>, vector<1x64xf32>
    %72 = vector.broadcast %71 : vector<1x64xf32> to vector<2x64xf32>
    %73 = arith.addf %70, %72 : vector<2x64xf32>
    %cst_49 = arith.constant 0.000000e+00 : f32
    %74 = vector.broadcast %cst_49 : f32 to vector<2x64xf32>
    %75 = arith.maximumf %73, %74 : vector<2x64xf32>
    %c384 = arith.constant 384 : index
    %c0_50 = arith.constant 0 : index
    %76 = vector.load %arg3[%c384, %c0_50] : memref<1024x512xbf16, #tpu.memory_space<vmem>>, vector<64x512xbf16>
    %77 = arith.extf %76 : vector<64x512xbf16> to vector<64x512xf32>
    %cst_51 = arith.constant dense<0.000000e+00> : vector<2x512xf32>
    %78 = tpu.matmul %75, %77, %cst_51 {dimension_numbers = #tpu.dot_dimension_numbers<[1], [0], [0], [1], [0, 0, 1, 1], [], []>} : vector<2x64xf32>, vector<64x512xf32>, vector<2x512xf32> -> vector<2x512xf32>
    %79 = arith.addf %68, %78 : vector<2x512xf32>
    %c0_52 = arith.constant 0 : index
    %c3584 = arith.constant 3584 : index
    %80 = vector.load %arg0[%c0_52, %c3584] : memref<2x8192xf32, #tpu.memory_space<vmem>>, vector<2x512xf32>
    %cst_53 = arith.constant dense<0.000000e+00> : vector<2x64xf32>
    %81 = tpu.matmul %80, %1, %cst_53 {dimension_numbers = #tpu.dot_dimension_numbers<[1], [0], [0], [1], [0, 0, 1, 1], [], []>} : vector<2x512xf32>, vector<512x64xf32>, vector<2x64xf32> -> vector<2x64xf32>
    %c0_54 = arith.constant 0 : index
    %c0_55 = arith.constant 0 : index
    %82 = vector.load %arg2[%c0_54, %c0_55] : memref<1x64xf32, #tpu.memory_space<vmem>>, vector<1x64xf32>
    %83 = vector.broadcast %82 : vector<1x64xf32> to vector<2x64xf32>
    %84 = arith.addf %81, %83 : vector<2x64xf32>
    %cst_56 = arith.constant 0.000000e+00 : f32
    %85 = vector.broadcast %cst_56 : f32 to vector<2x64xf32>
    %86 = arith.maximumf %84, %85 : vector<2x64xf32>
    %c448 = arith.constant 448 : index
    %c0_57 = arith.constant 0 : index
    %87 = vector.load %arg3[%c448, %c0_57] : memref<1024x512xbf16, #tpu.memory_space<vmem>>, vector<64x512xbf16>
    %88 = arith.extf %87 : vector<64x512xbf16> to vector<64x512xf32>
    %cst_58 = arith.constant dense<0.000000e+00> : vector<2x512xf32>
    %89 = tpu.matmul %86, %88, %cst_58 {dimension_numbers = #tpu.dot_dimension_numbers<[1], [0], [0], [1], [0, 0, 1, 1], [], []>} : vector<2x64xf32>, vector<64x512xf32>, vector<2x512xf32> -> vector<2x512xf32>
    %90 = arith.addf %79, %89 : vector<2x512xf32>
    %c0_59 = arith.constant 0 : index
    %c4096 = arith.constant 4096 : index
    %91 = vector.load %arg0[%c0_59, %c4096] : memref<2x8192xf32, #tpu.memory_space<vmem>>, vector<2x512xf32>
    %cst_60 = arith.constant dense<0.000000e+00> : vector<2x64xf32>
    %92 = tpu.matmul %91, %1, %cst_60 {dimension_numbers = #tpu.dot_dimension_numbers<[1], [0], [0], [1], [0, 0, 1, 1], [], []>} : vector<2x512xf32>, vector<512x64xf32>, vector<2x64xf32> -> vector<2x64xf32>
    %c0_61 = arith.constant 0 : index
    %c0_62 = arith.constant 0 : index
    %93 = vector.load %arg2[%c0_61, %c0_62] : memref<1x64xf32, #tpu.memory_space<vmem>>, vector<1x64xf32>
    %94 = vector.broadcast %93 : vector<1x64xf32> to vector<2x64xf32>
    %95 = arith.addf %92, %94 : vector<2x64xf32>
    %cst_63 = arith.constant 0.000000e+00 : f32
    %96 = vector.broadcast %cst_63 : f32 to vector<2x64xf32>
    %97 = arith.maximumf %95, %96 : vector<2x64xf32>
    %c512_64 = arith.constant 512 : index
    %c0_65 = arith.constant 0 : index
    %98 = vector.load %arg3[%c512_64, %c0_65] : memref<1024x512xbf16, #tpu.memory_space<vmem>>, vector<64x512xbf16>
    %99 = arith.extf %98 : vector<64x512xbf16> to vector<64x512xf32>
    %cst_66 = arith.constant dense<0.000000e+00> : vector<2x512xf32>
    %100 = tpu.matmul %97, %99, %cst_66 {dimension_numbers = #tpu.dot_dimension_numbers<[1], [0], [0], [1], [0, 0, 1, 1], [], []>} : vector<2x64xf32>, vector<64x512xf32>, vector<2x512xf32> -> vector<2x512xf32>
    %101 = arith.addf %90, %100 : vector<2x512xf32>
    %c0_67 = arith.constant 0 : index
    %c4608 = arith.constant 4608 : index
    %102 = vector.load %arg0[%c0_67, %c4608] : memref<2x8192xf32, #tpu.memory_space<vmem>>, vector<2x512xf32>
    %cst_68 = arith.constant dense<0.000000e+00> : vector<2x64xf32>
    %103 = tpu.matmul %102, %1, %cst_68 {dimension_numbers = #tpu.dot_dimension_numbers<[1], [0], [0], [1], [0, 0, 1, 1], [], []>} : vector<2x512xf32>, vector<512x64xf32>, vector<2x64xf32> -> vector<2x64xf32>
    %c0_69 = arith.constant 0 : index
    %c0_70 = arith.constant 0 : index
    %104 = vector.load %arg2[%c0_69, %c0_70] : memref<1x64xf32, #tpu.memory_space<vmem>>, vector<1x64xf32>
    %105 = vector.broadcast %104 : vector<1x64xf32> to vector<2x64xf32>
    %106 = arith.addf %103, %105 : vector<2x64xf32>
    %cst_71 = arith.constant 0.000000e+00 : f32
    %107 = vector.broadcast %cst_71 : f32 to vector<2x64xf32>
    %108 = arith.maximumf %106, %107 : vector<2x64xf32>
    %c576 = arith.constant 576 : index
    %c0_72 = arith.constant 0 : index
    %109 = vector.load %arg3[%c576, %c0_72] : memref<1024x512xbf16, #tpu.memory_space<vmem>>, vector<64x512xbf16>
    %110 = arith.extf %109 : vector<64x512xbf16> to vector<64x512xf32>
    %cst_73 = arith.constant dense<0.000000e+00> : vector<2x512xf32>
    %111 = tpu.matmul %108, %110, %cst_73 {dimension_numbers = #tpu.dot_dimension_numbers<[1], [0], [0], [1], [0, 0, 1, 1], [], []>} : vector<2x64xf32>, vector<64x512xf32>, vector<2x512xf32> -> vector<2x512xf32>
    %112 = arith.addf %101, %111 : vector<2x512xf32>
    %c0_74 = arith.constant 0 : index
    %c5120 = arith.constant 5120 : index
    %113 = vector.load %arg0[%c0_74, %c5120] : memref<2x8192xf32, #tpu.memory_space<vmem>>, vector<2x512xf32>
    %cst_75 = arith.constant dense<0.000000e+00> : vector<2x64xf32>
    %114 = tpu.matmul %113, %1, %cst_75 {dimension_numbers = #tpu.dot_dimension_numbers<[1], [0], [0], [1], [0, 0, 1, 1], [], []>} : vector<2x512xf32>, vector<512x64xf32>, vector<2x64xf32> -> vector<2x64xf32>
    %c0_76 = arith.constant 0 : index
    %c0_77 = arith.constant 0 : index
    %115 = vector.load %arg2[%c0_76, %c0_77] : memref<1x64xf32, #tpu.memory_space<vmem>>, vector<1x64xf32>
    %116 = vector.broadcast %115 : vector<1x64xf32> to vector<2x64xf32>
    %117 = arith.addf %114, %116 : vector<2x64xf32>
    %cst_78 = arith.constant 0.000000e+00 : f32
    %118 = vector.broadcast %cst_78 : f32 to vector<2x64xf32>
    %119 = arith.maximumf %117, %118 : vector<2x64xf32>
    %c640 = arith.constant 640 : index
    %c0_79 = arith.constant 0 : index
    %120 = vector.load %arg3[%c640, %c0_79] : memref<1024x512xbf16, #tpu.memory_space<vmem>>, vector<64x512xbf16>
    %121 = arith.extf %120 : vector<64x512xbf16> to vector<64x512xf32>
    %cst_80 = arith.constant dense<0.000000e+00> : vector<2x512xf32>
    %122 = tpu.matmul %119, %121, %cst_80 {dimension_numbers = #tpu.dot_dimension_numbers<[1], [0], [0], [1], [0, 0, 1, 1], [], []>} : vector<2x64xf32>, vector<64x512xf32>, vector<2x512xf32> -> vector<2x512xf32>
    %123 = arith.addf %112, %122 : vector<2x512xf32>
    %c0_81 = arith.constant 0 : index
    %c5632 = arith.constant 5632 : index
    %124 = vector.load %arg0[%c0_81, %c5632] : memref<2x8192xf32, #tpu.memory_space<vmem>>, vector<2x512xf32>
    %cst_82 = arith.constant dense<0.000000e+00> : vector<2x64xf32>
    %125 = tpu.matmul %124, %1, %cst_82 {dimension_numbers = #tpu.dot_dimension_numbers<[1], [0], [0], [1], [0, 0, 1, 1], [], []>} : vector<2x512xf32>, vector<512x64xf32>, vector<2x64xf32> -> vector<2x64xf32>
    %c0_83 = arith.constant 0 : index
    %c0_84 = arith.constant 0 : index
    %126 = vector.load %arg2[%c0_83, %c0_84] : memref<1x64xf32, #tpu.memory_space<vmem>>, vector<1x64xf32>
    %127 = vector.broadcast %126 : vector<1x64xf32> to vector<2x64xf32>
    %128 = arith.addf %125, %127 : vector<2x64xf32>
    %cst_85 = arith.constant 0.000000e+00 : f32
    %129 = vector.broadcast %cst_85 : f32 to vector<2x64xf32>
    %130 = arith.maximumf %128, %129 : vector<2x64xf32>
    %c704 = arith.constant 704 : index
    %c0_86 = arith.constant 0 : index
    %131 = vector.load %arg3[%c704, %c0_86] : memref<1024x512xbf16, #tpu.memory_space<vmem>>, vector<64x512xbf16>
    %132 = arith.extf %131 : vector<64x512xbf16> to vector<64x512xf32>
    %cst_87 = arith.constant dense<0.000000e+00> : vector<2x512xf32>
    %133 = tpu.matmul %130, %132, %cst_87 {dimension_numbers = #tpu.dot_dimension_numbers<[1], [0], [0], [1], [0, 0, 1, 1], [], []>} : vector<2x64xf32>, vector<64x512xf32>, vector<2x512xf32> -> vector<2x512xf32>
    %134 = arith.addf %123, %133 : vector<2x512xf32>
    %c0_88 = arith.constant 0 : index
    %c6144 = arith.constant 6144 : index
    %135 = vector.load %arg0[%c0_88, %c6144] : memref<2x8192xf32, #tpu.memory_space<vmem>>, vector<2x512xf32>
    %cst_89 = arith.constant dense<0.000000e+00> : vector<2x64xf32>
    %136 = tpu.matmul %135, %1, %cst_89 {dimension_numbers = #tpu.dot_dimension_numbers<[1], [0], [0], [1], [0, 0, 1, 1], [], []>} : vector<2x512xf32>, vector<512x64xf32>, vector<2x64xf32> -> vector<2x64xf32>
    %c0_90 = arith.constant 0 : index
    %c0_91 = arith.constant 0 : index
    %137 = vector.load %arg2[%c0_90, %c0_91] : memref<1x64xf32, #tpu.memory_space<vmem>>, vector<1x64xf32>
    %138 = vector.broadcast %137 : vector<1x64xf32> to vector<2x64xf32>
    %139 = arith.addf %136, %138 : vector<2x64xf32>
    %cst_92 = arith.constant 0.000000e+00 : f32
    %140 = vector.broadcast %cst_92 : f32 to vector<2x64xf32>
    %141 = arith.maximumf %139, %140 : vector<2x64xf32>
    %c768 = arith.constant 768 : index
    %c0_93 = arith.constant 0 : index
    %142 = vector.load %arg3[%c768, %c0_93] : memref<1024x512xbf16, #tpu.memory_space<vmem>>, vector<64x512xbf16>
    %143 = arith.extf %142 : vector<64x512xbf16> to vector<64x512xf32>
    %cst_94 = arith.constant dense<0.000000e+00> : vector<2x512xf32>
    %144 = tpu.matmul %141, %143, %cst_94 {dimension_numbers = #tpu.dot_dimension_numbers<[1], [0], [0], [1], [0, 0, 1, 1], [], []>} : vector<2x64xf32>, vector<64x512xf32>, vector<2x512xf32> -> vector<2x512xf32>
    %145 = arith.addf %134, %144 : vector<2x512xf32>
    %c0_95 = arith.constant 0 : index
    %c6656 = arith.constant 6656 : index
    %146 = vector.load %arg0[%c0_95, %c6656] : memref<2x8192xf32, #tpu.memory_space<vmem>>, vector<2x512xf32>
    %cst_96 = arith.constant dense<0.000000e+00> : vector<2x64xf32>
    %147 = tpu.matmul %146, %1, %cst_96 {dimension_numbers = #tpu.dot_dimension_numbers<[1], [0], [0], [1], [0, 0, 1, 1], [], []>} : vector<2x512xf32>, vector<512x64xf32>, vector<2x64xf32> -> vector<2x64xf32>
    %c0_97 = arith.constant 0 : index
    %c0_98 = arith.constant 0 : index
    %148 = vector.load %arg2[%c0_97, %c0_98] : memref<1x64xf32, #tpu.memory_space<vmem>>, vector<1x64xf32>
    %149 = vector.broadcast %148 : vector<1x64xf32> to vector<2x64xf32>
    %150 = arith.addf %147, %149 : vector<2x64xf32>
    %cst_99 = arith.constant 0.000000e+00 : f32
    %151 = vector.broadcast %cst_99 : f32 to vector<2x64xf32>
    %152 = arith.maximumf %150, %151 : vector<2x64xf32>
    %c832 = arith.constant 832 : index
    %c0_100 = arith.constant 0 : index
    %153 = vector.load %arg3[%c832, %c0_100] : memref<1024x512xbf16, #tpu.memory_space<vmem>>, vector<64x512xbf16>
    %154 = arith.extf %153 : vector<64x512xbf16> to vector<64x512xf32>
    %cst_101 = arith.constant dense<0.000000e+00> : vector<2x512xf32>
    %155 = tpu.matmul %152, %154, %cst_101 {dimension_numbers = #tpu.dot_dimension_numbers<[1], [0], [0], [1], [0, 0, 1, 1], [], []>} : vector<2x64xf32>, vector<64x512xf32>, vector<2x512xf32> -> vector<2x512xf32>
    %156 = arith.addf %145, %155 : vector<2x512xf32>
    %c0_102 = arith.constant 0 : index
    %c7168 = arith.constant 7168 : index
    %157 = vector.load %arg0[%c0_102, %c7168] : memref<2x8192xf32, #tpu.memory_space<vmem>>, vector<2x512xf32>
    %cst_103 = arith.constant dense<0.000000e+00> : vector<2x64xf32>
    %158 = tpu.matmul %157, %1, %cst_103 {dimension_numbers = #tpu.dot_dimension_numbers<[1], [0], [0], [1], [0, 0, 1, 1], [], []>} : vector<2x512xf32>, vector<512x64xf32>, vector<2x64xf32> -> vector<2x64xf32>
    %c0_104 = arith.constant 0 : index
    %c0_105 = arith.constant 0 : index
    %159 = vector.load %arg2[%c0_104, %c0_105] : memref<1x64xf32, #tpu.memory_space<vmem>>, vector<1x64xf32>
    %160 = vector.broadcast %159 : vector<1x64xf32> to vector<2x64xf32>
    %161 = arith.addf %158, %160 : vector<2x64xf32>
    %cst_106 = arith.constant 0.000000e+00 : f32
    %162 = vector.broadcast %cst_106 : f32 to vector<2x64xf32>
    %163 = arith.maximumf %161, %162 : vector<2x64xf32>
    %c896 = arith.constant 896 : index
    %c0_107 = arith.constant 0 : index
    %164 = vector.load %arg3[%c896, %c0_107] : memref<1024x512xbf16, #tpu.memory_space<vmem>>, vector<64x512xbf16>
    %165 = arith.extf %164 : vector<64x512xbf16> to vector<64x512xf32>
    %cst_108 = arith.constant dense<0.000000e+00> : vector<2x512xf32>
    %166 = tpu.matmul %163, %165, %cst_108 {dimension_numbers = #tpu.dot_dimension_numbers<[1], [0], [0], [1], [0, 0, 1, 1], [], []>} : vector<2x64xf32>, vector<64x512xf32>, vector<2x512xf32> -> vector<2x512xf32>
    %167 = arith.addf %156, %166 : vector<2x512xf32>
    %c0_109 = arith.constant 0 : index
    %c7680 = arith.constant 7680 : index
    %168 = vector.load %arg0[%c0_109, %c7680] : memref<2x8192xf32, #tpu.memory_space<vmem>>, vector<2x512xf32>
    %cst_110 = arith.constant dense<0.000000e+00> : vector<2x64xf32>
    %169 = tpu.matmul %168, %1, %cst_110 {dimension_numbers = #tpu.dot_dimension_numbers<[1], [0], [0], [1], [0, 0, 1, 1], [], []>} : vector<2x512xf32>, vector<512x64xf32>, vector<2x64xf32> -> vector<2x64xf32>
    %c0_111 = arith.constant 0 : index
    %c0_112 = arith.constant 0 : index
    %170 = vector.load %arg2[%c0_111, %c0_112] : memref<1x64xf32, #tpu.memory_space<vmem>>, vector<1x64xf32>
    %171 = vector.broadcast %170 : vector<1x64xf32> to vector<2x64xf32>
    %172 = arith.addf %169, %171 : vector<2x64xf32>
    %cst_113 = arith.constant 0.000000e+00 : f32
    %173 = vector.broadcast %cst_113 : f32 to vector<2x64xf32>
    %174 = arith.maximumf %172, %173 : vector<2x64xf32>
    %c960 = arith.constant 960 : index
    %c0_114 = arith.constant 0 : index
    %175 = vector.load %arg3[%c960, %c0_114] : memref<1024x512xbf16, #tpu.memory_space<vmem>>, vector<64x512xbf16>
    %176 = arith.extf %175 : vector<64x512xbf16> to vector<64x512xf32>
    %cst_115 = arith.constant dense<0.000000e+00> : vector<2x512xf32>
    %177 = tpu.matmul %174, %176, %cst_115 {dimension_numbers = #tpu.dot_dimension_numbers<[1], [0], [0], [1], [0, 0, 1, 1], [], []>} : vector<2x64xf32>, vector<64x512xf32>, vector<2x512xf32> -> vector<2x512xf32>
    %178 = arith.addf %167, %177 : vector<2x512xf32>
    %c0_116 = arith.constant 0 : index
    %c0_117 = arith.constant 0 : index
    %179 = vector.load %arg4[%c0_116, %c0_117] : memref<1x512xf32, #tpu.memory_space<vmem>>, vector<1x512xf32>
    %180 = vector.broadcast %179 : vector<1x512xf32> to vector<2x512xf32>
    %181 = arith.addf %178, %180 : vector<2x512xf32>
    %cst_118 = arith.constant 0.000000e+00 : f32
    %182 = vector.broadcast %cst_118 : f32 to vector<2x512xf32>
    %183 = arith.maximumf %181, %182 : vector<2x512xf32>
    %c0_119 = arith.constant 0 : index
    %c0_120 = arith.constant 0 : index
    %184 = vector.load %arg5[%c0_119, %c0_120] : memref<512x512xbf16, #tpu.memory_space<vmem>>, vector<512x512xbf16>
    %185 = arith.extf %184 : vector<512x512xbf16> to vector<512x512xf32>
    %cst_121 = arith.constant dense<0.000000e+00> : vector<2x512xf32>
    %186 = tpu.matmul %183, %185, %cst_121 {dimension_numbers = #tpu.dot_dimension_numbers<[1], [0], [0], [1], [0, 0, 1, 1], [], []>} : vector<2x512xf32>, vector<512x512xf32>, vector<2x512xf32> -> vector<2x512xf32>
    %c0_122 = arith.constant 0 : index
    %c0_123 = arith.constant 0 : index
    %187 = vector.load %arg6[%c0_122, %c0_123] : memref<1x512xf32, #tpu.memory_space<vmem>>, vector<1x512xf32>
    %188 = vector.broadcast %187 : vector<1x512xf32> to vector<2x512xf32>
    %189 = arith.addf %186, %188 : vector<2x512xf32>
    %cst_124 = arith.constant 0.000000e+00 : f32
    %190 = vector.broadcast %cst_124 : f32 to vector<2x512xf32>
    %191 = arith.maximumf %189, %190 : vector<2x512xf32>
    %c0_125 = arith.constant 0 : index
    %c0_126 = arith.constant 0 : index
    %192 = vector.load %arg7[%c0_125, %c0_126] : memref<512x128xbf16, #tpu.memory_space<vmem>>, vector<512x128xbf16>
    %193 = arith.extf %192 : vector<512x128xbf16> to vector<512x128xf32>
    %cst_127 = arith.constant dense<0.000000e+00> : vector<2x128xf32>
    %194 = tpu.matmul %191, %193, %cst_127 {dimension_numbers = #tpu.dot_dimension_numbers<[1], [0], [0], [1], [0, 0, 1, 1], [], []>} : vector<2x512xf32>, vector<512x128xf32>, vector<2x128xf32> -> vector<2x128xf32>
    %c0_128 = arith.constant 0 : index
    %c0_129 = arith.constant 0 : index
    %195 = vector.load %arg8[%c0_128, %c0_129] : memref<1x128xf32, #tpu.memory_space<vmem>>, vector<1x128xf32>
    %196 = vector.broadcast %195 : vector<1x128xf32> to vector<2x128xf32>
    %197 = arith.addf %194, %196 : vector<2x128xf32>
    %c0_130 = arith.constant 0 : index
    %c0_131 = arith.constant 0 : index
    %198 = vector.load %arg9[%c0_130, %c0_131] : memref<2x128xf32, #tpu.memory_space<vmem>>, vector<2x128xf32>
    tpu.vector_store %arg9[%c0_130, %c0_131], %197 {strides = array<i32>} : memref<2x128xf32, #tpu.memory_space<vmem>>, vector<2x128xf32>,
    return
  }
}

</mosaic_0001>

<bundles_post_ra>
// kernel: dqn_forward.2
= control target key start
LH: loop header
LB: loop body
LE: loop exit
PB: predicated region body
PF: predicated region fallthrough
CT: control target
= control target key end

     0   :  { %v543_v0 = vmov 0.0   ;;  %vm54_vm0 = vcmask 523264   ;;  %vm544_vm1 = vmmov 0   ;;  %vm345_vm2 = vcmask 261120   ;;  %s885_s1 = inlined_call_operand.vmem [shape: f32[64,32], index: 1, kind: input, shape index: {}]   ;;  %s886_s0 = inlined_call_operand.vmem [shape: f32[200,64], index: 0, kind: input, shape index: {}]   ;;  %s887_s2 = inlined_call_operand.vmem [shape: f32[1,32], index: 2, kind: input, shape index: {}]   ;;  %s888_s3 = inlined_call_operand.vmem [shape: f32[200,32], index: 3, kind: output, shape index: {}]  }
   0x1   :  { %434 = vmatprep.subr.mxu0 %v543_v0  ;;  %v46_v1 = vld [vmem:[%s885_s1 + $0x38] sm:$0xff]  ;;  %525 = vmatprep.subr.mxu1 %v543_v0  ;;  %v45_v2 = vld [vmem:[%s885_s1 + $0x30] sm:$0xff]  ;;  %v44_v3 = vld [vmem:[%s885_s1 + $0x28] sm:$0xff] }
   0x2   :  { %435 = vmatpush3.msra.mxu0 %v46_v1  ;;  %533 = vmatpush3.msra.mxu1 %v46_v1  ;;  %v43_v4 = vld [vmem:[%s885_s1 + $0x20] sm:$0xff]  ;;  %v42_v5 = vld [vmem:[%s885_s1 + $0x18] sm:$0xff]  ;;  %v41_v6 = vld [vmem:[%s885_s1 + $0x10] sm:$0xff] }
   0x3   :  { %436 = vmatprep.subr.mxu0 %v543_v0  ;;  %526 = vmatprep.subr.mxu1 %v543_v0  ;;  %v40_v7 = vld [vmem:[%s885_s1 + $0x8] sm:$0xff]  ;;  %v39_v8 = vld [vmem:[%s885_s1] sm:$0xff]  ;;  %v28_v12 = vld [vmem:[%s886_s0 + $0x70] sm:$0xff] }
   0x4   :  { %437 = vmatpush3.msra.mxu0 %v45_v2  ;;  %534 = vmatpush3.msra.mxu1 %v45_v2  ;;  %v14_v9 = vld [vmem:[%s886_s0] sm:$0xff]  ;;  %v27_v10 = vld [vmem:[%s886_s0 + $0x68] sm:$0xff]  ;;  %v16_v13 = vld [vmem:[%s886_s0 + $0x10] sm:$0xff] }
   0x5   :  { %438 = vmatprep.subr.mxu0 %v543_v0  ;;  %527 = vmatprep.subr.mxu1 %v543_v0  ;;  %v15_v11 = vld [vmem:[%s886_s0 + $0x8] sm:$0xff]  ;;  %v29_v14 = vld [vmem:[%s886_s0 + $0x78] sm:$0xff]  ;;  %v30_v16 = vld [vmem:[%s886_s0 + $0x80] sm:$0xff] }
   0x6   :  { %439 = vmatpush3.msra.mxu0 %v44_v3  ;;  %535 = vmatpush3.msra.mxu1 %v44_v3  ;;  %v17_v15 = vld [vmem:[%s886_s0 + $0x18] sm:$0xff]  ;;  %v18_v17 = vld [vmem:[%s886_s0 + $0x20] sm:$0xff]  ;;  %v31_v18 = vld [vmem:[%s886_s0 + $0x88] sm:$0xff] }
   0x7   :  { %440 = vmatprep.subr.mxu0 %v543_v0  ;;  %528 = vmatprep.subr.mxu1 %v543_v0  ;;  %v19_v19 = vld [vmem:[%s886_s0 + $0x28] sm:$0xff]  ;;  %v32_v20 = vld [vmem:[%s886_s0 + $0x90] sm:$0xff]  ;;  %v33_v22 = vld [vmem:[%s886_s0 + $0x98] sm:$0xff] }
   0x8   :  { %441 = vmatpush3.msra.mxu0 %v43_v4  ;;  %536 = vmatpush3.msra.mxu1 %v43_v4  ;;  %v20_v21 = vld [vmem:[%s886_s0 + $0x30] sm:$0xff]  ;;  %v21_v23 = vld [vmem:[%s886_s0 + $0x38] sm:$0xff]  ;;  %v34_v24 = vld [vmem:[%s886_s0 + $0xa0] sm:$0xff] }
   0x9   :  { %442 = vmatprep.subr.mxu0 %v543_v0  ;;  %529 = vmatprep.subr.mxu1 %v543_v0  ;;  %v22_v25 = vld [vmem:[%s886_s0 + $0x40] sm:$0xff]  ;;  %v35_v26 = vld [vmem:[%s886_s0 + $0xa8] sm:$0xff]  ;;  %v36_v28 = vld [vmem:[%s886_s0 + $0xb0] sm:$0xff] }
   0xa   :  { %443 = vmatpush3.msra.mxu0 %v42_v5  ;;  %537 = vmatpush3.msra.mxu1 %v42_v5  ;;  %v23_v27 = vld [vmem:[%s886_s0 + $0x48] sm:$0xff]  ;;  %v24_v29 = vld [vmem:[%s886_s0 + $0x50] sm:$0xff]  ;;  %v37_v30 = vld [vmem:[%s886_s0 + $0xb8] sm:$0xff] }
   0xb   :  { %444 = vmatprep.subr.mxu0 %v543_v0  ;;  %530 = vmatprep.subr.mxu1 %v543_v0  ;;  %v25_v31 = vld [vmem:[%s886_s0 + $0x58] sm:$0xff]  ;;  %v38_v32 = vld [vmem:[%s886_s0 + $0xc0] sm:$0xff] }
   0xc   :  { %445 = vmatpush3.msra.mxu0 %v41_v6  ;;  %538 = vmatpush3.msra.mxu1 %v41_v6  ;;  %v26_v33 = vld [vmem:[%s886_s0 + $0x60] sm:$0xff] }
   0xd   :  { %446 = vmatprep.subr.mxu0 %v543_v0  ;;  %531 = vmatprep.subr.mxu1 %v543_v0  ;;  %v758_v34 = vld [vmem:[%s887_s2] ss:$0 sm:$0xff] }
   0xe   :  { %447 = vmatpush3.msra.mxu0 %v40_v7  ;;  %539 = vmatpush3.msra.mxu1 %v40_v7 }
   0xf   :  { %448 = vmatprep.subr.mxu0 %v543_v0  ;;  %450 = vmatprep.mubr.msk.f32.mxu0 %vm544_vm1, %v543_v0 }
  0x10   :  { %449 = vmatpush3.msra.mxu0 %v39_v8  ;;  %532 = vmatprep.subr.mxu1 %v543_v0 }
  0x11   :  { %451 = vmatmul.mubr.msk.f32.vlgmr.msra.gmra.mxu0 %vm54_vm0, %v14_v9  ;;  %540 = vmatpush3.msra.mxu1 %v39_v8 }
  0x12   :  { %489 = vmatprep.mubr.msk.f32.mxu1 %vm544_vm1, %v543_v0  ;;  %453 = vmatprep.mubr.msk.f32.mxu0 %vm544_vm1, %v543_v0 }
  0x13   :  { %490 = vmatmul.mubr.msk.f32.vlgmr.msra.gmra.mxu1 %vm54_vm0, %v27_v10 }
  0x14   :  { %492 = vmatprep.mubr.msk.f32.mxu1 %vm544_vm1, %v543_v0 }
  0x15   :  { %454 = vmatmul.mubr.msk.f32.gmra.mxu0 %vm54_vm0, %v15_v11 }
  0x16   :  { %456 = vmatprep.mubr.msk.f32.mxu0 %vm544_vm1, %v543_v0 }
  0x17   :  { %493 = vmatmul.mubr.msk.f32.gmra.mxu1 %vm54_vm0, %v28_v12 }
  0x18   :  { %495 = vmatprep.mubr.msk.f32.mxu1 %vm544_vm1, %v543_v0 }
  0x19   :  { %457 = vmatmul.mubr.msk.f32.gmra.mxu0 %vm54_vm0, %v16_v13 }
  0x1a   :  { %459 = vmatprep.mubr.msk.f32.mxu0 %vm544_vm1, %v543_v0 }
  0x1b   :  { %496 = vmatmul.mubr.msk.f32.gmra.mxu1 %vm54_vm0, %v29_v14 }
  0x1c   :  { %498 = vmatprep.mubr.msk.f32.mxu1 %vm544_vm1, %v543_v0 }
  0x1d   :  { %460 = vmatmul.mubr.msk.f32.gmra.mxu0 %vm54_vm0, %v17_v15 }
  0x1e   :  { %462 = vmatprep.mubr.msk.f32.mxu0 %vm544_vm1, %v543_v0 }
  0x1f   :  { %499 = vmatmul.mubr.msk.f32.gmra.mxu1 %vm54_vm0, %v30_v16 }
  0x20   :  { %501 = vmatprep.mubr.msk.f32.mxu1 %vm544_vm1, %v543_v0 }
  0x21   :  { %463 = vmatmul.mubr.msk.f32.gmra.mxu0 %vm54_vm0, %v18_v17 }
  0x22   :  { %465 = vmatprep.mubr.msk.f32.mxu0 %vm544_vm1, %v543_v0 }
  0x23   :  { %502 = vmatmul.mubr.msk.f32.gmra.mxu1 %vm54_vm0, %v31_v18 }
  0x24   :  { %504 = vmatprep.mubr.msk.f32.mxu1 %vm544_vm1, %v543_v0 }
  0x25   :  { %466 = vmatmul.mubr.msk.f32.gmra.mxu0 %vm54_vm0, %v19_v19 }
  0x26   :  { %468 = vmatprep.mubr.msk.f32.mxu0 %vm544_vm1, %v543_v0 }
  0x27   :  { %505 = vmatmul.mubr.msk.f32.gmra.mxu1 %vm54_vm0, %v32_v20 }
  0x28   :  { %507 = vmatprep.mubr.msk.f32.mxu1 %vm544_vm1, %v543_v0 }
  0x29   :  { %469 = vmatmul.mubr.msk.f32.gmra.mxu0 %vm54_vm0, %v20_v21 }
  0x2a   :  { %471 = vmatprep.mubr.msk.f32.mxu0 %vm544_vm1, %v543_v0 }
  0x2b   :  { %508 = vmatmul.mubr.msk.f32.gmra.mxu1 %vm54_vm0, %v33_v22 }
  0x2c   :  { %510 = vmatprep.mubr.msk.f32.mxu1 %vm544_vm1, %v543_v0 }
  0x2d   :  { %472 = vmatmul.mubr.msk.f32.gmra.mxu0 %vm54_vm0, %v21_v23 }
  0x2e   :  { %474 = vmatprep.mubr.msk.f32.mxu0 %vm544_vm1, %v543_v0 }
  0x2f   :  { %511 = vmatmul.mubr.msk.f32.gmra.mxu1 %vm54_vm0, %v34_v24 }
  0x30   :  { %513 = vmatprep.mubr.msk.f32.mxu1 %vm544_vm1, %v543_v0 }
  0x31   :  { %475 = vmatmul.mubr.msk.f32.gmra.mxu0 %vm54_vm0, %v22_v25 }
  0x32   :  { %477 = vmatprep.mubr.msk.f32.mxu0 %vm544_vm1, %v543_v0 }
  0x33   :  { %514 = vmatmul.mubr.msk.f32.gmra.mxu1 %vm54_vm0, %v35_v26 }
  0x34   :  { %516 = vmatprep.mubr.msk.f32.mxu1 %vm544_vm1, %v543_v0 }
  0x35   :  { %478 = vmatmul.mubr.msk.f32.gmra.mxu0 %vm54_vm0, %v23_v27 }
  0x36   :  { %480 = vmatprep.mubr.msk.f32.mxu0 %vm544_vm1, %v543_v0 }
  0x37   :  { %517 = vmatmul.mubr.msk.f32.gmra.mxu1 %vm54_vm0, %v36_v28 }
  0x38   :  { %519 = vmatprep.mubr.msk.f32.mxu1 %vm544_vm1, %v543_v0 }
  0x39   :  { %481 = vmatmul.mubr.msk.f32.gmra.mxu0 %vm54_vm0, %v24_v29 }
  0x3a   :  { %483 = vmatprep.mubr.msk.f32.mxu0 %vm544_vm1, %v543_v0 }
  0x3b   :  { %520 = vmatmul.mubr.msk.f32.gmra.mxu1 %vm54_vm0, %v37_v30 }
  0x3c   :  { %522 = vmatprep.mubr.msk.f32.mxu1 %vm544_vm1, %v543_v0 }
  0x3d   :  { %484 = vmatmul.mubr.msk.f32.gmra.mxu0 %vm54_vm0, %v25_v31 }
  0x3e   :  { %486 = vmatprep.mubr.msk.f32.mxu0 %vm544_vm1, %v543_v0 }
  0x3f   :  { %523 = vmatmul.mubr.msk.f32.gmra.mxu1 %vm54_vm0, %v38_v32 }
  0x41   :  { %487 = vmatmul.mubr.msk.f32.gmra.mxu0 %vm54_vm0, %v26_v33 }
  0xd1   :  { %v196_v35 = vpop.f32.mrf.mxu0 }
  0xd2   :  { %v197_v36 = vadd.f32 %v758_v34, %v196_v35 }
  0xd3   :  { %v452_v37 = vpop.f32.mrf.mxu0  ;;  %v261_v38 = vpop.f32.mrf.mxu1 }
  0xd4   :  { %v320_v39 = vmax.f32 %v197_v36, 0.0  ;;  %v262_v40 = vadd.f32 %v758_v34, %v261_v38 }
  0xd5   :  { %v201_v41 = vpop.f32.mrf.mxu0  ;;  %v491_v42 = vpop.f32.mrf.mxu1 }
  0xd6   :  { %346 = vst.msk [vmem:[%s888_s3] sm:$0xff] %vm345_vm2, %v320_v39  ;;  %v333_v43 = vmax.f32 %v262_v40, 0.0  ;;  %v202_v44 = vadd.f32 %v758_v34, %v201_v41 }
  0xd7   :  { %v455_v45 = vpop.f32.mrf.mxu0  ;;  %v266_v46 = vpop.f32.mrf.mxu1 }
  0xd8   :  { %359 = vst.msk [vmem:[%s888_s3 + $0x68] sm:$0xff] %vm345_vm2, %v333_v43  ;;  %v321_v47 = vmax.f32 %v202_v44, 0.0  ;;  %v267_v48 = vadd.f32 %v758_v34, %v266_v46 }
  0xd9   :  { %v206_v49 = vpop.f32.mrf.mxu0  ;;  %v494_v50 = vpop.f32.mrf.mxu1 }
  0xda   :  { %347 = vst.msk [vmem:[%s888_s3 + $0x8] sm:$0xff] %vm345_vm2, %v321_v47  ;;  %v334_v51 = vmax.f32 %v267_v48, 0.0  ;;  %v207_v52 = vadd.f32 %v758_v34, %v206_v49 }
  0xdb   :  { %v458_v53 = vpop.f32.mrf.mxu0  ;;  %v271_v54 = vpop.f32.mrf.mxu1 }
  0xdc   :  { %360 = vst.msk [vmem:[%s888_s3 + $0x70] sm:$0xff] %vm345_vm2, %v334_v51  ;;  %v322_v55 = vmax.f32 %v207_v52, 0.0  ;;  %v272_v56 = vadd.f32 %v758_v34, %v271_v54 }
  0xdd   :  { %v211_v57 = vpop.f32.mrf.mxu0  ;;  %v497_v58 = vpop.f32.mrf.mxu1 }
  0xde   :  { %348 = vst.msk [vmem:[%s888_s3 + $0x10] sm:$0xff] %vm345_vm2, %v322_v55  ;;  %v335_v59 = vmax.f32 %v272_v56, 0.0  ;;  %v212_v60 = vadd.f32 %v758_v34, %v211_v57 }
  0xdf   :  { %v461_v61 = vpop.f32.mrf.mxu0  ;;  %v276_v62 = vpop.f32.mrf.mxu1 }
  0xe0   :  { %361 = vst.msk [vmem:[%s888_s3 + $0x78] sm:$0xff] %vm345_vm2, %v335_v59  ;;  %v323_v63 = vmax.f32 %v212_v60, 0.0  ;;  %v277_v0 = vadd.f32 %v758_v34, %v276_v62 }
  0xe1   :  { %v216_v1 = vpop.f32.mrf.mxu0  ;;  %v500_v2 = vpop.f32.mrf.mxu1 }
  0xe2   :  { %349 = vst.msk [vmem:[%s888_s3 + $0x18] sm:$0xff] %vm345_vm2, %v323_v63  ;;  %v336_v3 = vmax.f32 %v277_v0, 0.0  ;;  %v217_v4 = vadd.f32 %v758_v34, %v216_v1 }
  0xe3   :  { %v464_v5 = vpop.f32.mrf.mxu0  ;;  %v281_v6 = vpop.f32.mrf.mxu1 }
  0xe4   :  { %362 = vst.msk [vmem:[%s888_s3 + $0x80] sm:$0xff] %vm345_vm2, %v336_v3  ;;  %v324_v7 = vmax.f32 %v217_v4, 0.0  ;;  %v282_v8 = vadd.f32 %v758_v34, %v281_v6 }
  0xe5   :  { %v221_v9 = vpop.f32.mrf.mxu0  ;;  %v503_v10 = vpop.f32.mrf.mxu1 }
  0xe6   :  { %350 = vst.msk [vmem:[%s888_s3 + $0x20] sm:$0xff] %vm345_vm2, %v324_v7  ;;  %v337_v11 = vmax.f32 %v282_v8, 0.0  ;;  %v222_v12 = vadd.f32 %v758_v34, %v221_v9 }
  0xe7   :  { %v467_v13 = vpop.f32.mrf.mxu0  ;;  %v286_v14 = vpop.f32.mrf.mxu1 }
  0xe8   :  { %363 = vst.msk [vmem:[%s888_s3 + $0x88] sm:$0xff] %vm345_vm2, %v337_v11  ;;  %v325_v15 = vmax.f32 %v222_v12, 0.0  ;;  %v287_v16 = vadd.f32 %v758_v34, %v286_v14 }
  0xe9   :  { %v226_v17 = vpop.f32.mrf.mxu0  ;;  %v506_v18 = vpop.f32.mrf.mxu1 }
  0xea   :  { %351 = vst.msk [vmem:[%s888_s3 + $0x28] sm:$0xff] %vm345_vm2, %v325_v15  ;;  %v338_v19 = vmax.f32 %v287_v16, 0.0  ;;  %v227_v20 = vadd.f32 %v758_v34, %v226_v17 }
  0xeb   :  { %v470_v21 = vpop.f32.mrf.mxu0  ;;  %v291_v22 = vpop.f32.mrf.mxu1 }
  0xec   :  { %364 = vst.msk [vmem:[%s888_s3 + $0x90] sm:$0xff] %vm345_vm2, %v338_v19  ;;  %v326_v23 = vmax.f32 %v227_v20, 0.0  ;;  %v292_v24 = vadd.f32 %v758_v34, %v291_v22 }
  0xed   :  { %v231_v25 = vpop.f32.mrf.mxu0  ;;  %v509_v26 = vpop.f32.mrf.mxu1 }
  0xee   :  { %352 = vst.msk [vmem:[%s888_s3 + $0x30] sm:$0xff] %vm345_vm2, %v326_v23  ;;  %v339_v27 = vmax.f32 %v292_v24, 0.0  ;;  %v232_v28 = vadd.f32 %v758_v34, %v231_v25 }
  0xef   :  { %v473_v29 = vpop.f32.mrf.mxu0  ;;  %v296_v30 = vpop.f32.mrf.mxu1 }
  0xf0   :  { %365 = vst.msk [vmem:[%s888_s3 + $0x98] sm:$0xff] %vm345_vm2, %v339_v27  ;;  %v327_v31 = vmax.f32 %v232_v28, 0.0  ;;  %v297_v32 = vadd.f32 %v758_v34, %v296_v30 }
  0xf1   :  { %v236_v33 = vpop.f32.mrf.mxu0  ;;  %v512_v35 = vpop.f32.mrf.mxu1 }
  0xf2   :  { %353 = vst.msk [vmem:[%s888_s3 + $0x38] sm:$0xff] %vm345_vm2, %v327_v31  ;;  %v340_v36 = vmax.f32 %v297_v32, 0.0  ;;  %v237_v37 = vadd.f32 %v758_v34, %v236_v33 }
  0xf3   :  { %v476_v38 = vpop.f32.mrf.mxu0  ;;  %v301_v39 = vpop.f32.mrf.mxu1 }
  0xf4   :  { %366 = vst.msk [vmem:[%s888_s3 + $0xa0] sm:$0xff] %vm345_vm2, %v340_v36  ;;  %v328_v40 = vmax.f32 %v237_v37, 0.0  ;;  %v302_v41 = vadd.f32 %v758_v34, %v301_v39 }
  0xf5   :  { %v241_v42 = vpop.f32.mrf.mxu0  ;;  %v515_v43 = vpop.f32.mrf.mxu1 }
  0xf6   :  { %354 = vst.msk [vmem:[%s888_s3 + $0x40] sm:$0xff] %vm345_vm2, %v328_v40  ;;  %v341_v44 = vmax.f32 %v302_v41, 0.0  ;;  %v242_v45 = vadd.f32 %v758_v34, %v241_v42 }
  0xf7   :  { %v479_v46 = vpop.f32.mrf.mxu0  ;;  %v306_v47 = vpop.f32.mrf.mxu1 }
  0xf8   :  { %367 = vst.msk [vmem:[%s888_s3 + $0xa8] sm:$0xff] %vm345_vm2, %v341_v44  ;;  %v329_v48 = vmax.f32 %v242_v45, 0.0  ;;  %v307_v49 = vadd.f32 %v758_v34, %v306_v47 }
  0xf9   :  { %v246_v50 = vpop.f32.mrf.mxu0  ;;  %v518_v51 = vpop.f32.mrf.mxu1 }
  0xfa   :  { %355 = vst.msk [vmem:[%s888_s3 + $0x48] sm:$0xff] %vm345_vm2, %v329_v48  ;;  %v342_v52 = vmax.f32 %v307_v49, 0.0  ;;  %v247_v53 = vadd.f32 %v758_v34, %v246_v50 }
  0xfb   :  { %v482_v54 = vpop.f32.mrf.mxu0  ;;  %v311_v55 = vpop.f32.mrf.mxu1 }
  0xfc   :  { %368 = vst.msk [vmem:[%s888_s3 + $0xb0] sm:$0xff] %vm345_vm2, %v342_v52  ;;  %v330_v56 = vmax.f32 %v247_v53, 0.0  ;;  %v312_v57 = vadd.f32 %v758_v34, %v311_v55 }
  0xfd   :  { %v251_v58 = vpop.f32.mrf.mxu0  ;;  %v521_v59 = vpop.f32.mrf.mxu1 }
  0xfe   :  { %356 = vst.msk [vmem:[%s888_s3 + $0x50] sm:$0xff] %vm345_vm2, %v330_v56  ;;  %v343_v60 = vmax.f32 %v312_v57, 0.0  ;;  %v252_v61 = vadd.f32 %v758_v34, %v251_v58 }
  0xff   :  { %v485_v62 = vpop.f32.mrf.mxu0  ;;  %v316_v63 = vpop.f32.mrf.mxu1 }
 0x100   :  { %369 = vst.msk [vmem:[%s888_s3 + $0xb8] sm:$0xff] %vm345_vm2, %v343_v60  ;;  %v331_v0 = vmax.f32 %v252_v61, 0.0  ;;  %v317_v1 = vadd.f32 %v758_v34, %v316_v63 }
 0x101   :  { %v256_v2 = vpop.f32.mrf.mxu0  ;;  %v524_v3 = vpop.f32.mrf.mxu1 }
 0x102   :  { %357 = vst.msk [vmem:[%s888_s3 + $0x58] sm:$0xff] %vm345_vm2, %v331_v0  ;;  %v344_v4 = vmax.f32 %v317_v1, 0.0  ;;  %v257_v5 = vadd.f32 %v758_v34, %v256_v2 }
 0x103   :  { %v488_v6 = vpop.f32.mrf.mxu0 }
 0x104   :  { %370 = vst.msk [vmem:[%s888_s3 + $0xc0] sm:$0xff] %vm345_vm2, %v344_v4  ;;  %v332_v7 = vmax.f32 %v257_v5, 0.0 }
 0x106   :  { %358 = vst.msk [vmem:[%s888_s3 + $0x60] sm:$0xff] %vm345_vm2, %v332_v7 }

// kernel: dqn_forward.3
= control target key start
LH: loop header
LB: loop body
LE: loop exit
PB: predicated region body
PF: predicated region fallthrough
CT: control target
= control target key end

     0   :  { %s11491_s0 = inlined_call_operand.vmem [shape: f32[2,8192], index: 0, kind: input, shape index: {}]   ;;  %s11492_s1 = inlined_call_operand.vmem [shape: bf16[512,64], index: 1, kind: input, shape index: {}]   ;;  %s11493_s2 = inlined_call_operand.vmem [shape: f32[1,64], index: 2, kind: input, shape index: {}]   ;;  %s11494_s3 = inlined_call_operand.vmem [shape: bf16[1024,512], index: 3, kind: input, shape index: {}]   ;;  %s11495_s4 = inlined_call_operand.vmem [shape: f32[1,512], index: 4, kind: input, shape index: {}]   ;;  %s11496_s5 = inlined_call_operand.vmem [shape: bf16[512,512], index: 5, kind: input, shape index: {}]   ;;  %s11497_s6 = inlined_call_operand.vmem [shape: f32[1,512], index: 6, kind: input, shape index: {}]   ;;  %s11498_s7 = inlined_call_operand.vmem [shape: bf16[512,128], index: 7, kind: input, shape index: {}]   ;;  %s11499_s8 = inlined_call_operand.vmem [shape: f32[1,128], index: 8, kind: input, shape index: {}]   ;;  %s11500_s9 = inlined_call_operand.hbm [shape: f32[2,128], index: 9, kind: output, shape index: {}]  }
   0x1   :  { %v7255_v0 = vld [vmem:[%s11492_s1 + $0x78] sm:$0xff]   ;;  %v7254_v8 = vld [vmem:[%s11492_s1 + $0x70] sm:$0xff]   ;;  %v7253_v20 = vld [vmem:[%s11492_s1 + $0x68] sm:$0xff]  }
   0x2   :  { %v7271_v1 = vld [vmem:[%s11492_s1 + $0xf8] sm:$0xff]   ;;  %v8600_v3 = vunpack.c.h.bf16 %v7255_v0  ;;  %v8609_v7 = vunpack.c.l.bf16 %v7255_v0  ;;  %v7270_v9 = vld [vmem:[%s11492_s1 + $0xf0] sm:$0xff]   ;;  %v8633_v16 = vunpack.c.h.bf16 %v7254_v8  ;;  %v7269_v21 = vld [vmem:[%s11492_s1 + $0xe8] sm:$0xff]   ;;  %v8651_v22 = vunpack.c.l.bf16 %v7254_v8 }
   0x3   :  { %v7247_v2 = vld [vmem:[%s11492_s1 + $0x38] sm:$0xff]   ;;  %v8602_v4 = vunpack.c.h.bf16 %v7271_v1  ;;  %v8619_v11 = vunpack.c.l.bf16 %v7271_v1  ;;  %v7246_v14 = vld [vmem:[%s11492_s1 + $0x30] sm:$0xff]   ;;  %v8635_v17 = vunpack.c.h.bf16 %v7270_v9  ;;  %v8653_v23 = vunpack.c.l.bf16 %v7270_v9  ;;  %v7245_v24 = vld [vmem:[%s11492_s1 + $0x28] sm:$0xff]  }
   0x4   :  { %11594 = vst [vmem:[#allocation5_spill] sm:$0xff] %v8600_v3  ;;  %v8604_v5 = vunpack.c.h.bf16 %v7247_v2  ;;  %v7263_v6 = vld [vmem:[%s11492_s1 + $0xb8] sm:$0xff]   ;;  %v8621_v12 = vunpack.c.l.bf16 %v7247_v2  ;;  %v7262_v15 = vld [vmem:[%s11492_s1 + $0xb0] sm:$0xff]   ;;  %7303 = vmatprep.subr.mxu0 %v8600_v3  ;;  %v8639_v18 = vunpack.c.h.bf16 %v7246_v14  ;;  %v7261_v25 = vld [vmem:[%s11492_s1 + $0xa8] sm:$0xff]   ;;  %v8663_v26 = vunpack.c.l.bf16 %v7246_v14 }
   0x5   :  { %11595 = vst [vmem:[#allocation6_spill] sm:$0xff] %v8602_v4  ;;  %v8617_v10 = vunpack.c.h.bf16 %v7263_v6  ;;  %v8623_v13 = vunpack.c.l.bf16 %v7263_v6  ;;  %7338 = vmatprep.subr.mxu1 %v8602_v4  ;;  %v8641_v19 = vunpack.c.h.bf16 %v7262_v15  ;;  %v8665_v27 = vunpack.c.l.bf16 %v7262_v15  ;;  %v7252_v32 = vld [vmem:[%s11492_s1 + $0x60] sm:$0xff]  }
   0x6   :  { %7304 = vmatpush3.msra.mxu0 %v8604_v5  ;;  %v8669_v28 = vunpack.c.h.bf16 %v7253_v20  ;;  %v8671_v29 = vunpack.c.h.bf16 %v7269_v21  ;;  %v8675_v30 = vunpack.c.h.bf16 %v7245_v24  ;;  %v8677_v31 = vunpack.c.h.bf16 %v7261_v25  ;;  %v7268_v33 = vld [vmem:[%s11492_s1 + $0xe0] sm:$0xff]  }
   0x7   :  { %7339 = vmatpush3.msra.mxu1 %v8617_v10  ;;  %7305 = vmatprep.subr.mxu0 %v8609_v7  ;;  %v8687_v34 = vunpack.c.l.bf16 %v7253_v20  ;;  %v8689_v35 = vunpack.c.l.bf16 %v7269_v21  ;;  %v7244_v36 = vld [vmem:[%s11492_s1 + $0x20] sm:$0xff]   ;;  %v8699_v38 = vunpack.c.l.bf16 %v7245_v24  ;;  %v8701_v39 = vunpack.c.l.bf16 %v7261_v25 }
   0x8   :  { %7340 = vmatprep.subr.mxu1 %v8619_v11  ;;  %7306 = vmatpush3.msra.mxu0 %v8621_v12  ;;  %v7260_v37 = vld [vmem:[%s11492_s1 + $0xa0] sm:$0xff]   ;;  %v8705_v40 = vunpack.c.h.bf16 %v7252_v32  ;;  %v8707_v41 = vunpack.c.h.bf16 %v7268_v33 }
   0x9   :  { %7341 = vmatpush3.msra.mxu1 %v8623_v13  ;;  %7307 = vmatprep.subr.mxu0 %v8633_v16 }
   0xa   :  { %7342 = vmatprep.subr.mxu1 %v8635_v17  ;;  %7308 = vmatpush3.msra.mxu0 %v8639_v18 }
   0xb   :  { %7343 = vmatpush3.msra.mxu1 %v8641_v19  ;;  %7309 = vmatprep.subr.mxu0 %v8651_v22 }
   0xc   :  { %7344 = vmatprep.subr.mxu1 %v8653_v23  ;;  %7310 = vmatpush3.msra.mxu0 %v8663_v26 }
   0xd   :  { %7345 = vmatpush3.msra.mxu1 %v8665_v27  ;;  %7311 = vmatprep.subr.mxu0 %v8669_v28 }
   0xe   :  { %7346 = vmatprep.subr.mxu1 %v8671_v29 }
   0xf   :  { %14 = vsyncpa [#allocation3], 0  ;;  %7312 = vmatpush3.msra.mxu0 %v8675_v30  ;;  %7347 = vmatpush3.msra.mxu1 %v8677_v31  ;;  %v8711_v42 = vunpack.c.h.bf16 %v7244_v36  ;;  %v8713_v43 = vunpack.c.h.bf16 %v7260_v37  ;;  %v7251_v44 = vld [vmem:[%s11492_s1 + $0x58] sm:$0xff]   ;;  %v8723_v46 = vunpack.c.l.bf16 %v7252_v32  ;;  %v8725_v47 = vunpack.c.l.bf16 %v7268_v33  ;;  %v7250_v57 = vld [vmem:[%s11492_s1 + $0x50] sm:$0xff]   ;;  %s8540_s19 = smov [#allocation2]  }
  0x10   :  { %v7267_v45 = vld [vmem:[%s11492_s1 + $0xd8] sm:$0xff]   ;;  %7313 = vmatprep.subr.mxu0 %v8687_v34  ;;  %7348 = vmatprep.subr.mxu1 %v8689_v35  ;;  %v8735_v50 = vunpack.c.l.bf16 %v7244_v36  ;;  %v8737_v51 = vunpack.c.l.bf16 %v7260_v37  ;;  %v174_v52 = vlaneseq  ;;  %v8741_v53 = vunpack.c.h.bf16 %v7251_v44  ;;  %v7266_v58 = vld [vmem:[%s11492_s1 + $0xd0] sm:$0xff]   ;;  %v7249_v21 = vld [vmem:[%s11492_s1 + $0x48] sm:$0xff]   ;;  %s6943_s20 = sshll.u32 %s8540_s19, 4  ;;  %s6944_s20 = int_to_ptr.vmem [resolvable:$true] %s6943_s20 }
  0x11   :  { %v7243_v48 = vld [vmem:[%s11492_s1 + $0x18] sm:$0xff]   ;;  %7314 = vmatpush3.msra.mxu0 %v8699_v38  ;;  %7349 = vmatpush3.msra.mxu1 %v8701_v39  ;;  %v8743_v54 = vunpack.c.h.bf16 %v7267_v45  ;;  %v8538_v59 = vmov 1983009808   ;;  %v8759_v61 = vunpack.c.l.bf16 %v7251_v44  ;;  %v8761_v62 = vunpack.c.l.bf16 %v7267_v45  ;;  %v7242_v63 = vld [vmem:[%s11492_s1 + $0x10] sm:$0xff]   ;;  %v7265_v24 = vld [vmem:[%s11492_s1 + $0xc8] sm:$0xff]   ;;  %s8516_s21 = scalar_lea.vmem %s6944_s20, 32  ;;  %p8521_p1 = scmp.lt.s32.totalorder %s6944_s20, %s6944_s20 }
  0x12   :  { %v7259_v49 = vld [vmem:[%s11492_s1 + $0x98] sm:$0xff]   ;;  %7315 = vmatprep.subr.mxu0 %v8705_v40  ;;  %7350 = vmatprep.subr.mxu1 %v8707_v41  ;;  %v8747_v55 = vunpack.c.h.bf16 %v7243_v48  ;;  %v172_v60 = vunpack.c.l.s4 %v8538_v59  ;;  %v7258_v0 = vld [vmem:[%s11492_s1 + $0x90] sm:$0xff]   ;;  %v8771_v1 = vunpack.c.l.bf16 %v7243_v48  ;;  %v8775_v8 = vshrl.u32 %v174_v52, 7  ;;  %v7241_v33 = vld [vmem:[%s11492_s1 + $0x8] sm:$0xff]   ;;  %p8517_p0 = scmp.ne.s32.totalorder %s6944_s20, %s8516_s21  ;;  %p8522_p2 = scmp.lt.s32.totalorder %s8516_s21, %s8516_s21 }
  0x13   :  { %7316 = vmatpush3.msra.mxu0 %v8711_v42  ;;  %7351 = vmatpush3.msra.mxu1 %v8713_v43  ;;  %v8749_v56 = vunpack.c.h.bf16 %v7259_v49  ;;  %v8773_v2 = vunpack.c.l.bf16 %v7259_v49  ;;  %v8779_v9 = vunpack.c.h.bf16 %v7250_v57  ;;  %v8781_v14 = vunpack.c.h.bf16 %v7266_v58  ;;  %v7257_v36 = vld [vmem:[%s11492_s1 + $0x88] sm:$0xff]   ;;  %v161_v37 = vld [vmem:[%s11491_s0] sm:$0xff] }
  0x14   :  { %7317 = vmatprep.subr.mxu0 %v8723_v46  ;;  %7352 = vmatprep.subr.mxu1 %v8725_v47  ;;  %11596 = vst [vmem:[#allocation7_spill] sm:$0xff] %v8771_v1  ;;  %v173_v6 = vunpack.c.0.s8 %v172_v60  ;;  %11598 = vst [vmem:[#allocation9_spill] sm:$0xff] %v8775_v8  ;;  %v8785_v15 = vunpack.c.h.bf16 %v7242_v63  ;;  %v8787_v20 = vunpack.c.h.bf16 %v7258_v0  ;;  %v8797_v25 = vunpack.c.l.bf16 %v7250_v57  ;;  %v7248_v59 = vld [vmem:[%s11492_s1 + $0x40] sm:$0xff]   ;;  %p8523_p3 = por %p8522_p2, %p8521_p1 }
  0x15   :  { %7318 = vmatpush3.msra.mxu0 %v8735_v50  ;;  %7353 = vmatpush3.msra.mxu1 %v8737_v51  ;;  %11597 = vst [vmem:[#allocation8_spill] sm:$0xff] %v8773_v2  ;;  %11599 = vst [vmem:[#allocation10_spill] sm:$0xff] %v8779_v9  ;;  %v8799_v32 = vunpack.c.l.bf16 %v7266_v58  ;;  %v8812_v44 = vunpack.c.l.bf16 %v7242_v63  ;;  %v8814_v45 = vunpack.c.l.bf16 %v7258_v0  ;;  %v8821_v49 = vunpack.c.h.bf16 %v7249_v21  ;;  %v7264_v60 = vld [vmem:[%s11492_s1 + $0xc0] sm:$0xff]  }
  0x16   :  { %7319 = vmatprep.subr.mxu0 %v8741_v53  ;;  %7354 = vmatprep.subr.mxu1 %v8743_v54  ;;  %11600 = vst [vmem:[#allocation11_spill] sm:$0xff] %v8781_v14  ;;  %11601 = vst [vmem:[#allocation12_spill] sm:$0xff] %v8785_v15  ;;  %v8817_v48 = vsub.s32 %v173_v6, %v8775_v8  ;;  %v8823_v52 = vunpack.c.h.bf16 %v7265_v24  ;;  %v8827_v57 = vunpack.c.h.bf16 %v7241_v33  ;;  %v8829_v58 = vunpack.c.h.bf16 %v7257_v36  ;;  %v6986_v8 = vld [vmem:[%s11492_s1] sm:$0xff]   ;;  %p8524_p4 = pnand %p8523_p3, %p8517_p0 }
  0x17   :  { %7320 = vmatpush3.msra.mxu0 %v8747_v55  ;;  %7355 = vmatpush3.msra.mxu1 %v8749_v56  ;;  %11602 = vst [vmem:[#allocation13_spill] sm:$0xff] %v8787_v20  ;;  %11603 = vst [vmem:[#allocation14_spill] sm:$0xff] %v8797_v25  ;;  %v170_v63 = vcombine.high %v161_v37, %v161_v37  ;;  %v8839_v0 = vunpack.c.l.bf16 %v7249_v21  ;;  %v8841_v6 = vunpack.c.l.bf16 %v7265_v24  ;;  %v8858_v24 = vunpack.c.h.bf16 %v7248_v59 }
  0x18   :  { %7321 = vmatprep.subr.mxu0 %v8759_v61  ;;  %7356 = vmatprep.subr.mxu1 %v8761_v62  ;;  %11604 = vst [vmem:[#allocation15_spill] sm:$0xff] %v8799_v32  ;;  %11605 = vst [vmem:[#allocation16_spill] sm:$0xff] %v8812_v44  ;;  %v177_v21 = vrot.slane %v161_v37, %v8817_v48  ;;  %v8871_v37 = vunpack.c.l.bf16 %v7248_v59  ;;  %vm592_vm0 = vcmask 523264  }
  0x19   :  { %7322 = vmatpush3.msra.mxu0 %v8771_v1  ;;  %7357 = vmatpush3.msra.mxu1 %v8773_v2  ;;  %11606 = vst [vmem:[#allocation17_spill] sm:$0xff] %v8814_v45  ;;  %11607 = vst [vmem:[#allocation18_spill] sm:$0xff] %v8817_v48 }
  0x1a   :  { %7323 = vmatprep.subr.mxu0 %v8779_v9  ;;  %7358 = vmatprep.subr.mxu1 %v8781_v14  ;;  %11608 = vst [vmem:[#allocation19_spill] sm:$0xff] %v8821_v49  ;;  %11609 = vst [vmem:[#allocation20_spill] sm:$0xff] %v8823_v52 }
  0x1b   :  { %7324 = vmatpush3.msra.mxu0 %v8785_v15  ;;  %7359 = vmatpush3.msra.mxu1 %v8787_v20  ;;  %11610 = vst [vmem:[#allocation21_spill] sm:$0xff] %v8827_v57  ;;  %11611 = vst [vmem:[#allocation22_spill] sm:$0xff] %v8829_v58  ;;  %v7256_v20 = vld [vmem:[%s11492_s1 + $0x80] sm:$0xff]   ;;  %v8851_v15 = vunpack.c.l.bf16 %v7241_v33 }
  0x1c   :  { %7325 = vmatprep.subr.mxu0 %v8797_v25  ;;  %7360 = vmatprep.subr.mxu1 %v8799_v32  ;;  %11612 = vst [vmem:[#allocation23_spill] sm:$0xff] %v8839_v0  ;;  %11613 = vst [vmem:[#allocation24_spill] sm:$0xff] %v8841_v6  ;;  %v8853_v25 = vunpack.c.l.bf16 %v7257_v36  ;;  %v8860_v32 = vunpack.c.h.bf16 %v7264_v60  ;;  %v8866_v33 = vunpack.c.h.bf16 %v7256_v20  ;;  %v184_v36 = vrot.slane %v170_v63, %v8817_v48 }
  0x1d   :  { %7326 = vmatpush3.msra.mxu0 %v8812_v44  ;;  %7361 = vmatpush3.msra.mxu1 %v8814_v45  ;;  %11614 = vst [vmem:[#allocation25_spill] sm:$0xff] %v8851_v15  ;;  %11616 = vst [vmem:[#allocation27_spill] sm:$0xff] %v8858_v24  ;;  %v8864_v44 = vunpack.c.h.bf16 %v6986_v8  ;;  %v8881_v63 = vunpack.c.l.bf16 %v7256_v20 }
  0x1e   :  { %11615 = vst [vmem:[#allocation26_spill] sm:$0xff] %v8853_v25  ;;  %7327 = vmatprep.subr.mxu0 %v8821_v49  ;;  %7362 = vmatprep.subr.mxu1 %v8823_v52  ;;  %11617 = vst [vmem:[#allocation28_spill] sm:$0xff] %v8860_v32  ;;  %v8873_v52 = vunpack.c.l.bf16 %v7264_v60  ;;  %v186_v59 = vcombine.high %v184_v36, %v184_v36  ;;  %v11625_v60 = vld [vmem:[#allocation13_spill] sm:$0xff] }
  0x1f   :  { %7328 = vmatpush3.msra.mxu0 %v8827_v57  ;;  %7363 = vmatpush3.msra.mxu1 %v8829_v58  ;;  %11618 = vst [vmem:[#allocation29_spill] sm:$0xff] %v8864_v44  ;;  %11619 = vst [vmem:[#allocation30_spill] sm:$0xff] %v8866_v33  ;;  %v8877_v57 = vunpack.c.l.bf16 %v6986_v8  ;;  %v185_v58 = vcombine.high %v177_v21, %v177_v21  ;;  %v380_v8 = vld [vmem:[%s11491_s0 + $0x8] sm:$0xff] }
  0x20   :  { %7329 = vmatprep.subr.mxu0 %v8839_v0  ;;  %7364 = vmatprep.subr.mxu1 %v8841_v6  ;;  %11620 = vst [vmem:[#allocation31_spill] sm:$0xff] %v8871_v37  ;;  %11621 = vst [vmem:[#allocation32_spill] sm:$0xff] %v8873_v52  ;;  %v382_v20 = vcombine.high %v380_v8, %v380_v8 }
  0x21   :  { %7330 = vmatpush3.msra.mxu0 %v8851_v15  ;;  %7365 = vmatpush3.msra.mxu1 %v8853_v25  ;;  %11622 = vst [vmem:[#allocation33_spill] sm:$0xff] %v8877_v57  ;;  %11623 = vst [vmem:[#allocation34_spill] sm:$0xff] %v8881_v63 }
  0x22   :  { %7331 = vmatprep.subr.mxu0 %v8858_v24  ;;  %7366 = vmatprep.subr.mxu1 %v8860_v32 }
  0x23   :  { %7332 = vmatpush3.msra.mxu0 %v8864_v44  ;;  %7367 = vmatpush3.msra.mxu1 %v8866_v33 }
  0x24   :  { %7333 = vmatprep.subr.mxu0 %v8871_v37  ;;  %7368 = vmatprep.subr.mxu1 %v8873_v52 }
  0x25   :  { %7334 = vmatpush3.msra.mxu0 %v8877_v57  ;;  %255 = vmatprep.mubr.f32.mxu0 %v185_v58  ;;  %v11624_v58 = vld [vmem:[#allocation12_spill] sm:$0xff] }
  0x26   :  { %7369 = vmatpush3.msra.mxu1 %v8881_v63  ;;  %256 = vmatmul.mubr.f32.vlgmr.msra.gmra.mxu0 %v177_v21  ;;  %v11626_v21 = vld [vmem:[#allocation14_spill] sm:$0xff] }
  0x27   :  { %325 = vmatprep.mubr.f32.mxu1 %v186_v59  ;;  %7373 = vmatprep.subr.mxu0 %v8600_v3  ;;  %v11628_v59 = vld [vmem:[#allocation16_spill] sm:$0xff] }
  0x28   :  { %7408 = vmatprep.subr.mxu1 %v8602_v4  ;;  %326 = vmatmul.mubr.f32.vlgmr.msra.gmra.mxu1 %v184_v36  ;;  %v11627_v36 = vld [vmem:[#allocation15_spill] sm:$0xff] }
  0x29   :  { %7374 = vmatpush3.msra.mxu0 %v8604_v5  ;;  %7409 = vmatpush3.msra.mxu1 %v8617_v10 }
  0x2a   :  { %7375 = vmatprep.subr.mxu0 %v8609_v7  ;;  %7410 = vmatprep.subr.mxu1 %v8619_v11 }
  0x2b   :  { %7376 = vmatpush3.msra.mxu0 %v8621_v12  ;;  %7411 = vmatpush3.msra.mxu1 %v8623_v13 }
  0x2c   :  { %7377 = vmatprep.subr.mxu0 %v8633_v16  ;;  %7412 = vmatprep.subr.mxu1 %v8635_v17 }
  0x2d   :  { %7378 = vmatpush3.msra.mxu0 %v8639_v18  ;;  %7413 = vmatpush3.msra.mxu1 %v8641_v19 }
  0x2e   :  { %7379 = vmatprep.subr.mxu0 %v8651_v22  ;;  %7414 = vmatprep.subr.mxu1 %v8653_v23 }
  0x2f   :  { %7380 = vmatpush3.msra.mxu0 %v8663_v26  ;;  %7415 = vmatpush3.msra.mxu1 %v8665_v27 }
  0x30   :  { %7381 = vmatprep.subr.mxu0 %v8669_v28  ;;  %7416 = vmatprep.subr.mxu1 %v8671_v29 }
  0x31   :  { %7382 = vmatpush3.msra.mxu0 %v8675_v30  ;;  %7417 = vmatpush3.msra.mxu1 %v8677_v31 }
  0x32   :  { %7383 = vmatprep.subr.mxu0 %v8687_v34  ;;  %7418 = vmatprep.subr.mxu1 %v8689_v35 }
  0x33   :  { %7384 = vmatpush3.msra.mxu0 %v8699_v38  ;;  %7419 = vmatpush3.msra.mxu1 %v8701_v39 }
  0x34   :  { %7385 = vmatprep.subr.mxu0 %v8705_v40  ;;  %7420 = vmatprep.subr.mxu1 %v8707_v41 }
  0x35   :  { %7386 = vmatpush3.msra.mxu0 %v8711_v42  ;;  %7421 = vmatpush3.msra.mxu1 %v8713_v43 }
  0x36   :  { %7387 = vmatprep.subr.mxu0 %v8723_v46  ;;  %7422 = vmatprep.subr.mxu1 %v8725_v47 }
  0x37   :  { %7388 = vmatpush3.msra.mxu0 %v8735_v50  ;;  %7423 = vmatpush3.msra.mxu1 %v8737_v51 }
  0x38   :  { %7389 = vmatprep.subr.mxu0 %v8741_v53  ;;  %7424 = vmatprep.subr.mxu1 %v8743_v54 }
  0x39   :  { %7390 = vmatpush3.msra.mxu0 %v8747_v55  ;;  %7425 = vmatpush3.msra.mxu1 %v8749_v56 }
  0x3a   :  { %7391 = vmatprep.subr.mxu0 %v8759_v61  ;;  %7426 = vmatprep.subr.mxu1 %v8761_v62 }
  0x3b   :  { %7392 = vmatpush3.msra.mxu0 %v8771_v1  ;;  %7427 = vmatpush3.msra.mxu1 %v8773_v2  ;;  %v389_v1 = vrot.slane %v380_v8, %v8817_v48  ;;  %v11630_v2 = vld [vmem:[#allocation21_spill] sm:$0xff] }
  0x3c   :  { %7393 = vmatprep.subr.mxu0 %v8779_v9  ;;  %7428 = vmatprep.subr.mxu1 %v8781_v14  ;;  %v11629_v9 = vld [vmem:[#allocation20_spill] sm:$0xff]  ;;  %v396_v14 = vrot.slane %v382_v20, %v8817_v48  ;;  %v558_v20 = vld [vmem:[%s11494_s3 + $0xf0] sm:$0xff] }
  0x3d   :  { %7394 = vmatpush3.msra.mxu0 %v11624_v58  ;;  %7429 = vmatpush3.msra.mxu1 %v11625_v60  ;;  %v11631_v58 = vld [vmem:[#allocation22_spill] sm:$0xff] }
  0x3e   :  { %7395 = vmatprep.subr.mxu0 %v11626_v21  ;;  %7430 = vmatprep.subr.mxu1 %v11627_v36  ;;  %v398_v8 = vcombine.high %v396_v14, %v396_v14 }
  0x3f   :  { %7396 = vmatpush3.msra.mxu0 %v11628_v59  ;;  %7431 = vmatpush3.msra.mxu1 %v8814_v45  ;;  %v397_v45 = vcombine.high %v389_v1, %v389_v1 }
  0x40   :  { %7397 = vmatprep.subr.mxu0 %v8821_v49  ;;  %7432 = vmatprep.subr.mxu1 %v11629_v9 }
  0x41   :  { %7398 = vmatpush3.msra.mxu0 %v11630_v2  ;;  %7433 = vmatpush3.msra.mxu1 %v11631_v58 }
  0x42   :  { %7399 = vmatprep.subr.mxu0 %v8839_v0  ;;  %7434 = vmatprep.subr.mxu1 %v8841_v6 }
  0x43   :  { %7400 = vmatpush3.msra.mxu0 %v8851_v15  ;;  %7435 = vmatpush3.msra.mxu1 %v8853_v25 }
  0x44   :  { %7401 = vmatprep.subr.mxu0 %v8858_v24  ;;  %7436 = vmatprep.subr.mxu1 %v8860_v32 }
  0x45   :  { %7402 = vmatpush3.msra.mxu0 %v8864_v44  ;;  %7437 = vmatpush3.msra.mxu1 %v8866_v33  ;;  %v559_v33 = vld [vmem:[%s11494_s3 + $0xf8] sm:$0xff] }
  0x46   :  { %7403 = vmatprep.subr.mxu0 %v8871_v37  ;;  %7438 = vmatprep.subr.mxu1 %v8873_v52  ;;  %v556_v52 = vld [vmem:[%s11494_s3 + $0xe0] sm:$0xff]  ;;  %v588_v37 = vunpack.c.l.bf16 %v558_v20  ;;  %v591_v44 = vunpack.c.h.bf16 %v559_v33 }
  0x47   :  { %7404 = vmatpush3.msra.mxu0 %v8877_v57  ;;  %467 = vmatprep.mubr.f32.mxu0 %v397_v45  ;;  %v589_v57 = vunpack.c.h.bf16 %v558_v20  ;;  %v590_v45 = vunpack.c.l.bf16 %v559_v33  ;;  %v585_v32 = vunpack.c.h.bf16 %v556_v52 }
  0x48   :  { %7439 = vmatpush3.msra.mxu1 %v8881_v63  ;;  %537 = vmatprep.mubr.f32.mxu1 %v398_v8  ;;  %v555_v8 = vld [vmem:[%s11494_s3 + $0xd8] sm:$0xff]  ;;  %v584_v63 = vunpack.c.l.bf16 %v556_v52  ;;  %v552_v52 = vld [vmem:[%s11494_s3 + $0xc0] sm:$0xff] }
  0x49   :  { %468 = vmatmul.mubr.f32.vlgmr.msra.gmra.mxu0 %v389_v1  ;;  %538 = vmatmul.mubr.f32.vlgmr.msra.gmra.mxu1 %v396_v14  ;;  %v557_v1 = vld [vmem:[%s11494_s3 + $0xe8] sm:$0xff]  ;;  %v554_v14 = vld [vmem:[%s11494_s3 + $0xd0] sm:$0xff]  ;;  %v583_v33 = vunpack.c.h.bf16 %v555_v8  ;;  %v582_v6 = vunpack.c.l.bf16 %v555_v8 }
  0x4a   :  { %v586_v24 = vunpack.c.l.bf16 %v557_v1  ;;  %v587_v25 = vunpack.c.h.bf16 %v557_v1  ;;  %612 = vmatprep.subr.mxu0 %v589_v57  ;;  %683 = vmatprep.subr.mxu1 %v591_v44  ;;  %v581_v20 = vunpack.c.h.bf16 %v554_v14  ;;  %v580_v15 = vunpack.c.l.bf16 %v554_v14  ;;  %v553_v44 = vld [vmem:[%s11494_s3 + $0xc8] sm:$0xff]  ;;  %v548_v14 = vld [vmem:[%s11494_s3 + $0xa0] sm:$0xff] }
  0x4b   :  { %613 = vmatpush1.msra.mxu0 %v588_v37  ;;  %684 = vmatpush1.msra.mxu1 %v590_v45  ;;  %v577_v57 = vunpack.c.h.bf16 %v552_v52  ;;  %v579_v37 = vunpack.c.h.bf16 %v553_v44  ;;  %v576_v45 = vunpack.c.l.bf16 %v552_v52  ;;  %v578_v1 = vunpack.c.l.bf16 %v553_v44  ;;  %v549_v8 = vld [vmem:[%s11494_s3 + $0xa8] sm:$0xff] }
  0x4c   :  { %614 = vmatprep.subr.mxu0 %v585_v32  ;;  %685 = vmatprep.subr.mxu1 %v587_v25  ;;  %v550_v25 = vld [vmem:[%s11494_s3 + $0xb0] sm:$0xff]  ;;  %v568_v52 = vunpack.c.l.bf16 %v548_v14  ;;  %v570_v44 = vunpack.c.l.bf16 %v549_v8 }
  0x4d   :  { %615 = vmatpush1.msra.mxu0 %v584_v63  ;;  %686 = vmatpush1.msra.mxu1 %v586_v24  ;;  %v573_v32 = vunpack.c.h.bf16 %v550_v25  ;;  %v572_v24 = vunpack.c.l.bf16 %v550_v25 }
  0x4e   :  { %616 = vmatprep.subr.mxu0 %v581_v20  ;;  %687 = vmatprep.subr.mxu1 %v583_v33  ;;  %v569_v20 = vunpack.c.h.bf16 %v548_v14  ;;  %v571_v33 = vunpack.c.h.bf16 %v549_v8 }
  0x4f   :  { %617 = vmatpush1.msra.mxu0 %v580_v15  ;;  %688 = vmatpush1.msra.mxu1 %v582_v6  ;;  %v551_v15 = vld [vmem:[%s11494_s3 + $0xb8] sm:$0xff] }
  0x50   :  { %618 = vmatprep.subr.mxu0 %v577_v57  ;;  %689 = vmatprep.subr.mxu1 %v579_v37  ;;  %v575_v6 = vunpack.c.h.bf16 %v551_v15  ;;  %v574_v63 = vunpack.c.l.bf16 %v551_v15  ;;  %v546_v57 = vld [vmem:[%s11494_s3 + $0x90] sm:$0xff]  ;;  %v547_v37 = vld [vmem:[%s11494_s3 + $0x98] sm:$0xff] }
  0x51   :  { %619 = vmatpush1.msra.mxu0 %v576_v45  ;;  %690 = vmatpush1.msra.mxu1 %v578_v1  ;;  %v565_v45 = vunpack.c.h.bf16 %v546_v57  ;;  %v567_v1 = vunpack.c.h.bf16 %v547_v37  ;;  %v564_v25 = vunpack.c.l.bf16 %v546_v57  ;;  %v566_v15 = vunpack.c.l.bf16 %v547_v37 }
  0x52   :  { %620 = vmatprep.subr.mxu0 %v573_v32  ;;  %691 = vmatprep.subr.mxu1 %v575_v6  ;;  %v544_v32 = vld [vmem:[%s11494_s3 + $0x80] sm:$0xff]  ;;  %v545_v6 = vld [vmem:[%s11494_s3 + $0x88] sm:$0xff]  ;;  %v11553_v57 = vmov 0.0  }
  0x53   :  { %621 = vmatpush1.msra.mxu0 %v572_v24  ;;  %692 = vmatpush1.msra.mxu1 %v574_v63  ;;  %v561_v24 = vunpack.c.h.bf16 %v544_v32  ;;  %v563_v63 = vunpack.c.h.bf16 %v545_v6  ;;  %v560_v14 = vunpack.c.l.bf16 %v544_v32  ;;  %v562_v8 = vunpack.c.l.bf16 %v545_v6 }
  0x54   :  { %622 = vmatprep.subr.mxu0 %v569_v20  ;;  %693 = vmatprep.subr.mxu1 %v571_v33  ;;  %v346_v20 = vld [vmem:[%s11494_s3 + $0x70] sm:$0xff]  ;;  %v347_v33 = vld [vmem:[%s11494_s3 + $0x78] sm:$0xff] }
  0x55   :  { %623 = vmatpush1.msra.mxu0 %v568_v52  ;;  %694 = vmatpush1.msra.mxu1 %v570_v44  ;;  %v377_v52 = vunpack.c.h.bf16 %v346_v20  ;;  %v379_v44 = vunpack.c.h.bf16 %v347_v33  ;;  %v376_v58 = vunpack.c.l.bf16 %v346_v20  ;;  %v378_v2 = vunpack.c.l.bf16 %v347_v33  ;;  %v341_v20 = vld [vmem:[%s11494_s3 + $0x48] sm:$0xff] }
  0x56   :  { %624 = vmatprep.subr.mxu0 %v565_v45  ;;  %695 = vmatprep.subr.mxu1 %v567_v1  ;;  %v367_v36 = vunpack.c.h.bf16 %v341_v20 }
  0x57   :  { %625 = vmatpush1.msra.mxu0 %v564_v25  ;;  %696 = vmatpush1.msra.mxu1 %v566_v15 }
  0x58   :  { %626 = vmatprep.subr.mxu0 %v561_v24  ;;  %697 = vmatprep.subr.mxu1 %v563_v63 }
  0x59   :  { %627 = vmatpush1.msra.mxu0 %v560_v14  ;;  %698 = vmatpush1.msra.mxu1 %v562_v8  ;;  %v9017_v14 = vld [vmem:[%s11493_s2] ss:$0 sm:$0xff] }
  0x5a   :  { %660 = vmatprep.mubr.f32.mxu0 %v11553_v57  ;;  %731 = vmatprep.mubr.f32.mxu1 %v11553_v57 }
  0x5b   :  { %757 = vmatprep.subr.mxu0 %v377_v52  ;;  %828 = vmatprep.subr.mxu1 %v379_v44  ;;  %v344_v52 = vld [vmem:[%s11494_s3 + $0x60] sm:$0xff]  ;;  %v345_v44 = vld [vmem:[%s11494_s3 + $0x68] sm:$0xff] }
  0x5c   :  { %v372_v9 = vunpack.c.l.bf16 %v344_v52  ;;  %v374_v49 = vunpack.c.l.bf16 %v345_v44 }
  0xe6   :  { %v7335_v37 = vpop.f32.mrf.mxu0 }
  0xe8   :  { %v7370_v45 = vpop.f32.mrf.mxu1  ;;  %v7336_v1 = vpop.f32.mrf.mxu0 }
  0xe9   :  { %v7337_v21 = vadd.f32 %v7336_v1, %v7335_v37 }
  0xea   :  { %v7371_v25 = vpop.f32.mrf.mxu1 }
 0x109   :  { %v7405_v15 = vpop.f32.mrf.mxu0  ;;  %v7440_v32 = vpop.f32.mrf.mxu1 }
 0x10b   :  { %v7406_v6 = vpop.f32.mrf.mxu0  ;;  %v7441_v24 = vpop.f32.mrf.mxu1 }
 0x10c   :  { %v7407_v63 = vadd.f32 %v7406_v6, %v7405_v15  ;;  %v7442_v0 = vadd.f32 %v7441_v24, %v7440_v32  ;;  %v342_v15 = vld [vmem:[%s11494_s3 + $0x50] sm:$0xff]  ;;  %v343_v32 = vld [vmem:[%s11494_s3 + $0x58] sm:$0xff]  ;;  %v373_v24 = vunpack.c.h.bf16 %v344_v52 }
 0x10d   :  { %v369_v33 = vunpack.c.h.bf16 %v342_v15  ;;  %v370_v48 = vunpack.c.l.bf16 %v343_v32  ;;  %v338_v52 = vld [vmem:[%s11494_s3 + $0x30] sm:$0xff] }
 0x10e   :  { %v470_v8 = vadd.f32 %v7407_v63, %v9017_v14  ;;  %v375_v63 = vunpack.c.h.bf16 %v345_v44  ;;  %v339_v44 = vld [vmem:[%s11494_s3 + $0x38] sm:$0xff] }
 0x10f   :  { %v362_v37 = vunpack.c.l.bf16 %v339_v44 }
 0x110   :  { %v540_v57 = vadd.f32 %v7442_v0, %v470_v8  ;;  %v340_v0 = vld [vmem:[%s11494_s3 + $0x40] sm:$0xff]  ;;  %v371_v8 = vunpack.c.h.bf16 %v343_v32  ;;  %v361_v32 = vunpack.c.h.bf16 %v338_v52 }
 0x111   :  { %v365_v59 = vunpack.c.h.bf16 %v340_v0 }
 0x112   :  { %v543_v6 = vmax.f32 %v540_v57, 0.0  ;;  %v368_v57 = vunpack.c.l.bf16 %v342_v15  ;;  %v337_v15 = vld [vmem:[%s11494_s3 + $0x28] sm:$0xff] }
 0x114   :  { %6952 = vmatmul.mubr.msk.f32.vlgmr.msra.gmra.mxu0 %vm592_vm0, %v543_v6  ;;  %6953 = vmatmul.mubr.msk.f32.vlgmr.msra.gmra.mxu1 %vm592_vm0, %v543_v6  ;;  %v364_v6 = vunpack.c.l.bf16 %v340_v0  ;;  %v359_v0 = vunpack.c.h.bf16 %v337_v15 }
 0x115   :  { %758 = vmatpush1.msra.mxu0 %v376_v58  ;;  %829 = vmatpush1.msra.mxu1 %v378_v2  ;;  %v366_v58 = vunpack.c.l.bf16 %v341_v20  ;;  %v336_v2 = vld [vmem:[%s11494_s3 + $0x20] sm:$0xff]  ;;  %v258_v20 = vadd.f32 %v7337_v21, %v9017_v14 }
 0x116   :  { %759 = vmatprep.subr.mxu0 %v373_v24  ;;  %830 = vmatprep.subr.mxu1 %v375_v63  ;;  %v363_v24 = vunpack.c.h.bf16 %v339_v44  ;;  %v360_v63 = vunpack.c.l.bf16 %v338_v52  ;;  %v357_v1 = vunpack.c.h.bf16 %v336_v2  ;;  %v333_v52 = vld [vmem:[%s11494_s3 + $0x8] sm:$0xff] }
 0x117   :  { %760 = vmatpush1.msra.mxu0 %v372_v9  ;;  %831 = vmatpush1.msra.mxu1 %v374_v49  ;;  %v334_v9 = vld [vmem:[%s11494_s3 + $0x10] sm:$0xff]  ;;  %v335_v49 = vld [vmem:[%s11494_s3 + $0x18] sm:$0xff]  ;;  %v351_v44 = vunpack.c.h.bf16 %v333_v52 }
 0x118   :  { %761 = vmatprep.subr.mxu0 %v369_v33  ;;  %832 = vmatprep.subr.mxu1 %v371_v8  ;;  %v7372_v33 = vadd.f32 %v7371_v25, %v7370_v45  ;;  %v358_v8 = vunpack.c.l.bf16 %v337_v15  ;;  %v352_v21 = vunpack.c.l.bf16 %v334_v9  ;;  %v354_v45 = vunpack.c.l.bf16 %v335_v49 }
 0x119   :  { %762 = vmatpush1.msra.mxu0 %v368_v57  ;;  %833 = vmatpush1.msra.mxu1 %v370_v48  ;;  %v356_v48 = vunpack.c.l.bf16 %v336_v2  ;;  %v332_v57 = vld [vmem:[%s11494_s3] sm:$0xff]  ;;  %v350_v2 = vunpack.c.l.bf16 %v333_v52 }
 0x11a   :  { %763 = vmatprep.subr.mxu0 %v365_v59  ;;  %834 = vmatprep.subr.mxu1 %v367_v36  ;;  %v353_v36 = vunpack.c.h.bf16 %v334_v9  ;;  %v355_v59 = vunpack.c.h.bf16 %v335_v49  ;;  %v349_v25 = vunpack.c.h.bf16 %v332_v57  ;;  %v11635_v9 = vld [vmem:[#allocation10_spill] sm:$0xff]  ;;  %v11636_v49 = vld [vmem:[#allocation11_spill] sm:$0xff] }
 0x11b   :  { %764 = vmatpush1.msra.mxu0 %v364_v6  ;;  %835 = vmatpush1.msra.mxu1 %v366_v58  ;;  %v328_v6 = vadd.f32 %v7372_v33, %v258_v20  ;;  %v348_v58 = vunpack.c.l.bf16 %v332_v57  ;;  %v11638_v20 = vld [vmem:[#allocation14_spill] sm:$0xff]  ;;  %v11639_v33 = vld [vmem:[#allocation15_spill] sm:$0xff] }
 0x11c   :  { %765 = vmatprep.subr.mxu0 %v361_v32  ;;  %836 = vmatprep.subr.mxu1 %v363_v24  ;;  %v11632_v32 = vmov 0.0   ;;  %v883_v24 = vld [vmem:[%s11491_s0 + $0x10] sm:$0xff] }
 0x11d   :  { %766 = vmatpush1.msra.mxu0 %v360_v63  ;;  %837 = vmatpush1.msra.mxu1 %v362_v37  ;;  %v331_v15 = vmax.f32 %v328_v6, 0.0  ;;  %v11633_v63 = vld [vmem:[#allocation7_spill] sm:$0xff]  ;;  %v11634_v37 = vld [vmem:[#allocation8_spill] sm:$0xff]  ;;  %v11642_v57 = vld [vmem:[#allocation18_spill] sm:$0xff] }
 0x11e   :  { %767 = vmatprep.subr.mxu0 %v357_v1  ;;  %838 = vmatprep.subr.mxu1 %v359_v0  ;;  %v885_v1 = vcombine.high %v883_v24, %v883_v24  ;;  %v11637_v0 = vld [vmem:[#allocation12_spill] sm:$0xff]  ;;  %v892_v52 = vrot.slane %v883_v24, %v11642_v57  ;;  %v11651_v24 = vld [vmem:[#allocation27_spill] sm:$0xff] }
 0x11f   :  { %768 = vmatpush1.msra.mxu0 %v356_v48  ;;  %839 = vmatpush1.msra.mxu1 %v358_v8  ;;  %v11640_v48 = vld [vmem:[#allocation16_spill] sm:$0xff]  ;;  %v11641_v8 = vld [vmem:[#allocation17_spill] sm:$0xff] }
 0x120   :  { %769 = vmatprep.subr.mxu0 %v353_v36  ;;  %840 = vmatprep.subr.mxu1 %v355_v59  ;;  %v11643_v36 = vld [vmem:[#allocation19_spill] sm:$0xff]  ;;  %v11644_v59 = vld [vmem:[#allocation20_spill] sm:$0xff] }
 0x121   :  { %770 = vmatpush1.msra.mxu0 %v352_v21  ;;  %841 = vmatpush1.msra.mxu1 %v354_v45  ;;  %v899_v21 = vrot.slane %v885_v1, %v11642_v57  ;;  %v11645_v45 = vld [vmem:[#allocation21_spill] sm:$0xff]  ;;  %v11648_v6 = vld [vmem:[#allocation24_spill] sm:$0xff]  ;;  %v11654_v1 = vld [vmem:[#allocation30_spill] sm:$0xff] }
 0x122   :  { %771 = vmatprep.subr.mxu0 %v349_v25  ;;  %842 = vmatprep.subr.mxu1 %v351_v44  ;;  %v11646_v25 = vld [vmem:[#allocation22_spill] sm:$0xff]  ;;  %v11647_v44 = vld [vmem:[#allocation23_spill] sm:$0xff] }
 0x123   :  { %772 = vmatpush1.msra.mxu0 %v348_v58  ;;  %805 = vmatprep.mubr.f32.mxu0 %v11632_v32  ;;  %v11649_v58 = vld [vmem:[#allocation25_spill] sm:$0xff] }
 0x124   :  { %843 = vmatpush1.msra.mxu1 %v350_v2  ;;  %876 = vmatprep.mubr.f32.mxu1 %v11632_v32  ;;  %v11650_v2 = vld [vmem:[#allocation26_spill] sm:$0xff] }
 0x125   :  { %6954 = vmatmul.mubr.msk.f32.vlgmr.msra.gmra.mxu0 %vm592_vm0, %v331_v15  ;;  %6955 = vmatmul.mubr.msk.f32.vlgmr.msra.gmra.mxu1 %vm592_vm0, %v331_v15  ;;  %v900_v15 = vcombine.high %v892_v52, %v892_v52 }
 0x126   :  { %7443 = vmatprep.subr.mxu0 %v8600_v3  ;;  %7478 = vmatprep.subr.mxu1 %v8602_v4 }
 0x127   :  { %7444 = vmatpush3.msra.mxu0 %v8604_v5  ;;  %7479 = vmatpush3.msra.mxu1 %v8617_v10 }
 0x128   :  { %7445 = vmatprep.subr.mxu0 %v8609_v7  ;;  %7480 = vmatprep.subr.mxu1 %v8619_v11 }
 0x129   :  { %7446 = vmatpush3.msra.mxu0 %v8621_v12  ;;  %7481 = vmatpush3.msra.mxu1 %v8623_v13 }
 0x12a   :  { %7447 = vmatprep.subr.mxu0 %v8633_v16  ;;  %7482 = vmatprep.subr.mxu1 %v8635_v17 }
 0x12b   :  { %7448 = vmatpush3.msra.mxu0 %v8639_v18  ;;  %7483 = vmatpush3.msra.mxu1 %v8641_v19 }
 0x12c   :  { %7449 = vmatprep.subr.mxu0 %v8651_v22  ;;  %7484 = vmatprep.subr.mxu1 %v8653_v23 }
 0x12d   :  { %7450 = vmatpush3.msra.mxu0 %v8663_v26  ;;  %7485 = vmatpush3.msra.mxu1 %v8665_v27 }
 0x12e   :  { %7451 = vmatprep.subr.mxu0 %v8669_v28  ;;  %7486 = vmatprep.subr.mxu1 %v8671_v29 }
 0x12f   :  { %7452 = vmatpush3.msra.mxu0 %v8675_v30  ;;  %7487 = vmatpush3.msra.mxu1 %v8677_v31 }
 0x130   :  { %7453 = vmatprep.subr.mxu0 %v8687_v34  ;;  %7488 = vmatprep.subr.mxu1 %v8689_v35 }
 0x131   :  { %7454 = vmatpush3.msra.mxu0 %v8699_v38  ;;  %7489 = vmatpush3.msra.mxu1 %v8701_v39 }
 0x132   :  { %7455 = vmatprep.subr.mxu0 %v8705_v40  ;;  %7490 = vmatprep.subr.mxu1 %v8707_v41 }
 0x133   :  { %7456 = vmatpush3.msra.mxu0 %v8711_v42  ;;  %7491 = vmatpush3.msra.mxu1 %v8713_v43 }
 0x134   :  { %7457 = vmatprep.subr.mxu0 %v8723_v46  ;;  %7492 = vmatprep.subr.mxu1 %v8725_v47 }
 0x135   :  { %7458 = vmatpush3.msra.mxu0 %v8735_v50  ;;  %7493 = vmatpush3.msra.mxu1 %v8737_v51 }
 0x136   :  { %7459 = vmatprep.subr.mxu0 %v8741_v53  ;;  %7494 = vmatprep.subr.mxu1 %v8743_v54 }
 0x137   :  { %7460 = vmatpush3.msra.mxu0 %v8747_v55  ;;  %7495 = vmatpush3.msra.mxu1 %v8749_v56 }
 0x138   :  { %7461 = vmatprep.subr.mxu0 %v8759_v61  ;;  %7496 = vmatprep.subr.mxu1 %v8761_v62 }
 0x139   :  { %7462 = vmatpush3.msra.mxu0 %v11633_v63  ;;  %7497 = vmatpush3.msra.mxu1 %v11634_v37 }
 0x13a   :  { %7463 = vmatprep.subr.mxu0 %v11635_v9  ;;  %7498 = vmatprep.subr.mxu1 %v11636_v49 }
 0x13b   :  { %7464 = vmatpush3.msra.mxu0 %v11637_v0  ;;  %7499 = vmatpush3.msra.mxu1 %v11625_v60 }
 0x13c   :  { %7465 = vmatprep.subr.mxu0 %v11638_v20  ;;  %7500 = vmatprep.subr.mxu1 %v11639_v33 }
 0x13d   :  { %7466 = vmatpush3.msra.mxu0 %v11640_v48  ;;  %7501 = vmatpush3.msra.mxu1 %v11641_v8  ;;  %v11653_v8 = vld [vmem:[#allocation29_spill] sm:$0xff] }
 0x13e   :  { %7467 = vmatprep.subr.mxu0 %v11643_v36  ;;  %7502 = vmatprep.subr.mxu1 %v11644_v59  ;;  %v11652_v36 = vld [vmem:[#allocation28_spill] sm:$0xff]  ;;  %v901_v59 = vcombine.high %v899_v21, %v899_v21 }
 0x13f   :  { %7468 = vmatpush3.msra.mxu0 %v11645_v45  ;;  %7503 = vmatpush3.msra.mxu1 %v11646_v25  ;;  %v11655_v45 = vld [vmem:[#allocation31_spill] sm:$0xff]  ;;  %v11656_v25 = vld [vmem:[#allocation32_spill] sm:$0xff] }
 0x140   :  { %7469 = vmatprep.subr.mxu0 %v11647_v44  ;;  %7504 = vmatprep.subr.mxu1 %v11648_v6  ;;  %v11657_v44 = vld [vmem:[#allocation33_spill] sm:$0xff] }
 0x141   :  { %7470 = vmatpush3.msra.mxu0 %v11649_v58  ;;  %7505 = vmatpush3.msra.mxu1 %v11650_v2  ;;  %v11658_v58 = vld [vmem:[#allocation34_spill] sm:$0xff] }
 0x142   :  { %7471 = vmatprep.subr.mxu0 %v11651_v24  ;;  %7506 = vmatprep.subr.mxu1 %v11652_v36 }
 0x143   :  { %7472 = vmatpush3.msra.mxu0 %v11653_v8  ;;  %7507 = vmatpush3.msra.mxu1 %v11654_v1  ;;  %v1061_v1 = vld [vmem:[%s11494_s3 + $0x170] sm:$0xff] }
 0x144   :  { %7473 = vmatprep.subr.mxu0 %v11655_v45  ;;  %7508 = vmatprep.subr.mxu1 %v11656_v25  ;;  %v1062_v25 = vld [vmem:[%s11494_s3 + $0x178] sm:$0xff] }
 0x145   :  { %7474 = vmatpush3.msra.mxu0 %v11657_v44  ;;  %970 = vmatprep.mubr.f32.mxu0 %v900_v15  ;;  %v1059_v15 = vld [vmem:[%s11494_s3 + $0x160] sm:$0xff]  ;;  %v1057_v44 = vld [vmem:[%s11494_s3 + $0x150] sm:$0xff]  ;;  %v1058_v45 = vld [vmem:[%s11494_s3 + $0x158] sm:$0xff] }
 0x146   :  { %7509 = vmatpush3.msra.mxu1 %v11658_v58  ;;  %1040 = vmatprep.mubr.f32.mxu1 %v901_v59  ;;  %v1091_v58 = vunpack.c.l.bf16 %v1061_v1  ;;  %v1092_v59 = vunpack.c.h.bf16 %v1061_v1  ;;  %v1087_v8 = vunpack.c.l.bf16 %v1059_v15  ;;  %v1088_v36 = vunpack.c.h.bf16 %v1059_v15  ;;  %v1056_v15 = vld [vmem:[%s11494_s3 + $0x148] sm:$0xff] }
 0x147   :  { %971 = vmatmul.mubr.f32.vlgmr.msra.gmra.mxu0 %v892_v52  ;;  %1041 = vmatmul.mubr.f32.vlgmr.msra.gmra.mxu1 %v899_v21  ;;  %v1093_v52 = vunpack.c.l.bf16 %v1062_v25  ;;  %v1094_v21 = vunpack.c.h.bf16 %v1062_v25  ;;  %v1084_v1 = vunpack.c.h.bf16 %v1057_v44  ;;  %v1086_v25 = vunpack.c.h.bf16 %v1058_v45 }
 0x148   :  { %1162 = vmatprep.mubr.f32.mxu0 %v11632_v32  ;;  %1233 = vmatprep.mubr.f32.mxu1 %v11632_v32  ;;  %v1060_v32 = vld [vmem:[%s11494_s3 + $0x168] sm:$0xff]  ;;  %v1083_v6 = vunpack.c.l.bf16 %v1057_v44  ;;  %v1085_v57 = vunpack.c.l.bf16 %v1058_v45  ;;  %v1081_v45 = vunpack.c.l.bf16 %v1056_v15 }
 0x149   :  { %v1089_v24 = vunpack.c.l.bf16 %v1060_v32  ;;  %v1090_v2 = vunpack.c.h.bf16 %v1060_v32  ;;  %1114 = vmatprep.subr.mxu0 %v1092_v59  ;;  %1185 = vmatprep.subr.mxu1 %v1094_v21  ;;  %v1055_v32 = vld [vmem:[%s11494_s3 + $0x140] sm:$0xff]  ;;  %v1082_v59 = vunpack.c.h.bf16 %v1056_v15  ;;  %v1052_v21 = vld [vmem:[%s11494_s3 + $0x128] sm:$0xff] }
 0x14a   :  { %1115 = vmatpush1.msra.mxu0 %v1091_v58  ;;  %1186 = vmatpush1.msra.mxu1 %v1093_v52  ;;  %v1080_v58 = vunpack.c.h.bf16 %v1055_v32  ;;  %v1079_v44 = vunpack.c.l.bf16 %v1055_v32  ;;  %v1051_v52 = vld [vmem:[%s11494_s3 + $0x120] sm:$0xff]  ;;  %v1073_v15 = vunpack.c.l.bf16 %v1052_v21 }
 0x14b   :  { %1116 = vmatprep.subr.mxu0 %v1088_v36  ;;  %1187 = vmatprep.subr.mxu1 %v1090_v2  ;;  %v1071_v32 = vunpack.c.l.bf16 %v1051_v52 }
 0x14c   :  { %1117 = vmatpush1.msra.mxu0 %v1087_v8  ;;  %1188 = vmatpush1.msra.mxu1 %v1089_v24  ;;  %v1053_v8 = vld [vmem:[%s11494_s3 + $0x130] sm:$0xff] }
 0x14d   :  { %1118 = vmatprep.subr.mxu0 %v1084_v1  ;;  %1189 = vmatprep.subr.mxu1 %v1086_v25  ;;  %v1076_v36 = vunpack.c.h.bf16 %v1053_v8  ;;  %v1075_v2 = vunpack.c.l.bf16 %v1053_v8  ;;  %v1072_v1 = vunpack.c.h.bf16 %v1051_v52  ;;  %v1074_v25 = vunpack.c.h.bf16 %v1052_v21 }
 0x14e   :  { %1119 = vmatpush1.msra.mxu0 %v1083_v6  ;;  %1190 = vmatpush1.msra.mxu1 %v1085_v57  ;;  %v1054_v57 = vld [vmem:[%s11494_s3 + $0x138] sm:$0xff] }
 0x14f   :  { %1120 = vmatprep.subr.mxu0 %v1080_v58  ;;  %1191 = vmatprep.subr.mxu1 %v1082_v59  ;;  %v1078_v6 = vunpack.c.h.bf16 %v1054_v57  ;;  %v1077_v24 = vunpack.c.l.bf16 %v1054_v57  ;;  %v1049_v58 = vld [vmem:[%s11494_s3 + $0x110] sm:$0xff]  ;;  %v1050_v59 = vld [vmem:[%s11494_s3 + $0x118] sm:$0xff] }
 0x150   :  { %1121 = vmatpush1.msra.mxu0 %v1079_v44  ;;  %1192 = vmatpush1.msra.mxu1 %v1081_v45  ;;  %v1068_v44 = vunpack.c.h.bf16 %v1049_v58  ;;  %v1070_v45 = vunpack.c.h.bf16 %v1050_v59  ;;  %v1067_v8 = vunpack.c.l.bf16 %v1049_v58  ;;  %v1069_v57 = vunpack.c.l.bf16 %v1050_v59 }
 0x151   :  { %1122 = vmatprep.subr.mxu0 %v1076_v36  ;;  %1193 = vmatprep.subr.mxu1 %v1078_v6  ;;  %v1047_v36 = vld [vmem:[%s11494_s3 + $0x100] sm:$0xff]  ;;  %v1048_v6 = vld [vmem:[%s11494_s3 + $0x108] sm:$0xff] }
 0x152   :  { %1123 = vmatpush1.msra.mxu0 %v1075_v2  ;;  %1194 = vmatpush1.msra.mxu1 %v1077_v24  ;;  %v1064_v2 = vunpack.c.h.bf16 %v1047_v36  ;;  %v1066_v24 = vunpack.c.h.bf16 %v1048_v6  ;;  %v1063_v52 = vunpack.c.l.bf16 %v1047_v36  ;;  %v1065_v21 = vunpack.c.l.bf16 %v1048_v6 }
 0x153   :  { %1124 = vmatprep.subr.mxu0 %v1072_v1  ;;  %1195 = vmatprep.subr.mxu1 %v1074_v25 }
 0x154   :  { %1125 = vmatpush1.msra.mxu0 %v1071_v32  ;;  %1196 = vmatpush1.msra.mxu1 %v1073_v15 }
 0x155   :  { %1126 = vmatprep.subr.mxu0 %v1068_v44  ;;  %1197 = vmatprep.subr.mxu1 %v1070_v45 }
 0x156   :  { %1127 = vmatpush1.msra.mxu0 %v1067_v8  ;;  %1198 = vmatpush1.msra.mxu1 %v1069_v57 }
 0x157   :  { %1128 = vmatprep.subr.mxu0 %v1064_v2  ;;  %1199 = vmatprep.subr.mxu1 %v1066_v24 }
 0x158   :  { %1129 = vmatpush1.msra.mxu0 %v1063_v52  ;;  %1200 = vmatpush1.msra.mxu1 %v1065_v21 }
 0x159   :  { %7513 = vmatprep.subr.mxu0 %v8600_v3  ;;  %7548 = vmatprep.subr.mxu1 %v8602_v4 }
 0x1d4   :  { %v662_v1 = vpop.f32.mrf.mxu0  ;;  %v733_v25 = vpop.f32.mrf.mxu1 }
 0x1d6   :  { %v664_v32 = vpop.f32.mrf.mxu0  ;;  %v735_v15 = vpop.f32.mrf.mxu1 }
 0x1e5   :  { %v807_v58 = vpop.f32.mrf.mxu0  ;;  %v878_v59 = vpop.f32.mrf.mxu1 }
 0x1e6   :  { %v9190_v44 = vadd.f32 %v807_v58, %v662_v1  ;;  %v9192_v45 = vadd.f32 %v878_v59, %v733_v25  ;;  %v11662_v1 = vld [vmem:[#allocation17_spill] sm:$0xff]  ;;  %v11663_v25 = vld [vmem:[#allocation18_spill] sm:$0xff]  ;;  %v11665_v58 = vld [vmem:[#allocation20_spill] sm:$0xff] }
 0x1e7   :  { %v809_v8 = vpop.f32.mrf.mxu0  ;;  %v880_v57 = vpop.f32.mrf.mxu1 }
 0x1e8   :  { %v9194_v36 = vadd.f32 %v809_v8, %v664_v32  ;;  %v9196_v6 = vadd.f32 %v880_v57, %v735_v15  ;;  %v11664_v15 = vld [vmem:[#allocation19_spill] sm:$0xff]  ;;  %v11666_v8 = vld [vmem:[#allocation21_spill] sm:$0xff]  ;;  %v11667_v57 = vld [vmem:[#allocation22_spill] sm:$0xff] }
 0x207   :  { %v7475_v2 = vpop.f32.mrf.mxu0  ;;  %v7510_v24 = vpop.f32.mrf.mxu1 }
 0x209   :  { %v7476_v52 = vpop.f32.mrf.mxu0  ;;  %v7511_v21 = vpop.f32.mrf.mxu1 }
 0x20a   :  { %v7477_v4 = vadd.f32 %v7476_v52, %v7475_v2  ;;  %v7512_v48 = vadd.f32 %v7511_v21, %v7510_v24  ;;  %v11668_v2 = vld [vmem:[#allocation23_spill] sm:$0xff]  ;;  %v11669_v24 = vld [vmem:[#allocation24_spill] sm:$0xff]  ;;  %v11670_v52 = vld [vmem:[#allocation25_spill] sm:$0xff] }
 0x20b   :  { %v11671_v21 = vld [vmem:[#allocation26_spill] sm:$0xff] }
 0x20c   :  { %v973_v3 = vadd.f32 %v7477_v4, %v9017_v14 }
 0x20e   :  { %v1043_v33 = vadd.f32 %v7512_v48, %v973_v3  ;;  %v1244_v3 = vld [vmem:[%s11491_s0 + $0x18] sm:$0xff] }
 0x20f   :  { %v1246_v4 = vcombine.high %v1244_v3, %v1244_v3  ;;  %v11661_v48 = vld [vmem:[#allocation16_spill] sm:$0xff]  ;;  %v1253_v32 = vrot.slane %v1244_v3, %v11663_v25  ;;  %v11672_v3 = vld [vmem:[#allocation27_spill] sm:$0xff] }
 0x210   :  { %v1046_v20 = vmax.f32 %v1043_v33, 0.0  ;;  %v11660_v33 = vld [vmem:[#allocation15_spill] sm:$0xff] }
 0x211   :  { %v1260_v59 = vrot.slane %v1246_v4, %v11663_v25  ;;  %v11675_v4 = vld [vmem:[#allocation30_spill] sm:$0xff] }
 0x212   :  { %6956 = vmatmul.mubr.msk.f32.vlgmr.msra.gmra.mxu0 %vm592_vm0, %v1046_v20  ;;  %6957 = vmatmul.mubr.msk.f32.vlgmr.msra.gmra.mxu1 %vm592_vm0, %v1046_v20  ;;  %v11659_v20 = vld [vmem:[#allocation14_spill] sm:$0xff] }
 0x213   :  { %7514 = vmatpush3.msra.mxu0 %v8604_v5  ;;  %7549 = vmatpush3.msra.mxu1 %v8617_v10 }
 0x214   :  { %7515 = vmatprep.subr.mxu0 %v8609_v7  ;;  %7550 = vmatprep.subr.mxu1 %v8619_v11 }
 0x215   :  { %7516 = vmatpush3.msra.mxu0 %v8621_v12  ;;  %7551 = vmatpush3.msra.mxu1 %v8623_v13 }
 0x216   :  { %7517 = vmatprep.subr.mxu0 %v8633_v16  ;;  %7552 = vmatprep.subr.mxu1 %v8635_v17 }
 0x217   :  { %7518 = vmatpush3.msra.mxu0 %v8639_v18  ;;  %7553 = vmatpush3.msra.mxu1 %v8641_v19 }
 0x218   :  { %7519 = vmatprep.subr.mxu0 %v8651_v22  ;;  %7554 = vmatprep.subr.mxu1 %v8653_v23 }
 0x219   :  { %7520 = vmatpush3.msra.mxu0 %v8663_v26  ;;  %7555 = vmatpush3.msra.mxu1 %v8665_v27 }
 0x21a   :  { %7521 = vmatprep.subr.mxu0 %v8669_v28  ;;  %7556 = vmatprep.subr.mxu1 %v8671_v29 }
 0x21b   :  { %7522 = vmatpush3.msra.mxu0 %v8675_v30  ;;  %7557 = vmatpush3.msra.mxu1 %v8677_v31 }
 0x21c   :  { %7523 = vmatprep.subr.mxu0 %v8687_v34  ;;  %7558 = vmatprep.subr.mxu1 %v8689_v35 }
 0x21d   :  { %7524 = vmatpush3.msra.mxu0 %v8699_v38  ;;  %7559 = vmatpush3.msra.mxu1 %v8701_v39 }
 0x21e   :  { %7525 = vmatprep.subr.mxu0 %v8705_v40  ;;  %7560 = vmatprep.subr.mxu1 %v8707_v41 }
 0x21f   :  { %7526 = vmatpush3.msra.mxu0 %v8711_v42  ;;  %7561 = vmatpush3.msra.mxu1 %v8713_v43 }
 0x220   :  { %7527 = vmatprep.subr.mxu0 %v8723_v46  ;;  %7562 = vmatprep.subr.mxu1 %v8725_v47 }
 0x221   :  { %7528 = vmatpush3.msra.mxu0 %v8735_v50  ;;  %7563 = vmatpush3.msra.mxu1 %v8737_v51 }
 0x222   :  { %7529 = vmatprep.subr.mxu0 %v8741_v53  ;;  %7564 = vmatprep.subr.mxu1 %v8743_v54 }
 0x223   :  { %7530 = vmatpush3.msra.mxu0 %v8747_v55  ;;  %7565 = vmatpush3.msra.mxu1 %v8749_v56 }
 0x224   :  { %7531 = vmatprep.subr.mxu0 %v8759_v61  ;;  %7566 = vmatprep.subr.mxu1 %v8761_v62 }
 0x225   :  { %7532 = vmatpush3.msra.mxu0 %v11633_v63  ;;  %7567 = vmatpush3.msra.mxu1 %v11634_v37 }
 0x226   :  { %7533 = vmatprep.subr.mxu0 %v11635_v9  ;;  %7568 = vmatprep.subr.mxu1 %v11636_v49 }
 0x227   :  { %7534 = vmatpush3.msra.mxu0 %v11637_v0  ;;  %7569 = vmatpush3.msra.mxu1 %v11625_v60 }
 0x228   :  { %7535 = vmatprep.subr.mxu0 %v11659_v20  ;;  %7570 = vmatprep.subr.mxu1 %v11660_v33 }
 0x229   :  { %7536 = vmatpush3.msra.mxu0 %v11661_v48  ;;  %7571 = vmatpush3.msra.mxu1 %v11662_v1  ;;  %v1261_v1 = vcombine.high %v1253_v32, %v1253_v32  ;;  %v11674_v48 = vld [vmem:[#allocation29_spill] sm:$0xff] }
 0x22a   :  { %7537 = vmatprep.subr.mxu0 %v11664_v15  ;;  %7572 = vmatprep.subr.mxu1 %v11665_v58  ;;  %v11673_v15 = vld [vmem:[#allocation28_spill] sm:$0xff]  ;;  %v1262_v58 = vcombine.high %v1260_v59, %v1260_v59 }
 0x22b   :  { %7538 = vmatpush3.msra.mxu0 %v11666_v8  ;;  %7573 = vmatpush3.msra.mxu1 %v11667_v57  ;;  %v11676_v8 = vld [vmem:[#allocation31_spill] sm:$0xff]  ;;  %v11677_v57 = vld [vmem:[#allocation32_spill] sm:$0xff] }
 0x22c   :  { %7539 = vmatprep.subr.mxu0 %v11668_v2  ;;  %7574 = vmatprep.subr.mxu1 %v11669_v24  ;;  %v11678_v2 = vld [vmem:[#allocation33_spill] sm:$0xff] }
 0x22d   :  { %7540 = vmatpush3.msra.mxu0 %v11670_v52  ;;  %7575 = vmatpush3.msra.mxu1 %v11671_v21  ;;  %v11679_v52 = vld [vmem:[#allocation34_spill] sm:$0xff] }
 0x22e   :  { %7541 = vmatprep.subr.mxu0 %v11672_v3  ;;  %7576 = vmatprep.subr.mxu1 %v11673_v15  ;;  %v11680_v3 = vmov 0.0  }
 0x22f   :  { %7542 = vmatpush3.msra.mxu0 %v11674_v48  ;;  %7577 = vmatpush3.msra.mxu1 %v11675_v4  ;;  %v1422_v4 = vld [vmem:[%s11494_s3 + $0x1f0] sm:$0xff] }
 0x230   :  { %7543 = vmatprep.subr.mxu0 %v11676_v8  ;;  %7578 = vmatprep.subr.mxu1 %v11677_v57  ;;  %v1423_v57 = vld [vmem:[%s11494_s3 + $0x1f8] sm:$0xff] }
 0x231   :  { %7544 = vmatpush3.msra.mxu0 %v11678_v2  ;;  %1331 = vmatprep.mubr.f32.mxu0 %v1261_v1  ;;  %v1420_v1 = vld [vmem:[%s11494_s3 + $0x1e0] sm:$0xff]  ;;  %v1418_v2 = vld [vmem:[%s11494_s3 + $0x1d0] sm:$0xff]  ;;  %v1419_v8 = vld [vmem:[%s11494_s3 + $0x1d8] sm:$0xff] }
 0x232   :  { %7579 = vmatpush3.msra.mxu1 %v11679_v52  ;;  %1401 = vmatprep.mubr.f32.mxu1 %v1262_v58  ;;  %v1452_v52 = vunpack.c.l.bf16 %v1422_v4  ;;  %v1453_v58 = vunpack.c.h.bf16 %v1422_v4  ;;  %v1448_v48 = vunpack.c.l.bf16 %v1420_v1  ;;  %v1449_v15 = vunpack.c.h.bf16 %v1420_v1  ;;  %v1417_v1 = vld [vmem:[%s11494_s3 + $0x1c8] sm:$0xff] }
 0x233   :  { %1332 = vmatmul.mubr.f32.vlgmr.msra.gmra.mxu0 %v1253_v32  ;;  %1402 = vmatmul.mubr.f32.vlgmr.msra.gmra.mxu1 %v1260_v59  ;;  %v1454_v32 = vunpack.c.l.bf16 %v1423_v57  ;;  %v1455_v59 = vunpack.c.h.bf16 %v1423_v57  ;;  %v1445_v4 = vunpack.c.h.bf16 %v1418_v2  ;;  %v1447_v57 = vunpack.c.h.bf16 %v1419_v8 }
 0x234   :  { %1523 = vmatprep.mubr.f32.mxu0 %v11680_v3  ;;  %1594 = vmatprep.mubr.f32.mxu1 %v11680_v3  ;;  %v1421_v3 = vld [vmem:[%s11494_s3 + $0x1e8] sm:$0xff]  ;;  %v1444_v25 = vunpack.c.l.bf16 %v1418_v2  ;;  %v1446_v33 = vunpack.c.l.bf16 %v1419_v8  ;;  %v1442_v8 = vunpack.c.l.bf16 %v1417_v1 }
 0x235   :  { %v1450_v21 = vunpack.c.l.bf16 %v1421_v3  ;;  %v1451_v24 = vunpack.c.h.bf16 %v1421_v3  ;;  %1475 = vmatprep.subr.mxu0 %v1453_v58  ;;  %1546 = vmatprep.subr.mxu1 %v1455_v59  ;;  %v1416_v3 = vld [vmem:[%s11494_s3 + $0x1c0] sm:$0xff]  ;;  %v1443_v58 = vunpack.c.h.bf16 %v1417_v1  ;;  %v1413_v59 = vld [vmem:[%s11494_s3 + $0x1a8] sm:$0xff] }
 0x236   :  { %1476 = vmatpush1.msra.mxu0 %v1452_v52  ;;  %1547 = vmatpush1.msra.mxu1 %v1454_v32  ;;  %v1441_v52 = vunpack.c.h.bf16 %v1416_v3  ;;  %v1440_v2 = vunpack.c.l.bf16 %v1416_v3  ;;  %v1412_v32 = vld [vmem:[%s11494_s3 + $0x1a0] sm:$0xff]  ;;  %v1434_v1 = vunpack.c.l.bf16 %v1413_v59 }
 0x237   :  { %1477 = vmatprep.subr.mxu0 %v1449_v15  ;;  %1548 = vmatprep.subr.mxu1 %v1451_v24  ;;  %v1432_v3 = vunpack.c.l.bf16 %v1412_v32 }
 0x238   :  { %1478 = vmatpush1.msra.mxu0 %v1448_v48  ;;  %1549 = vmatpush1.msra.mxu1 %v1450_v21  ;;  %v1414_v48 = vld [vmem:[%s11494_s3 + $0x1b0] sm:$0xff] }
 0x239   :  { %1479 = vmatprep.subr.mxu0 %v1445_v4  ;;  %1550 = vmatprep.subr.mxu1 %v1447_v57  ;;  %v1436_v24 = vunpack.c.l.bf16 %v1414_v48  ;;  %v1433_v4 = vunpack.c.h.bf16 %v1412_v32  ;;  %v1435_v57 = vunpack.c.h.bf16 %v1413_v59 }
 0x23a   :  { %1480 = vmatpush1.msra.mxu0 %v1444_v25  ;;  %1551 = vmatpush1.msra.mxu1 %v1446_v33  ;;  %v1415_v33 = vld [vmem:[%s11494_s3 + $0x1b8] sm:$0xff]  ;;  %v1437_v25 = vunpack.c.h.bf16 %v1414_v48 }
 0x23b   :  { %1481 = vmatprep.subr.mxu0 %v1441_v52  ;;  %1552 = vmatprep.subr.mxu1 %v1443_v58  ;;  %v1439_v15 = vunpack.c.h.bf16 %v1415_v33  ;;  %v1438_v21 = vunpack.c.l.bf16 %v1415_v33  ;;  %v1410_v52 = vld [vmem:[%s11494_s3 + $0x190] sm:$0xff]  ;;  %v1411_v58 = vld [vmem:[%s11494_s3 + $0x198] sm:$0xff] }
 0x23c   :  { %1482 = vmatpush1.msra.mxu0 %v1440_v2  ;;  %1553 = vmatpush1.msra.mxu1 %v1442_v8  ;;  %v1429_v2 = vunpack.c.h.bf16 %v1410_v52  ;;  %v1431_v8 = vunpack.c.h.bf16 %v1411_v58  ;;  %v1428_v48 = vunpack.c.l.bf16 %v1410_v52  ;;  %v1430_v33 = vunpack.c.l.bf16 %v1411_v58 }
 0x23d   :  { %1483 = vmatprep.subr.mxu0 %v1437_v25  ;;  %1554 = vmatprep.subr.mxu1 %v1439_v15  ;;  %v1408_v25 = vld [vmem:[%s11494_s3 + $0x180] sm:$0xff]  ;;  %v1409_v15 = vld [vmem:[%s11494_s3 + $0x188] sm:$0xff] }
 0x23e   :  { %1484 = vmatpush1.msra.mxu0 %v1436_v24  ;;  %1555 = vmatpush1.msra.mxu1 %v1438_v21  ;;  %v1425_v24 = vunpack.c.h.bf16 %v1408_v25  ;;  %v1427_v21 = vunpack.c.h.bf16 %v1409_v15  ;;  %v1424_v32 = vunpack.c.l.bf16 %v1408_v25  ;;  %v1426_v59 = vunpack.c.l.bf16 %v1409_v15 }
 0x23f   :  { %1485 = vmatprep.subr.mxu0 %v1433_v4  ;;  %1556 = vmatprep.subr.mxu1 %v1435_v57  ;;  %v11681_v4 = vld [vmem:[#allocation5_spill] sm:$0xff]  ;;  %v11682_v57 = vld [vmem:[#allocation6_spill] sm:$0xff] }
 0x240   :  { %1486 = vmatpush1.msra.mxu0 %v1432_v3  ;;  %1557 = vmatpush1.msra.mxu1 %v1434_v1 }
 0x241   :  { %1487 = vmatprep.subr.mxu0 %v1429_v2  ;;  %1558 = vmatprep.subr.mxu1 %v1431_v8 }
 0x242   :  { %1488 = vmatpush1.msra.mxu0 %v1428_v48  ;;  %1559 = vmatpush1.msra.mxu1 %v1430_v33 }
 0x243   :  { %1489 = vmatprep.subr.mxu0 %v1425_v24  ;;  %1560 = vmatprep.subr.mxu1 %v1427_v21 }
 0x244   :  { %1490 = vmatpush1.msra.mxu0 %v1424_v32  ;;  %1561 = vmatpush1.msra.mxu1 %v1426_v59 }
 0x245   :  { %7583 = vmatprep.subr.mxu0 %v11681_v4  ;;  %7618 = vmatprep.subr.mxu1 %v11682_v57 }
 0x2d2   :  { %v1164_v3 = vpop.f32.mrf.mxu0  ;;  %v1235_v1 = vpop.f32.mrf.mxu1 }
 0x2d3   :  { %v9321_v52 = vadd.f32 %v1164_v3, %v9190_v44  ;;  %v9324_v58 = vadd.f32 %v1235_v1, %v9192_v45  ;;  %v11686_v1 = vld [vmem:[#allocation17_spill] sm:$0xff] }
 0x2d4   :  { %v1166_v2 = vpop.f32.mrf.mxu0  ;;  %v1237_v8 = vpop.f32.mrf.mxu1 }
 0x2d5   :  { %11683 = vst [vmem:[#allocation7_spill] sm:$0xff] %v9321_v52  ;;  %v9327_v48 = vadd.f32 %v1166_v2, %v9194_v36  ;;  %v9330_v33 = vadd.f32 %v1237_v8, %v9196_v6  ;;  %v11684_v36 = vld [vmem:[#allocation15_spill] sm:$0xff]  ;;  %v11685_v6 = vld [vmem:[#allocation16_spill] sm:$0xff] }
 0x2d6   :  { %v11688_v8 = vld [vmem:[#allocation19_spill] sm:$0xff] }
 0x2f3   :  { %v7545_v25 = vpop.f32.mrf.mxu0  ;;  %v7580_v15 = vpop.f32.mrf.mxu1 }
 0x2f5   :  { %v7546_v24 = vpop.f32.mrf.mxu0  ;;  %v7581_v21 = vpop.f32.mrf.mxu1 }
 0x2f6   :  { %v7547_v32 = vadd.f32 %v7546_v24, %v7545_v25  ;;  %v7582_v44 = vadd.f32 %v7581_v21, %v7580_v15  ;;  %v11689_v25 = vld [vmem:[#allocation20_spill] sm:$0xff]  ;;  %v11690_v24 = vld [vmem:[#allocation21_spill] sm:$0xff]  ;;  %v11691_v21 = vld [vmem:[#allocation22_spill] sm:$0xff] }
 0x2f8   :  { %v1334_v59 = vadd.f32 %v7547_v32, %v9017_v14  ;;  %v1605_v14 = vld [vmem:[%s11491_s0 + $0x20] sm:$0xff]  ;;  %v11692_v32 = vld [vmem:[#allocation23_spill] sm:$0xff] }
 0x2f9   :  { %v1607_v45 = vcombine.high %v1605_v14, %v1605_v14 }
 0x2fa   :  { %v1404_v3 = vadd.f32 %v7582_v44, %v1334_v59  ;;  %v11693_v59 = vld [vmem:[#allocation24_spill] sm:$0xff]  ;;  %v11694_v44 = vld [vmem:[#allocation25_spill] sm:$0xff] }
 0x2fc   :  { %v1407_v52 = vmax.f32 %v1404_v3, 0.0  ;;  %v11695_v3 = vld [vmem:[#allocation26_spill] sm:$0xff] }
 0x2fe   :  { %6958 = vmatmul.mubr.msk.f32.vlgmr.msra.gmra.mxu0 %vm592_vm0, %v1407_v52  ;;  %6959 = vmatmul.mubr.msk.f32.vlgmr.msra.gmra.mxu1 %vm592_vm0, %v1407_v52  ;;  %v11687_v52 = vld [vmem:[#allocation18_spill] sm:$0xff] }
 0x2ff   :  { %7584 = vmatpush3.msra.mxu0 %v8604_v5  ;;  %7619 = vmatpush3.msra.mxu1 %v8617_v10  ;;  %v1614_v2 = vrot.slane %v1605_v14, %v11687_v52  ;;  %v1621_v15 = vrot.slane %v1607_v45, %v11687_v52  ;;  %v11696_v14 = vld [vmem:[#allocation27_spill] sm:$0xff]  ;;  %v11699_v45 = vld [vmem:[#allocation30_spill] sm:$0xff] }
 0x300   :  { %7585 = vmatprep.subr.mxu0 %v8609_v7  ;;  %7620 = vmatprep.subr.mxu1 %v8619_v11 }
 0x301   :  { %7586 = vmatpush3.msra.mxu0 %v8621_v12  ;;  %7621 = vmatpush3.msra.mxu1 %v8623_v13 }
 0x302   :  { %7587 = vmatprep.subr.mxu0 %v8633_v16  ;;  %7622 = vmatprep.subr.mxu1 %v8635_v17 }
 0x303   :  { %7588 = vmatpush3.msra.mxu0 %v8639_v18  ;;  %7623 = vmatpush3.msra.mxu1 %v8641_v19 }
 0x304   :  { %7589 = vmatprep.subr.mxu0 %v8651_v22  ;;  %7624 = vmatprep.subr.mxu1 %v8653_v23 }
 0x305   :  { %7590 = vmatpush3.msra.mxu0 %v8663_v26  ;;  %7625 = vmatpush3.msra.mxu1 %v8665_v27 }
 0x306   :  { %7591 = vmatprep.subr.mxu0 %v8669_v28  ;;  %7626 = vmatprep.subr.mxu1 %v8671_v29 }
 0x307   :  { %7592 = vmatpush3.msra.mxu0 %v8675_v30  ;;  %7627 = vmatpush3.msra.mxu1 %v8677_v31 }
 0x308   :  { %7593 = vmatprep.subr.mxu0 %v8687_v34  ;;  %7628 = vmatprep.subr.mxu1 %v8689_v35 }
 0x309   :  { %7594 = vmatpush3.msra.mxu0 %v8699_v38  ;;  %7629 = vmatpush3.msra.mxu1 %v8701_v39 }
 0x30a   :  { %7595 = vmatprep.subr.mxu0 %v8705_v40  ;;  %7630 = vmatprep.subr.mxu1 %v8707_v41 }
 0x30b   :  { %7596 = vmatpush3.msra.mxu0 %v8711_v42  ;;  %7631 = vmatpush3.msra.mxu1 %v8713_v43 }
 0x30c   :  { %7597 = vmatprep.subr.mxu0 %v8723_v46  ;;  %7632 = vmatprep.subr.mxu1 %v8725_v47 }
 0x30d   :  { %7598 = vmatpush3.msra.mxu0 %v8735_v50  ;;  %7633 = vmatpush3.msra.mxu1 %v8737_v51 }
 0x30e   :  { %7599 = vmatprep.subr.mxu0 %v8741_v53  ;;  %7634 = vmatprep.subr.mxu1 %v8743_v54 }
 0x30f   :  { %7600 = vmatpush3.msra.mxu0 %v8747_v55  ;;  %7635 = vmatpush3.msra.mxu1 %v8749_v56 }
 0x310   :  { %7601 = vmatprep.subr.mxu0 %v8759_v61  ;;  %7636 = vmatprep.subr.mxu1 %v8761_v62 }
 0x311   :  { %7602 = vmatpush3.msra.mxu0 %v11633_v63  ;;  %7637 = vmatpush3.msra.mxu1 %v11634_v37 }
 0x312   :  { %7603 = vmatprep.subr.mxu0 %v11635_v9  ;;  %7638 = vmatprep.subr.mxu1 %v11636_v49 }
 0x313   :  { %7604 = vmatpush3.msra.mxu0 %v11637_v0  ;;  %7639 = vmatpush3.msra.mxu1 %v11625_v60 }
 0x314   :  { %7605 = vmatprep.subr.mxu0 %v11659_v20  ;;  %7640 = vmatprep.subr.mxu1 %v11684_v36 }
 0x315   :  { %7606 = vmatpush3.msra.mxu0 %v11685_v6  ;;  %7641 = vmatpush3.msra.mxu1 %v11686_v1  ;;  %v1622_v1 = vcombine.high %v1614_v2, %v1614_v2  ;;  %v11698_v6 = vld [vmem:[#allocation29_spill] sm:$0xff] }
 0x316   :  { %7607 = vmatprep.subr.mxu0 %v11688_v8  ;;  %7642 = vmatprep.subr.mxu1 %v11689_v25  ;;  %v11697_v8 = vld [vmem:[#allocation28_spill] sm:$0xff]  ;;  %v1623_v25 = vcombine.high %v1621_v15, %v1621_v15 }
 0x317   :  { %7608 = vmatpush3.msra.mxu0 %v11690_v24  ;;  %7643 = vmatpush3.msra.mxu1 %v11691_v21  ;;  %v11700_v24 = vld [vmem:[#allocation31_spill] sm:$0xff]  ;;  %v11701_v21 = vld [vmem:[#allocation32_spill] sm:$0xff] }
 0x318   :  { %7609 = vmatprep.subr.mxu0 %v11692_v32  ;;  %7644 = vmatprep.subr.mxu1 %v11693_v59  ;;  %v11702_v32 = vld [vmem:[#allocation33_spill] sm:$0xff] }
 0x319   :  { %7610 = vmatpush3.msra.mxu0 %v11694_v44  ;;  %7645 = vmatpush3.msra.mxu1 %v11695_v3  ;;  %v11703_v44 = vld [vmem:[#allocation34_spill] sm:$0xff] }
 0x31a   :  { %7611 = vmatprep.subr.mxu0 %v11696_v14  ;;  %7646 = vmatprep.subr.mxu1 %v11697_v8  ;;  %v11704_v14 = vmov 0.0  }
 0x31b   :  { %7612 = vmatpush3.msra.mxu0 %v11698_v6  ;;  %7647 = vmatpush3.msra.mxu1 %v11699_v45  ;;  %v1783_v45 = vld [vmem:[%s11494_s3 + $0x270] sm:$0xff] }
 0x31c   :  { %7613 = vmatprep.subr.mxu0 %v11700_v24  ;;  %7648 = vmatprep.subr.mxu1 %v11701_v21  ;;  %v1784_v21 = vld [vmem:[%s11494_s3 + $0x278] sm:$0xff] }
 0x31d   :  { %7614 = vmatpush3.msra.mxu0 %v11702_v32  ;;  %1692 = vmatprep.mubr.f32.mxu0 %v1622_v1  ;;  %v1781_v1 = vld [vmem:[%s11494_s3 + $0x260] sm:$0xff]  ;;  %v1779_v32 = vld [vmem:[%s11494_s3 + $0x250] sm:$0xff]  ;;  %v1780_v24 = vld [vmem:[%s11494_s3 + $0x258] sm:$0xff] }
 0x31e   :  { %7649 = vmatpush3.msra.mxu1 %v11703_v44  ;;  %1762 = vmatprep.mubr.f32.mxu1 %v1623_v25  ;;  %v1813_v44 = vunpack.c.l.bf16 %v1783_v45  ;;  %v1814_v25 = vunpack.c.h.bf16 %v1783_v45  ;;  %v1809_v6 = vunpack.c.l.bf16 %v1781_v1  ;;  %v1810_v8 = vunpack.c.h.bf16 %v1781_v1  ;;  %v1778_v1 = vld [vmem:[%s11494_s3 + $0x248] sm:$0xff] }
 0x31f   :  { %1693 = vmatmul.mubr.f32.vlgmr.msra.gmra.mxu0 %v1614_v2  ;;  %1763 = vmatmul.mubr.f32.vlgmr.msra.gmra.mxu1 %v1621_v15  ;;  %v1815_v2 = vunpack.c.l.bf16 %v1784_v21  ;;  %v1816_v15 = vunpack.c.h.bf16 %v1784_v21  ;;  %v1806_v45 = vunpack.c.h.bf16 %v1779_v32  ;;  %v1808_v21 = vunpack.c.h.bf16 %v1780_v24 }
 0x320   :  { %1884 = vmatprep.mubr.f32.mxu0 %v11704_v14  ;;  %1955 = vmatprep.mubr.f32.mxu1 %v11704_v14  ;;  %v1782_v14 = vld [vmem:[%s11494_s3 + $0x268] sm:$0xff]  ;;  %v1805_v52 = vunpack.c.l.bf16 %v1779_v32  ;;  %v1807_v36 = vunpack.c.l.bf16 %v1780_v24  ;;  %v1803_v24 = vunpack.c.l.bf16 %v1778_v1 }
 0x321   :  { %v1811_v3 = vunpack.c.l.bf16 %v1782_v14  ;;  %v1812_v59 = vunpack.c.h.bf16 %v1782_v14  ;;  %1836 = vmatprep.subr.mxu0 %v1814_v25  ;;  %1907 = vmatprep.subr.mxu1 %v1816_v15  ;;  %v1777_v14 = vld [vmem:[%s11494_s3 + $0x240] sm:$0xff]  ;;  %v1804_v25 = vunpack.c.h.bf16 %v1778_v1  ;;  %v1774_v15 = vld [vmem:[%s11494_s3 + $0x228] sm:$0xff] }
 0x322   :  { %1837 = vmatpush1.msra.mxu0 %v1813_v44  ;;  %1908 = vmatpush1.msra.mxu1 %v1815_v2  ;;  %v1802_v44 = vunpack.c.h.bf16 %v1777_v14  ;;  %v1801_v32 = vunpack.c.l.bf16 %v1777_v14  ;;  %v1773_v2 = vld [vmem:[%s11494_s3 + $0x220] sm:$0xff]  ;;  %v1795_v1 = vunpack.c.l.bf16 %v1774_v15 }
 0x323   :  { %1838 = vmatprep.subr.mxu0 %v1810_v8  ;;  %1909 = vmatprep.subr.mxu1 %v1812_v59  ;;  %v1793_v14 = vunpack.c.l.bf16 %v1773_v2 }
 0x324   :  { %1839 = vmatpush1.msra.mxu0 %v1809_v6  ;;  %1910 = vmatpush1.msra.mxu1 %v1811_v3  ;;  %v1775_v6 = vld [vmem:[%s11494_s3 + $0x230] sm:$0xff] }
 0x325   :  { %1840 = vmatprep.subr.mxu0 %v1806_v45  ;;  %1911 = vmatprep.subr.mxu1 %v1808_v21  ;;  %v1797_v59 = vunpack.c.l.bf16 %v1775_v6  ;;  %v1794_v45 = vunpack.c.h.bf16 %v1773_v2  ;;  %v1796_v21 = vunpack.c.h.bf16 %v1774_v15 }
 0x326   :  { %1841 = vmatpush1.msra.mxu0 %v1805_v52  ;;  %1912 = vmatpush1.msra.mxu1 %v1807_v36  ;;  %v1776_v36 = vld [vmem:[%s11494_s3 + $0x238] sm:$0xff]  ;;  %v1798_v52 = vunpack.c.h.bf16 %v1775_v6 }
 0x327   :  { %1842 = vmatprep.subr.mxu0 %v1802_v44  ;;  %1913 = vmatprep.subr.mxu1 %v1804_v25  ;;  %v1800_v8 = vunpack.c.h.bf16 %v1776_v36  ;;  %v1799_v3 = vunpack.c.l.bf16 %v1776_v36  ;;  %v1771_v44 = vld [vmem:[%s11494_s3 + $0x210] sm:$0xff]  ;;  %v1772_v25 = vld [vmem:[%s11494_s3 + $0x218] sm:$0xff] }
 0x328   :  { %1843 = vmatpush1.msra.mxu0 %v1801_v32  ;;  %1914 = vmatpush1.msra.mxu1 %v1803_v24  ;;  %v1790_v32 = vunpack.c.h.bf16 %v1771_v44  ;;  %v1792_v24 = vunpack.c.h.bf16 %v1772_v25  ;;  %v1789_v6 = vunpack.c.l.bf16 %v1771_v44  ;;  %v1791_v36 = vunpack.c.l.bf16 %v1772_v25 }
 0x329   :  { %1844 = vmatprep.subr.mxu0 %v1798_v52  ;;  %1915 = vmatprep.subr.mxu1 %v1800_v8  ;;  %v1769_v52 = vld [vmem:[%s11494_s3 + $0x200] sm:$0xff]  ;;  %v1770_v8 = vld [vmem:[%s11494_s3 + $0x208] sm:$0xff] }
 0x32a   :  { %1845 = vmatpush1.msra.mxu0 %v1797_v59  ;;  %1916 = vmatpush1.msra.mxu1 %v1799_v3  ;;  %v1786_v59 = vunpack.c.h.bf16 %v1769_v52  ;;  %v1788_v3 = vunpack.c.h.bf16 %v1770_v8  ;;  %v1785_v2 = vunpack.c.l.bf16 %v1769_v52  ;;  %v1787_v15 = vunpack.c.l.bf16 %v1770_v8 }
 0x32b   :  { %1846 = vmatprep.subr.mxu0 %v1794_v45  ;;  %1917 = vmatprep.subr.mxu1 %v1796_v21 }
 0x32c   :  { %1847 = vmatpush1.msra.mxu0 %v1793_v14  ;;  %1918 = vmatpush1.msra.mxu1 %v1795_v1  ;;  %v11705_v14 = vld [vmem:[#allocation7_spill] sm:$0xff] }
 0x32d   :  { %1848 = vmatprep.subr.mxu0 %v1790_v32  ;;  %1919 = vmatprep.subr.mxu1 %v1792_v24 }
 0x32e   :  { %1849 = vmatpush1.msra.mxu0 %v1789_v6  ;;  %1920 = vmatpush1.msra.mxu1 %v1791_v36 }
 0x32f   :  { %1850 = vmatprep.subr.mxu0 %v1786_v59  ;;  %1921 = vmatprep.subr.mxu1 %v1788_v3 }
 0x330   :  { %1851 = vmatpush1.msra.mxu0 %v1785_v2  ;;  %1922 = vmatpush1.msra.mxu1 %v1787_v15  ;;  %v9469_v2 = vld [vmem:[%s11493_s2] ss:$0 sm:$0xff] }
 0x331   :  { %7653 = vmatprep.subr.mxu0 %v11681_v4  ;;  %7688 = vmatprep.subr.mxu1 %v11682_v57 }
 0x3be   :  { %v1525_v45 = vpop.f32.mrf.mxu0  ;;  %v1596_v21 = vpop.f32.mrf.mxu1 }
 0x3bf   :  { %v9455_v1 = vadd.f32 %v1525_v45, %v11705_v14  ;;  %v9458_v44 = vadd.f32 %v1596_v21, %v9324_v58  ;;  %v11706_v14 = vld [vmem:[#allocation15_spill] sm:$0xff] }
 0x3c0   :  { %v1527_v25 = vpop.f32.mrf.mxu0  ;;  %v1598_v32 = vpop.f32.mrf.mxu1 }
 0x3c1   :  { %v9461_v24 = vadd.f32 %v1527_v25, %v9327_v48  ;;  %v9464_v6 = vadd.f32 %v1598_v32, %v9330_v33  ;;  %v1966_v48 = vld [vmem:[%s11491_s0 + $0x28] sm:$0xff]  ;;  %v11707_v25 = vld [vmem:[#allocation16_spill] sm:$0xff] }
 0x3c2   :  { %v1968_v33 = vcombine.high %v1966_v48, %v1966_v48  ;;  %v11708_v32 = vld [vmem:[#allocation17_spill] sm:$0xff] }
 0x3df   :  { %v7615_v36 = vpop.f32.mrf.mxu0  ;;  %v7650_v52 = vpop.f32.mrf.mxu1 }
 0x3e1   :  { %v7616_v8 = vpop.f32.mrf.mxu0  ;;  %v7651_v59 = vpop.f32.mrf.mxu1 }
 0x3e2   :  { %v7617_v3 = vadd.f32 %v7616_v8, %v7615_v36  ;;  %v7652_v15 = vadd.f32 %v7651_v59, %v7650_v52  ;;  %v11709_v36 = vld [vmem:[#allocation18_spill] sm:$0xff]  ;;  %v11710_v8 = vld [vmem:[#allocation19_spill] sm:$0xff]  ;;  %v11711_v59 = vld [vmem:[#allocation20_spill] sm:$0xff] }
 0x3e3   :  { %v1975_v52 = vrot.slane %v1966_v48, %v11709_v36  ;;  %v11718_v48 = vld [vmem:[#allocation27_spill] sm:$0xff] }
 0x3e4   :  { %v1695_v58 = vadd.f32 %v9469_v2, %v7617_v3  ;;  %v1982_v3 = vrot.slane %v1968_v33, %v11709_v36  ;;  %v11721_v33 = vld [vmem:[#allocation30_spill] sm:$0xff] }
 0x3e6   :  { %v1765_v45 = vadd.f32 %v7652_v15, %v1695_v58  ;;  %v11712_v58 = vld [vmem:[#allocation21_spill] sm:$0xff]  ;;  %v11713_v15 = vld [vmem:[#allocation22_spill] sm:$0xff] }
 0x3e8   :  { %v1768_v21 = vmax.f32 %v1765_v45, 0.0  ;;  %v11714_v45 = vld [vmem:[#allocation23_spill] sm:$0xff] }
 0x3ea   :  { %6960 = vmatmul.mubr.msk.f32.vlgmr.msra.gmra.mxu0 %vm592_vm0, %v1768_v21  ;;  %6961 = vmatmul.mubr.msk.f32.vlgmr.msra.gmra.mxu1 %vm592_vm0, %v1768_v21  ;;  %v11715_v21 = vld [vmem:[#allocation24_spill] sm:$0xff] }
 0x3eb   :  { %7654 = vmatpush3.msra.mxu0 %v8604_v5  ;;  %7689 = vmatpush3.msra.mxu1 %v8617_v10 }
 0x3ec   :  { %7655 = vmatprep.subr.mxu0 %v8609_v7  ;;  %7690 = vmatprep.subr.mxu1 %v8619_v11 }
 0x3ed   :  { %7656 = vmatpush3.msra.mxu0 %v8621_v12  ;;  %7691 = vmatpush3.msra.mxu1 %v8623_v13 }
 0x3ee   :  { %7657 = vmatprep.subr.mxu0 %v8633_v16  ;;  %7692 = vmatprep.subr.mxu1 %v8635_v17 }
 0x3ef   :  { %7658 = vmatpush3.msra.mxu0 %v8639_v18  ;;  %7693 = vmatpush3.msra.mxu1 %v8641_v19 }
 0x3f0   :  { %7659 = vmatprep.subr.mxu0 %v8651_v22  ;;  %7694 = vmatprep.subr.mxu1 %v8653_v23 }
 0x3f1   :  { %7660 = vmatpush3.msra.mxu0 %v8663_v26  ;;  %7695 = vmatpush3.msra.mxu1 %v8665_v27 }
 0x3f2   :  { %7661 = vmatprep.subr.mxu0 %v8669_v28  ;;  %7696 = vmatprep.subr.mxu1 %v8671_v29 }
 0x3f3   :  { %7662 = vmatpush3.msra.mxu0 %v8675_v30  ;;  %7697 = vmatpush3.msra.mxu1 %v8677_v31 }
 0x3f4   :  { %7663 = vmatprep.subr.mxu0 %v8687_v34  ;;  %7698 = vmatprep.subr.mxu1 %v8689_v35 }
 0x3f5   :  { %7664 = vmatpush3.msra.mxu0 %v8699_v38  ;;  %7699 = vmatpush3.msra.mxu1 %v8701_v39 }
 0x3f6   :  { %7665 = vmatprep.subr.mxu0 %v8705_v40  ;;  %7700 = vmatprep.subr.mxu1 %v8707_v41 }
 0x3f7   :  { %7666 = vmatpush3.msra.mxu0 %v8711_v42  ;;  %7701 = vmatpush3.msra.mxu1 %v8713_v43 }
 0x3f8   :  { %7667 = vmatprep.subr.mxu0 %v8723_v46  ;;  %7702 = vmatprep.subr.mxu1 %v8725_v47 }
 0x3f9   :  { %7668 = vmatpush3.msra.mxu0 %v8735_v50  ;;  %7703 = vmatpush3.msra.mxu1 %v8737_v51 }
 0x3fa   :  { %7669 = vmatprep.subr.mxu0 %v8741_v53  ;;  %7704 = vmatprep.subr.mxu1 %v8743_v54 }
 0x3fb   :  { %7670 = vmatpush3.msra.mxu0 %v8747_v55  ;;  %7705 = vmatpush3.msra.mxu1 %v8749_v56 }
 0x3fc   :  { %7671 = vmatprep.subr.mxu0 %v8759_v61  ;;  %7706 = vmatprep.subr.mxu1 %v8761_v62 }
 0x3fd   :  { %7672 = vmatpush3.msra.mxu0 %v11633_v63  ;;  %7707 = vmatpush3.msra.mxu1 %v11634_v37 }
 0x3fe   :  { %7673 = vmatprep.subr.mxu0 %v11635_v9  ;;  %7708 = vmatprep.subr.mxu1 %v11636_v49 }
 0x3ff   :  { %7674 = vmatpush3.msra.mxu0 %v11637_v0  ;;  %7709 = vmatpush3.msra.mxu1 %v11625_v60 }
 0x400   :  { %7675 = vmatprep.subr.mxu0 %v11659_v20  ;;  %7710 = vmatprep.subr.mxu1 %v11706_v14  ;;  %v11716_v14 = vld [vmem:[#allocation25_spill] sm:$0xff] }
 0x401   :  { %7676 = vmatpush3.msra.mxu0 %v11707_v25  ;;  %7711 = vmatpush3.msra.mxu1 %v11708_v32  ;;  %v11717_v25 = vld [vmem:[#allocation26_spill] sm:$0xff]  ;;  %v1983_v32 = vcombine.high %v1975_v52, %v1975_v52  ;;  %v11720_v20 = vld [vmem:[#allocation29_spill] sm:$0xff] }
 0x402   :  { %7677 = vmatprep.subr.mxu0 %v11710_v8  ;;  %7712 = vmatprep.subr.mxu1 %v11711_v59  ;;  %v11719_v8 = vld [vmem:[#allocation28_spill] sm:$0xff]  ;;  %v1984_v59 = vcombine.high %v1982_v3, %v1982_v3 }
 0x403   :  { %7678 = vmatpush3.msra.mxu0 %v11712_v58  ;;  %7713 = vmatpush3.msra.mxu1 %v11713_v15  ;;  %v11722_v58 = vld [vmem:[#allocation31_spill] sm:$0xff]  ;;  %v11723_v15 = vld [vmem:[#allocation32_spill] sm:$0xff] }
 0x404   :  { %7679 = vmatprep.subr.mxu0 %v11714_v45  ;;  %7714 = vmatprep.subr.mxu1 %v11715_v21  ;;  %v11724_v45 = vld [vmem:[#allocation33_spill] sm:$0xff] }
 0x405   :  { %7680 = vmatpush3.msra.mxu0 %v11716_v14  ;;  %7715 = vmatpush3.msra.mxu1 %v11717_v25  ;;  %v11725_v14 = vld [vmem:[#allocation34_spill] sm:$0xff] }
 0x406   :  { %7681 = vmatprep.subr.mxu0 %v11718_v48  ;;  %7716 = vmatprep.subr.mxu1 %v11719_v8  ;;  %v11726_v48 = vmov 0.0  }
 0x407   :  { %7682 = vmatpush3.msra.mxu0 %v11720_v20  ;;  %7717 = vmatpush3.msra.mxu1 %v11721_v33  ;;  %v2144_v33 = vld [vmem:[%s11494_s3 + $0x2f0] sm:$0xff] }
 0x408   :  { %7683 = vmatprep.subr.mxu0 %v11722_v58  ;;  %7718 = vmatprep.subr.mxu1 %v11723_v15  ;;  %v2145_v15 = vld [vmem:[%s11494_s3 + $0x2f8] sm:$0xff] }
 0x409   :  { %7684 = vmatpush3.msra.mxu0 %v11724_v45  ;;  %2053 = vmatprep.mubr.f32.mxu0 %v1983_v32  ;;  %v2142_v32 = vld [vmem:[%s11494_s3 + $0x2e0] sm:$0xff]  ;;  %v2140_v45 = vld [vmem:[%s11494_s3 + $0x2d0] sm:$0xff]  ;;  %v2141_v58 = vld [vmem:[%s11494_s3 + $0x2d8] sm:$0xff] }
 0x40a   :  { %7719 = vmatpush3.msra.mxu1 %v11725_v14  ;;  %2123 = vmatprep.mubr.f32.mxu1 %v1984_v59  ;;  %v2174_v14 = vunpack.c.l.bf16 %v2144_v33  ;;  %v2175_v59 = vunpack.c.h.bf16 %v2144_v33  ;;  %v2170_v20 = vunpack.c.l.bf16 %v2142_v32  ;;  %v2171_v8 = vunpack.c.h.bf16 %v2142_v32  ;;  %v2139_v32 = vld [vmem:[%s11494_s3 + $0x2c8] sm:$0xff] }
 0x40b   :  { %2054 = vmatmul.mubr.f32.vlgmr.msra.gmra.mxu0 %v1975_v52  ;;  %2124 = vmatmul.mubr.f32.vlgmr.msra.gmra.mxu1 %v1982_v3  ;;  %v2176_v52 = vunpack.c.l.bf16 %v2145_v15  ;;  %v2177_v3 = vunpack.c.h.bf16 %v2145_v15  ;;  %v2167_v33 = vunpack.c.h.bf16 %v2140_v45  ;;  %v2169_v15 = vunpack.c.h.bf16 %v2141_v58 }
 0x40c   :  { %2245 = vmatprep.mubr.f32.mxu0 %v11726_v48  ;;  %2316 = vmatprep.mubr.f32.mxu1 %v11726_v48  ;;  %v2143_v48 = vld [vmem:[%s11494_s3 + $0x2e8] sm:$0xff]  ;;  %v2166_v36 = vunpack.c.l.bf16 %v2140_v45  ;;  %v2168_v60 = vunpack.c.l.bf16 %v2141_v58  ;;  %v2164_v58 = vunpack.c.l.bf16 %v2139_v32 }
 0x40d   :  { %v2172_v25 = vunpack.c.l.bf16 %v2143_v48  ;;  %v2173_v21 = vunpack.c.h.bf16 %v2143_v48  ;;  %2197 = vmatprep.subr.mxu0 %v2175_v59  ;;  %2268 = vmatprep.subr.mxu1 %v2177_v3  ;;  %v2138_v48 = vld [vmem:[%s11494_s3 + $0x2c0] sm:$0xff]  ;;  %v2165_v59 = vunpack.c.h.bf16 %v2139_v32  ;;  %v2135_v3 = vld [vmem:[%s11494_s3 + $0x2a8] sm:$0xff] }
 0x40e   :  { %2198 = vmatpush1.msra.mxu0 %v2174_v14  ;;  %2269 = vmatpush1.msra.mxu1 %v2176_v52  ;;  %v2163_v14 = vunpack.c.h.bf16 %v2138_v48  ;;  %v2162_v45 = vunpack.c.l.bf16 %v2138_v48  ;;  %v2134_v52 = vld [vmem:[%s11494_s3 + $0x2a0] sm:$0xff]  ;;  %v2156_v32 = vunpack.c.l.bf16 %v2135_v3 }
 0x40f   :  { %2199 = vmatprep.subr.mxu0 %v2171_v8  ;;  %2270 = vmatprep.subr.mxu1 %v2173_v21  ;;  %v2154_v48 = vunpack.c.l.bf16 %v2134_v52 }
 0x410   :  { %2200 = vmatpush1.msra.mxu0 %v2170_v20  ;;  %2271 = vmatpush1.msra.mxu1 %v2172_v25  ;;  %v2136_v20 = vld [vmem:[%s11494_s3 + $0x2b0] sm:$0xff] }
 0x411   :  { %2201 = vmatprep.subr.mxu0 %v2167_v33  ;;  %2272 = vmatprep.subr.mxu1 %v2169_v15  ;;  %v2159_v25 = vunpack.c.h.bf16 %v2136_v20  ;;  %v2158_v8 = vunpack.c.l.bf16 %v2136_v20  ;;  %v2155_v33 = vunpack.c.h.bf16 %v2134_v52  ;;  %v2157_v15 = vunpack.c.h.bf16 %v2135_v3 }
 0x412   :  { %2202 = vmatpush1.msra.mxu0 %v2166_v36  ;;  %2273 = vmatpush1.msra.mxu1 %v2168_v60  ;;  %v2137_v60 = vld [vmem:[%s11494_s3 + $0x2b8] sm:$0xff] }
 0x413   :  { %2203 = vmatprep.subr.mxu0 %v2163_v14  ;;  %2274 = vmatprep.subr.mxu1 %v2165_v59  ;;  %v2161_v36 = vunpack.c.h.bf16 %v2137_v60  ;;  %v2160_v21 = vunpack.c.l.bf16 %v2137_v60  ;;  %v2132_v14 = vld [vmem:[%s11494_s3 + $0x290] sm:$0xff]  ;;  %v2133_v59 = vld [vmem:[%s11494_s3 + $0x298] sm:$0xff] }
 0x414   :  { %2204 = vmatpush1.msra.mxu0 %v2162_v45  ;;  %2275 = vmatpush1.msra.mxu1 %v2164_v58  ;;  %v2151_v45 = vunpack.c.h.bf16 %v2132_v14  ;;  %v2153_v58 = vunpack.c.h.bf16 %v2133_v59  ;;  %v2150_v20 = vunpack.c.l.bf16 %v2132_v14  ;;  %v2152_v60 = vunpack.c.l.bf16 %v2133_v59 }
 0x415   :  { %2205 = vmatprep.subr.mxu0 %v2159_v25  ;;  %2276 = vmatprep.subr.mxu1 %v2161_v36  ;;  %v2130_v25 = vld [vmem:[%s11494_s3 + $0x280] sm:$0xff]  ;;  %v2131_v36 = vld [vmem:[%s11494_s3 + $0x288] sm:$0xff] }
 0x416   :  { %2206 = vmatpush1.msra.mxu0 %v2158_v8  ;;  %2277 = vmatpush1.msra.mxu1 %v2160_v21  ;;  %v2147_v8 = vunpack.c.h.bf16 %v2130_v25  ;;  %v2149_v21 = vunpack.c.h.bf16 %v2131_v36  ;;  %v2146_v52 = vunpack.c.l.bf16 %v2130_v25  ;;  %v2148_v3 = vunpack.c.l.bf16 %v2131_v36 }
 0x417   :  { %2207 = vmatprep.subr.mxu0 %v2155_v33  ;;  %2278 = vmatprep.subr.mxu1 %v2157_v15 }
 0x418   :  { %2208 = vmatpush1.msra.mxu0 %v2154_v48  ;;  %2279 = vmatpush1.msra.mxu1 %v2156_v32 }
 0x419   :  { %2209 = vmatprep.subr.mxu0 %v2151_v45  ;;  %2280 = vmatprep.subr.mxu1 %v2153_v58 }
 0x41a   :  { %2210 = vmatpush1.msra.mxu0 %v2150_v20  ;;  %2281 = vmatpush1.msra.mxu1 %v2152_v60 }
 0x41b   :  { %2211 = vmatprep.subr.mxu0 %v2147_v8  ;;  %2282 = vmatprep.subr.mxu1 %v2149_v21 }
 0x41c   :  { %2212 = vmatpush1.msra.mxu0 %v2146_v52  ;;  %2283 = vmatpush1.msra.mxu1 %v2148_v3 }
 0x41d   :  { %7723 = vmatprep.subr.mxu0 %v11681_v4  ;;  %7758 = vmatprep.subr.mxu1 %v11682_v57 }
 0x4aa   :  { %v1886_v33 = vpop.f32.mrf.mxu0  ;;  %v1957_v15 = vpop.f32.mrf.mxu1 }
 0x4ab   :  { %v9594_v48 = vadd.f32 %v1886_v33, %v9455_v1  ;;  %v9597_v32 = vadd.f32 %v1957_v15, %v9458_v44  ;;  %v2327_v44 = vld [vmem:[%s11491_s0 + $0x30] sm:$0xff] }
 0x4ac   :  { %v1888_v14 = vpop.f32.mrf.mxu0  ;;  %v1959_v59 = vpop.f32.mrf.mxu1  ;;  %v11728_v33 = vld [vmem:[#allocation14_spill] sm:$0xff]  ;;  %v11729_v15 = vld [vmem:[#allocation15_spill] sm:$0xff] }
 0x4ad   :  { %v9600_v45 = vadd.f32 %v1888_v14, %v9461_v24  ;;  %v9603_v58 = vadd.f32 %v1959_v59, %v9464_v6  ;;  %v2329_v24 = vcombine.high %v2327_v44, %v2327_v44  ;;  %v11727_v6 = vld [vmem:[#allocation13_spill] sm:$0xff]  ;;  %v11730_v14 = vld [vmem:[#allocation16_spill] sm:$0xff] }
 0x4ae   :  { %v11731_v59 = vld [vmem:[#allocation17_spill] sm:$0xff] }
 0x4cb   :  { %v7685_v20 = vpop.f32.mrf.mxu0  ;;  %v7720_v60 = vpop.f32.mrf.mxu1 }
 0x4cd   :  { %v7686_v25 = vpop.f32.mrf.mxu0  ;;  %v7721_v36 = vpop.f32.mrf.mxu1 }
 0x4ce   :  { %v7687_v8 = vadd.f32 %v7686_v25, %v7685_v20  ;;  %v7722_v1 = vadd.f32 %v7721_v36, %v7720_v60  ;;  %v11732_v20 = vld [vmem:[#allocation18_spill] sm:$0xff]  ;;  %v11733_v25 = vld [vmem:[#allocation19_spill] sm:$0xff]  ;;  %v11734_v36 = vld [vmem:[#allocation20_spill] sm:$0xff] }
 0x4cf   :  { %v2336_v60 = vrot.slane %v2327_v44, %v11732_v20  ;;  %v11741_v44 = vld [vmem:[#allocation27_spill] sm:$0xff] }
 0x4d0   :  { %v2056_v21 = vadd.f32 %v9469_v2, %v7687_v8  ;;  %v2343_v8 = vrot.slane %v2329_v24, %v11732_v20  ;;  %v11744_v24 = vld [vmem:[#allocation30_spill] sm:$0xff] }
 0x4d2   :  { %v2126_v52 = vadd.f32 %v7722_v1, %v2056_v21  ;;  %v11735_v21 = vld [vmem:[#allocation21_spill] sm:$0xff]  ;;  %v11736_v1 = vld [vmem:[#allocation22_spill] sm:$0xff] }
 0x4d4   :  { %v2129_v3 = vmax.f32 %v2126_v52, 0.0  ;;  %v11737_v52 = vld [vmem:[#allocation23_spill] sm:$0xff] }
 0x4d6   :  { %6962 = vmatmul.mubr.msk.f32.vlgmr.msra.gmra.mxu0 %vm592_vm0, %v2129_v3  ;;  %6963 = vmatmul.mubr.msk.f32.vlgmr.msra.gmra.mxu1 %vm592_vm0, %v2129_v3  ;;  %v11738_v3 = vld [vmem:[#allocation24_spill] sm:$0xff] }
 0x4d7   :  { %7724 = vmatpush3.msra.mxu0 %v8604_v5  ;;  %7759 = vmatpush3.msra.mxu1 %v8617_v10 }
 0x4d8   :  { %7725 = vmatprep.subr.mxu0 %v8609_v7  ;;  %7760 = vmatprep.subr.mxu1 %v8619_v11 }
 0x4d9   :  { %7726 = vmatpush3.msra.mxu0 %v8621_v12  ;;  %7761 = vmatpush3.msra.mxu1 %v8623_v13 }
 0x4da   :  { %7727 = vmatprep.subr.mxu0 %v8633_v16  ;;  %7762 = vmatprep.subr.mxu1 %v8635_v17 }
 0x4db   :  { %7728 = vmatpush3.msra.mxu0 %v8639_v18  ;;  %7763 = vmatpush3.msra.mxu1 %v8641_v19 }
 0x4dc   :  { %7729 = vmatprep.subr.mxu0 %v8651_v22  ;;  %7764 = vmatprep.subr.mxu1 %v8653_v23 }
 0x4dd   :  { %7730 = vmatpush3.msra.mxu0 %v8663_v26  ;;  %7765 = vmatpush3.msra.mxu1 %v8665_v27 }
 0x4de   :  { %7731 = vmatprep.subr.mxu0 %v8669_v28  ;;  %7766 = vmatprep.subr.mxu1 %v8671_v29 }
 0x4df   :  { %7732 = vmatpush3.msra.mxu0 %v8675_v30  ;;  %7767 = vmatpush3.msra.mxu1 %v8677_v31 }
 0x4e0   :  { %7733 = vmatprep.subr.mxu0 %v8687_v34  ;;  %7768 = vmatprep.subr.mxu1 %v8689_v35 }
 0x4e1   :  { %7734 = vmatpush3.msra.mxu0 %v8699_v38  ;;  %7769 = vmatpush3.msra.mxu1 %v8701_v39 }
 0x4e2   :  { %7735 = vmatprep.subr.mxu0 %v8705_v40  ;;  %7770 = vmatprep.subr.mxu1 %v8707_v41 }
 0x4e3   :  { %7736 = vmatpush3.msra.mxu0 %v8711_v42  ;;  %7771 = vmatpush3.msra.mxu1 %v8713_v43 }
 0x4e4   :  { %7737 = vmatprep.subr.mxu0 %v8723_v46  ;;  %7772 = vmatprep.subr.mxu1 %v8725_v47 }
 0x4e5   :  { %7738 = vmatpush3.msra.mxu0 %v8735_v50  ;;  %7773 = vmatpush3.msra.mxu1 %v8737_v51 }
 0x4e6   :  { %7739 = vmatprep.subr.mxu0 %v8741_v53  ;;  %7774 = vmatprep.subr.mxu1 %v8743_v54 }
 0x4e7   :  { %7740 = vmatpush3.msra.mxu0 %v8747_v55  ;;  %7775 = vmatpush3.msra.mxu1 %v8749_v56 }
 0x4e8   :  { %7741 = vmatprep.subr.mxu0 %v8759_v61  ;;  %7776 = vmatprep.subr.mxu1 %v8761_v62 }
 0x4e9   :  { %7742 = vmatpush3.msra.mxu0 %v11633_v63  ;;  %7777 = vmatpush3.msra.mxu1 %v11634_v37 }
 0x4ea   :  { %7743 = vmatprep.subr.mxu0 %v11635_v9  ;;  %7778 = vmatprep.subr.mxu1 %v11636_v49 }
 0x4eb   :  { %7744 = vmatpush3.msra.mxu0 %v11637_v0  ;;  %7779 = vmatpush3.msra.mxu1 %v11727_v6 }
 0x4ec   :  { %7745 = vmatprep.subr.mxu0 %v11728_v33  ;;  %7780 = vmatprep.subr.mxu1 %v11729_v15  ;;  %v11739_v15 = vld [vmem:[#allocation25_spill] sm:$0xff] }
 0x4ed   :  { %7746 = vmatpush3.msra.mxu0 %v11730_v14  ;;  %7781 = vmatpush3.msra.mxu1 %v11731_v59  ;;  %v11740_v14 = vld [vmem:[#allocation26_spill] sm:$0xff]  ;;  %v2344_v59 = vcombine.high %v2336_v60, %v2336_v60  ;;  %v11743_v33 = vld [vmem:[#allocation29_spill] sm:$0xff] }
 0x4ee   :  { %7747 = vmatprep.subr.mxu0 %v11733_v25  ;;  %7782 = vmatprep.subr.mxu1 %v11734_v36  ;;  %v11742_v25 = vld [vmem:[#allocation28_spill] sm:$0xff]  ;;  %v2345_v36 = vcombine.high %v2343_v8, %v2343_v8 }
 0x4ef   :  { %7748 = vmatpush3.msra.mxu0 %v11735_v21  ;;  %7783 = vmatpush3.msra.mxu1 %v11736_v1  ;;  %v11745_v21 = vld [vmem:[#allocation31_spill] sm:$0xff]  ;;  %v11746_v1 = vld [vmem:[#allocation32_spill] sm:$0xff] }
 0x4f0   :  { %7749 = vmatprep.subr.mxu0 %v11737_v52  ;;  %7784 = vmatprep.subr.mxu1 %v11738_v3  ;;  %v11747_v52 = vld [vmem:[#allocation33_spill] sm:$0xff] }
 0x4f1   :  { %7750 = vmatpush3.msra.mxu0 %v11739_v15  ;;  %7785 = vmatpush3.msra.mxu1 %v11740_v14  ;;  %v11748_v15 = vld [vmem:[#allocation34_spill] sm:$0xff] }
 0x4f2   :  { %7751 = vmatprep.subr.mxu0 %v11741_v44  ;;  %7786 = vmatprep.subr.mxu1 %v11742_v25  ;;  %v11749_v44 = vmov 0.0  }
 0x4f3   :  { %7752 = vmatpush3.msra.mxu0 %v11743_v33  ;;  %7787 = vmatpush3.msra.mxu1 %v11744_v24  ;;  %v2505_v24 = vld [vmem:[%s11494_s3 + $0x370] sm:$0xff] }
 0x4f4   :  { %7753 = vmatprep.subr.mxu0 %v11745_v21  ;;  %7788 = vmatprep.subr.mxu1 %v11746_v1  ;;  %v2506_v1 = vld [vmem:[%s11494_s3 + $0x378] sm:$0xff] }
 0x4f5   :  { %7754 = vmatpush3.msra.mxu0 %v11747_v52  ;;  %2414 = vmatprep.mubr.f32.mxu0 %v2344_v59  ;;  %v2503_v59 = vld [vmem:[%s11494_s3 + $0x360] sm:$0xff]  ;;  %v2501_v52 = vld [vmem:[%s11494_s3 + $0x350] sm:$0xff]  ;;  %v2502_v21 = vld [vmem:[%s11494_s3 + $0x358] sm:$0xff] }
 0x4f6   :  { %7789 = vmatpush3.msra.mxu1 %v11748_v15  ;;  %2484 = vmatprep.mubr.f32.mxu1 %v2345_v36  ;;  %v2535_v15 = vunpack.c.l.bf16 %v2505_v24  ;;  %v2536_v36 = vunpack.c.h.bf16 %v2505_v24  ;;  %v2531_v33 = vunpack.c.l.bf16 %v2503_v59  ;;  %v2532_v25 = vunpack.c.h.bf16 %v2503_v59  ;;  %v2500_v59 = vld [vmem:[%s11494_s3 + $0x348] sm:$0xff] }
 0x4f7   :  { %2415 = vmatmul.mubr.f32.vlgmr.msra.gmra.mxu0 %v2336_v60  ;;  %2485 = vmatmul.mubr.f32.vlgmr.msra.gmra.mxu1 %v2343_v8  ;;  %v2537_v60 = vunpack.c.l.bf16 %v2506_v1  ;;  %v2538_v8 = vunpack.c.h.bf16 %v2506_v1  ;;  %v2528_v24 = vunpack.c.h.bf16 %v2501_v52  ;;  %v2530_v1 = vunpack.c.h.bf16 %v2502_v21 }
 0x4f8   :  { %2606 = vmatprep.mubr.f32.mxu0 %v11749_v44  ;;  %2677 = vmatprep.mubr.f32.mxu1 %v11749_v44  ;;  %v2504_v44 = vld [vmem:[%s11494_s3 + $0x368] sm:$0xff]  ;;  %v2527_v20 = vunpack.c.l.bf16 %v2501_v52  ;;  %v2529_v6 = vunpack.c.l.bf16 %v2502_v21  ;;  %v2525_v21 = vunpack.c.l.bf16 %v2500_v59 }
 0x4f9   :  { %v2533_v14 = vunpack.c.l.bf16 %v2504_v44  ;;  %v2534_v3 = vunpack.c.h.bf16 %v2504_v44  ;;  %2558 = vmatprep.subr.mxu0 %v2536_v36  ;;  %2629 = vmatprep.subr.mxu1 %v2538_v8  ;;  %v2499_v44 = vld [vmem:[%s11494_s3 + $0x340] sm:$0xff]  ;;  %v2526_v36 = vunpack.c.h.bf16 %v2500_v59  ;;  %v2496_v8 = vld [vmem:[%s11494_s3 + $0x328] sm:$0xff] }
 0x4fa   :  { %2559 = vmatpush1.msra.mxu0 %v2535_v15  ;;  %2630 = vmatpush1.msra.mxu1 %v2537_v60  ;;  %v2524_v15 = vunpack.c.h.bf16 %v2499_v44  ;;  %v2523_v52 = vunpack.c.l.bf16 %v2499_v44  ;;  %v2495_v60 = vld [vmem:[%s11494_s3 + $0x320] sm:$0xff]  ;;  %v2517_v59 = vunpack.c.l.bf16 %v2496_v8 }
 0x4fb   :  { %2560 = vmatprep.subr.mxu0 %v2532_v25  ;;  %2631 = vmatprep.subr.mxu1 %v2534_v3  ;;  %v2515_v44 = vunpack.c.l.bf16 %v2495_v60 }
 0x4fc   :  { %2561 = vmatpush1.msra.mxu0 %v2531_v33  ;;  %2632 = vmatpush1.msra.mxu1 %v2533_v14  ;;  %v2497_v33 = vld [vmem:[%s11494_s3 + $0x330] sm:$0xff] }
 0x4fd   :  { %2562 = vmatprep.subr.mxu0 %v2528_v24  ;;  %2633 = vmatprep.subr.mxu1 %v2530_v1  ;;  %v2520_v14 = vunpack.c.h.bf16 %v2497_v33  ;;  %v2519_v25 = vunpack.c.l.bf16 %v2497_v33  ;;  %v2516_v24 = vunpack.c.h.bf16 %v2495_v60  ;;  %v2518_v1 = vunpack.c.h.bf16 %v2496_v8 }
 0x4fe   :  { %2563 = vmatpush1.msra.mxu0 %v2527_v20  ;;  %2634 = vmatpush1.msra.mxu1 %v2529_v6  ;;  %v2498_v6 = vld [vmem:[%s11494_s3 + $0x338] sm:$0xff] }
 0x4ff   :  { %2564 = vmatprep.subr.mxu0 %v2524_v15  ;;  %2635 = vmatprep.subr.mxu1 %v2526_v36  ;;  %v2522_v20 = vunpack.c.h.bf16 %v2498_v6  ;;  %v2521_v3 = vunpack.c.l.bf16 %v2498_v6  ;;  %v2493_v15 = vld [vmem:[%s11494_s3 + $0x310] sm:$0xff]  ;;  %v2494_v36 = vld [vmem:[%s11494_s3 + $0x318] sm:$0xff] }
 0x500   :  { %2565 = vmatpush1.msra.mxu0 %v2523_v52  ;;  %2636 = vmatpush1.msra.mxu1 %v2525_v21  ;;  %v2512_v52 = vunpack.c.h.bf16 %v2493_v15  ;;  %v2514_v21 = vunpack.c.h.bf16 %v2494_v36  ;;  %v2511_v33 = vunpack.c.l.bf16 %v2493_v15  ;;  %v2513_v6 = vunpack.c.l.bf16 %v2494_v36 }
 0x501   :  { %2566 = vmatprep.subr.mxu0 %v2520_v14  ;;  %2637 = vmatprep.subr.mxu1 %v2522_v20  ;;  %v2491_v14 = vld [vmem:[%s11494_s3 + $0x300] sm:$0xff]  ;;  %v2492_v20 = vld [vmem:[%s11494_s3 + $0x308] sm:$0xff] }
 0x502   :  { %2567 = vmatpush1.msra.mxu0 %v2519_v25  ;;  %2638 = vmatpush1.msra.mxu1 %v2521_v3  ;;  %v2508_v25 = vunpack.c.h.bf16 %v2491_v14  ;;  %v2510_v3 = vunpack.c.h.bf16 %v2492_v20  ;;  %v2507_v60 = vunpack.c.l.bf16 %v2491_v14  ;;  %v2509_v8 = vunpack.c.l.bf16 %v2492_v20 }
 0x503   :  { %2568 = vmatprep.subr.mxu0 %v2516_v24  ;;  %2639 = vmatprep.subr.mxu1 %v2518_v1 }
 0x504   :  { %2569 = vmatpush1.msra.mxu0 %v2515_v44  ;;  %2640 = vmatpush1.msra.mxu1 %v2517_v59 }
 0x505   :  { %2570 = vmatprep.subr.mxu0 %v2512_v52  ;;  %2641 = vmatprep.subr.mxu1 %v2514_v21 }
 0x506   :  { %2571 = vmatpush1.msra.mxu0 %v2511_v33  ;;  %2642 = vmatpush1.msra.mxu1 %v2513_v6 }
 0x507   :  { %2572 = vmatprep.subr.mxu0 %v2508_v25  ;;  %2643 = vmatprep.subr.mxu1 %v2510_v3 }
 0x508   :  { %2573 = vmatpush1.msra.mxu0 %v2507_v60  ;;  %2644 = vmatpush1.msra.mxu1 %v2509_v8 }
 0x509   :  { %7793 = vmatprep.subr.mxu0 %v11681_v4  ;;  %7828 = vmatprep.subr.mxu1 %v11682_v57 }
 0x596   :  { %v2247_v24 = vpop.f32.mrf.mxu0  ;;  %v2318_v1 = vpop.f32.mrf.mxu1 }
 0x597   :  { %v9728_v44 = vadd.f32 %v2247_v24, %v9594_v48  ;;  %v9731_v59 = vadd.f32 %v2318_v1, %v9597_v32  ;;  %v11752_v24 = vld [vmem:[#allocation15_spill] sm:$0xff]  ;;  %v11753_v1 = vld [vmem:[#allocation16_spill] sm:$0xff] }
 0x598   :  { %v2249_v15 = vpop.f32.mrf.mxu0  ;;  %v2320_v36 = vpop.f32.mrf.mxu1 }
 0x599   :  { %v9734_v52 = vadd.f32 %v2249_v15, %v9600_v45  ;;  %v9737_v21 = vadd.f32 %v2320_v36, %v9603_v58  ;;  %v11750_v45 = vld [vmem:[#allocation13_spill] sm:$0xff]  ;;  %v11751_v58 = vld [vmem:[#allocation14_spill] sm:$0xff] }
 0x59a   :  { %v11754_v15 = vld [vmem:[#allocation17_spill] sm:$0xff]  ;;  %v11755_v36 = vld [vmem:[#allocation18_spill] sm:$0xff] }
 0x5b7   :  { %v7755_v33 = vpop.f32.mrf.mxu0  ;;  %v7790_v6 = vpop.f32.mrf.mxu1 }
 0x5b9   :  { %v7756_v14 = vpop.f32.mrf.mxu0  ;;  %v7791_v20 = vpop.f32.mrf.mxu1 }
 0x5ba   :  { %v7757_v25 = vadd.f32 %v7756_v14, %v7755_v33  ;;  %v7792_v48 = vadd.f32 %v7791_v20, %v7790_v6  ;;  %v11756_v6 = vld [vmem:[#allocation19_spill] sm:$0xff]  ;;  %v11757_v14 = vld [vmem:[#allocation20_spill] sm:$0xff] }
 0x5bc   :  { %v2417_v3 = vadd.f32 %v9469_v2, %v7757_v25  ;;  %v2688_v2 = vld [vmem:[%s11491_s0 + $0x38] sm:$0xff]  ;;  %v11758_v25 = vld [vmem:[#allocation21_spill] sm:$0xff] }
 0x5bd   :  { %v2690_v32 = vcombine.high %v2688_v2, %v2688_v2  ;;  %v2697_v33 = vrot.slane %v2688_v2, %v11755_v36  ;;  %v11764_v2 = vld [vmem:[#allocation27_spill] sm:$0xff] }
 0x5be   :  { %v2487_v60 = vadd.f32 %v7792_v48, %v2417_v3  ;;  %v11759_v3 = vld [vmem:[#allocation22_spill] sm:$0xff]  ;;  %v11760_v48 = vld [vmem:[#allocation23_spill] sm:$0xff] }
 0x5bf   :  { %v2704_v20 = vrot.slane %v2690_v32, %v11755_v36  ;;  %v11767_v32 = vld [vmem:[#allocation30_spill] sm:$0xff] }
 0x5c0   :  { %v2490_v8 = vmax.f32 %v2487_v60, 0.0  ;;  %v11761_v60 = vld [vmem:[#allocation24_spill] sm:$0xff] }
 0x5c2   :  { %6964 = vmatmul.mubr.msk.f32.vlgmr.msra.gmra.mxu0 %vm592_vm0, %v2490_v8  ;;  %6965 = vmatmul.mubr.msk.f32.vlgmr.msra.gmra.mxu1 %vm592_vm0, %v2490_v8  ;;  %v11762_v8 = vld [vmem:[#allocation25_spill] sm:$0xff] }
 0x5c3   :  { %7794 = vmatpush3.msra.mxu0 %v8604_v5  ;;  %7829 = vmatpush3.msra.mxu1 %v8617_v10 }
 0x5c4   :  { %7795 = vmatprep.subr.mxu0 %v8609_v7  ;;  %7830 = vmatprep.subr.mxu1 %v8619_v11 }
 0x5c5   :  { %7796 = vmatpush3.msra.mxu0 %v8621_v12  ;;  %7831 = vmatpush3.msra.mxu1 %v8623_v13 }
 0x5c6   :  { %7797 = vmatprep.subr.mxu0 %v8633_v16  ;;  %7832 = vmatprep.subr.mxu1 %v8635_v17 }
 0x5c7   :  { %7798 = vmatpush3.msra.mxu0 %v8639_v18  ;;  %7833 = vmatpush3.msra.mxu1 %v8641_v19 }
 0x5c8   :  { %7799 = vmatprep.subr.mxu0 %v8651_v22  ;;  %7834 = vmatprep.subr.mxu1 %v8653_v23 }
 0x5c9   :  { %7800 = vmatpush3.msra.mxu0 %v8663_v26  ;;  %7835 = vmatpush3.msra.mxu1 %v8665_v27 }
 0x5ca   :  { %7801 = vmatprep.subr.mxu0 %v8669_v28  ;;  %7836 = vmatprep.subr.mxu1 %v8671_v29 }
 0x5cb   :  { %7802 = vmatpush3.msra.mxu0 %v8675_v30  ;;  %7837 = vmatpush3.msra.mxu1 %v8677_v31 }
 0x5cc   :  { %7803 = vmatprep.subr.mxu0 %v8687_v34  ;;  %7838 = vmatprep.subr.mxu1 %v8689_v35 }
 0x5cd   :  { %7804 = vmatpush3.msra.mxu0 %v8699_v38  ;;  %7839 = vmatpush3.msra.mxu1 %v8701_v39 }
 0x5ce   :  { %7805 = vmatprep.subr.mxu0 %v8705_v40  ;;  %7840 = vmatprep.subr.mxu1 %v8707_v41 }
 0x5cf   :  { %7806 = vmatpush3.msra.mxu0 %v8711_v42  ;;  %7841 = vmatpush3.msra.mxu1 %v8713_v43 }
 0x5d0   :  { %7807 = vmatprep.subr.mxu0 %v8723_v46  ;;  %7842 = vmatprep.subr.mxu1 %v8725_v47 }
 0x5d1   :  { %7808 = vmatpush3.msra.mxu0 %v8735_v50  ;;  %7843 = vmatpush3.msra.mxu1 %v8737_v51 }
 0x5d2   :  { %7809 = vmatprep.subr.mxu0 %v8741_v53  ;;  %7844 = vmatprep.subr.mxu1 %v8743_v54 }
 0x5d3   :  { %7810 = vmatpush3.msra.mxu0 %v8747_v55  ;;  %7845 = vmatpush3.msra.mxu1 %v8749_v56 }
 0x5d4   :  { %7811 = vmatprep.subr.mxu0 %v8759_v61  ;;  %7846 = vmatprep.subr.mxu1 %v8761_v62 }
 0x5d5   :  { %7812 = vmatpush3.msra.mxu0 %v11633_v63  ;;  %7847 = vmatpush3.msra.mxu1 %v11634_v37 }
 0x5d6   :  { %7813 = vmatprep.subr.mxu0 %v11635_v9  ;;  %7848 = vmatprep.subr.mxu1 %v11636_v49 }
 0x5d7   :  { %7814 = vmatpush3.msra.mxu0 %v11637_v0  ;;  %7849 = vmatpush3.msra.mxu1 %v11750_v45 }
 0x5d8   :  { %7815 = vmatprep.subr.mxu0 %v11751_v58  ;;  %7850 = vmatprep.subr.mxu1 %v11752_v24  ;;  %v11766_v24 = vld [vmem:[#allocation29_spill] sm:$0xff] }
 0x5d9   :  { %7816 = vmatpush3.msra.mxu0 %v11753_v1  ;;  %7851 = vmatpush3.msra.mxu1 %v11754_v15  ;;  %v11763_v1 = vld [vmem:[#allocation26_spill] sm:$0xff]  ;;  %v2705_v15 = vcombine.high %v2697_v33, %v2697_v33 }
 0x5da   :  { %7817 = vmatprep.subr.mxu0 %v11756_v6  ;;  %7852 = vmatprep.subr.mxu1 %v11757_v14  ;;  %v11765_v6 = vld [vmem:[#allocation28_spill] sm:$0xff]  ;;  %v2706_v14 = vcombine.high %v2704_v20, %v2704_v20 }
 0x5db   :  { %7818 = vmatpush3.msra.mxu0 %v11758_v25  ;;  %7853 = vmatpush3.msra.mxu1 %v11759_v3  ;;  %v11768_v25 = vld [vmem:[#allocation31_spill] sm:$0xff]  ;;  %v11769_v3 = vld [vmem:[#allocation32_spill] sm:$0xff] }
 0x5dc   :  { %7819 = vmatprep.subr.mxu0 %v11760_v48  ;;  %7854 = vmatprep.subr.mxu1 %v11761_v60  ;;  %v11770_v48 = vld [vmem:[#allocation33_spill] sm:$0xff] }
 0x5dd   :  { %7820 = vmatpush3.msra.mxu0 %v11762_v8  ;;  %7855 = vmatpush3.msra.mxu1 %v11763_v1  ;;  %v11771_v8 = vld [vmem:[#allocation34_spill] sm:$0xff] }
 0x5de   :  { %7821 = vmatprep.subr.mxu0 %v11764_v2  ;;  %7856 = vmatprep.subr.mxu1 %v11765_v6  ;;  %v11772_v2 = vmov 0.0  }
 0x5df   :  { %7822 = vmatpush3.msra.mxu0 %v11766_v24  ;;  %7857 = vmatpush3.msra.mxu1 %v11767_v32  ;;  %v2866_v32 = vld [vmem:[%s11494_s3 + $0x3f0] sm:$0xff] }
 0x5e0   :  { %7823 = vmatprep.subr.mxu0 %v11768_v25  ;;  %7858 = vmatprep.subr.mxu1 %v11769_v3  ;;  %v2867_v3 = vld [vmem:[%s11494_s3 + $0x3f8] sm:$0xff] }
 0x5e1   :  { %7824 = vmatpush3.msra.mxu0 %v11770_v48  ;;  %2775 = vmatprep.mubr.f32.mxu0 %v2705_v15  ;;  %v2864_v15 = vld [vmem:[%s11494_s3 + $0x3e0] sm:$0xff]  ;;  %v2862_v48 = vld [vmem:[%s11494_s3 + $0x3d0] sm:$0xff]  ;;  %v2863_v25 = vld [vmem:[%s11494_s3 + $0x3d8] sm:$0xff] }
 0x5e2   :  { %7859 = vmatpush3.msra.mxu1 %v11771_v8  ;;  %2845 = vmatprep.mubr.f32.mxu1 %v2706_v14  ;;  %v2896_v8 = vunpack.c.l.bf16 %v2866_v32  ;;  %v2897_v14 = vunpack.c.h.bf16 %v2866_v32  ;;  %v2892_v24 = vunpack.c.l.bf16 %v2864_v15  ;;  %v2893_v6 = vunpack.c.h.bf16 %v2864_v15  ;;  %v2861_v15 = vld [vmem:[%s11494_s3 + $0x3c8] sm:$0xff] }
 0x5e3   :  { %2776 = vmatmul.mubr.f32.vlgmr.msra.gmra.mxu0 %v2697_v33  ;;  %2846 = vmatmul.mubr.f32.vlgmr.msra.gmra.mxu1 %v2704_v20  ;;  %v2898_v33 = vunpack.c.l.bf16 %v2867_v3  ;;  %v2899_v20 = vunpack.c.h.bf16 %v2867_v3  ;;  %v2889_v32 = vunpack.c.h.bf16 %v2862_v48  ;;  %v2891_v3 = vunpack.c.h.bf16 %v2863_v25 }
 0x5e4   :  { %2967 = vmatprep.mubr.f32.mxu0 %v11772_v2  ;;  %3038 = vmatprep.mubr.f32.mxu1 %v11772_v2  ;;  %v2865_v2 = vld [vmem:[%s11494_s3 + $0x3e8] sm:$0xff]  ;;  %v2888_v36 = vunpack.c.l.bf16 %v2862_v48  ;;  %v2890_v58 = vunpack.c.l.bf16 %v2863_v25  ;;  %v2886_v25 = vunpack.c.l.bf16 %v2861_v15 }
 0x5e5   :  { %v2894_v1 = vunpack.c.l.bf16 %v2865_v2  ;;  %v2895_v60 = vunpack.c.h.bf16 %v2865_v2  ;;  %2919 = vmatprep.subr.mxu0 %v2897_v14  ;;  %2990 = vmatprep.subr.mxu1 %v2899_v20  ;;  %v2860_v2 = vld [vmem:[%s11494_s3 + $0x3c0] sm:$0xff]  ;;  %v2887_v14 = vunpack.c.h.bf16 %v2861_v15  ;;  %v2857_v20 = vld [vmem:[%s11494_s3 + $0x3a8] sm:$0xff] }
 0x5e6   :  { %2920 = vmatpush1.msra.mxu0 %v2896_v8  ;;  %2991 = vmatpush1.msra.mxu1 %v2898_v33  ;;  %v2885_v8 = vunpack.c.h.bf16 %v2860_v2  ;;  %v2884_v48 = vunpack.c.l.bf16 %v2860_v2  ;;  %v2856_v33 = vld [vmem:[%s11494_s3 + $0x3a0] sm:$0xff]  ;;  %v2878_v15 = vunpack.c.l.bf16 %v2857_v20 }
 0x5e7   :  { %2921 = vmatprep.subr.mxu0 %v2893_v6  ;;  %2992 = vmatprep.subr.mxu1 %v2895_v60  ;;  %v2876_v2 = vunpack.c.l.bf16 %v2856_v33 }
 0x5e8   :  { %2922 = vmatpush1.msra.mxu0 %v2892_v24  ;;  %2993 = vmatpush1.msra.mxu1 %v2894_v1  ;;  %v2858_v24 = vld [vmem:[%s11494_s3 + $0x3b0] sm:$0xff] }
 0x5e9   :  { %2923 = vmatprep.subr.mxu0 %v2889_v32  ;;  %2994 = vmatprep.subr.mxu1 %v2891_v3  ;;  %v2881_v1 = vunpack.c.h.bf16 %v2858_v24  ;;  %v2880_v6 = vunpack.c.l.bf16 %v2858_v24  ;;  %v2877_v32 = vunpack.c.h.bf16 %v2856_v33  ;;  %v2879_v3 = vunpack.c.h.bf16 %v2857_v20 }
 0x5ea   :  { %2924 = vmatpush1.msra.mxu0 %v2888_v36  ;;  %2995 = vmatpush1.msra.mxu1 %v2890_v58  ;;  %v2859_v58 = vld [vmem:[%s11494_s3 + $0x3b8] sm:$0xff] }
 0x5eb   :  { %2925 = vmatprep.subr.mxu0 %v2885_v8  ;;  %2996 = vmatprep.subr.mxu1 %v2887_v14  ;;  %v2883_v36 = vunpack.c.h.bf16 %v2859_v58  ;;  %v2882_v60 = vunpack.c.l.bf16 %v2859_v58  ;;  %v2854_v8 = vld [vmem:[%s11494_s3 + $0x390] sm:$0xff]  ;;  %v2855_v14 = vld [vmem:[%s11494_s3 + $0x398] sm:$0xff] }
 0x5ec   :  { %2926 = vmatpush1.msra.mxu0 %v2884_v48  ;;  %2997 = vmatpush1.msra.mxu1 %v2886_v25  ;;  %v2873_v48 = vunpack.c.h.bf16 %v2854_v8  ;;  %v2875_v25 = vunpack.c.h.bf16 %v2855_v14  ;;  %v2872_v24 = vunpack.c.l.bf16 %v2854_v8  ;;  %v2874_v58 = vunpack.c.l.bf16 %v2855_v14 }
 0x5ed   :  { %2927 = vmatprep.subr.mxu0 %v2881_v1  ;;  %2998 = vmatprep.subr.mxu1 %v2883_v36  ;;  %v2852_v1 = vld [vmem:[%s11494_s3 + $0x380] sm:$0xff]  ;;  %v2853_v36 = vld [vmem:[%s11494_s3 + $0x388] sm:$0xff] }
 0x5ee   :  { %2928 = vmatpush1.msra.mxu0 %v2880_v6  ;;  %2999 = vmatpush1.msra.mxu1 %v2882_v60  ;;  %v2869_v6 = vunpack.c.h.bf16 %v2852_v1  ;;  %v2871_v60 = vunpack.c.h.bf16 %v2853_v36  ;;  %v2868_v33 = vunpack.c.l.bf16 %v2852_v1  ;;  %v2870_v20 = vunpack.c.l.bf16 %v2853_v36 }
 0x5ef   :  { %2929 = vmatprep.subr.mxu0 %v2877_v32  ;;  %3000 = vmatprep.subr.mxu1 %v2879_v3 }
 0x5f0   :  { %2930 = vmatpush1.msra.mxu0 %v2876_v2  ;;  %3001 = vmatpush1.msra.mxu1 %v2878_v15 }
 0x5f1   :  { %2931 = vmatprep.subr.mxu0 %v2873_v48  ;;  %3002 = vmatprep.subr.mxu1 %v2875_v25 }
 0x5f2   :  { %2932 = vmatpush1.msra.mxu0 %v2872_v24  ;;  %3003 = vmatpush1.msra.mxu1 %v2874_v58 }
 0x5f3   :  { %2933 = vmatprep.subr.mxu0 %v2869_v6  ;;  %3004 = vmatprep.subr.mxu1 %v2871_v60 }
 0x5f4   :  { %2934 = vmatpush1.msra.mxu0 %v2868_v33  ;;  %3005 = vmatpush1.msra.mxu1 %v2870_v20 }
 0x5f5   :  { %7863 = vmatprep.subr.mxu0 %v11681_v4  ;;  %7898 = vmatprep.subr.mxu1 %v11682_v57 }
 0x682   :  { %v2608_v32 = vpop.f32.mrf.mxu0  ;;  %v2679_v3 = vpop.f32.mrf.mxu1 }
 0x683   :  { %v9862_v2 = vadd.f32 %v2608_v32, %v9728_v44  ;;  %v9865_v15 = vadd.f32 %v2679_v3, %v9731_v59  ;;  %v9876_v44 = vld [vmem:[%s11493_s2] ss:$0 sm:$0xff]  ;;  %v11773_v32 = vld [vmem:[#allocation14_spill] sm:$0xff]  ;;  %v11774_v3 = vld [vmem:[#allocation15_spill] sm:$0xff] }
 0x684   :  { %v2610_v8 = vpop.f32.mrf.mxu0  ;;  %v2681_v14 = vpop.f32.mrf.mxu1 }
 0x685   :  { %v9868_v48 = vadd.f32 %v2610_v8, %v9734_v52  ;;  %v9871_v25 = vadd.f32 %v2681_v14, %v9737_v21  ;;  %v3049_v52 = vld [vmem:[%s11491_s0 + $0x40] sm:$0xff] }
 0x686   :  { %v3051_v21 = vcombine.high %v3049_v52, %v3049_v52  ;;  %v11775_v8 = vld [vmem:[#allocation16_spill] sm:$0xff]  ;;  %v11776_v14 = vld [vmem:[#allocation17_spill] sm:$0xff] }
 0x6a3   :  { %v7825_v24 = vpop.f32.mrf.mxu0  ;;  %v7860_v58 = vpop.f32.mrf.mxu1 }
 0x6a5   :  { %v7826_v1 = vpop.f32.mrf.mxu0  ;;  %v7861_v36 = vpop.f32.mrf.mxu1 }
 0x6a6   :  { %v7827_v6 = vadd.f32 %v7826_v1, %v7825_v24  ;;  %v7862_v60 = vadd.f32 %v7861_v36, %v7860_v58  ;;  %v11777_v24 = vld [vmem:[#allocation18_spill] sm:$0xff]  ;;  %v11778_v1 = vld [vmem:[#allocation19_spill] sm:$0xff]  ;;  %v11779_v36 = vld [vmem:[#allocation20_spill] sm:$0xff] }
 0x6a7   :  { %v3058_v58 = vrot.slane %v3049_v52, %v11777_v24  ;;  %v11786_v52 = vld [vmem:[#allocation27_spill] sm:$0xff] }
 0x6a8   :  { %v2778_v59 = vadd.f32 %v9876_v44, %v7827_v6  ;;  %v3065_v6 = vrot.slane %v3051_v21, %v11777_v24  ;;  %v11789_v21 = vld [vmem:[#allocation30_spill] sm:$0xff] }
 0x6aa   :  { %v2848_v33 = vadd.f32 %v7862_v60, %v2778_v59  ;;  %v11780_v59 = vld [vmem:[#allocation21_spill] sm:$0xff]  ;;  %v11781_v60 = vld [vmem:[#allocation22_spill] sm:$0xff] }
 0x6ac   :  { %v2851_v20 = vmax.f32 %v2848_v33, 0.0  ;;  %v11782_v33 = vld [vmem:[#allocation23_spill] sm:$0xff] }
 0x6ae   :  { %6966 = vmatmul.mubr.msk.f32.vlgmr.msra.gmra.mxu0 %vm592_vm0, %v2851_v20  ;;  %6967 = vmatmul.mubr.msk.f32.vlgmr.msra.gmra.mxu1 %vm592_vm0, %v2851_v20  ;;  %v11783_v20 = vld [vmem:[#allocation24_spill] sm:$0xff] }
 0x6af   :  { %7864 = vmatpush3.msra.mxu0 %v8604_v5  ;;  %7899 = vmatpush3.msra.mxu1 %v8617_v10 }
 0x6b0   :  { %7865 = vmatprep.subr.mxu0 %v8609_v7  ;;  %7900 = vmatprep.subr.mxu1 %v8619_v11 }
 0x6b1   :  { %7866 = vmatpush3.msra.mxu0 %v8621_v12  ;;  %7901 = vmatpush3.msra.mxu1 %v8623_v13 }
 0x6b2   :  { %7867 = vmatprep.subr.mxu0 %v8633_v16  ;;  %7902 = vmatprep.subr.mxu1 %v8635_v17 }
 0x6b3   :  { %7868 = vmatpush3.msra.mxu0 %v8639_v18  ;;  %7903 = vmatpush3.msra.mxu1 %v8641_v19 }
 0x6b4   :  { %7869 = vmatprep.subr.mxu0 %v8651_v22  ;;  %7904 = vmatprep.subr.mxu1 %v8653_v23 }
 0x6b5   :  { %7870 = vmatpush3.msra.mxu0 %v8663_v26  ;;  %7905 = vmatpush3.msra.mxu1 %v8665_v27 }
 0x6b6   :  { %7871 = vmatprep.subr.mxu0 %v8669_v28  ;;  %7906 = vmatprep.subr.mxu1 %v8671_v29 }
 0x6b7   :  { %7872 = vmatpush3.msra.mxu0 %v8675_v30  ;;  %7907 = vmatpush3.msra.mxu1 %v8677_v31 }
 0x6b8   :  { %7873 = vmatprep.subr.mxu0 %v8687_v34  ;;  %7908 = vmatprep.subr.mxu1 %v8689_v35 }
 0x6b9   :  { %7874 = vmatpush3.msra.mxu0 %v8699_v38  ;;  %7909 = vmatpush3.msra.mxu1 %v8701_v39 }
 0x6ba   :  { %7875 = vmatprep.subr.mxu0 %v8705_v40  ;;  %7910 = vmatprep.subr.mxu1 %v8707_v41 }
 0x6bb   :  { %7876 = vmatpush3.msra.mxu0 %v8711_v42  ;;  %7911 = vmatpush3.msra.mxu1 %v8713_v43 }
 0x6bc   :  { %7877 = vmatprep.subr.mxu0 %v8723_v46  ;;  %7912 = vmatprep.subr.mxu1 %v8725_v47 }
 0x6bd   :  { %7878 = vmatpush3.msra.mxu0 %v8735_v50  ;;  %7913 = vmatpush3.msra.mxu1 %v8737_v51 }
 0x6be   :  { %7879 = vmatprep.subr.mxu0 %v8741_v53  ;;  %7914 = vmatprep.subr.mxu1 %v8743_v54 }
 0x6bf   :  { %7880 = vmatpush3.msra.mxu0 %v8747_v55  ;;  %7915 = vmatpush3.msra.mxu1 %v8749_v56 }
 0x6c0   :  { %7881 = vmatprep.subr.mxu0 %v8759_v61  ;;  %7916 = vmatprep.subr.mxu1 %v8761_v62 }
 0x6c1   :  { %7882 = vmatpush3.msra.mxu0 %v11633_v63  ;;  %7917 = vmatpush3.msra.mxu1 %v11634_v37 }
 0x6c2   :  { %7883 = vmatprep.subr.mxu0 %v11635_v9  ;;  %7918 = vmatprep.subr.mxu1 %v11636_v49 }
 0x6c3   :  { %7884 = vmatpush3.msra.mxu0 %v11637_v0  ;;  %7919 = vmatpush3.msra.mxu1 %v11750_v45 }
 0x6c4   :  { %7885 = vmatprep.subr.mxu0 %v11773_v32  ;;  %7920 = vmatprep.subr.mxu1 %v11774_v3  ;;  %v11784_v3 = vld [vmem:[#allocation25_spill] sm:$0xff] }
 0x6c5   :  { %7886 = vmatpush3.msra.mxu0 %v11775_v8  ;;  %7921 = vmatpush3.msra.mxu1 %v11776_v14  ;;  %v11785_v8 = vld [vmem:[#allocation26_spill] sm:$0xff]  ;;  %v3066_v14 = vcombine.high %v3058_v58, %v3058_v58  ;;  %v11788_v32 = vld [vmem:[#allocation29_spill] sm:$0xff] }
 0x6c6   :  { %7887 = vmatprep.subr.mxu0 %v11778_v1  ;;  %7922 = vmatprep.subr.mxu1 %v11779_v36  ;;  %v11787_v1 = vld [vmem:[#allocation28_spill] sm:$0xff]  ;;  %v3067_v36 = vcombine.high %v3065_v6, %v3065_v6 }
 0x6c7   :  { %7888 = vmatpush3.msra.mxu0 %v11780_v59  ;;  %7923 = vmatpush3.msra.mxu1 %v11781_v60  ;;  %v11790_v59 = vld [vmem:[#allocation31_spill] sm:$0xff]  ;;  %v11791_v60 = vld [vmem:[#allocation32_spill] sm:$0xff] }
 0x6c8   :  { %7889 = vmatprep.subr.mxu0 %v11782_v33  ;;  %7924 = vmatprep.subr.mxu1 %v11783_v20  ;;  %v11792_v33 = vld [vmem:[#allocation33_spill] sm:$0xff] }
 0x6c9   :  { %7890 = vmatpush3.msra.mxu0 %v11784_v3  ;;  %7925 = vmatpush3.msra.mxu1 %v11785_v8  ;;  %v11793_v3 = vld [vmem:[#allocation34_spill] sm:$0xff] }
 0x6ca   :  { %7891 = vmatprep.subr.mxu0 %v11786_v52  ;;  %7926 = vmatprep.subr.mxu1 %v11787_v1  ;;  %v11794_v52 = vmov 0.0  }
 0x6cb   :  { %7892 = vmatpush3.msra.mxu0 %v11788_v32  ;;  %7927 = vmatpush3.msra.mxu1 %v11789_v21  ;;  %v3227_v21 = vld [vmem:[%s11494_s3 + $0x470] sm:$0xff] }
 0x6cc   :  { %7893 = vmatprep.subr.mxu0 %v11790_v59  ;;  %7928 = vmatprep.subr.mxu1 %v11791_v60  ;;  %v3228_v60 = vld [vmem:[%s11494_s3 + $0x478] sm:$0xff] }
 0x6cd   :  { %7894 = vmatpush3.msra.mxu0 %v11792_v33  ;;  %3136 = vmatprep.mubr.f32.mxu0 %v3066_v14  ;;  %v3225_v14 = vld [vmem:[%s11494_s3 + $0x460] sm:$0xff]  ;;  %v3223_v33 = vld [vmem:[%s11494_s3 + $0x450] sm:$0xff]  ;;  %v3224_v59 = vld [vmem:[%s11494_s3 + $0x458] sm:$0xff] }
 0x6ce   :  { %7929 = vmatpush3.msra.mxu1 %v11793_v3  ;;  %3206 = vmatprep.mubr.f32.mxu1 %v3067_v36  ;;  %v3257_v3 = vunpack.c.l.bf16 %v3227_v21  ;;  %v3258_v36 = vunpack.c.h.bf16 %v3227_v21  ;;  %v3253_v32 = vunpack.c.l.bf16 %v3225_v14  ;;  %v3254_v1 = vunpack.c.h.bf16 %v3225_v14  ;;  %v3222_v14 = vld [vmem:[%s11494_s3 + $0x448] sm:$0xff] }
 0x6cf   :  { %3137 = vmatmul.mubr.f32.vlgmr.msra.gmra.mxu0 %v3058_v58  ;;  %3207 = vmatmul.mubr.f32.vlgmr.msra.gmra.mxu1 %v3065_v6  ;;  %v3259_v58 = vunpack.c.l.bf16 %v3228_v60  ;;  %v3260_v6 = vunpack.c.h.bf16 %v3228_v60  ;;  %v3250_v21 = vunpack.c.h.bf16 %v3223_v33  ;;  %v3252_v60 = vunpack.c.h.bf16 %v3224_v59 }
 0x6d0   :  { %3328 = vmatprep.mubr.f32.mxu0 %v11794_v52  ;;  %3399 = vmatprep.mubr.f32.mxu1 %v11794_v52  ;;  %v3226_v52 = vld [vmem:[%s11494_s3 + $0x468] sm:$0xff]  ;;  %v3249_v24 = vunpack.c.l.bf16 %v3223_v33  ;;  %v3251_v45 = vunpack.c.l.bf16 %v3224_v59  ;;  %v3247_v59 = vunpack.c.l.bf16 %v3222_v14 }
 0x6d1   :  { %v3255_v8 = vunpack.c.l.bf16 %v3226_v52  ;;  %v3256_v20 = vunpack.c.h.bf16 %v3226_v52  ;;  %3280 = vmatprep.subr.mxu0 %v3258_v36  ;;  %3351 = vmatprep.subr.mxu1 %v3260_v6  ;;  %v3221_v52 = vld [vmem:[%s11494_s3 + $0x440] sm:$0xff]  ;;  %v3248_v36 = vunpack.c.h.bf16 %v3222_v14  ;;  %v3218_v6 = vld [vmem:[%s11494_s3 + $0x428] sm:$0xff] }
 0x6d2   :  { %3281 = vmatpush1.msra.mxu0 %v3257_v3  ;;  %3352 = vmatpush1.msra.mxu1 %v3259_v58  ;;  %v3246_v3 = vunpack.c.h.bf16 %v3221_v52  ;;  %v3245_v33 = vunpack.c.l.bf16 %v3221_v52  ;;  %v3217_v58 = vld [vmem:[%s11494_s3 + $0x420] sm:$0xff]  ;;  %v3239_v14 = vunpack.c.l.bf16 %v3218_v6 }
 0x6d3   :  { %3282 = vmatprep.subr.mxu0 %v3254_v1  ;;  %3353 = vmatprep.subr.mxu1 %v3256_v20  ;;  %v3237_v52 = vunpack.c.l.bf16 %v3217_v58 }
 0x6d4   :  { %3283 = vmatpush1.msra.mxu0 %v3253_v32  ;;  %3354 = vmatpush1.msra.mxu1 %v3255_v8  ;;  %v3219_v32 = vld [vmem:[%s11494_s3 + $0x430] sm:$0xff] }
 0x6d5   :  { %3284 = vmatprep.subr.mxu0 %v3250_v21  ;;  %3355 = vmatprep.subr.mxu1 %v3252_v60  ;;  %v3242_v8 = vunpack.c.h.bf16 %v3219_v32  ;;  %v3241_v1 = vunpack.c.l.bf16 %v3219_v32  ;;  %v3238_v21 = vunpack.c.h.bf16 %v3217_v58  ;;  %v3240_v60 = vunpack.c.h.bf16 %v3218_v6 }
 0x6d6   :  { %3285 = vmatpush1.msra.mxu0 %v3249_v24  ;;  %3356 = vmatpush1.msra.mxu1 %v3251_v45  ;;  %v3220_v45 = vld [vmem:[%s11494_s3 + $0x438] sm:$0xff] }
 0x6d7   :  { %3286 = vmatprep.subr.mxu0 %v3246_v3  ;;  %3357 = vmatprep.subr.mxu1 %v3248_v36  ;;  %v3244_v24 = vunpack.c.h.bf16 %v3220_v45  ;;  %v3243_v20 = vunpack.c.l.bf16 %v3220_v45  ;;  %v3215_v3 = vld [vmem:[%s11494_s3 + $0x410] sm:$0xff]  ;;  %v3216_v36 = vld [vmem:[%s11494_s3 + $0x418] sm:$0xff] }
 0x6d8   :  { %3287 = vmatpush1.msra.mxu0 %v3245_v33  ;;  %3358 = vmatpush1.msra.mxu1 %v3247_v59  ;;  %v3234_v33 = vunpack.c.h.bf16 %v3215_v3  ;;  %v3236_v59 = vunpack.c.h.bf16 %v3216_v36  ;;  %v3233_v32 = vunpack.c.l.bf16 %v3215_v3  ;;  %v3235_v45 = vunpack.c.l.bf16 %v3216_v36 }
 0x6d9   :  { %3288 = vmatprep.subr.mxu0 %v3242_v8  ;;  %3359 = vmatprep.subr.mxu1 %v3244_v24  ;;  %v3213_v8 = vld [vmem:[%s11494_s3 + $0x400] sm:$0xff]  ;;  %v3214_v24 = vld [vmem:[%s11494_s3 + $0x408] sm:$0xff] }
 0x6da   :  { %3289 = vmatpush1.msra.mxu0 %v3241_v1  ;;  %3360 = vmatpush1.msra.mxu1 %v3243_v20  ;;  %v3230_v1 = vunpack.c.h.bf16 %v3213_v8  ;;  %v3232_v20 = vunpack.c.h.bf16 %v3214_v24  ;;  %v3229_v58 = vunpack.c.l.bf16 %v3213_v8  ;;  %v3231_v6 = vunpack.c.l.bf16 %v3214_v24 }
 0x6db   :  { %3290 = vmatprep.subr.mxu0 %v3238_v21  ;;  %3361 = vmatprep.subr.mxu1 %v3240_v60 }
 0x6dc   :  { %3291 = vmatpush1.msra.mxu0 %v3237_v52  ;;  %3362 = vmatpush1.msra.mxu1 %v3239_v14 }
 0x6dd   :  { %3292 = vmatprep.subr.mxu0 %v3234_v33  ;;  %3363 = vmatprep.subr.mxu1 %v3236_v59 }
 0x6de   :  { %3293 = vmatpush1.msra.mxu0 %v3233_v32  ;;  %3364 = vmatpush1.msra.mxu1 %v3235_v45 }
 0x6df   :  { %3294 = vmatprep.subr.mxu0 %v3230_v1  ;;  %3365 = vmatprep.subr.mxu1 %v3232_v20 }
 0x6e0   :  { %3295 = vmatpush1.msra.mxu0 %v3229_v58  ;;  %3366 = vmatpush1.msra.mxu1 %v3231_v6 }
 0x6e1   :  { %7933 = vmatprep.subr.mxu0 %v11681_v4  ;;  %7968 = vmatprep.subr.mxu1 %v11682_v57 }
 0x76e   :  { %v2969_v21 = vpop.f32.mrf.mxu0  ;;  %v3040_v60 = vpop.f32.mrf.mxu1 }
 0x76f   :  { %v10001_v52 = vadd.f32 %v2969_v21, %v9862_v2  ;;  %v10004_v14 = vadd.f32 %v3040_v60, %v9865_v15  ;;  %v3410_v15 = vld [vmem:[%s11491_s0 + $0x48] sm:$0xff]  ;;  %v11797_v60 = vld [vmem:[#allocation15_spill] sm:$0xff] }
 0x770   :  { %v2971_v3 = vpop.f32.mrf.mxu0  ;;  %v3042_v36 = vpop.f32.mrf.mxu1  ;;  %v11796_v21 = vld [vmem:[#allocation14_spill] sm:$0xff] }
 0x771   :  { %v10007_v33 = vadd.f32 %v2971_v3, %v9868_v48  ;;  %v10010_v59 = vadd.f32 %v3042_v36, %v9871_v25  ;;  %v3412_v48 = vcombine.high %v3410_v15, %v3410_v15  ;;  %v11795_v25 = vld [vmem:[#allocation13_spill] sm:$0xff]  ;;  %v11798_v3 = vld [vmem:[#allocation16_spill] sm:$0xff] }
 0x772   :  { %v11799_v36 = vld [vmem:[#allocation17_spill] sm:$0xff] }
 0x78f   :  { %v7895_v32 = vpop.f32.mrf.mxu0  ;;  %v7930_v45 = vpop.f32.mrf.mxu1 }
 0x791   :  { %v7896_v8 = vpop.f32.mrf.mxu0  ;;  %v7931_v24 = vpop.f32.mrf.mxu1 }
 0x792   :  { %v7897_v1 = vadd.f32 %v7896_v8, %v7895_v32  ;;  %v7932_v2 = vadd.f32 %v7931_v24, %v7930_v45  ;;  %v11800_v32 = vld [vmem:[#allocation18_spill] sm:$0xff]  ;;  %v11801_v8 = vld [vmem:[#allocation19_spill] sm:$0xff]  ;;  %v11802_v24 = vld [vmem:[#allocation20_spill] sm:$0xff] }
 0x793   :  { %v3419_v45 = vrot.slane %v3410_v15, %v11800_v32  ;;  %v11809_v15 = vld [vmem:[#allocation27_spill] sm:$0xff] }
 0x794   :  { %v3139_v20 = vadd.f32 %v9876_v44, %v7897_v1  ;;  %v3426_v1 = vrot.slane %v3412_v48, %v11800_v32  ;;  %v11812_v48 = vld [vmem:[#allocation30_spill] sm:$0xff] }
 0x796   :  { %v3209_v58 = vadd.f32 %v7932_v2, %v3139_v20  ;;  %v11803_v20 = vld [vmem:[#allocation21_spill] sm:$0xff]  ;;  %v11804_v2 = vld [vmem:[#allocation22_spill] sm:$0xff] }
 0x798   :  { %v3212_v6 = vmax.f32 %v3209_v58, 0.0  ;;  %v11805_v58 = vld [vmem:[#allocation23_spill] sm:$0xff] }
 0x79a   :  { %6968 = vmatmul.mubr.msk.f32.vlgmr.msra.gmra.mxu0 %vm592_vm0, %v3212_v6  ;;  %6969 = vmatmul.mubr.msk.f32.vlgmr.msra.gmra.mxu1 %vm592_vm0, %v3212_v6  ;;  %v11806_v6 = vld [vmem:[#allocation24_spill] sm:$0xff] }
 0x79b   :  { %7934 = vmatpush3.msra.mxu0 %v8604_v5  ;;  %7969 = vmatpush3.msra.mxu1 %v8617_v10 }
 0x79c   :  { %7935 = vmatprep.subr.mxu0 %v8609_v7  ;;  %7970 = vmatprep.subr.mxu1 %v8619_v11 }
 0x79d   :  { %7936 = vmatpush3.msra.mxu0 %v8621_v12  ;;  %7971 = vmatpush3.msra.mxu1 %v8623_v13 }
 0x79e   :  { %7937 = vmatprep.subr.mxu0 %v8633_v16  ;;  %7972 = vmatprep.subr.mxu1 %v8635_v17 }
 0x79f   :  { %7938 = vmatpush3.msra.mxu0 %v8639_v18  ;;  %7973 = vmatpush3.msra.mxu1 %v8641_v19 }
 0x7a0   :  { %7939 = vmatprep.subr.mxu0 %v8651_v22  ;;  %7974 = vmatprep.subr.mxu1 %v8653_v23 }
 0x7a1   :  { %7940 = vmatpush3.msra.mxu0 %v8663_v26  ;;  %7975 = vmatpush3.msra.mxu1 %v8665_v27 }
 0x7a2   :  { %7941 = vmatprep.subr.mxu0 %v8669_v28  ;;  %7976 = vmatprep.subr.mxu1 %v8671_v29 }
 0x7a3   :  { %7942 = vmatpush3.msra.mxu0 %v8675_v30  ;;  %7977 = vmatpush3.msra.mxu1 %v8677_v31 }
 0x7a4   :  { %7943 = vmatprep.subr.mxu0 %v8687_v34  ;;  %7978 = vmatprep.subr.mxu1 %v8689_v35 }
 0x7a5   :  { %7944 = vmatpush3.msra.mxu0 %v8699_v38  ;;  %7979 = vmatpush3.msra.mxu1 %v8701_v39 }
 0x7a6   :  { %7945 = vmatprep.subr.mxu0 %v8705_v40  ;;  %7980 = vmatprep.subr.mxu1 %v8707_v41 }
 0x7a7   :  { %7946 = vmatpush3.msra.mxu0 %v8711_v42  ;;  %7981 = vmatpush3.msra.mxu1 %v8713_v43 }
 0x7a8   :  { %7947 = vmatprep.subr.mxu0 %v8723_v46  ;;  %7982 = vmatprep.subr.mxu1 %v8725_v47 }
 0x7a9   :  { %7948 = vmatpush3.msra.mxu0 %v8735_v50  ;;  %7983 = vmatpush3.msra.mxu1 %v8737_v51 }
 0x7aa   :  { %7949 = vmatprep.subr.mxu0 %v8741_v53  ;;  %7984 = vmatprep.subr.mxu1 %v8743_v54 }
 0x7ab   :  { %7950 = vmatpush3.msra.mxu0 %v8747_v55  ;;  %7985 = vmatpush3.msra.mxu1 %v8749_v56 }
 0x7ac   :  { %7951 = vmatprep.subr.mxu0 %v8759_v61  ;;  %7986 = vmatprep.subr.mxu1 %v8761_v62 }
 0x7ad   :  { %7952 = vmatpush3.msra.mxu0 %v11633_v63  ;;  %7987 = vmatpush3.msra.mxu1 %v11634_v37 }
 0x7ae   :  { %7953 = vmatprep.subr.mxu0 %v11635_v9  ;;  %7988 = vmatprep.subr.mxu1 %v11636_v49 }
 0x7af   :  { %7954 = vmatpush3.msra.mxu0 %v11637_v0  ;;  %7989 = vmatpush3.msra.mxu1 %v11795_v25 }
 0x7b0   :  { %7955 = vmatprep.subr.mxu0 %v11796_v21  ;;  %7990 = vmatprep.subr.mxu1 %v11797_v60  ;;  %v11807_v60 = vld [vmem:[#allocation25_spill] sm:$0xff] }
 0x7b1   :  { %7956 = vmatpush3.msra.mxu0 %v11798_v3  ;;  %7991 = vmatpush3.msra.mxu1 %v11799_v36  ;;  %v11808_v3 = vld [vmem:[#allocation26_spill] sm:$0xff]  ;;  %v3427_v36 = vcombine.high %v3419_v45, %v3419_v45  ;;  %v11811_v21 = vld [vmem:[#allocation29_spill] sm:$0xff] }
 0x7b2   :  { %7957 = vmatprep.subr.mxu0 %v11801_v8  ;;  %7992 = vmatprep.subr.mxu1 %v11802_v24  ;;  %v11810_v8 = vld [vmem:[#allocation28_spill] sm:$0xff]  ;;  %v3428_v24 = vcombine.high %v3426_v1, %v3426_v1 }
 0x7b3   :  { %7958 = vmatpush3.msra.mxu0 %v11803_v20  ;;  %7993 = vmatpush3.msra.mxu1 %v11804_v2  ;;  %v11813_v20 = vld [vmem:[#allocation31_spill] sm:$0xff]  ;;  %v11814_v2 = vld [vmem:[#allocation32_spill] sm:$0xff] }
 0x7b4   :  { %7959 = vmatprep.subr.mxu0 %v11805_v58  ;;  %7994 = vmatprep.subr.mxu1 %v11806_v6  ;;  %v11815_v58 = vld [vmem:[#allocation33_spill] sm:$0xff] }
 0x7b5   :  { %7960 = vmatpush3.msra.mxu0 %v11807_v60  ;;  %7995 = vmatpush3.msra.mxu1 %v11808_v3  ;;  %v11816_v60 = vld [vmem:[#allocation34_spill] sm:$0xff] }
 0x7b6   :  { %7961 = vmatprep.subr.mxu0 %v11809_v15  ;;  %7996 = vmatprep.subr.mxu1 %v11810_v8  ;;  %v11817_v15 = vmov 0.0  }
 0x7b7   :  { %7962 = vmatpush3.msra.mxu0 %v11811_v21  ;;  %7997 = vmatpush3.msra.mxu1 %v11812_v48  ;;  %v3588_v48 = vld [vmem:[%s11494_s3 + $0x4f0] sm:$0xff] }
 0x7b8   :  { %7963 = vmatprep.subr.mxu0 %v11813_v20  ;;  %7998 = vmatprep.subr.mxu1 %v11814_v2  ;;  %v3589_v2 = vld [vmem:[%s11494_s3 + $0x4f8] sm:$0xff] }
 0x7b9   :  { %7964 = vmatpush3.msra.mxu0 %v11815_v58  ;;  %3497 = vmatprep.mubr.f32.mxu0 %v3427_v36  ;;  %v3586_v36 = vld [vmem:[%s11494_s3 + $0x4e0] sm:$0xff]  ;;  %v3584_v58 = vld [vmem:[%s11494_s3 + $0x4d0] sm:$0xff]  ;;  %v3585_v20 = vld [vmem:[%s11494_s3 + $0x4d8] sm:$0xff] }
 0x7ba   :  { %7999 = vmatpush3.msra.mxu1 %v11816_v60  ;;  %3567 = vmatprep.mubr.f32.mxu1 %v3428_v24  ;;  %v3618_v60 = vunpack.c.l.bf16 %v3588_v48  ;;  %v3619_v24 = vunpack.c.h.bf16 %v3588_v48  ;;  %v3614_v21 = vunpack.c.l.bf16 %v3586_v36  ;;  %v3615_v8 = vunpack.c.h.bf16 %v3586_v36  ;;  %v3583_v36 = vld [vmem:[%s11494_s3 + $0x4c8] sm:$0xff] }
 0x7bb   :  { %3498 = vmatmul.mubr.f32.vlgmr.msra.gmra.mxu0 %v3419_v45  ;;  %3568 = vmatmul.mubr.f32.vlgmr.msra.gmra.mxu1 %v3426_v1  ;;  %v3620_v45 = vunpack.c.l.bf16 %v3589_v2  ;;  %v3621_v1 = vunpack.c.h.bf16 %v3589_v2  ;;  %v3611_v48 = vunpack.c.h.bf16 %v3584_v58  ;;  %v3613_v2 = vunpack.c.h.bf16 %v3585_v20 }
 0x7bc   :  { %3689 = vmatprep.mubr.f32.mxu0 %v11817_v15  ;;  %3760 = vmatprep.mubr.f32.mxu1 %v11817_v15  ;;  %v3587_v15 = vld [vmem:[%s11494_s3 + $0x4e8] sm:$0xff]  ;;  %v3610_v32 = vunpack.c.l.bf16 %v3584_v58  ;;  %v3612_v25 = vunpack.c.l.bf16 %v3585_v20  ;;  %v3608_v20 = vunpack.c.l.bf16 %v3583_v36 }
 0x7bd   :  { %v3616_v3 = vunpack.c.l.bf16 %v3587_v15  ;;  %v3617_v6 = vunpack.c.h.bf16 %v3587_v15  ;;  %3641 = vmatprep.subr.mxu0 %v3619_v24  ;;  %3712 = vmatprep.subr.mxu1 %v3621_v1  ;;  %v3582_v15 = vld [vmem:[%s11494_s3 + $0x4c0] sm:$0xff]  ;;  %v3609_v24 = vunpack.c.h.bf16 %v3583_v36  ;;  %v3579_v1 = vld [vmem:[%s11494_s3 + $0x4a8] sm:$0xff] }
 0x7be   :  { %3642 = vmatpush1.msra.mxu0 %v3618_v60  ;;  %3713 = vmatpush1.msra.mxu1 %v3620_v45  ;;  %v3607_v60 = vunpack.c.h.bf16 %v3582_v15  ;;  %v3606_v58 = vunpack.c.l.bf16 %v3582_v15  ;;  %v3578_v45 = vld [vmem:[%s11494_s3 + $0x4a0] sm:$0xff]  ;;  %v3600_v36 = vunpack.c.l.bf16 %v3579_v1 }
 0x7bf   :  { %3643 = vmatprep.subr.mxu0 %v3615_v8  ;;  %3714 = vmatprep.subr.mxu1 %v3617_v6  ;;  %v3598_v15 = vunpack.c.l.bf16 %v3578_v45 }
 0x7c0   :  { %3644 = vmatpush1.msra.mxu0 %v3614_v21  ;;  %3715 = vmatpush1.msra.mxu1 %v3616_v3  ;;  %v3580_v21 = vld [vmem:[%s11494_s3 + $0x4b0] sm:$0xff] }
 0x7c1   :  { %3645 = vmatprep.subr.mxu0 %v3611_v48  ;;  %3716 = vmatprep.subr.mxu1 %v3613_v2  ;;  %v3603_v3 = vunpack.c.h.bf16 %v3580_v21  ;;  %v3602_v8 = vunpack.c.l.bf16 %v3580_v21  ;;  %v3599_v48 = vunpack.c.h.bf16 %v3578_v45  ;;  %v3601_v2 = vunpack.c.h.bf16 %v3579_v1 }
 0x7c2   :  { %3646 = vmatpush1.msra.mxu0 %v3610_v32  ;;  %3717 = vmatpush1.msra.mxu1 %v3612_v25  ;;  %v3581_v25 = vld [vmem:[%s11494_s3 + $0x4b8] sm:$0xff] }
 0x7c3   :  { %3647 = vmatprep.subr.mxu0 %v3607_v60  ;;  %3718 = vmatprep.subr.mxu1 %v3609_v24  ;;  %v3605_v32 = vunpack.c.h.bf16 %v3581_v25  ;;  %v3604_v6 = vunpack.c.l.bf16 %v3581_v25  ;;  %v3576_v60 = vld [vmem:[%s11494_s3 + $0x490] sm:$0xff]  ;;  %v3577_v24 = vld [vmem:[%s11494_s3 + $0x498] sm:$0xff] }
 0x7c4   :  { %3648 = vmatpush1.msra.mxu0 %v3606_v58  ;;  %3719 = vmatpush1.msra.mxu1 %v3608_v20  ;;  %v3595_v58 = vunpack.c.h.bf16 %v3576_v60  ;;  %v3597_v20 = vunpack.c.h.bf16 %v3577_v24  ;;  %v3594_v21 = vunpack.c.l.bf16 %v3576_v60  ;;  %v3596_v25 = vunpack.c.l.bf16 %v3577_v24 }
 0x7c5   :  { %3649 = vmatprep.subr.mxu0 %v3603_v3  ;;  %3720 = vmatprep.subr.mxu1 %v3605_v32  ;;  %v3574_v3 = vld [vmem:[%s11494_s3 + $0x480] sm:$0xff]  ;;  %v3575_v32 = vld [vmem:[%s11494_s3 + $0x488] sm:$0xff] }
 0x7c6   :  { %3650 = vmatpush1.msra.mxu0 %v3602_v8  ;;  %3721 = vmatpush1.msra.mxu1 %v3604_v6  ;;  %v3591_v8 = vunpack.c.h.bf16 %v3574_v3  ;;  %v3593_v6 = vunpack.c.h.bf16 %v3575_v32  ;;  %v3590_v45 = vunpack.c.l.bf16 %v3574_v3  ;;  %v3592_v1 = vunpack.c.l.bf16 %v3575_v32 }
 0x7c7   :  { %3651 = vmatprep.subr.mxu0 %v3599_v48  ;;  %3722 = vmatprep.subr.mxu1 %v3601_v2 }
 0x7c8   :  { %3652 = vmatpush1.msra.mxu0 %v3598_v15  ;;  %3723 = vmatpush1.msra.mxu1 %v3600_v36 }
 0x7c9   :  { %3653 = vmatprep.subr.mxu0 %v3595_v58  ;;  %3724 = vmatprep.subr.mxu1 %v3597_v20 }
 0x7ca   :  { %3654 = vmatpush1.msra.mxu0 %v3594_v21  ;;  %3725 = vmatpush1.msra.mxu1 %v3596_v25 }
 0x7cb   :  { %3655 = vmatprep.subr.mxu0 %v3591_v8  ;;  %3726 = vmatprep.subr.mxu1 %v3593_v6 }
 0x7cc   :  { %3656 = vmatpush1.msra.mxu0 %v3590_v45  ;;  %3727 = vmatpush1.msra.mxu1 %v3592_v1 }
 0x7cd   :  { %8003 = vmatprep.subr.mxu0 %v11681_v4  ;;  %8038 = vmatprep.subr.mxu1 %v11682_v57 }
 0x85a   :  { %v3330_v48 = vpop.f32.mrf.mxu0  ;;  %v3401_v2 = vpop.f32.mrf.mxu1 }
 0x85b   :  { %v10135_v15 = vadd.f32 %v3330_v48, %v10001_v52  ;;  %v10138_v36 = vadd.f32 %v3401_v2, %v10004_v14  ;;  %v11820_v48 = vld [vmem:[#allocation15_spill] sm:$0xff]  ;;  %v11821_v2 = vld [vmem:[#allocation16_spill] sm:$0xff] }
 0x85c   :  { %v3332_v60 = vpop.f32.mrf.mxu0  ;;  %v3403_v24 = vpop.f32.mrf.mxu1 }
 0x85d   :  { %v10141_v58 = vadd.f32 %v3332_v60, %v10007_v33  ;;  %v10144_v20 = vadd.f32 %v3403_v24, %v10010_v59  ;;  %v11818_v33 = vld [vmem:[#allocation13_spill] sm:$0xff]  ;;  %v11819_v59 = vld [vmem:[#allocation14_spill] sm:$0xff] }
 0x85e   :  { %v11822_v60 = vld [vmem:[#allocation17_spill] sm:$0xff]  ;;  %v11823_v24 = vld [vmem:[#allocation18_spill] sm:$0xff] }
 0x87b   :  { %v7965_v21 = vpop.f32.mrf.mxu0  ;;  %v8000_v25 = vpop.f32.mrf.mxu1 }
 0x87d   :  { %v7966_v3 = vpop.f32.mrf.mxu0  ;;  %v8001_v32 = vpop.f32.mrf.mxu1 }
 0x87e   :  { %v7967_v8 = vadd.f32 %v7966_v3, %v7965_v21  ;;  %v8002_v52 = vadd.f32 %v8001_v32, %v8000_v25  ;;  %v11824_v25 = vld [vmem:[#allocation19_spill] sm:$0xff]  ;;  %v11825_v3 = vld [vmem:[#allocation20_spill] sm:$0xff] }
 0x880   :  { %v3500_v6 = vadd.f32 %v9876_v44, %v7967_v8  ;;  %v3771_v44 = vld [vmem:[%s11491_s0 + $0x50] sm:$0xff]  ;;  %v11826_v8 = vld [vmem:[#allocation21_spill] sm:$0xff] }
 0x881   :  { %v3773_v14 = vcombine.high %v3771_v44, %v3771_v44  ;;  %v3780_v21 = vrot.slane %v3771_v44, %v11823_v24  ;;  %v11832_v44 = vld [vmem:[#allocation27_spill] sm:$0xff] }
 0x882   :  { %v3570_v45 = vadd.f32 %v8002_v52, %v3500_v6  ;;  %v11827_v6 = vld [vmem:[#allocation22_spill] sm:$0xff]  ;;  %v11828_v52 = vld [vmem:[#allocation23_spill] sm:$0xff] }
 0x883   :  { %v3787_v32 = vrot.slane %v3773_v14, %v11823_v24  ;;  %v11835_v14 = vld [vmem:[#allocation30_spill] sm:$0xff] }
 0x884   :  { %v3573_v1 = vmax.f32 %v3570_v45, 0.0  ;;  %v11829_v45 = vld [vmem:[#allocation24_spill] sm:$0xff] }
 0x886   :  { %6970 = vmatmul.mubr.msk.f32.vlgmr.msra.gmra.mxu0 %vm592_vm0, %v3573_v1  ;;  %6971 = vmatmul.mubr.msk.f32.vlgmr.msra.gmra.mxu1 %vm592_vm0, %v3573_v1  ;;  %v11830_v1 = vld [vmem:[#allocation25_spill] sm:$0xff] }
 0x887   :  { %8004 = vmatpush3.msra.mxu0 %v8604_v5  ;;  %8039 = vmatpush3.msra.mxu1 %v8617_v10 }
 0x888   :  { %8005 = vmatprep.subr.mxu0 %v8609_v7  ;;  %8040 = vmatprep.subr.mxu1 %v8619_v11 }
 0x889   :  { %8006 = vmatpush3.msra.mxu0 %v8621_v12  ;;  %8041 = vmatpush3.msra.mxu1 %v8623_v13 }
 0x88a   :  { %8007 = vmatprep.subr.mxu0 %v8633_v16  ;;  %8042 = vmatprep.subr.mxu1 %v8635_v17 }
 0x88b   :  { %8008 = vmatpush3.msra.mxu0 %v8639_v18  ;;  %8043 = vmatpush3.msra.mxu1 %v8641_v19 }
 0x88c   :  { %8009 = vmatprep.subr.mxu0 %v8651_v22  ;;  %8044 = vmatprep.subr.mxu1 %v8653_v23 }
 0x88d   :  { %8010 = vmatpush3.msra.mxu0 %v8663_v26  ;;  %8045 = vmatpush3.msra.mxu1 %v8665_v27 }
 0x88e   :  { %8011 = vmatprep.subr.mxu0 %v8669_v28  ;;  %8046 = vmatprep.subr.mxu1 %v8671_v29 }
 0x88f   :  { %8012 = vmatpush3.msra.mxu0 %v8675_v30  ;;  %8047 = vmatpush3.msra.mxu1 %v8677_v31 }
 0x890   :  { %8013 = vmatprep.subr.mxu0 %v8687_v34  ;;  %8048 = vmatprep.subr.mxu1 %v8689_v35 }
 0x891   :  { %8014 = vmatpush3.msra.mxu0 %v8699_v38  ;;  %8049 = vmatpush3.msra.mxu1 %v8701_v39 }
 0x892   :  { %8015 = vmatprep.subr.mxu0 %v8705_v40  ;;  %8050 = vmatprep.subr.mxu1 %v8707_v41 }
 0x893   :  { %8016 = vmatpush3.msra.mxu0 %v8711_v42  ;;  %8051 = vmatpush3.msra.mxu1 %v8713_v43 }
 0x894   :  { %8017 = vmatprep.subr.mxu0 %v8723_v46  ;;  %8052 = vmatprep.subr.mxu1 %v8725_v47 }
 0x895   :  { %8018 = vmatpush3.msra.mxu0 %v8735_v50  ;;  %8053 = vmatpush3.msra.mxu1 %v8737_v51 }
 0x896   :  { %8019 = vmatprep.subr.mxu0 %v8741_v53  ;;  %8054 = vmatprep.subr.mxu1 %v8743_v54 }
 0x897   :  { %8020 = vmatpush3.msra.mxu0 %v8747_v55  ;;  %8055 = vmatpush3.msra.mxu1 %v8749_v56 }
 0x898   :  { %8021 = vmatprep.subr.mxu0 %v8759_v61  ;;  %8056 = vmatprep.subr.mxu1 %v8761_v62 }
 0x899   :  { %8022 = vmatpush3.msra.mxu0 %v11633_v63  ;;  %8057 = vmatpush3.msra.mxu1 %v11634_v37 }
 0x89a   :  { %8023 = vmatprep.subr.mxu0 %v11635_v9  ;;  %8058 = vmatprep.subr.mxu1 %v11636_v49 }
 0x89b   :  { %8024 = vmatpush3.msra.mxu0 %v11637_v0  ;;  %8059 = vmatpush3.msra.mxu1 %v11818_v33 }
 0x89c   :  { %8025 = vmatprep.subr.mxu0 %v11819_v59  ;;  %8060 = vmatprep.subr.mxu1 %v11820_v48  ;;  %v11834_v48 = vld [vmem:[#allocation29_spill] sm:$0xff] }
 0x89d   :  { %8026 = vmatpush3.msra.mxu0 %v11821_v2  ;;  %8061 = vmatpush3.msra.mxu1 %v11822_v60  ;;  %v11831_v2 = vld [vmem:[#allocation26_spill] sm:$0xff]  ;;  %v3788_v60 = vcombine.high %v3780_v21, %v3780_v21 }
 0x89e   :  { %8027 = vmatprep.subr.mxu0 %v11824_v25  ;;  %8062 = vmatprep.subr.mxu1 %v11825_v3  ;;  %v11833_v25 = vld [vmem:[#allocation28_spill] sm:$0xff]  ;;  %v3789_v3 = vcombine.high %v3787_v32, %v3787_v32 }
 0x89f   :  { %8028 = vmatpush3.msra.mxu0 %v11826_v8  ;;  %8063 = vmatpush3.msra.mxu1 %v11827_v6  ;;  %v11836_v8 = vld [vmem:[#allocation31_spill] sm:$0xff]  ;;  %v11837_v6 = vld [vmem:[#allocation32_spill] sm:$0xff] }
 0x8a0   :  { %8029 = vmatprep.subr.mxu0 %v11828_v52  ;;  %8064 = vmatprep.subr.mxu1 %v11829_v45  ;;  %v11838_v52 = vld [vmem:[#allocation33_spill] sm:$0xff] }
 0x8a1   :  { %8030 = vmatpush3.msra.mxu0 %v11830_v1  ;;  %8065 = vmatpush3.msra.mxu1 %v11831_v2  ;;  %v11839_v1 = vld [vmem:[#allocation34_spill] sm:$0xff] }
 0x8a2   :  { %8031 = vmatprep.subr.mxu0 %v11832_v44  ;;  %8066 = vmatprep.subr.mxu1 %v11833_v25  ;;  %v11840_v44 = vmov 0.0  }
 0x8a3   :  { %8032 = vmatpush3.msra.mxu0 %v11834_v48  ;;  %8067 = vmatpush3.msra.mxu1 %v11835_v14  ;;  %v3949_v14 = vld [vmem:[%s11494_s3 + $0x570] sm:$0xff] }
 0x8a4   :  { %8033 = vmatprep.subr.mxu0 %v11836_v8  ;;  %8068 = vmatprep.subr.mxu1 %v11837_v6  ;;  %v3950_v6 = vld [vmem:[%s11494_s3 + $0x578] sm:$0xff] }
 0x8a5   :  { %8034 = vmatpush3.msra.mxu0 %v11838_v52  ;;  %3858 = vmatprep.mubr.f32.mxu0 %v3788_v60  ;;  %v3947_v60 = vld [vmem:[%s11494_s3 + $0x560] sm:$0xff]  ;;  %v3945_v52 = vld [vmem:[%s11494_s3 + $0x550] sm:$0xff]  ;;  %v3946_v8 = vld [vmem:[%s11494_s3 + $0x558] sm:$0xff] }
 0x8a6   :  { %8069 = vmatpush3.msra.mxu1 %v11839_v1  ;;  %3928 = vmatprep.mubr.f32.mxu1 %v3789_v3  ;;  %v3979_v1 = vunpack.c.l.bf16 %v3949_v14  ;;  %v3980_v3 = vunpack.c.h.bf16 %v3949_v14  ;;  %v3975_v48 = vunpack.c.l.bf16 %v3947_v60  ;;  %v3976_v25 = vunpack.c.h.bf16 %v3947_v60  ;;  %v3944_v60 = vld [vmem:[%s11494_s3 + $0x548] sm:$0xff] }
 0x8a7   :  { %3859 = vmatmul.mubr.f32.vlgmr.msra.gmra.mxu0 %v3780_v21  ;;  %3929 = vmatmul.mubr.f32.vlgmr.msra.gmra.mxu1 %v3787_v32  ;;  %v3981_v21 = vunpack.c.l.bf16 %v3950_v6  ;;  %v3982_v32 = vunpack.c.h.bf16 %v3950_v6  ;;  %v3972_v14 = vunpack.c.h.bf16 %v3945_v52  ;;  %v3974_v6 = vunpack.c.h.bf16 %v3946_v8 }
 0x8a8   :  { %4050 = vmatprep.mubr.f32.mxu0 %v11840_v44  ;;  %4121 = vmatprep.mubr.f32.mxu1 %v11840_v44  ;;  %v3948_v44 = vld [vmem:[%s11494_s3 + $0x568] sm:$0xff]  ;;  %v3971_v24 = vunpack.c.l.bf16 %v3945_v52  ;;  %v3973_v59 = vunpack.c.l.bf16 %v3946_v8  ;;  %v3969_v8 = vunpack.c.l.bf16 %v3944_v60 }
 0x8a9   :  { %v3977_v2 = vunpack.c.l.bf16 %v3948_v44  ;;  %v3978_v45 = vunpack.c.h.bf16 %v3948_v44  ;;  %4002 = vmatprep.subr.mxu0 %v3980_v3  ;;  %4073 = vmatprep.subr.mxu1 %v3982_v32  ;;  %v3943_v44 = vld [vmem:[%s11494_s3 + $0x540] sm:$0xff]  ;;  %v3970_v3 = vunpack.c.h.bf16 %v3944_v60  ;;  %v3940_v32 = vld [vmem:[%s11494_s3 + $0x528] sm:$0xff] }
 0x8aa   :  { %4003 = vmatpush1.msra.mxu0 %v3979_v1  ;;  %4074 = vmatpush1.msra.mxu1 %v3981_v21  ;;  %v3968_v1 = vunpack.c.h.bf16 %v3943_v44  ;;  %v3967_v52 = vunpack.c.l.bf16 %v3943_v44  ;;  %v3939_v21 = vld [vmem:[%s11494_s3 + $0x520] sm:$0xff]  ;;  %v3961_v60 = vunpack.c.l.bf16 %v3940_v32 }
 0x8ab   :  { %4004 = vmatprep.subr.mxu0 %v3976_v25  ;;  %4075 = vmatprep.subr.mxu1 %v3978_v45  ;;  %v3959_v44 = vunpack.c.l.bf16 %v3939_v21 }
 0x8ac   :  { %4005 = vmatpush1.msra.mxu0 %v3975_v48  ;;  %4076 = vmatpush1.msra.mxu1 %v3977_v2  ;;  %v3941_v48 = vld [vmem:[%s11494_s3 + $0x530] sm:$0xff] }
 0x8ad   :  { %4006 = vmatprep.subr.mxu0 %v3972_v14  ;;  %4077 = vmatprep.subr.mxu1 %v3974_v6  ;;  %v3964_v2 = vunpack.c.h.bf16 %v3941_v48  ;;  %v3963_v25 = vunpack.c.l.bf16 %v3941_v48  ;;  %v3960_v14 = vunpack.c.h.bf16 %v3939_v21  ;;  %v3962_v6 = vunpack.c.h.bf16 %v3940_v32 }
 0x8ae   :  { %4007 = vmatpush1.msra.mxu0 %v3971_v24  ;;  %4078 = vmatpush1.msra.mxu1 %v3973_v59  ;;  %v3942_v59 = vld [vmem:[%s11494_s3 + $0x538] sm:$0xff] }
 0x8af   :  { %4008 = vmatprep.subr.mxu0 %v3968_v1  ;;  %4079 = vmatprep.subr.mxu1 %v3970_v3  ;;  %v3966_v24 = vunpack.c.h.bf16 %v3942_v59  ;;  %v3965_v45 = vunpack.c.l.bf16 %v3942_v59  ;;  %v3937_v1 = vld [vmem:[%s11494_s3 + $0x510] sm:$0xff]  ;;  %v3938_v3 = vld [vmem:[%s11494_s3 + $0x518] sm:$0xff] }
 0x8b0   :  { %4009 = vmatpush1.msra.mxu0 %v3967_v52  ;;  %4080 = vmatpush1.msra.mxu1 %v3969_v8  ;;  %v3956_v52 = vunpack.c.h.bf16 %v3937_v1  ;;  %v3958_v8 = vunpack.c.h.bf16 %v3938_v3  ;;  %v3955_v48 = vunpack.c.l.bf16 %v3937_v1  ;;  %v3957_v59 = vunpack.c.l.bf16 %v3938_v3 }
 0x8b1   :  { %4010 = vmatprep.subr.mxu0 %v3964_v2  ;;  %4081 = vmatprep.subr.mxu1 %v3966_v24  ;;  %v3935_v2 = vld [vmem:[%s11494_s3 + $0x500] sm:$0xff]  ;;  %v3936_v24 = vld [vmem:[%s11494_s3 + $0x508] sm:$0xff] }
 0x8b2   :  { %4011 = vmatpush1.msra.mxu0 %v3963_v25  ;;  %4082 = vmatpush1.msra.mxu1 %v3965_v45  ;;  %v3952_v25 = vunpack.c.h.bf16 %v3935_v2  ;;  %v3954_v45 = vunpack.c.h.bf16 %v3936_v24  ;;  %v3951_v21 = vunpack.c.l.bf16 %v3935_v2  ;;  %v3953_v32 = vunpack.c.l.bf16 %v3936_v24 }
 0x8b3   :  { %4012 = vmatprep.subr.mxu0 %v3960_v14  ;;  %4083 = vmatprep.subr.mxu1 %v3962_v6 }
 0x8b4   :  { %4013 = vmatpush1.msra.mxu0 %v3959_v44  ;;  %4084 = vmatpush1.msra.mxu1 %v3961_v60 }
 0x8b5   :  { %4014 = vmatprep.subr.mxu0 %v3956_v52  ;;  %4085 = vmatprep.subr.mxu1 %v3958_v8 }
 0x8b6   :  { %4015 = vmatpush1.msra.mxu0 %v3955_v48  ;;  %4086 = vmatpush1.msra.mxu1 %v3957_v59 }
 0x8b7   :  { %4016 = vmatprep.subr.mxu0 %v3952_v25  ;;  %4087 = vmatprep.subr.mxu1 %v3954_v45 }
 0x8b8   :  { %4017 = vmatpush1.msra.mxu0 %v3951_v21  ;;  %4088 = vmatpush1.msra.mxu1 %v3953_v32 }
 0x8b9   :  { %8073 = vmatprep.subr.mxu0 %v11681_v4  ;;  %8108 = vmatprep.subr.mxu1 %v11682_v57 }
 0x946   :  { %v3691_v14 = vpop.f32.mrf.mxu0  ;;  %v3762_v6 = vpop.f32.mrf.mxu1 }
 0x947   :  { %v10269_v44 = vadd.f32 %v3691_v14, %v10135_v15  ;;  %v10272_v60 = vadd.f32 %v3762_v6, %v10138_v36  ;;  %v10283_v15 = vld [vmem:[%s11493_s2] ss:$0 sm:$0xff]  ;;  %v11841_v14 = vld [vmem:[#allocation14_spill] sm:$0xff]  ;;  %v11842_v6 = vld [vmem:[#allocation15_spill] sm:$0xff] }
 0x948   :  { %v3693_v1 = vpop.f32.mrf.mxu0  ;;  %v3764_v3 = vpop.f32.mrf.mxu1 }
 0x949   :  { %v10275_v52 = vadd.f32 %v3693_v1, %v10141_v58  ;;  %v10278_v8 = vadd.f32 %v3764_v3, %v10144_v20  ;;  %v4132_v58 = vld [vmem:[%s11491_s0 + $0x58] sm:$0xff]  ;;  %v11844_v3 = vld [vmem:[#allocation17_spill] sm:$0xff] }
 0x94a   :  { %v4134_v20 = vcombine.high %v4132_v58, %v4132_v58  ;;  %v11843_v1 = vld [vmem:[#allocation16_spill] sm:$0xff] }
 0x967   :  { %v8035_v48 = vpop.f32.mrf.mxu0  ;;  %v8070_v59 = vpop.f32.mrf.mxu1 }
 0x969   :  { %v8036_v2 = vpop.f32.mrf.mxu0  ;;  %v8071_v24 = vpop.f32.mrf.mxu1 }
 0x96a   :  { %v8037_v25 = vadd.f32 %v8036_v2, %v8035_v48  ;;  %v8072_v45 = vadd.f32 %v8071_v24, %v8070_v59  ;;  %v11845_v48 = vld [vmem:[#allocation18_spill] sm:$0xff]  ;;  %v11846_v2 = vld [vmem:[#allocation19_spill] sm:$0xff]  ;;  %v11847_v24 = vld [vmem:[#allocation20_spill] sm:$0xff] }
 0x96b   :  { %v4141_v59 = vrot.slane %v4132_v58, %v11845_v48  ;;  %v11854_v58 = vld [vmem:[#allocation27_spill] sm:$0xff] }
 0x96c   :  { %v3861_v36 = vadd.f32 %v10283_v15, %v8037_v25  ;;  %v4148_v25 = vrot.slane %v4134_v20, %v11845_v48  ;;  %v11857_v20 = vld [vmem:[#allocation30_spill] sm:$0xff] }
 0x96e   :  { %v3931_v21 = vadd.f32 %v8072_v45, %v3861_v36  ;;  %v11848_v36 = vld [vmem:[#allocation21_spill] sm:$0xff]  ;;  %v11849_v45 = vld [vmem:[#allocation22_spill] sm:$0xff] }
 0x970   :  { %v3934_v32 = vmax.f32 %v3931_v21, 0.0  ;;  %v11850_v21 = vld [vmem:[#allocation23_spill] sm:$0xff] }
 0x972   :  { %6972 = vmatmul.mubr.msk.f32.vlgmr.msra.gmra.mxu0 %vm592_vm0, %v3934_v32  ;;  %6973 = vmatmul.mubr.msk.f32.vlgmr.msra.gmra.mxu1 %vm592_vm0, %v3934_v32  ;;  %v11851_v32 = vld [vmem:[#allocation24_spill] sm:$0xff] }
 0x973   :  { %8074 = vmatpush3.msra.mxu0 %v8604_v5  ;;  %8109 = vmatpush3.msra.mxu1 %v8617_v10 }
 0x974   :  { %8075 = vmatprep.subr.mxu0 %v8609_v7  ;;  %8110 = vmatprep.subr.mxu1 %v8619_v11 }
 0x975   :  { %8076 = vmatpush3.msra.mxu0 %v8621_v12  ;;  %8111 = vmatpush3.msra.mxu1 %v8623_v13 }
 0x976   :  { %8077 = vmatprep.subr.mxu0 %v8633_v16  ;;  %8112 = vmatprep.subr.mxu1 %v8635_v17 }
 0x977   :  { %8078 = vmatpush3.msra.mxu0 %v8639_v18  ;;  %8113 = vmatpush3.msra.mxu1 %v8641_v19 }
 0x978   :  { %8079 = vmatprep.subr.mxu0 %v8651_v22  ;;  %8114 = vmatprep.subr.mxu1 %v8653_v23 }
 0x979   :  { %8080 = vmatpush3.msra.mxu0 %v8663_v26  ;;  %8115 = vmatpush3.msra.mxu1 %v8665_v27 }
 0x97a   :  { %8081 = vmatprep.subr.mxu0 %v8669_v28  ;;  %8116 = vmatprep.subr.mxu1 %v8671_v29 }
 0x97b   :  { %8082 = vmatpush3.msra.mxu0 %v8675_v30  ;;  %8117 = vmatpush3.msra.mxu1 %v8677_v31 }
 0x97c   :  { %8083 = vmatprep.subr.mxu0 %v8687_v34  ;;  %8118 = vmatprep.subr.mxu1 %v8689_v35 }
 0x97d   :  { %8084 = vmatpush3.msra.mxu0 %v8699_v38  ;;  %8119 = vmatpush3.msra.mxu1 %v8701_v39 }
 0x97e   :  { %8085 = vmatprep.subr.mxu0 %v8705_v40  ;;  %8120 = vmatprep.subr.mxu1 %v8707_v41 }
 0x97f   :  { %8086 = vmatpush3.msra.mxu0 %v8711_v42  ;;  %8121 = vmatpush3.msra.mxu1 %v8713_v43 }
 0x980   :  { %8087 = vmatprep.subr.mxu0 %v8723_v46  ;;  %8122 = vmatprep.subr.mxu1 %v8725_v47 }
 0x981   :  { %8088 = vmatpush3.msra.mxu0 %v8735_v50  ;;  %8123 = vmatpush3.msra.mxu1 %v8737_v51 }
 0x982   :  { %8089 = vmatprep.subr.mxu0 %v8741_v53  ;;  %8124 = vmatprep.subr.mxu1 %v8743_v54 }
 0x983   :  { %8090 = vmatpush3.msra.mxu0 %v8747_v55  ;;  %8125 = vmatpush3.msra.mxu1 %v8749_v56 }
 0x984   :  { %8091 = vmatprep.subr.mxu0 %v8759_v61  ;;  %8126 = vmatprep.subr.mxu1 %v8761_v62 }
 0x985   :  { %8092 = vmatpush3.msra.mxu0 %v11633_v63  ;;  %8127 = vmatpush3.msra.mxu1 %v11634_v37 }
 0x986   :  { %8093 = vmatprep.subr.mxu0 %v11635_v9  ;;  %8128 = vmatprep.subr.mxu1 %v11636_v49 }
 0x987   :  { %8094 = vmatpush3.msra.mxu0 %v11637_v0  ;;  %8129 = vmatpush3.msra.mxu1 %v11818_v33 }
 0x988   :  { %8095 = vmatprep.subr.mxu0 %v11841_v14  ;;  %8130 = vmatprep.subr.mxu1 %v11842_v6  ;;  %v11852_v6 = vld [vmem:[#allocation25_spill] sm:$0xff] }
 0x989   :  { %8096 = vmatpush3.msra.mxu0 %v11843_v1  ;;  %8131 = vmatpush3.msra.mxu1 %v11844_v3  ;;  %v11853_v1 = vld [vmem:[#allocation26_spill] sm:$0xff]  ;;  %v4149_v3 = vcombine.high %v4141_v59, %v4141_v59  ;;  %v11856_v14 = vld [vmem:[#allocation29_spill] sm:$0xff] }
 0x98a   :  { %8097 = vmatprep.subr.mxu0 %v11846_v2  ;;  %8132 = vmatprep.subr.mxu1 %v11847_v24  ;;  %v11855_v2 = vld [vmem:[#allocation28_spill] sm:$0xff]  ;;  %v4150_v24 = vcombine.high %v4148_v25, %v4148_v25 }
 0x98b   :  { %8098 = vmatpush3.msra.mxu0 %v11848_v36  ;;  %8133 = vmatpush3.msra.mxu1 %v11849_v45  ;;  %v11858_v36 = vld [vmem:[#allocation31_spill] sm:$0xff]  ;;  %v11859_v45 = vld [vmem:[#allocation32_spill] sm:$0xff] }
 0x98c   :  { %8099 = vmatprep.subr.mxu0 %v11850_v21  ;;  %8134 = vmatprep.subr.mxu1 %v11851_v32  ;;  %v11860_v21 = vld [vmem:[#allocation33_spill] sm:$0xff] }
 0x98d   :  { %8100 = vmatpush3.msra.mxu0 %v11852_v6  ;;  %8135 = vmatpush3.msra.mxu1 %v11853_v1  ;;  %v11861_v6 = vld [vmem:[#allocation34_spill] sm:$0xff] }
 0x98e   :  { %8101 = vmatprep.subr.mxu0 %v11854_v58  ;;  %8136 = vmatprep.subr.mxu1 %v11855_v2  ;;  %v11862_v58 = vmov 0.0  }
 0x98f   :  { %8102 = vmatpush3.msra.mxu0 %v11856_v14  ;;  %8137 = vmatpush3.msra.mxu1 %v11857_v20  ;;  %v4310_v20 = vld [vmem:[%s11494_s3 + $0x5f0] sm:$0xff] }
 0x990   :  { %8103 = vmatprep.subr.mxu0 %v11858_v36  ;;  %8138 = vmatprep.subr.mxu1 %v11859_v45  ;;  %v4311_v45 = vld [vmem:[%s11494_s3 + $0x5f8] sm:$0xff] }
 0x991   :  { %8104 = vmatpush3.msra.mxu0 %v11860_v21  ;;  %4219 = vmatprep.mubr.f32.mxu0 %v4149_v3  ;;  %v4308_v3 = vld [vmem:[%s11494_s3 + $0x5e0] sm:$0xff]  ;;  %v4306_v21 = vld [vmem:[%s11494_s3 + $0x5d0] sm:$0xff]  ;;  %v4307_v36 = vld [vmem:[%s11494_s3 + $0x5d8] sm:$0xff] }
 0x992   :  { %8139 = vmatpush3.msra.mxu1 %v11861_v6  ;;  %4289 = vmatprep.mubr.f32.mxu1 %v4150_v24  ;;  %v4340_v6 = vunpack.c.l.bf16 %v4310_v20  ;;  %v4341_v24 = vunpack.c.h.bf16 %v4310_v20  ;;  %v4336_v14 = vunpack.c.l.bf16 %v4308_v3  ;;  %v4337_v2 = vunpack.c.h.bf16 %v4308_v3  ;;  %v4305_v3 = vld [vmem:[%s11494_s3 + $0x5c8] sm:$0xff] }
 0x993   :  { %4220 = vmatmul.mubr.f32.vlgmr.msra.gmra.mxu0 %v4141_v59  ;;  %4290 = vmatmul.mubr.f32.vlgmr.msra.gmra.mxu1 %v4148_v25  ;;  %v4342_v59 = vunpack.c.l.bf16 %v4311_v45  ;;  %v4343_v25 = vunpack.c.h.bf16 %v4311_v45  ;;  %v4333_v20 = vunpack.c.h.bf16 %v4306_v21  ;;  %v4335_v45 = vunpack.c.h.bf16 %v4307_v36 }
 0x994   :  { %4411 = vmatprep.mubr.f32.mxu0 %v11862_v58  ;;  %4482 = vmatprep.mubr.f32.mxu1 %v11862_v58  ;;  %v4309_v58 = vld [vmem:[%s11494_s3 + $0x5e8] sm:$0xff]  ;;  %v4332_v48 = vunpack.c.l.bf16 %v4306_v21  ;;  %v4334_v33 = vunpack.c.l.bf16 %v4307_v36  ;;  %v4330_v36 = vunpack.c.l.bf16 %v4305_v3 }
 0x995   :  { %v4338_v1 = vunpack.c.l.bf16 %v4309_v58  ;;  %v4339_v32 = vunpack.c.h.bf16 %v4309_v58  ;;  %4363 = vmatprep.subr.mxu0 %v4341_v24  ;;  %4434 = vmatprep.subr.mxu1 %v4343_v25  ;;  %v4304_v58 = vld [vmem:[%s11494_s3 + $0x5c0] sm:$0xff]  ;;  %v4331_v24 = vunpack.c.h.bf16 %v4305_v3  ;;  %v4301_v25 = vld [vmem:[%s11494_s3 + $0x5a8] sm:$0xff] }
 0x996   :  { %4364 = vmatpush1.msra.mxu0 %v4340_v6  ;;  %4435 = vmatpush1.msra.mxu1 %v4342_v59  ;;  %v4329_v6 = vunpack.c.h.bf16 %v4304_v58  ;;  %v4328_v21 = vunpack.c.l.bf16 %v4304_v58  ;;  %v4300_v59 = vld [vmem:[%s11494_s3 + $0x5a0] sm:$0xff]  ;;  %v4322_v3 = vunpack.c.l.bf16 %v4301_v25 }
 0x997   :  { %4365 = vmatprep.subr.mxu0 %v4337_v2  ;;  %4436 = vmatprep.subr.mxu1 %v4339_v32  ;;  %v4320_v58 = vunpack.c.l.bf16 %v4300_v59 }
 0x998   :  { %4366 = vmatpush1.msra.mxu0 %v4336_v14  ;;  %4437 = vmatpush1.msra.mxu1 %v4338_v1  ;;  %v4302_v14 = vld [vmem:[%s11494_s3 + $0x5b0] sm:$0xff] }
 0x999   :  { %4367 = vmatprep.subr.mxu0 %v4333_v20  ;;  %4438 = vmatprep.subr.mxu1 %v4335_v45  ;;  %v4325_v1 = vunpack.c.h.bf16 %v4302_v14  ;;  %v4324_v2 = vunpack.c.l.bf16 %v4302_v14  ;;  %v4321_v20 = vunpack.c.h.bf16 %v4300_v59  ;;  %v4323_v45 = vunpack.c.h.bf16 %v4301_v25 }
 0x99a   :  { %4368 = vmatpush1.msra.mxu0 %v4332_v48  ;;  %4439 = vmatpush1.msra.mxu1 %v4334_v33  ;;  %v4303_v33 = vld [vmem:[%s11494_s3 + $0x5b8] sm:$0xff] }
 0x99b   :  { %4369 = vmatprep.subr.mxu0 %v4329_v6  ;;  %4440 = vmatprep.subr.mxu1 %v4331_v24  ;;  %v4327_v48 = vunpack.c.h.bf16 %v4303_v33  ;;  %v4326_v32 = vunpack.c.l.bf16 %v4303_v33  ;;  %v4298_v6 = vld [vmem:[%s11494_s3 + $0x590] sm:$0xff]  ;;  %v4299_v24 = vld [vmem:[%s11494_s3 + $0x598] sm:$0xff] }
 0x99c   :  { %4370 = vmatpush1.msra.mxu0 %v4328_v21  ;;  %4441 = vmatpush1.msra.mxu1 %v4330_v36  ;;  %v4317_v21 = vunpack.c.h.bf16 %v4298_v6  ;;  %v4319_v36 = vunpack.c.h.bf16 %v4299_v24  ;;  %v4316_v14 = vunpack.c.l.bf16 %v4298_v6  ;;  %v4318_v33 = vunpack.c.l.bf16 %v4299_v24 }
 0x99d   :  { %4371 = vmatprep.subr.mxu0 %v4325_v1  ;;  %4442 = vmatprep.subr.mxu1 %v4327_v48  ;;  %v4296_v1 = vld [vmem:[%s11494_s3 + $0x580] sm:$0xff]  ;;  %v4297_v48 = vld [vmem:[%s11494_s3 + $0x588] sm:$0xff] }
 0x99e   :  { %4372 = vmatpush1.msra.mxu0 %v4324_v2  ;;  %4443 = vmatpush1.msra.mxu1 %v4326_v32  ;;  %v4313_v2 = vunpack.c.h.bf16 %v4296_v1  ;;  %v4315_v32 = vunpack.c.h.bf16 %v4297_v48  ;;  %v4312_v59 = vunpack.c.l.bf16 %v4296_v1  ;;  %v4314_v25 = vunpack.c.l.bf16 %v4297_v48 }
 0x99f   :  { %4373 = vmatprep.subr.mxu0 %v4321_v20  ;;  %4444 = vmatprep.subr.mxu1 %v4323_v45 }
 0x9a0   :  { %4374 = vmatpush1.msra.mxu0 %v4320_v58  ;;  %4445 = vmatpush1.msra.mxu1 %v4322_v3 }
 0x9a1   :  { %4375 = vmatprep.subr.mxu0 %v4317_v21  ;;  %4446 = vmatprep.subr.mxu1 %v4319_v36 }
 0x9a2   :  { %4376 = vmatpush1.msra.mxu0 %v4316_v14  ;;  %4447 = vmatpush1.msra.mxu1 %v4318_v33 }
 0x9a3   :  { %4377 = vmatprep.subr.mxu0 %v4313_v2  ;;  %4448 = vmatprep.subr.mxu1 %v4315_v32 }
 0x9a4   :  { %4378 = vmatpush1.msra.mxu0 %v4312_v59  ;;  %4449 = vmatpush1.msra.mxu1 %v4314_v25 }
 0x9a5   :  { %8143 = vmatprep.subr.mxu0 %v11681_v4  ;;  %8178 = vmatprep.subr.mxu1 %v11682_v57 }
 0xa32   :  { %v4052_v20 = vpop.f32.mrf.mxu0  ;;  %v4123_v45 = vpop.f32.mrf.mxu1 }
 0xa33   :  { %v10408_v58 = vadd.f32 %v4052_v20, %v10269_v44  ;;  %v10411_v3 = vadd.f32 %v4123_v45, %v10272_v60  ;;  %v4493_v60 = vld [vmem:[%s11491_s0 + $0x60] sm:$0xff]  ;;  %v11864_v20 = vld [vmem:[#allocation14_spill] sm:$0xff]  ;;  %v11865_v45 = vld [vmem:[#allocation15_spill] sm:$0xff] }
 0xa34   :  { %v4054_v6 = vpop.f32.mrf.mxu0  ;;  %v4125_v24 = vpop.f32.mrf.mxu1 }
 0xa35   :  { %v10414_v21 = vadd.f32 %v4054_v6, %v10275_v52  ;;  %v10417_v36 = vadd.f32 %v4125_v24, %v10278_v8  ;;  %v4495_v52 = vcombine.high %v4493_v60, %v4493_v60  ;;  %v11863_v8 = vld [vmem:[#allocation13_spill] sm:$0xff]  ;;  %v11866_v6 = vld [vmem:[#allocation16_spill] sm:$0xff] }
 0xa36   :  { %v11867_v24 = vld [vmem:[#allocation17_spill] sm:$0xff] }
 0xa53   :  { %v8105_v14 = vpop.f32.mrf.mxu0  ;;  %v8140_v33 = vpop.f32.mrf.mxu1 }
 0xa55   :  { %v8106_v1 = vpop.f32.mrf.mxu0  ;;  %v8141_v48 = vpop.f32.mrf.mxu1 }
 0xa56   :  { %v8107_v2 = vadd.f32 %v8106_v1, %v8105_v14  ;;  %v8142_v44 = vadd.f32 %v8141_v48, %v8140_v33  ;;  %v11868_v14 = vld [vmem:[#allocation18_spill] sm:$0xff]  ;;  %v11869_v1 = vld [vmem:[#allocation19_spill] sm:$0xff]  ;;  %v11870_v48 = vld [vmem:[#allocation20_spill] sm:$0xff] }
 0xa57   :  { %v4502_v33 = vrot.slane %v4493_v60, %v11868_v14  ;;  %v11877_v60 = vld [vmem:[#allocation27_spill] sm:$0xff] }
 0xa58   :  { %v4222_v32 = vadd.f32 %v10283_v15, %v8107_v2  ;;  %v4509_v2 = vrot.slane %v4495_v52, %v11868_v14  ;;  %v11880_v52 = vld [vmem:[#allocation30_spill] sm:$0xff] }
 0xa5a   :  { %v4292_v59 = vadd.f32 %v8142_v44, %v4222_v32  ;;  %v11871_v32 = vld [vmem:[#allocation21_spill] sm:$0xff]  ;;  %v11872_v44 = vld [vmem:[#allocation22_spill] sm:$0xff] }
 0xa5c   :  { %v4295_v25 = vmax.f32 %v4292_v59, 0.0  ;;  %v11873_v59 = vld [vmem:[#allocation23_spill] sm:$0xff] }
 0xa5e   :  { %6974 = vmatmul.mubr.msk.f32.vlgmr.msra.gmra.mxu0 %vm592_vm0, %v4295_v25  ;;  %6975 = vmatmul.mubr.msk.f32.vlgmr.msra.gmra.mxu1 %vm592_vm0, %v4295_v25  ;;  %v11874_v25 = vld [vmem:[#allocation24_spill] sm:$0xff] }
 0xa5f   :  { %8144 = vmatpush3.msra.mxu0 %v8604_v5  ;;  %8179 = vmatpush3.msra.mxu1 %v8617_v10 }
 0xa60   :  { %8145 = vmatprep.subr.mxu0 %v8609_v7  ;;  %8180 = vmatprep.subr.mxu1 %v8619_v11 }
 0xa61   :  { %8146 = vmatpush3.msra.mxu0 %v8621_v12  ;;  %8181 = vmatpush3.msra.mxu1 %v8623_v13 }
 0xa62   :  { %8147 = vmatprep.subr.mxu0 %v8633_v16  ;;  %8182 = vmatprep.subr.mxu1 %v8635_v17 }
 0xa63   :  { %8148 = vmatpush3.msra.mxu0 %v8639_v18  ;;  %8183 = vmatpush3.msra.mxu1 %v8641_v19 }
 0xa64   :  { %8149 = vmatprep.subr.mxu0 %v8651_v22  ;;  %8184 = vmatprep.subr.mxu1 %v8653_v23 }
 0xa65   :  { %8150 = vmatpush3.msra.mxu0 %v8663_v26  ;;  %8185 = vmatpush3.msra.mxu1 %v8665_v27 }
 0xa66   :  { %8151 = vmatprep.subr.mxu0 %v8669_v28  ;;  %8186 = vmatprep.subr.mxu1 %v8671_v29 }
 0xa67   :  { %8152 = vmatpush3.msra.mxu0 %v8675_v30  ;;  %8187 = vmatpush3.msra.mxu1 %v8677_v31 }
 0xa68   :  { %8153 = vmatprep.subr.mxu0 %v8687_v34  ;;  %8188 = vmatprep.subr.mxu1 %v8689_v35 }
 0xa69   :  { %8154 = vmatpush3.msra.mxu0 %v8699_v38  ;;  %8189 = vmatpush3.msra.mxu1 %v8701_v39 }
 0xa6a   :  { %8155 = vmatprep.subr.mxu0 %v8705_v40  ;;  %8190 = vmatprep.subr.mxu1 %v8707_v41 }
 0xa6b   :  { %8156 = vmatpush3.msra.mxu0 %v8711_v42  ;;  %8191 = vmatpush3.msra.mxu1 %v8713_v43 }
 0xa6c   :  { %8157 = vmatprep.subr.mxu0 %v8723_v46  ;;  %8192 = vmatprep.subr.mxu1 %v8725_v47 }
 0xa6d   :  { %8158 = vmatpush3.msra.mxu0 %v8735_v50  ;;  %8193 = vmatpush3.msra.mxu1 %v8737_v51 }
 0xa6e   :  { %8159 = vmatprep.subr.mxu0 %v8741_v53  ;;  %8194 = vmatprep.subr.mxu1 %v8743_v54 }
 0xa6f   :  { %8160 = vmatpush3.msra.mxu0 %v8747_v55  ;;  %8195 = vmatpush3.msra.mxu1 %v8749_v56 }
 0xa70   :  { %8161 = vmatprep.subr.mxu0 %v8759_v61  ;;  %8196 = vmatprep.subr.mxu1 %v8761_v62 }
 0xa71   :  { %8162 = vmatpush3.msra.mxu0 %v11633_v63  ;;  %8197 = vmatpush3.msra.mxu1 %v11634_v37 }
 0xa72   :  { %8163 = vmatprep.subr.mxu0 %v11635_v9  ;;  %8198 = vmatprep.subr.mxu1 %v11636_v49 }
 0xa73   :  { %8164 = vmatpush3.msra.mxu0 %v11637_v0  ;;  %8199 = vmatpush3.msra.mxu1 %v11863_v8 }
 0xa74   :  { %8165 = vmatprep.subr.mxu0 %v11864_v20  ;;  %8200 = vmatprep.subr.mxu1 %v11865_v45  ;;  %v11875_v45 = vld [vmem:[#allocation25_spill] sm:$0xff] }
 0xa75   :  { %8166 = vmatpush3.msra.mxu0 %v11866_v6  ;;  %8201 = vmatpush3.msra.mxu1 %v11867_v24  ;;  %v11876_v6 = vld [vmem:[#allocation26_spill] sm:$0xff]  ;;  %v4510_v24 = vcombine.high %v4502_v33, %v4502_v33  ;;  %v11879_v20 = vld [vmem:[#allocation29_spill] sm:$0xff] }
 0xa76   :  { %8167 = vmatprep.subr.mxu0 %v11869_v1  ;;  %8202 = vmatprep.subr.mxu1 %v11870_v48  ;;  %v11878_v1 = vld [vmem:[#allocation28_spill] sm:$0xff]  ;;  %v4511_v48 = vcombine.high %v4509_v2, %v4509_v2 }
 0xa77   :  { %8168 = vmatpush3.msra.mxu0 %v11871_v32  ;;  %8203 = vmatpush3.msra.mxu1 %v11872_v44  ;;  %v11881_v32 = vld [vmem:[#allocation31_spill] sm:$0xff]  ;;  %v11882_v44 = vld [vmem:[#allocation32_spill] sm:$0xff] }
 0xa78   :  { %8169 = vmatprep.subr.mxu0 %v11873_v59  ;;  %8204 = vmatprep.subr.mxu1 %v11874_v25  ;;  %v11883_v59 = vld [vmem:[#allocation33_spill] sm:$0xff] }
 0xa79   :  { %8170 = vmatpush3.msra.mxu0 %v11875_v45  ;;  %8205 = vmatpush3.msra.mxu1 %v11876_v6  ;;  %v11884_v45 = vld [vmem:[#allocation34_spill] sm:$0xff] }
 0xa7a   :  { %8171 = vmatprep.subr.mxu0 %v11877_v60  ;;  %8206 = vmatprep.subr.mxu1 %v11878_v1  ;;  %v11885_v60 = vmov 0.0  }
 0xa7b   :  { %8172 = vmatpush3.msra.mxu0 %v11879_v20  ;;  %8207 = vmatpush3.msra.mxu1 %v11880_v52  ;;  %v4671_v52 = vld [vmem:[%s11494_s3 + $0x670] sm:$0xff] }
 0xa7c   :  { %8173 = vmatprep.subr.mxu0 %v11881_v32  ;;  %8208 = vmatprep.subr.mxu1 %v11882_v44  ;;  %v4672_v44 = vld [vmem:[%s11494_s3 + $0x678] sm:$0xff] }
 0xa7d   :  { %8174 = vmatpush3.msra.mxu0 %v11883_v59  ;;  %4580 = vmatprep.mubr.f32.mxu0 %v4510_v24  ;;  %v4669_v24 = vld [vmem:[%s11494_s3 + $0x660] sm:$0xff]  ;;  %v4667_v59 = vld [vmem:[%s11494_s3 + $0x650] sm:$0xff]  ;;  %v4668_v32 = vld [vmem:[%s11494_s3 + $0x658] sm:$0xff] }
 0xa7e   :  { %8209 = vmatpush3.msra.mxu1 %v11884_v45  ;;  %4650 = vmatprep.mubr.f32.mxu1 %v4511_v48  ;;  %v4701_v45 = vunpack.c.l.bf16 %v4671_v52  ;;  %v4702_v48 = vunpack.c.h.bf16 %v4671_v52  ;;  %v4697_v20 = vunpack.c.l.bf16 %v4669_v24  ;;  %v4698_v1 = vunpack.c.h.bf16 %v4669_v24  ;;  %v4666_v24 = vld [vmem:[%s11494_s3 + $0x648] sm:$0xff] }
 0xa7f   :  { %4581 = vmatmul.mubr.f32.vlgmr.msra.gmra.mxu0 %v4502_v33  ;;  %4651 = vmatmul.mubr.f32.vlgmr.msra.gmra.mxu1 %v4509_v2  ;;  %v4703_v33 = vunpack.c.l.bf16 %v4672_v44  ;;  %v4704_v2 = vunpack.c.h.bf16 %v4672_v44  ;;  %v4694_v52 = vunpack.c.h.bf16 %v4667_v59  ;;  %v4696_v44 = vunpack.c.h.bf16 %v4668_v32 }
 0xa80   :  { %4772 = vmatprep.mubr.f32.mxu0 %v11885_v60  ;;  %4843 = vmatprep.mubr.f32.mxu1 %v11885_v60  ;;  %v4670_v60 = vld [vmem:[%s11494_s3 + $0x668] sm:$0xff]  ;;  %v4693_v14 = vunpack.c.l.bf16 %v4667_v59  ;;  %v4695_v8 = vunpack.c.l.bf16 %v4668_v32  ;;  %v4691_v32 = vunpack.c.l.bf16 %v4666_v24 }
 0xa81   :  { %v4699_v6 = vunpack.c.l.bf16 %v4670_v60  ;;  %v4700_v25 = vunpack.c.h.bf16 %v4670_v60  ;;  %4724 = vmatprep.subr.mxu0 %v4702_v48  ;;  %4795 = vmatprep.subr.mxu1 %v4704_v2  ;;  %v4665_v60 = vld [vmem:[%s11494_s3 + $0x640] sm:$0xff]  ;;  %v4692_v48 = vunpack.c.h.bf16 %v4666_v24  ;;  %v4662_v2 = vld [vmem:[%s11494_s3 + $0x628] sm:$0xff] }
 0xa82   :  { %4725 = vmatpush1.msra.mxu0 %v4701_v45  ;;  %4796 = vmatpush1.msra.mxu1 %v4703_v33  ;;  %v4690_v45 = vunpack.c.h.bf16 %v4665_v60  ;;  %v4689_v59 = vunpack.c.l.bf16 %v4665_v60  ;;  %v4661_v33 = vld [vmem:[%s11494_s3 + $0x620] sm:$0xff]  ;;  %v4683_v24 = vunpack.c.l.bf16 %v4662_v2 }
 0xa83   :  { %4726 = vmatprep.subr.mxu0 %v4698_v1  ;;  %4797 = vmatprep.subr.mxu1 %v4700_v25  ;;  %v4681_v60 = vunpack.c.l.bf16 %v4661_v33 }
 0xa84   :  { %4727 = vmatpush1.msra.mxu0 %v4697_v20  ;;  %4798 = vmatpush1.msra.mxu1 %v4699_v6  ;;  %v4663_v20 = vld [vmem:[%s11494_s3 + $0x630] sm:$0xff] }
 0xa85   :  { %4728 = vmatprep.subr.mxu0 %v4694_v52  ;;  %4799 = vmatprep.subr.mxu1 %v4696_v44  ;;  %v4686_v6 = vunpack.c.h.bf16 %v4663_v20  ;;  %v4685_v1 = vunpack.c.l.bf16 %v4663_v20  ;;  %v4682_v52 = vunpack.c.h.bf16 %v4661_v33  ;;  %v4684_v44 = vunpack.c.h.bf16 %v4662_v2 }
 0xa86   :  { %4729 = vmatpush1.msra.mxu0 %v4693_v14  ;;  %4800 = vmatpush1.msra.mxu1 %v4695_v8  ;;  %v4664_v8 = vld [vmem:[%s11494_s3 + $0x638] sm:$0xff] }
 0xa87   :  { %4730 = vmatprep.subr.mxu0 %v4690_v45  ;;  %4801 = vmatprep.subr.mxu1 %v4692_v48  ;;  %v4688_v14 = vunpack.c.h.bf16 %v4664_v8  ;;  %v4687_v25 = vunpack.c.l.bf16 %v4664_v8  ;;  %v4659_v45 = vld [vmem:[%s11494_s3 + $0x610] sm:$0xff]  ;;  %v4660_v48 = vld [vmem:[%s11494_s3 + $0x618] sm:$0xff] }
 0xa88   :  { %4731 = vmatpush1.msra.mxu0 %v4689_v59  ;;  %4802 = vmatpush1.msra.mxu1 %v4691_v32  ;;  %v4678_v59 = vunpack.c.h.bf16 %v4659_v45  ;;  %v4680_v32 = vunpack.c.h.bf16 %v4660_v48  ;;  %v4677_v20 = vunpack.c.l.bf16 %v4659_v45  ;;  %v4679_v8 = vunpack.c.l.bf16 %v4660_v48 }
 0xa89   :  { %4732 = vmatprep.subr.mxu0 %v4686_v6  ;;  %4803 = vmatprep.subr.mxu1 %v4688_v14  ;;  %v4657_v6 = vld [vmem:[%s11494_s3 + $0x600] sm:$0xff]  ;;  %v4658_v14 = vld [vmem:[%s11494_s3 + $0x608] sm:$0xff] }
 0xa8a   :  { %4733 = vmatpush1.msra.mxu0 %v4685_v1  ;;  %4804 = vmatpush1.msra.mxu1 %v4687_v25  ;;  %v4674_v1 = vunpack.c.h.bf16 %v4657_v6  ;;  %v4676_v25 = vunpack.c.h.bf16 %v4658_v14  ;;  %v4673_v33 = vunpack.c.l.bf16 %v4657_v6  ;;  %v4675_v2 = vunpack.c.l.bf16 %v4658_v14 }
 0xa8b   :  { %4734 = vmatprep.subr.mxu0 %v4682_v52  ;;  %4805 = vmatprep.subr.mxu1 %v4684_v44 }
 0xa8c   :  { %4735 = vmatpush1.msra.mxu0 %v4681_v60  ;;  %4806 = vmatpush1.msra.mxu1 %v4683_v24 }
 0xa8d   :  { %4736 = vmatprep.subr.mxu0 %v4678_v59  ;;  %4807 = vmatprep.subr.mxu1 %v4680_v32 }
 0xa8e   :  { %4737 = vmatpush1.msra.mxu0 %v4677_v20  ;;  %4808 = vmatpush1.msra.mxu1 %v4679_v8 }
 0xa8f   :  { %4738 = vmatprep.subr.mxu0 %v4674_v1  ;;  %4809 = vmatprep.subr.mxu1 %v4676_v25 }
 0xa90   :  { %4739 = vmatpush1.msra.mxu0 %v4673_v33  ;;  %4810 = vmatpush1.msra.mxu1 %v4675_v2 }
 0xa91   :  { %8213 = vmatprep.subr.mxu0 %v11681_v4  ;;  %8248 = vmatprep.subr.mxu1 %v11682_v57 }
 0xb1e   :  { %v4413_v52 = vpop.f32.mrf.mxu0  ;;  %v4484_v44 = vpop.f32.mrf.mxu1 }
 0xb1f   :  { %v10542_v60 = vadd.f32 %v4413_v52, %v10408_v58  ;;  %v10545_v24 = vadd.f32 %v4484_v44, %v10411_v3  ;;  %v11888_v52 = vld [vmem:[#allocation15_spill] sm:$0xff]  ;;  %v11889_v44 = vld [vmem:[#allocation16_spill] sm:$0xff] }
 0xb20   :  { %v4415_v45 = vpop.f32.mrf.mxu0  ;;  %v4486_v48 = vpop.f32.mrf.mxu1 }
 0xb21   :  { %v10548_v59 = vadd.f32 %v4415_v45, %v10414_v21  ;;  %v10551_v32 = vadd.f32 %v4486_v48, %v10417_v36  ;;  %v11886_v21 = vld [vmem:[#allocation13_spill] sm:$0xff]  ;;  %v11887_v36 = vld [vmem:[#allocation14_spill] sm:$0xff] }
 0xb22   :  { %v11890_v45 = vld [vmem:[#allocation17_spill] sm:$0xff]  ;;  %v11891_v48 = vld [vmem:[#allocation18_spill] sm:$0xff] }
 0xb3f   :  { %v8175_v20 = vpop.f32.mrf.mxu0  ;;  %v8210_v8 = vpop.f32.mrf.mxu1 }
 0xb41   :  { %v8176_v6 = vpop.f32.mrf.mxu0  ;;  %v8211_v14 = vpop.f32.mrf.mxu1 }
 0xb42   :  { %v8177_v1 = vadd.f32 %v8176_v6, %v8175_v20  ;;  %v8212_v58 = vadd.f32 %v8211_v14, %v8210_v8  ;;  %v11892_v8 = vld [vmem:[#allocation19_spill] sm:$0xff]  ;;  %v11893_v6 = vld [vmem:[#allocation20_spill] sm:$0xff] }
 0xb44   :  { %v4583_v25 = vadd.f32 %v10283_v15, %v8177_v1  ;;  %v4854_v15 = vld [vmem:[%s11491_s0 + $0x68] sm:$0xff] }
 0xb45   :  { %v4856_v3 = vcombine.high %v4854_v15, %v4854_v15  ;;  %v4863_v20 = vrot.slane %v4854_v15, %v11891_v48  ;;  %v11894_v1 = vld [vmem:[#allocation21_spill] sm:$0xff]  ;;  %v11900_v15 = vld [vmem:[#allocation27_spill] sm:$0xff] }
 0xb46   :  { %v4653_v33 = vadd.f32 %v8212_v58, %v4583_v25  ;;  %v11895_v25 = vld [vmem:[#allocation22_spill] sm:$0xff]  ;;  %v11896_v58 = vld [vmem:[#allocation23_spill] sm:$0xff] }
 0xb47   :  { %v4870_v14 = vrot.slane %v4856_v3, %v11891_v48  ;;  %v11903_v3 = vld [vmem:[#allocation30_spill] sm:$0xff] }
 0xb48   :  { %v4656_v2 = vmax.f32 %v4653_v33, 0.0  ;;  %v11897_v33 = vld [vmem:[#allocation24_spill] sm:$0xff] }
 0xb4a   :  { %6976 = vmatmul.mubr.msk.f32.vlgmr.msra.gmra.mxu0 %vm592_vm0, %v4656_v2  ;;  %6977 = vmatmul.mubr.msk.f32.vlgmr.msra.gmra.mxu1 %vm592_vm0, %v4656_v2  ;;  %v11898_v2 = vld [vmem:[#allocation25_spill] sm:$0xff] }
 0xb4b   :  { %8214 = vmatpush3.msra.mxu0 %v8604_v5  ;;  %8249 = vmatpush3.msra.mxu1 %v8617_v10 }
 0xb4c   :  { %8215 = vmatprep.subr.mxu0 %v8609_v7  ;;  %8250 = vmatprep.subr.mxu1 %v8619_v11 }
 0xb4d   :  { %8216 = vmatpush3.msra.mxu0 %v8621_v12  ;;  %8251 = vmatpush3.msra.mxu1 %v8623_v13 }
 0xb4e   :  { %8217 = vmatprep.subr.mxu0 %v8633_v16  ;;  %8252 = vmatprep.subr.mxu1 %v8635_v17 }
 0xb4f   :  { %8218 = vmatpush3.msra.mxu0 %v8639_v18  ;;  %8253 = vmatpush3.msra.mxu1 %v8641_v19 }
 0xb50   :  { %8219 = vmatprep.subr.mxu0 %v8651_v22  ;;  %8254 = vmatprep.subr.mxu1 %v8653_v23 }
 0xb51   :  { %8220 = vmatpush3.msra.mxu0 %v8663_v26  ;;  %8255 = vmatpush3.msra.mxu1 %v8665_v27 }
 0xb52   :  { %8221 = vmatprep.subr.mxu0 %v8669_v28  ;;  %8256 = vmatprep.subr.mxu1 %v8671_v29 }
 0xb53   :  { %8222 = vmatpush3.msra.mxu0 %v8675_v30  ;;  %8257 = vmatpush3.msra.mxu1 %v8677_v31 }
 0xb54   :  { %8223 = vmatprep.subr.mxu0 %v8687_v34  ;;  %8258 = vmatprep.subr.mxu1 %v8689_v35 }
 0xb55   :  { %8224 = vmatpush3.msra.mxu0 %v8699_v38  ;;  %8259 = vmatpush3.msra.mxu1 %v8701_v39 }
 0xb56   :  { %8225 = vmatprep.subr.mxu0 %v8705_v40  ;;  %8260 = vmatprep.subr.mxu1 %v8707_v41 }
 0xb57   :  { %8226 = vmatpush3.msra.mxu0 %v8711_v42  ;;  %8261 = vmatpush3.msra.mxu1 %v8713_v43 }
 0xb58   :  { %8227 = vmatprep.subr.mxu0 %v8723_v46  ;;  %8262 = vmatprep.subr.mxu1 %v8725_v47 }
 0xb59   :  { %8228 = vmatpush3.msra.mxu0 %v8735_v50  ;;  %8263 = vmatpush3.msra.mxu1 %v8737_v51 }
 0xb5a   :  { %8229 = vmatprep.subr.mxu0 %v8741_v53  ;;  %8264 = vmatprep.subr.mxu1 %v8743_v54 }
 0xb5b   :  { %8230 = vmatpush3.msra.mxu0 %v8747_v55  ;;  %8265 = vmatpush3.msra.mxu1 %v8749_v56 }
 0xb5c   :  { %8231 = vmatprep.subr.mxu0 %v8759_v61  ;;  %8266 = vmatprep.subr.mxu1 %v8761_v62 }
 0xb5d   :  { %8232 = vmatpush3.msra.mxu0 %v11633_v63  ;;  %8267 = vmatpush3.msra.mxu1 %v11634_v37 }
 0xb5e   :  { %8233 = vmatprep.subr.mxu0 %v11635_v9  ;;  %8268 = vmatprep.subr.mxu1 %v11636_v49 }
 0xb5f   :  { %8234 = vmatpush3.msra.mxu0 %v11637_v0  ;;  %8269 = vmatpush3.msra.mxu1 %v11886_v21 }
 0xb60   :  { %8235 = vmatprep.subr.mxu0 %v11887_v36  ;;  %8270 = vmatprep.subr.mxu1 %v11888_v52  ;;  %v11902_v52 = vld [vmem:[#allocation29_spill] sm:$0xff] }
 0xb61   :  { %8236 = vmatpush3.msra.mxu0 %v11889_v44  ;;  %8271 = vmatpush3.msra.mxu1 %v11890_v45  ;;  %v11899_v44 = vld [vmem:[#allocation26_spill] sm:$0xff]  ;;  %v4871_v45 = vcombine.high %v4863_v20, %v4863_v20 }
 0xb62   :  { %8237 = vmatprep.subr.mxu0 %v11892_v8  ;;  %8272 = vmatprep.subr.mxu1 %v11893_v6  ;;  %v11901_v8 = vld [vmem:[#allocation28_spill] sm:$0xff]  ;;  %v4872_v6 = vcombine.high %v4870_v14, %v4870_v14 }
 0xb63   :  { %8238 = vmatpush3.msra.mxu0 %v11894_v1  ;;  %8273 = vmatpush3.msra.mxu1 %v11895_v25  ;;  %v11904_v1 = vld [vmem:[#allocation31_spill] sm:$0xff]  ;;  %v11905_v25 = vld [vmem:[#allocation32_spill] sm:$0xff] }
 0xb64   :  { %8239 = vmatprep.subr.mxu0 %v11896_v58  ;;  %8274 = vmatprep.subr.mxu1 %v11897_v33  ;;  %v11906_v58 = vld [vmem:[#allocation33_spill] sm:$0xff] }
 0xb65   :  { %8240 = vmatpush3.msra.mxu0 %v11898_v2  ;;  %8275 = vmatpush3.msra.mxu1 %v11899_v44  ;;  %v11907_v2 = vld [vmem:[#allocation34_spill] sm:$0xff] }
 0xb66   :  { %8241 = vmatprep.subr.mxu0 %v11900_v15  ;;  %8276 = vmatprep.subr.mxu1 %v11901_v8  ;;  %v11908_v15 = vmov 0.0  }
 0xb67   :  { %8242 = vmatpush3.msra.mxu0 %v11902_v52  ;;  %8277 = vmatpush3.msra.mxu1 %v11903_v3  ;;  %v5032_v3 = vld [vmem:[%s11494_s3 + $0x6f0] sm:$0xff] }
 0xb68   :  { %8243 = vmatprep.subr.mxu0 %v11904_v1  ;;  %8278 = vmatprep.subr.mxu1 %v11905_v25  ;;  %v5033_v25 = vld [vmem:[%s11494_s3 + $0x6f8] sm:$0xff] }
 0xb69   :  { %8244 = vmatpush3.msra.mxu0 %v11906_v58  ;;  %4941 = vmatprep.mubr.f32.mxu0 %v4871_v45  ;;  %v5030_v45 = vld [vmem:[%s11494_s3 + $0x6e0] sm:$0xff]  ;;  %v5028_v58 = vld [vmem:[%s11494_s3 + $0x6d0] sm:$0xff]  ;;  %v5029_v1 = vld [vmem:[%s11494_s3 + $0x6d8] sm:$0xff] }
 0xb6a   :  { %8279 = vmatpush3.msra.mxu1 %v11907_v2  ;;  %5011 = vmatprep.mubr.f32.mxu1 %v4872_v6  ;;  %v5062_v2 = vunpack.c.l.bf16 %v5032_v3  ;;  %v5063_v6 = vunpack.c.h.bf16 %v5032_v3  ;;  %v5058_v52 = vunpack.c.l.bf16 %v5030_v45  ;;  %v5059_v8 = vunpack.c.h.bf16 %v5030_v45  ;;  %v5027_v45 = vld [vmem:[%s11494_s3 + $0x6c8] sm:$0xff] }
 0xb6b   :  { %4942 = vmatmul.mubr.f32.vlgmr.msra.gmra.mxu0 %v4863_v20  ;;  %5012 = vmatmul.mubr.f32.vlgmr.msra.gmra.mxu1 %v4870_v14  ;;  %v5064_v20 = vunpack.c.l.bf16 %v5033_v25  ;;  %v5065_v14 = vunpack.c.h.bf16 %v5033_v25  ;;  %v5055_v3 = vunpack.c.h.bf16 %v5028_v58  ;;  %v5057_v25 = vunpack.c.h.bf16 %v5029_v1 }
 0xb6c   :  { %5133 = vmatprep.mubr.f32.mxu0 %v11908_v15  ;;  %5204 = vmatprep.mubr.f32.mxu1 %v11908_v15  ;;  %v5031_v15 = vld [vmem:[%s11494_s3 + $0x6e8] sm:$0xff]  ;;  %v5054_v48 = vunpack.c.l.bf16 %v5028_v58  ;;  %v5056_v36 = vunpack.c.l.bf16 %v5029_v1  ;;  %v5052_v1 = vunpack.c.l.bf16 %v5027_v45 }
 0xb6d   :  { %v5060_v44 = vunpack.c.l.bf16 %v5031_v15  ;;  %v5061_v33 = vunpack.c.h.bf16 %v5031_v15  ;;  %5085 = vmatprep.subr.mxu0 %v5063_v6  ;;  %5156 = vmatprep.subr.mxu1 %v5065_v14  ;;  %v5026_v15 = vld [vmem:[%s11494_s3 + $0x6c0] sm:$0xff]  ;;  %v5053_v6 = vunpack.c.h.bf16 %v5027_v45  ;;  %v5023_v14 = vld [vmem:[%s11494_s3 + $0x6a8] sm:$0xff] }
 0xb6e   :  { %5086 = vmatpush1.msra.mxu0 %v5062_v2  ;;  %5157 = vmatpush1.msra.mxu1 %v5064_v20  ;;  %v5051_v2 = vunpack.c.h.bf16 %v5026_v15  ;;  %v5050_v58 = vunpack.c.l.bf16 %v5026_v15  ;;  %v5022_v20 = vld [vmem:[%s11494_s3 + $0x6a0] sm:$0xff]  ;;  %v5044_v45 = vunpack.c.l.bf16 %v5023_v14 }
 0xb6f   :  { %5087 = vmatprep.subr.mxu0 %v5059_v8  ;;  %5158 = vmatprep.subr.mxu1 %v5061_v33  ;;  %v5042_v15 = vunpack.c.l.bf16 %v5022_v20 }
 0xb70   :  { %5088 = vmatpush1.msra.mxu0 %v5058_v52  ;;  %5159 = vmatpush1.msra.mxu1 %v5060_v44  ;;  %v5024_v52 = vld [vmem:[%s11494_s3 + $0x6b0] sm:$0xff] }
 0xb71   :  { %5089 = vmatprep.subr.mxu0 %v5055_v3  ;;  %5160 = vmatprep.subr.mxu1 %v5057_v25  ;;  %v5047_v44 = vunpack.c.h.bf16 %v5024_v52  ;;  %v5046_v8 = vunpack.c.l.bf16 %v5024_v52  ;;  %v5043_v3 = vunpack.c.h.bf16 %v5022_v20  ;;  %v5045_v25 = vunpack.c.h.bf16 %v5023_v14 }
 0xb72   :  { %5090 = vmatpush1.msra.mxu0 %v5054_v48  ;;  %5161 = vmatpush1.msra.mxu1 %v5056_v36  ;;  %v5025_v36 = vld [vmem:[%s11494_s3 + $0x6b8] sm:$0xff] }
 0xb73   :  { %5091 = vmatprep.subr.mxu0 %v5051_v2  ;;  %5162 = vmatprep.subr.mxu1 %v5053_v6  ;;  %v5049_v48 = vunpack.c.h.bf16 %v5025_v36  ;;  %v5048_v33 = vunpack.c.l.bf16 %v5025_v36  ;;  %v5020_v2 = vld [vmem:[%s11494_s3 + $0x690] sm:$0xff]  ;;  %v5021_v6 = vld [vmem:[%s11494_s3 + $0x698] sm:$0xff] }
 0xb74   :  { %5092 = vmatpush1.msra.mxu0 %v5050_v58  ;;  %5163 = vmatpush1.msra.mxu1 %v5052_v1  ;;  %v5039_v58 = vunpack.c.h.bf16 %v5020_v2  ;;  %v5041_v1 = vunpack.c.h.bf16 %v5021_v6  ;;  %v5038_v52 = vunpack.c.l.bf16 %v5020_v2  ;;  %v5040_v36 = vunpack.c.l.bf16 %v5021_v6 }
 0xb75   :  { %5093 = vmatprep.subr.mxu0 %v5047_v44  ;;  %5164 = vmatprep.subr.mxu1 %v5049_v48  ;;  %v5018_v44 = vld [vmem:[%s11494_s3 + $0x680] sm:$0xff]  ;;  %v5019_v48 = vld [vmem:[%s11494_s3 + $0x688] sm:$0xff] }
 0xb76   :  { %5094 = vmatpush1.msra.mxu0 %v5046_v8  ;;  %5165 = vmatpush1.msra.mxu1 %v5048_v33  ;;  %v5035_v8 = vunpack.c.h.bf16 %v5018_v44  ;;  %v5037_v33 = vunpack.c.h.bf16 %v5019_v48  ;;  %v5034_v20 = vunpack.c.l.bf16 %v5018_v44  ;;  %v5036_v14 = vunpack.c.l.bf16 %v5019_v48 }
 0xb77   :  { %5095 = vmatprep.subr.mxu0 %v5043_v3  ;;  %5166 = vmatprep.subr.mxu1 %v5045_v25 }
 0xb78   :  { %5096 = vmatpush1.msra.mxu0 %v5042_v15  ;;  %5167 = vmatpush1.msra.mxu1 %v5044_v45 }
 0xb79   :  { %5097 = vmatprep.subr.mxu0 %v5039_v58  ;;  %5168 = vmatprep.subr.mxu1 %v5041_v1 }
 0xb7a   :  { %5098 = vmatpush1.msra.mxu0 %v5038_v52  ;;  %5169 = vmatpush1.msra.mxu1 %v5040_v36 }
 0xb7b   :  { %5099 = vmatprep.subr.mxu0 %v5035_v8  ;;  %5170 = vmatprep.subr.mxu1 %v5037_v33 }
 0xb7c   :  { %5100 = vmatpush1.msra.mxu0 %v5034_v20  ;;  %5171 = vmatpush1.msra.mxu1 %v5036_v14 }
 0xb7d   :  { %8283 = vmatprep.subr.mxu0 %v11681_v4  ;;  %8318 = vmatprep.subr.mxu1 %v11682_v57 }
 0xc0a   :  { %v4774_v3 = vpop.f32.mrf.mxu0  ;;  %v4845_v25 = vpop.f32.mrf.mxu1 }
 0xc0b   :  { %v10676_v15 = vadd.f32 %v4774_v3, %v10542_v60  ;;  %v10679_v45 = vadd.f32 %v4845_v25, %v10545_v24  ;;  %v10690_v60 = vld [vmem:[%s11493_s2] ss:$0 sm:$0xff]  ;;  %v11909_v3 = vld [vmem:[#allocation14_spill] sm:$0xff]  ;;  %v11910_v25 = vld [vmem:[#allocation15_spill] sm:$0xff] }
 0xc0c   :  { %v4776_v2 = vpop.f32.mrf.mxu0  ;;  %v4847_v6 = vpop.f32.mrf.mxu1 }
 0xc0d   :  { %v10682_v58 = vadd.f32 %v4776_v2, %v10548_v59  ;;  %v10685_v1 = vadd.f32 %v4847_v6, %v10551_v32  ;;  %v5215_v59 = vld [vmem:[%s11491_s0 + $0x70] sm:$0xff]  ;;  %v11911_v2 = vld [vmem:[#allocation16_spill] sm:$0xff]  ;;  %v11912_v6 = vld [vmem:[#allocation17_spill] sm:$0xff] }
 0xc0e   :  { %v5217_v32 = vcombine.high %v5215_v59, %v5215_v59 }
 0xc2b   :  { %v8245_v52 = vpop.f32.mrf.mxu0  ;;  %v8280_v36 = vpop.f32.mrf.mxu1 }
 0xc2d   :  { %v8246_v44 = vpop.f32.mrf.mxu0  ;;  %v8281_v48 = vpop.f32.mrf.mxu1 }
 0xc2e   :  { %v8247_v8 = vadd.f32 %v8246_v44, %v8245_v52  ;;  %v8282_v33 = vadd.f32 %v8281_v48, %v8280_v36  ;;  %v11913_v52 = vld [vmem:[#allocation18_spill] sm:$0xff]  ;;  %v11914_v44 = vld [vmem:[#allocation19_spill] sm:$0xff]  ;;  %v11915_v48 = vld [vmem:[#allocation20_spill] sm:$0xff] }
 0xc2f   :  { %v5224_v36 = vrot.slane %v5215_v59, %v11913_v52  ;;  %v11922_v59 = vld [vmem:[#allocation27_spill] sm:$0xff] }
 0xc30   :  { %v4944_v24 = vadd.f32 %v10690_v60, %v8247_v8  ;;  %v5231_v8 = vrot.slane %v5217_v32, %v11913_v52  ;;  %v11925_v32 = vld [vmem:[#allocation30_spill] sm:$0xff] }
 0xc32   :  { %v5014_v20 = vadd.f32 %v8282_v33, %v4944_v24  ;;  %v11916_v24 = vld [vmem:[#allocation21_spill] sm:$0xff]  ;;  %v11917_v33 = vld [vmem:[#allocation22_spill] sm:$0xff] }
 0xc34   :  { %v5017_v14 = vmax.f32 %v5014_v20, 0.0  ;;  %v11918_v20 = vld [vmem:[#allocation23_spill] sm:$0xff] }
 0xc36   :  { %6978 = vmatmul.mubr.msk.f32.vlgmr.msra.gmra.mxu0 %vm592_vm0, %v5017_v14  ;;  %6979 = vmatmul.mubr.msk.f32.vlgmr.msra.gmra.mxu1 %vm592_vm0, %v5017_v14  ;;  %v11919_v14 = vld [vmem:[#allocation24_spill] sm:$0xff] }
 0xc37   :  { %8284 = vmatpush3.msra.mxu0 %v8604_v5  ;;  %8319 = vmatpush3.msra.mxu1 %v8617_v10 }
 0xc38   :  { %8285 = vmatprep.subr.mxu0 %v8609_v7  ;;  %8320 = vmatprep.subr.mxu1 %v8619_v11 }
 0xc39   :  { %8286 = vmatpush3.msra.mxu0 %v8621_v12  ;;  %8321 = vmatpush3.msra.mxu1 %v8623_v13 }
 0xc3a   :  { %8287 = vmatprep.subr.mxu0 %v8633_v16  ;;  %8322 = vmatprep.subr.mxu1 %v8635_v17 }
 0xc3b   :  { %8288 = vmatpush3.msra.mxu0 %v8639_v18  ;;  %8323 = vmatpush3.msra.mxu1 %v8641_v19 }
 0xc3c   :  { %8289 = vmatprep.subr.mxu0 %v8651_v22  ;;  %8324 = vmatprep.subr.mxu1 %v8653_v23 }
 0xc3d   :  { %8290 = vmatpush3.msra.mxu0 %v8663_v26  ;;  %8325 = vmatpush3.msra.mxu1 %v8665_v27 }
 0xc3e   :  { %8291 = vmatprep.subr.mxu0 %v8669_v28  ;;  %8326 = vmatprep.subr.mxu1 %v8671_v29 }
 0xc3f   :  { %8292 = vmatpush3.msra.mxu0 %v8675_v30  ;;  %8327 = vmatpush3.msra.mxu1 %v8677_v31 }
 0xc40   :  { %8293 = vmatprep.subr.mxu0 %v8687_v34  ;;  %8328 = vmatprep.subr.mxu1 %v8689_v35 }
 0xc41   :  { %8294 = vmatpush3.msra.mxu0 %v8699_v38  ;;  %8329 = vmatpush3.msra.mxu1 %v8701_v39 }
 0xc42   :  { %8295 = vmatprep.subr.mxu0 %v8705_v40  ;;  %8330 = vmatprep.subr.mxu1 %v8707_v41 }
 0xc43   :  { %8296 = vmatpush3.msra.mxu0 %v8711_v42  ;;  %8331 = vmatpush3.msra.mxu1 %v8713_v43 }
 0xc44   :  { %8297 = vmatprep.subr.mxu0 %v8723_v46  ;;  %8332 = vmatprep.subr.mxu1 %v8725_v47 }
 0xc45   :  { %8298 = vmatpush3.msra.mxu0 %v8735_v50  ;;  %8333 = vmatpush3.msra.mxu1 %v8737_v51 }
 0xc46   :  { %8299 = vmatprep.subr.mxu0 %v8741_v53  ;;  %8334 = vmatprep.subr.mxu1 %v8743_v54 }
 0xc47   :  { %8300 = vmatpush3.msra.mxu0 %v8747_v55  ;;  %8335 = vmatpush3.msra.mxu1 %v8749_v56 }
 0xc48   :  { %8301 = vmatprep.subr.mxu0 %v8759_v61  ;;  %8336 = vmatprep.subr.mxu1 %v8761_v62 }
 0xc49   :  { %8302 = vmatpush3.msra.mxu0 %v11633_v63  ;;  %8337 = vmatpush3.msra.mxu1 %v11634_v37 }
 0xc4a   :  { %8303 = vmatprep.subr.mxu0 %v11635_v9  ;;  %8338 = vmatprep.subr.mxu1 %v11636_v49 }
 0xc4b   :  { %8304 = vmatpush3.msra.mxu0 %v11637_v0  ;;  %8339 = vmatpush3.msra.mxu1 %v11886_v21 }
 0xc4c   :  { %8305 = vmatprep.subr.mxu0 %v11909_v3  ;;  %8340 = vmatprep.subr.mxu1 %v11910_v25  ;;  %v11920_v25 = vld [vmem:[#allocation25_spill] sm:$0xff] }
 0xc4d   :  { %8306 = vmatpush3.msra.mxu0 %v11911_v2  ;;  %8341 = vmatpush3.msra.mxu1 %v11912_v6  ;;  %v11921_v2 = vld [vmem:[#allocation26_spill] sm:$0xff]  ;;  %v5232_v6 = vcombine.high %v5224_v36, %v5224_v36  ;;  %v11924_v3 = vld [vmem:[#allocation29_spill] sm:$0xff] }
 0xc4e   :  { %8307 = vmatprep.subr.mxu0 %v11914_v44  ;;  %8342 = vmatprep.subr.mxu1 %v11915_v48  ;;  %v11923_v44 = vld [vmem:[#allocation28_spill] sm:$0xff]  ;;  %v5233_v48 = vcombine.high %v5231_v8, %v5231_v8 }
 0xc4f   :  { %8308 = vmatpush3.msra.mxu0 %v11916_v24  ;;  %8343 = vmatpush3.msra.mxu1 %v11917_v33  ;;  %v11926_v24 = vld [vmem:[#allocation31_spill] sm:$0xff]  ;;  %v11927_v33 = vld [vmem:[#allocation32_spill] sm:$0xff] }
 0xc50   :  { %8309 = vmatprep.subr.mxu0 %v11918_v20  ;;  %8344 = vmatprep.subr.mxu1 %v11919_v14  ;;  %v11928_v20 = vld [vmem:[#allocation33_spill] sm:$0xff] }
 0xc51   :  { %8310 = vmatpush3.msra.mxu0 %v11920_v25  ;;  %8345 = vmatpush3.msra.mxu1 %v11921_v2  ;;  %v11929_v25 = vld [vmem:[#allocation34_spill] sm:$0xff] }
 0xc52   :  { %8311 = vmatprep.subr.mxu0 %v11922_v59  ;;  %8346 = vmatprep.subr.mxu1 %v11923_v44  ;;  %v11930_v59 = vmov 0.0  }
 0xc53   :  { %8312 = vmatpush3.msra.mxu0 %v11924_v3  ;;  %8347 = vmatpush3.msra.mxu1 %v11925_v32  ;;  %v5393_v32 = vld [vmem:[%s11494_s3 + $0x770] sm:$0xff] }
 0xc54   :  { %8313 = vmatprep.subr.mxu0 %v11926_v24  ;;  %8348 = vmatprep.subr.mxu1 %v11927_v33  ;;  %v5394_v33 = vld [vmem:[%s11494_s3 + $0x778] sm:$0xff] }
 0xc55   :  { %8314 = vmatpush3.msra.mxu0 %v11928_v20  ;;  %5302 = vmatprep.mubr.f32.mxu0 %v5232_v6  ;;  %v5391_v6 = vld [vmem:[%s11494_s3 + $0x760] sm:$0xff]  ;;  %v5389_v20 = vld [vmem:[%s11494_s3 + $0x750] sm:$0xff]  ;;  %v5390_v24 = vld [vmem:[%s11494_s3 + $0x758] sm:$0xff] }
 0xc56   :  { %8349 = vmatpush3.msra.mxu1 %v11929_v25  ;;  %5372 = vmatprep.mubr.f32.mxu1 %v5233_v48  ;;  %v5423_v25 = vunpack.c.l.bf16 %v5393_v32  ;;  %v5424_v48 = vunpack.c.h.bf16 %v5393_v32  ;;  %v5419_v3 = vunpack.c.l.bf16 %v5391_v6  ;;  %v5420_v44 = vunpack.c.h.bf16 %v5391_v6  ;;  %v5388_v6 = vld [vmem:[%s11494_s3 + $0x748] sm:$0xff] }
 0xc57   :  { %5303 = vmatmul.mubr.f32.vlgmr.msra.gmra.mxu0 %v5224_v36  ;;  %5373 = vmatmul.mubr.f32.vlgmr.msra.gmra.mxu1 %v5231_v8  ;;  %v5425_v36 = vunpack.c.l.bf16 %v5394_v33  ;;  %v5426_v8 = vunpack.c.h.bf16 %v5394_v33  ;;  %v5416_v32 = vunpack.c.h.bf16 %v5389_v20  ;;  %v5418_v33 = vunpack.c.h.bf16 %v5390_v24 }
 0xc58   :  { %5494 = vmatprep.mubr.f32.mxu0 %v11930_v59  ;;  %5565 = vmatprep.mubr.f32.mxu1 %v11930_v59  ;;  %v5392_v59 = vld [vmem:[%s11494_s3 + $0x768] sm:$0xff]  ;;  %v5415_v52 = vunpack.c.l.bf16 %v5389_v20  ;;  %v5417_v21 = vunpack.c.l.bf16 %v5390_v24  ;;  %v5413_v24 = vunpack.c.l.bf16 %v5388_v6 }
 0xc59   :  { %v5421_v2 = vunpack.c.l.bf16 %v5392_v59  ;;  %v5422_v14 = vunpack.c.h.bf16 %v5392_v59  ;;  %5446 = vmatprep.subr.mxu0 %v5424_v48  ;;  %5517 = vmatprep.subr.mxu1 %v5426_v8  ;;  %v5387_v59 = vld [vmem:[%s11494_s3 + $0x740] sm:$0xff]  ;;  %v5414_v48 = vunpack.c.h.bf16 %v5388_v6  ;;  %v5384_v8 = vld [vmem:[%s11494_s3 + $0x728] sm:$0xff] }
 0xc5a   :  { %5447 = vmatpush1.msra.mxu0 %v5423_v25  ;;  %5518 = vmatpush1.msra.mxu1 %v5425_v36  ;;  %v5412_v25 = vunpack.c.h.bf16 %v5387_v59  ;;  %v5411_v20 = vunpack.c.l.bf16 %v5387_v59  ;;  %v5383_v36 = vld [vmem:[%s11494_s3 + $0x720] sm:$0xff]  ;;  %v5405_v6 = vunpack.c.l.bf16 %v5384_v8 }
 0xc5b   :  { %5448 = vmatprep.subr.mxu0 %v5420_v44  ;;  %5519 = vmatprep.subr.mxu1 %v5422_v14  ;;  %v5403_v59 = vunpack.c.l.bf16 %v5383_v36 }
 0xc5c   :  { %5449 = vmatpush1.msra.mxu0 %v5419_v3  ;;  %5520 = vmatpush1.msra.mxu1 %v5421_v2  ;;  %v5385_v3 = vld [vmem:[%s11494_s3 + $0x730] sm:$0xff] }
 0xc5d   :  { %5450 = vmatprep.subr.mxu0 %v5416_v32  ;;  %5521 = vmatprep.subr.mxu1 %v5418_v33  ;;  %v5408_v2 = vunpack.c.h.bf16 %v5385_v3  ;;  %v5407_v44 = vunpack.c.l.bf16 %v5385_v3  ;;  %v5404_v32 = vunpack.c.h.bf16 %v5383_v36  ;;  %v5406_v33 = vunpack.c.h.bf16 %v5384_v8 }
 0xc5e   :  { %5451 = vmatpush1.msra.mxu0 %v5415_v52  ;;  %5522 = vmatpush1.msra.mxu1 %v5417_v21  ;;  %v5386_v21 = vld [vmem:[%s11494_s3 + $0x738] sm:$0xff] }
 0xc5f   :  { %5452 = vmatprep.subr.mxu0 %v5412_v25  ;;  %5523 = vmatprep.subr.mxu1 %v5414_v48  ;;  %v5410_v52 = vunpack.c.h.bf16 %v5386_v21  ;;  %v5409_v14 = vunpack.c.l.bf16 %v5386_v21  ;;  %v5381_v25 = vld [vmem:[%s11494_s3 + $0x710] sm:$0xff]  ;;  %v5382_v48 = vld [vmem:[%s11494_s3 + $0x718] sm:$0xff] }
 0xc60   :  { %5453 = vmatpush1.msra.mxu0 %v5411_v20  ;;  %5524 = vmatpush1.msra.mxu1 %v5413_v24  ;;  %v5400_v20 = vunpack.c.h.bf16 %v5381_v25  ;;  %v5402_v24 = vunpack.c.h.bf16 %v5382_v48  ;;  %v5399_v3 = vunpack.c.l.bf16 %v5381_v25  ;;  %v5401_v21 = vunpack.c.l.bf16 %v5382_v48 }
 0xc61   :  { %5454 = vmatprep.subr.mxu0 %v5408_v2  ;;  %5525 = vmatprep.subr.mxu1 %v5410_v52  ;;  %v5379_v2 = vld [vmem:[%s11494_s3 + $0x700] sm:$0xff]  ;;  %v5380_v52 = vld [vmem:[%s11494_s3 + $0x708] sm:$0xff] }
 0xc62   :  { %5455 = vmatpush1.msra.mxu0 %v5407_v44  ;;  %5526 = vmatpush1.msra.mxu1 %v5409_v14  ;;  %v5396_v44 = vunpack.c.h.bf16 %v5379_v2  ;;  %v5398_v14 = vunpack.c.h.bf16 %v5380_v52  ;;  %v5395_v36 = vunpack.c.l.bf16 %v5379_v2  ;;  %v5397_v8 = vunpack.c.l.bf16 %v5380_v52 }
 0xc63   :  { %5456 = vmatprep.subr.mxu0 %v5404_v32  ;;  %5527 = vmatprep.subr.mxu1 %v5406_v33 }
 0xc64   :  { %5457 = vmatpush1.msra.mxu0 %v5403_v59  ;;  %5528 = vmatpush1.msra.mxu1 %v5405_v6 }
 0xc65   :  { %5458 = vmatprep.subr.mxu0 %v5400_v20  ;;  %5529 = vmatprep.subr.mxu1 %v5402_v24 }
 0xc66   :  { %5459 = vmatpush1.msra.mxu0 %v5399_v3  ;;  %5530 = vmatpush1.msra.mxu1 %v5401_v21 }
 0xc67   :  { %5460 = vmatprep.subr.mxu0 %v5396_v44  ;;  %5531 = vmatprep.subr.mxu1 %v5398_v14 }
 0xc68   :  { %5461 = vmatpush1.msra.mxu0 %v5395_v36  ;;  %5532 = vmatpush1.msra.mxu1 %v5397_v8 }
 0xc69   :  { %8353 = vmatprep.subr.mxu0 %v11681_v4  ;;  %8388 = vmatprep.subr.mxu1 %v11682_v57 }
 0xcf6   :  { %v5135_v32 = vpop.f32.mrf.mxu0  ;;  %v5206_v33 = vpop.f32.mrf.mxu1 }
 0xcf7   :  { %v10815_v59 = vadd.f32 %v5135_v32, %v10676_v15  ;;  %v10818_v6 = vadd.f32 %v5206_v33, %v10679_v45  ;;  %v5748_v33 = vld [vmem:[%s11494_s3 + $0x7c0] sm:$0xff] }
 0xcf8   :  { %v5137_v25 = vpop.f32.mrf.mxu0  ;;  %v5208_v48 = vpop.f32.mrf.mxu1 }
 0xcf9   :  { %v10821_v20 = vadd.f32 %v5137_v25, %v10682_v58  ;;  %v10824_v24 = vadd.f32 %v5208_v48, %v10685_v1  ;;  %v5749_v25 = vld [vmem:[%s11494_s3 + $0x7c8] sm:$0xff]  ;;  %v5773_v48 = vunpack.c.h.bf16 %v5748_v33 }
 0xd17   :  { %v8315_v3 = vpop.f32.mrf.mxu0  ;;  %v8350_v4 = vpop.f32.mrf.mxu1 }
 0xd19   :  { %v8316_v21 = vpop.f32.mrf.mxu0  ;;  %v8351_v57 = vpop.f32.mrf.mxu1 }
 0xd1a   :  { %v8317_v2 = vadd.f32 %v8316_v21, %v8315_v3  ;;  %v8352_v15 = vadd.f32 %v8351_v57, %v8350_v4  ;;  %v5775_v3 = vunpack.c.h.bf16 %v5749_v25  ;;  %v5772_v4 = vunpack.c.l.bf16 %v5748_v33  ;;  %v5746_v57 = vld [vmem:[%s11494_s3 + $0x7b0] sm:$0xff] }
 0xd1b   :  { %v5774_v21 = vunpack.c.l.bf16 %v5749_v25 }
 0xd1c   :  { %v5305_v52 = vadd.f32 %v10690_v60, %v8317_v2  ;;  %v5747_v2 = vld [vmem:[%s11494_s3 + $0x7b8] sm:$0xff] }
 0xd1e   :  { %v5375_v44 = vadd.f32 %v8352_v15, %v5305_v52  ;;  %v5769_v52 = vunpack.c.h.bf16 %v5746_v57  ;;  %v5771_v15 = vunpack.c.h.bf16 %v5747_v2 }
 0xd20   :  { %v5378_v14 = vmax.f32 %v5375_v44, 0.0  ;;  %v5768_v44 = vunpack.c.l.bf16 %v5746_v57 }
 0xd22   :  { %6980 = vmatmul.mubr.msk.f32.vlgmr.msra.gmra.mxu0 %vm592_vm0, %v5378_v14  ;;  %6981 = vmatmul.mubr.msk.f32.vlgmr.msra.gmra.mxu1 %vm592_vm0, %v5378_v14  ;;  %v5770_v14 = vunpack.c.l.bf16 %v5747_v2 }
 0xd23   :  { %8354 = vmatpush3.msra.mxu0 %v8604_v5  ;;  %8389 = vmatpush3.msra.mxu1 %v8617_v10  ;;  %v5576_v5 = vld [vmem:[%s11491_s0 + $0x78] sm:$0xff]  ;;  %v11931_v10 = vld [vmem:[#allocation13_spill] sm:$0xff] }
 0xd24   :  { %8355 = vmatprep.subr.mxu0 %v8609_v7  ;;  %8390 = vmatprep.subr.mxu1 %v8619_v11  ;;  %v5578_v7 = vcombine.high %v5576_v5, %v5576_v5  ;;  %v11932_v11 = vld [vmem:[#allocation14_spill] sm:$0xff] }
 0xd25   :  { %8356 = vmatpush3.msra.mxu0 %v8621_v12  ;;  %8391 = vmatpush3.msra.mxu1 %v8623_v13  ;;  %v11933_v12 = vld [vmem:[#allocation15_spill] sm:$0xff]  ;;  %v11934_v13 = vld [vmem:[#allocation16_spill] sm:$0xff] }
 0xd26   :  { %8357 = vmatprep.subr.mxu0 %v8633_v16  ;;  %8392 = vmatprep.subr.mxu1 %v8635_v17  ;;  %v11935_v16 = vld [vmem:[#allocation17_spill] sm:$0xff]  ;;  %v11936_v17 = vld [vmem:[#allocation18_spill] sm:$0xff] }
 0xd27   :  { %8358 = vmatpush3.msra.mxu0 %v8639_v18  ;;  %8393 = vmatpush3.msra.mxu1 %v8641_v19  ;;  %v5585_v18 = vrot.slane %v5576_v5, %v11936_v17  ;;  %v11937_v19 = vld [vmem:[#allocation19_spill] sm:$0xff]  ;;  %v5744_v5 = vld [vmem:[%s11494_s3 + $0x7a0] sm:$0xff] }
 0xd28   :  { %8359 = vmatprep.subr.mxu0 %v8651_v22  ;;  %8394 = vmatprep.subr.mxu1 %v8653_v23  ;;  %v11938_v22 = vld [vmem:[#allocation20_spill] sm:$0xff]  ;;  %v5592_v23 = vrot.slane %v5578_v7, %v11936_v17  ;;  %v5745_v7 = vld [vmem:[%s11494_s3 + $0x7a8] sm:$0xff] }
 0xd29   :  { %8360 = vmatpush3.msra.mxu0 %v8663_v26  ;;  %8395 = vmatpush3.msra.mxu1 %v8665_v27  ;;  %v11939_v26 = vld [vmem:[#allocation21_spill] sm:$0xff]  ;;  %v11940_v27 = vld [vmem:[#allocation22_spill] sm:$0xff]  ;;  %v5743_v17 = vld [vmem:[%s11494_s3 + $0x798] sm:$0xff] }
 0xd2a   :  { %8361 = vmatprep.subr.mxu0 %v8669_v28  ;;  %8396 = vmatprep.subr.mxu1 %v8671_v29  ;;  %v11941_v28 = vld [vmem:[#allocation23_spill] sm:$0xff]  ;;  %v11942_v29 = vld [vmem:[#allocation24_spill] sm:$0xff] }
 0xd2b   :  { %8362 = vmatpush3.msra.mxu0 %v8675_v30  ;;  %8397 = vmatpush3.msra.mxu1 %v8677_v31  ;;  %v11943_v30 = vld [vmem:[#allocation25_spill] sm:$0xff]  ;;  %v11944_v31 = vld [vmem:[#allocation26_spill] sm:$0xff] }
 0xd2c   :  { %8363 = vmatprep.subr.mxu0 %v8687_v34  ;;  %8398 = vmatprep.subr.mxu1 %v8689_v35  ;;  %v5593_v34 = vcombine.high %v5585_v18, %v5585_v18  ;;  %v11945_v35 = vld [vmem:[#allocation27_spill] sm:$0xff] }
 0xd2d   :  { %8364 = vmatpush3.msra.mxu0 %v8699_v38  ;;  %8399 = vmatpush3.msra.mxu1 %v8701_v39  ;;  %v11946_v38 = vld [vmem:[#allocation28_spill] sm:$0xff]  ;;  %v5594_v39 = vcombine.high %v5592_v23, %v5592_v23 }
 0xd2e   :  { %8365 = vmatprep.subr.mxu0 %v8705_v40  ;;  %8400 = vmatprep.subr.mxu1 %v8707_v41  ;;  %v11947_v40 = vld [vmem:[#allocation29_spill] sm:$0xff]  ;;  %v11948_v41 = vld [vmem:[#allocation30_spill] sm:$0xff] }
 0xd2f   :  { %8366 = vmatpush3.msra.mxu0 %v8711_v42  ;;  %8401 = vmatpush3.msra.mxu1 %v8713_v43  ;;  %v11949_v42 = vld [vmem:[#allocation31_spill] sm:$0xff]  ;;  %v11950_v43 = vld [vmem:[#allocation32_spill] sm:$0xff] }
 0xd30   :  { %8367 = vmatprep.subr.mxu0 %v8723_v46  ;;  %8402 = vmatprep.subr.mxu1 %v8725_v47  ;;  %v11951_v46 = vld [vmem:[#allocation33_spill] sm:$0xff]  ;;  %v11952_v47 = vld [vmem:[#allocation34_spill] sm:$0xff] }
 0xd31   :  { %8368 = vmatpush3.msra.mxu0 %v8735_v50  ;;  %8403 = vmatpush3.msra.mxu1 %v8737_v51  ;;  %v11953_v50 = vmov 0.0   ;;  %v5754_v51 = vld [vmem:[%s11494_s3 + $0x7f0] sm:$0xff] }
 0xd32   :  { %8369 = vmatprep.subr.mxu0 %v8741_v53  ;;  %8404 = vmatprep.subr.mxu1 %v8743_v54  ;;  %v5755_v53 = vld [vmem:[%s11494_s3 + $0x7f8] sm:$0xff]  ;;  %v5752_v54 = vld [vmem:[%s11494_s3 + $0x7e0] sm:$0xff] }
 0xd33   :  { %8370 = vmatpush3.msra.mxu0 %v8747_v55  ;;  %8405 = vmatpush3.msra.mxu1 %v8749_v56  ;;  %v5784_v55 = vunpack.c.l.bf16 %v5754_v51  ;;  %v5785_v56 = vunpack.c.h.bf16 %v5754_v51 }
 0xd34   :  { %8371 = vmatprep.subr.mxu0 %v8759_v61  ;;  %8406 = vmatprep.subr.mxu1 %v8761_v62  ;;  %v5786_v61 = vunpack.c.l.bf16 %v5755_v53  ;;  %v5787_v62 = vunpack.c.h.bf16 %v5755_v53 }
 0xd35   :  { %8372 = vmatpush3.msra.mxu0 %v11633_v63  ;;  %8407 = vmatpush3.msra.mxu1 %v11634_v37  ;;  %v5753_v63 = vld [vmem:[%s11494_s3 + $0x7e8] sm:$0xff]  ;;  %v5750_v37 = vld [vmem:[%s11494_s3 + $0x7d0] sm:$0xff] }
 0xd36   :  { %8373 = vmatprep.subr.mxu0 %v11635_v9  ;;  %8408 = vmatprep.subr.mxu1 %v11636_v49  ;;  %v5751_v9 = vld [vmem:[%s11494_s3 + $0x7d8] sm:$0xff]  ;;  %v5780_v49 = vunpack.c.l.bf16 %v5752_v54  ;;  %v5782_v45 = vunpack.c.l.bf16 %v5753_v63  ;;  %v5783_v58 = vunpack.c.h.bf16 %v5753_v63  ;;  %v5777_v1 = vunpack.c.h.bf16 %v5750_v37 }
 0xd37   :  { %8374 = vmatpush3.msra.mxu0 %v11637_v0  ;;  %8409 = vmatpush3.msra.mxu1 %v11931_v10  ;;  %v5781_v0 = vunpack.c.h.bf16 %v5752_v54  ;;  %v5779_v36 = vunpack.c.h.bf16 %v5751_v9  ;;  %v5776_v8 = vunpack.c.l.bf16 %v5750_v37  ;;  %v5778_v32 = vunpack.c.l.bf16 %v5751_v9  ;;  %v5993_v9 = vld [vmem:[%s11496_s5 + $0xd0] sm:$0xff] }
 0xd38   :  { %8375 = vmatprep.subr.mxu0 %v11932_v11  ;;  %8410 = vmatprep.subr.mxu1 %v11933_v12  ;;  %v5765_v10 = vunpack.c.h.bf16 %v5744_v5  ;;  %v5767_v11 = vunpack.c.h.bf16 %v5745_v7  ;;  %v5764_v12 = vunpack.c.l.bf16 %v5744_v5  ;;  %v6147_v25 = vunpack.c.l.bf16 %v5993_v9 }
 0xd39   :  { %8376 = vmatpush3.msra.mxu0 %v11934_v13  ;;  %8411 = vmatpush3.msra.mxu1 %v11935_v16  ;;  %v5766_v13 = vunpack.c.l.bf16 %v5745_v7  ;;  %v5742_v16 = vld [vmem:[%s11494_s3 + $0x790] sm:$0xff] }
 0xd3a   :  { %8377 = vmatprep.subr.mxu0 %v11937_v19  ;;  %8412 = vmatprep.subr.mxu1 %v11938_v22  ;;  %v5763_v19 = vunpack.c.h.bf16 %v5743_v17  ;;  %v5760_v22 = vunpack.c.l.bf16 %v5742_v16 }
 0xd3b   :  { %8378 = vmatpush3.msra.mxu0 %v11939_v26  ;;  %8413 = vmatpush3.msra.mxu1 %v11940_v27  ;;  %v5740_v26 = vld [vmem:[%s11494_s3 + $0x780] sm:$0xff]  ;;  %v5741_v27 = vld [vmem:[%s11494_s3 + $0x788] sm:$0xff] }
 0xd3c   :  { %8379 = vmatprep.subr.mxu0 %v11941_v28  ;;  %8414 = vmatprep.subr.mxu1 %v11942_v29  ;;  %v5757_v28 = vunpack.c.h.bf16 %v5740_v26  ;;  %v5759_v29 = vunpack.c.h.bf16 %v5741_v27 }
 0xd3d   :  { %8380 = vmatpush3.msra.mxu0 %v11943_v30  ;;  %8415 = vmatpush3.msra.mxu1 %v11944_v31  ;;  %v5756_v30 = vunpack.c.l.bf16 %v5740_v26  ;;  %v5758_v31 = vunpack.c.l.bf16 %v5741_v27 }
 0xd3e   :  { %8381 = vmatprep.subr.mxu0 %v11945_v35  ;;  %8416 = vmatprep.subr.mxu1 %v11946_v38  ;;  %v6061_v35 = vld [vmem:[%s11496_s5 + $0x2f0] sm:$0xff] }
 0xd3f   :  { %8382 = vmatpush3.msra.mxu0 %v11947_v40  ;;  %8417 = vmatpush3.msra.mxu1 %v11948_v41 }
 0xd40   :  { %8383 = vmatprep.subr.mxu0 %v11949_v42  ;;  %8418 = vmatprep.subr.mxu1 %v11950_v43 }
 0xd41   :  { %8384 = vmatpush3.msra.mxu0 %v11951_v46  ;;  %5663 = vmatprep.mubr.f32.mxu0 %v5593_v34  ;;  %v5997_v34 = vld [vmem:[%s11496_s5 + $0xf0] sm:$0xff] }
 0xd42   :  { %8419 = vmatpush3.msra.mxu1 %v11952_v47  ;;  %5733 = vmatprep.mubr.f32.mxu1 %v5594_v39  ;;  %v6156_v38 = vunpack.c.h.bf16 %v5997_v34  ;;  %v6284_v39 = vunpack.c.h.bf16 %v6061_v35  ;;  %v6155_v37 = vunpack.c.l.bf16 %v5997_v34 }
 0xd43   :  { %5664 = vmatmul.mubr.f32.vlgmr.msra.gmra.mxu0 %v5585_v18  ;;  %5734 = vmatmul.mubr.f32.vlgmr.msra.gmra.mxu1 %v5592_v23  ;;  %v5761_v18 = vunpack.c.h.bf16 %v5742_v16  ;;  %v5762_v23 = vunpack.c.l.bf16 %v5743_v17 }
 0xd44   :  { %5855 = vmatprep.mubr.f32.mxu0 %v11953_v50  ;;  %5926 = vmatprep.mubr.f32.mxu1 %v11953_v50 }
 0xd45   :  { %5807 = vmatprep.subr.mxu0 %v5785_v56  ;;  %5878 = vmatprep.subr.mxu1 %v5787_v62 }
 0xd46   :  { %5808 = vmatpush1.msra.mxu0 %v5784_v55  ;;  %5879 = vmatpush1.msra.mxu1 %v5786_v61 }
 0xd47   :  { %5809 = vmatprep.subr.mxu0 %v5781_v0  ;;  %5880 = vmatprep.subr.mxu1 %v5783_v58 }
 0xd48   :  { %5810 = vmatpush1.msra.mxu0 %v5780_v49  ;;  %5881 = vmatpush1.msra.mxu1 %v5782_v45 }
 0xd49   :  { %5811 = vmatprep.subr.mxu0 %v5777_v1  ;;  %5882 = vmatprep.subr.mxu1 %v5779_v36  ;;  %v5991_v36 = vld [vmem:[%s11496_s5 + $0xc0] sm:$0xff] }
 0xd4a   :  { %5812 = vmatpush1.msra.mxu0 %v5776_v8  ;;  %5883 = vmatpush1.msra.mxu1 %v5778_v32  ;;  %v6055_v8 = vld [vmem:[%s11496_s5 + $0x2c0] sm:$0xff]  ;;  %v6148_v32 = vunpack.c.h.bf16 %v5993_v9  ;;  %v6143_v2 = vunpack.c.l.bf16 %v5991_v36 }
 0xd4b   :  { %5813 = vmatprep.subr.mxu0 %v5773_v48  ;;  %5884 = vmatprep.subr.mxu1 %v5775_v3  ;;  %v5989_v3 = vld [vmem:[%s11496_s5 + $0xb0] sm:$0xff]  ;;  %v6272_v57 = vunpack.c.h.bf16 %v6055_v8 }
 0xd4c   :  { %5814 = vmatpush1.msra.mxu0 %v5772_v4  ;;  %5885 = vmatpush1.msra.mxu1 %v5774_v21  ;;  %v6053_v4 = vld [vmem:[%s11496_s5 + $0x2b0] sm:$0xff]  ;;  %v6144_v21 = vunpack.c.h.bf16 %v5991_v36  ;;  %v6139_v7 = vunpack.c.l.bf16 %v5989_v3  ;;  %v5971_v36 = vld [vmem:[%s11496_s5 + $0x20] sm:$0xff] }
 0xd4d   :  { %5815 = vmatprep.subr.mxu0 %v5769_v52  ;;  %5886 = vmatprep.subr.mxu1 %v5771_v15  ;;  %v6271_v52 = vunpack.c.l.bf16 %v6055_v8  ;;  %v5987_v15 = vld [vmem:[%s11496_s5 + $0xa0] sm:$0xff]  ;;  %v6268_v5 = vunpack.c.h.bf16 %v6053_v4 }
 0xd4e   :  { %5816 = vmatpush1.msra.mxu0 %v5768_v44  ;;  %5887 = vmatpush1.msra.mxu1 %v5770_v14  ;;  %v6051_v44 = vld [vmem:[%s11496_s5 + $0x2a0] sm:$0xff]  ;;  %v6140_v14 = vunpack.c.h.bf16 %v5989_v3  ;;  %v6135_v17 = vunpack.c.l.bf16 %v5987_v15  ;;  %v5969_v3 = vld [vmem:[%s11496_s5 + $0x10] sm:$0xff] }
 0xd4f   :  { %5817 = vmatprep.subr.mxu0 %v5765_v10  ;;  %5888 = vmatprep.subr.mxu1 %v5767_v11  ;;  %v6267_v10 = vunpack.c.l.bf16 %v6053_v4  ;;  %v5985_v11 = vld [vmem:[%s11496_s5 + $0x90] sm:$0xff]  ;;  %v6264_v16 = vunpack.c.h.bf16 %v6051_v44  ;;  %v6035_v8 = vld [vmem:[%s11496_s5 + $0x220] sm:$0xff] }
 0xd50   :  { %5818 = vmatpush1.msra.mxu0 %v5764_v12  ;;  %5889 = vmatpush1.msra.mxu1 %v5766_v13  ;;  %v6049_v12 = vld [vmem:[%s11496_s5 + $0x290] sm:$0xff]  ;;  %v6136_v13 = vunpack.c.h.bf16 %v5987_v15  ;;  %v6131_v27 = vunpack.c.l.bf16 %v5985_v11  ;;  %v5967_v15 = vld [vmem:[%s11496_s5] sm:$0xff] }
 0xd51   :  { %5819 = vmatprep.subr.mxu0 %v5761_v18  ;;  %5890 = vmatprep.subr.mxu1 %v5763_v19  ;;  %v6263_v18 = vunpack.c.l.bf16 %v6051_v44  ;;  %v5983_v19 = vld [vmem:[%s11496_s5 + $0x80] sm:$0xff]  ;;  %v6260_v26 = vunpack.c.h.bf16 %v6049_v12  ;;  %v6033_v4 = vld [vmem:[%s11496_s5 + $0x210] sm:$0xff] }
 0xd52   :  { %5820 = vmatpush1.msra.mxu0 %v5760_v22  ;;  %5891 = vmatpush1.msra.mxu1 %v5762_v23  ;;  %v6047_v22 = vld [vmem:[%s11496_s5 + $0x280] sm:$0xff]  ;;  %v6132_v23 = vunpack.c.h.bf16 %v5985_v11  ;;  %v6029_v11 = vld [vmem:[%s11496_s5 + $0x1f0] sm:$0xff] }
 0xd53   :  { %5821 = vmatprep.subr.mxu0 %v5757_v28  ;;  %5892 = vmatprep.subr.mxu1 %v5759_v29  ;;  %v6259_v28 = vunpack.c.l.bf16 %v6049_v12  ;;  %v5981_v29 = vld [vmem:[%s11496_s5 + $0x70] sm:$0xff]  ;;  %v6256_v34 = vunpack.c.h.bf16 %v6047_v22  ;;  %v6031_v44 = vld [vmem:[%s11496_s5 + $0x200] sm:$0xff] }
 0xd54   :  { %5822 = vmatpush1.msra.mxu0 %v5756_v30  ;;  %5893 = vmatpush1.msra.mxu1 %v5758_v31  ;;  %v6045_v30 = vld [vmem:[%s11496_s5 + $0x270] sm:$0xff]  ;;  %v6128_v31 = vunpack.c.h.bf16 %v5983_v19 }
 0xd55   :  { %6373 = vmatprep.subr.mxu0 %v6156_v38  ;;  %6444 = vmatprep.subr.mxu1 %v6284_v39  ;;  %v6255_v38 = vunpack.c.l.bf16 %v6047_v22  ;;  %v5979_v39 = vld [vmem:[%s11496_s5 + $0x60] sm:$0xff]  ;;  %v6093_v12 = vld [vmem:[%s11496_s5 + $0x3f0] sm:$0xff] }
 0xd56   :  { %v6091_v22 = vld [vmem:[%s11496_s5 + $0x3e0] sm:$0xff] }
 0xde2   :  { %v5496_v40 = vpop.f32.mrf.mxu0  ;;  %v5567_v41 = vpop.f32.mrf.mxu1 }
 0xde3   :  { %v10953_v42 = vadd.f32 %v5496_v40, %v10815_v59  ;;  %v10956_v43 = vadd.f32 %v5567_v41, %v10818_v6  ;;  %v5995_v6 = vld [vmem:[%s11496_s5 + $0xe0] sm:$0xff]  ;;  %v6124_v41 = vunpack.c.h.bf16 %v5981_v29 }
 0xde4   :  { %v5498_v46 = vpop.f32.mrf.mxu0  ;;  %v5569_v47 = vpop.f32.mrf.mxu1  ;;  %v6152_v0 = vunpack.c.h.bf16 %v5995_v6  ;;  %v6151_v58 = vunpack.c.l.bf16 %v5995_v6  ;;  %v6043_v40 = vld [vmem:[%s11496_s5 + $0x260] sm:$0xff] }
 0xde5   :  { %v10959_v50 = vadd.f32 %v5498_v46, %v10821_v20  ;;  %v10962_v51 = vadd.f32 %v5569_v47, %v10824_v24  ;;  %v6059_v20 = vld [vmem:[%s11496_s5 + $0x2e0] sm:$0xff]  ;;  %v6283_v24 = vunpack.c.l.bf16 %v6061_v35  ;;  %v6127_v35 = vunpack.c.l.bf16 %v5983_v19 }
 0xde6   :  { %v6280_v45 = vunpack.c.h.bf16 %v6059_v20  ;;  %v6279_v1 = vunpack.c.l.bf16 %v6059_v20  ;;  %v6252_v46 = vunpack.c.h.bf16 %v6045_v30  ;;  %v6123_v47 = vunpack.c.l.bf16 %v5981_v29  ;;  %v5975_v6 = vld [vmem:[%s11496_s5 + $0x40] sm:$0xff]  ;;  %v6025_v29 = vld [vmem:[%s11496_s5 + $0x1d0] sm:$0xff] }
 0xde7   :  { %v6039_v20 = vld [vmem:[%s11496_s5 + $0x240] sm:$0xff] }
 0xde8   :  { %v6027_v19 = vld [vmem:[%s11496_s5 + $0x1e0] sm:$0xff] }
 0xe03   :  { %v8385_v53 = vpop.f32.mrf.mxu0  ;;  %v8420_v54 = vpop.f32.mrf.mxu1 }
 0xe05   :  { %v8386_v55 = vpop.f32.mrf.mxu0  ;;  %v8421_v56 = vpop.f32.mrf.mxu1 }
 0xe06   :  { %v8387_v61 = vadd.f32 %v8386_v55, %v8385_v53  ;;  %v8422_v59 = vadd.f32 %v8421_v56, %v8420_v54  ;;  %v6251_v53 = vunpack.c.l.bf16 %v6045_v30  ;;  %v5977_v54 = vld [vmem:[%s11496_s5 + $0x50] sm:$0xff]  ;;  %v6120_v56 = vunpack.c.h.bf16 %v5979_v39 }
 0xe07   :  { %v6041_v55 = vld [vmem:[%s11496_s5 + $0x250] sm:$0xff] }
 0xe08   :  { %v5666_v62 = vadd.f32 %v10690_v60, %v8387_v61  ;;  %v6057_v60 = vld [vmem:[%s11496_s5 + $0x2d0] sm:$0xff]  ;;  %v6248_v61 = vunpack.c.h.bf16 %v6043_v40  ;;  %v6243_v9 = vunpack.c.l.bf16 %v6041_v55 }
 0xe09   :  { %v6276_v33 = vunpack.c.h.bf16 %v6057_v60  ;;  %v6275_v48 = vunpack.c.l.bf16 %v6057_v60  ;;  %v5973_v60 = vld [vmem:[%s11496_s5 + $0x30] sm:$0xff] }
 0xe0a   :  { %v5736_v63 = vadd.f32 %v8422_v59, %v5666_v62  ;;  %v6119_v62 = vunpack.c.l.bf16 %v5979_v39  ;;  %v6247_v59 = vunpack.c.l.bf16 %v6043_v40  ;;  %v6089_v30 = vld [vmem:[%s11496_s5 + $0x3d0] sm:$0xff]  ;;  %v6023_v39 = vld [vmem:[%s11496_s5 + $0x1c0] sm:$0xff] }
 0xe0b   :  { %v6087_v40 = vld [vmem:[%s11496_s5 + $0x3c0] sm:$0xff] }
 0xe0c   :  { %v5739_v49 = vmax.f32 %v5736_v63, 0.0  ;;  %v6116_v63 = vunpack.c.h.bf16 %v5977_v54 }
 0xe0e   :  { %6982 = vmatmul.mubr.msk.f32.vlgmr.msra.gmra.mxu0 %vm592_vm0, %v5739_v49  ;;  %6983 = vmatmul.mubr.msk.f32.vlgmr.msra.gmra.mxu1 %vm592_vm0, %v5739_v49  ;;  %v6037_v49 = vld [vmem:[%s11496_s5 + $0x230] sm:$0xff] }
 0xe0f   :  { %6374 = vmatpush1.msra.mxu0 %v6155_v37  ;;  %6445 = vmatpush1.msra.mxu1 %v6283_v24  ;;  %v6244_v37 = vunpack.c.h.bf16 %v6041_v55  ;;  %v6115_v24 = vunpack.c.l.bf16 %v5977_v54  ;;  %v6021_v54 = vld [vmem:[%s11496_s5 + $0x1b0] sm:$0xff] }
 0xe10   :  { %6375 = vmatprep.subr.mxu0 %v6152_v0  ;;  %6446 = vmatprep.subr.mxu1 %v6280_v45  ;;  %v6112_v0 = vunpack.c.h.bf16 %v5975_v6  ;;  %v6240_v45 = vunpack.c.h.bf16 %v6039_v20  ;;  %v6085_v55 = vld [vmem:[%s11496_s5 + $0x3b0] sm:$0xff] }
 0xe11   :  { %6376 = vmatpush1.msra.mxu0 %v6151_v58  ;;  %6447 = vmatpush1.msra.mxu1 %v6279_v1  ;;  %v6111_v58 = vunpack.c.l.bf16 %v5975_v6  ;;  %v6239_v1 = vunpack.c.l.bf16 %v6039_v20  ;;  %v6019_v6 = vld [vmem:[%s11496_s5 + $0x1a0] sm:$0xff] }
 0xe12   :  { %6377 = vmatprep.subr.mxu0 %v6148_v32  ;;  %6448 = vmatprep.subr.mxu1 %v6276_v33  ;;  %v6108_v32 = vunpack.c.h.bf16 %v5973_v60  ;;  %v6236_v33 = vunpack.c.h.bf16 %v6037_v49  ;;  %v6083_v20 = vld [vmem:[%s11496_s5 + $0x3a0] sm:$0xff] }
 0xe13   :  { %6378 = vmatpush1.msra.mxu0 %v6147_v25  ;;  %6449 = vmatpush1.msra.mxu1 %v6275_v48  ;;  %v6107_v25 = vunpack.c.l.bf16 %v5973_v60  ;;  %v6235_v48 = vunpack.c.l.bf16 %v6037_v49  ;;  %v6017_v60 = vld [vmem:[%s11496_s5 + $0x190] sm:$0xff] }
 0xe14   :  { %6379 = vmatprep.subr.mxu0 %v6144_v21  ;;  %6450 = vmatprep.subr.mxu1 %v6272_v57  ;;  %v6104_v21 = vunpack.c.h.bf16 %v5971_v36  ;;  %v6232_v57 = vunpack.c.h.bf16 %v6035_v8  ;;  %v6081_v49 = vld [vmem:[%s11496_s5 + $0x390] sm:$0xff] }
 0xe15   :  { %6380 = vmatpush1.msra.mxu0 %v6143_v2  ;;  %6451 = vmatpush1.msra.mxu1 %v6271_v52  ;;  %v6103_v2 = vunpack.c.l.bf16 %v5971_v36  ;;  %v6231_v52 = vunpack.c.l.bf16 %v6035_v8  ;;  %v6015_v36 = vld [vmem:[%s11496_s5 + $0x180] sm:$0xff] }
 0xe16   :  { %6381 = vmatprep.subr.mxu0 %v6140_v14  ;;  %6452 = vmatprep.subr.mxu1 %v6268_v5  ;;  %v6100_v14 = vunpack.c.h.bf16 %v5969_v3  ;;  %v6228_v5 = vunpack.c.h.bf16 %v6033_v4  ;;  %v6079_v8 = vld [vmem:[%s11496_s5 + $0x380] sm:$0xff] }
 0xe17   :  { %6382 = vmatpush1.msra.mxu0 %v6139_v7  ;;  %6453 = vmatpush1.msra.mxu1 %v6267_v10  ;;  %v6099_v7 = vunpack.c.l.bf16 %v5969_v3  ;;  %v6227_v10 = vunpack.c.l.bf16 %v6033_v4  ;;  %v6013_v3 = vld [vmem:[%s11496_s5 + $0x170] sm:$0xff] }
 0xe18   :  { %6383 = vmatprep.subr.mxu0 %v6136_v13  ;;  %6454 = vmatprep.subr.mxu1 %v6264_v16  ;;  %v6096_v13 = vunpack.c.h.bf16 %v5967_v15  ;;  %v6224_v16 = vunpack.c.h.bf16 %v6031_v44  ;;  %v6077_v4 = vld [vmem:[%s11496_s5 + $0x370] sm:$0xff] }
 0xe19   :  { %6384 = vmatpush1.msra.mxu0 %v6135_v17  ;;  %6455 = vmatpush1.msra.mxu1 %v6263_v18  ;;  %v6095_v17 = vunpack.c.l.bf16 %v5967_v15  ;;  %v6223_v18 = vunpack.c.l.bf16 %v6031_v44  ;;  %v6011_v15 = vld [vmem:[%s11496_s5 + $0x160] sm:$0xff] }
 0xe1a   :  { %6385 = vmatprep.subr.mxu0 %v6132_v23  ;;  %6456 = vmatprep.subr.mxu1 %v6260_v26  ;;  %v6220_v23 = vunpack.c.h.bf16 %v6029_v11  ;;  %v6348_v26 = vunpack.c.h.bf16 %v6093_v12  ;;  %v6075_v44 = vld [vmem:[%s11496_s5 + $0x360] sm:$0xff] }
 0xe1b   :  { %6386 = vmatpush1.msra.mxu0 %v6131_v27  ;;  %6457 = vmatpush1.msra.mxu1 %v6259_v28  ;;  %v6219_v27 = vunpack.c.l.bf16 %v6029_v11  ;;  %v6347_v28 = vunpack.c.l.bf16 %v6093_v12  ;;  %v6009_v11 = vld [vmem:[%s11496_s5 + $0x150] sm:$0xff] }
 0xe1c   :  { %6387 = vmatprep.subr.mxu0 %v6128_v31  ;;  %6458 = vmatprep.subr.mxu1 %v6256_v34  ;;  %v6216_v31 = vunpack.c.h.bf16 %v6027_v19  ;;  %v6344_v34 = vunpack.c.h.bf16 %v6091_v22  ;;  %v6073_v12 = vld [vmem:[%s11496_s5 + $0x350] sm:$0xff] }
 0xe1d   :  { %6388 = vmatpush1.msra.mxu0 %v6127_v35  ;;  %6459 = vmatpush1.msra.mxu1 %v6255_v38  ;;  %v6215_v35 = vunpack.c.l.bf16 %v6027_v19  ;;  %v6343_v38 = vunpack.c.l.bf16 %v6091_v22  ;;  %v6007_v19 = vld [vmem:[%s11496_s5 + $0x140] sm:$0xff] }
 0xe1e   :  { %6389 = vmatprep.subr.mxu0 %v6124_v41  ;;  %6460 = vmatprep.subr.mxu1 %v6252_v46  ;;  %v6212_v41 = vunpack.c.h.bf16 %v6025_v29  ;;  %v6340_v46 = vunpack.c.h.bf16 %v6089_v30  ;;  %v6071_v22 = vld [vmem:[%s11496_s5 + $0x340] sm:$0xff] }
 0xe1f   :  { %6390 = vmatpush1.msra.mxu0 %v6123_v47  ;;  %6461 = vmatpush1.msra.mxu1 %v6251_v53  ;;  %v6211_v47 = vunpack.c.l.bf16 %v6025_v29  ;;  %v6339_v53 = vunpack.c.l.bf16 %v6089_v30  ;;  %v6176_v29 = vunpack.c.h.bf16 %v6007_v19  ;;  %v6304_v30 = vunpack.c.h.bf16 %v6071_v22 }
 0xe20   :  { %6391 = vmatprep.subr.mxu0 %v6120_v56  ;;  %6462 = vmatprep.subr.mxu1 %v6248_v61  ;;  %v6208_v56 = vunpack.c.h.bf16 %v6023_v39  ;;  %v6336_v61 = vunpack.c.h.bf16 %v6087_v40 }
 0xe21   :  { %6392 = vmatpush1.msra.mxu0 %v6119_v62  ;;  %6463 = vmatpush1.msra.mxu1 %v6247_v59  ;;  %v6207_v62 = vunpack.c.l.bf16 %v6023_v39  ;;  %v6335_v59 = vunpack.c.l.bf16 %v6087_v40 }
 0xe22   :  { %6393 = vmatprep.subr.mxu0 %v6116_v63  ;;  %6464 = vmatprep.subr.mxu1 %v6244_v37  ;;  %v6204_v63 = vunpack.c.h.bf16 %v6021_v54  ;;  %v6332_v37 = vunpack.c.h.bf16 %v6085_v55 }
 0xe23   :  { %6394 = vmatpush1.msra.mxu0 %v6115_v24  ;;  %6465 = vmatpush1.msra.mxu1 %v6243_v9  ;;  %v6203_v24 = vunpack.c.l.bf16 %v6021_v54  ;;  %v6331_v9 = vunpack.c.l.bf16 %v6085_v55 }
 0xe24   :  { %6395 = vmatprep.subr.mxu0 %v6112_v0  ;;  %6466 = vmatprep.subr.mxu1 %v6240_v45  ;;  %v6200_v0 = vunpack.c.h.bf16 %v6019_v6  ;;  %v6328_v45 = vunpack.c.h.bf16 %v6083_v20 }
 0xe25   :  { %6396 = vmatpush1.msra.mxu0 %v6111_v58  ;;  %6467 = vmatpush1.msra.mxu1 %v6239_v1  ;;  %v6199_v58 = vunpack.c.l.bf16 %v6019_v6  ;;  %v6327_v1 = vunpack.c.l.bf16 %v6083_v20 }
 0xe26   :  { %6397 = vmatprep.subr.mxu0 %v6108_v32  ;;  %6468 = vmatprep.subr.mxu1 %v6236_v33  ;;  %v6196_v32 = vunpack.c.h.bf16 %v6017_v60  ;;  %v6324_v33 = vunpack.c.h.bf16 %v6081_v49 }
 0xe27   :  { %6398 = vmatpush1.msra.mxu0 %v6107_v25  ;;  %6469 = vmatpush1.msra.mxu1 %v6235_v48  ;;  %v6195_v25 = vunpack.c.l.bf16 %v6017_v60  ;;  %v6323_v48 = vunpack.c.l.bf16 %v6081_v49 }
 0xe28   :  { %6399 = vmatprep.subr.mxu0 %v6104_v21  ;;  %6470 = vmatprep.subr.mxu1 %v6232_v57  ;;  %v6192_v21 = vunpack.c.h.bf16 %v6015_v36  ;;  %v6320_v57 = vunpack.c.h.bf16 %v6079_v8 }
 0xe29   :  { %6400 = vmatpush1.msra.mxu0 %v6103_v2  ;;  %6471 = vmatpush1.msra.mxu1 %v6231_v52  ;;  %v6191_v2 = vunpack.c.l.bf16 %v6015_v36  ;;  %v6319_v52 = vunpack.c.l.bf16 %v6079_v8 }
 0xe2a   :  { %6401 = vmatprep.subr.mxu0 %v6100_v14  ;;  %6472 = vmatprep.subr.mxu1 %v6228_v5  ;;  %v6188_v14 = vunpack.c.h.bf16 %v6013_v3  ;;  %v6316_v5 = vunpack.c.h.bf16 %v6077_v4 }
 0xe2b   :  { %6402 = vmatpush1.msra.mxu0 %v6099_v7  ;;  %6473 = vmatpush1.msra.mxu1 %v6227_v10  ;;  %v6187_v7 = vunpack.c.l.bf16 %v6013_v3  ;;  %v6315_v10 = vunpack.c.l.bf16 %v6077_v4 }
 0xe2c   :  { %6403 = vmatprep.subr.mxu0 %v6096_v13  ;;  %6474 = vmatprep.subr.mxu1 %v6224_v16  ;;  %v6184_v13 = vunpack.c.h.bf16 %v6011_v15  ;;  %v6312_v16 = vunpack.c.h.bf16 %v6075_v44 }
 0xe2d   :  { %6404 = vmatpush1.msra.mxu0 %v6095_v17  ;;  %6475 = vmatpush1.msra.mxu1 %v6223_v18  ;;  %v6183_v17 = vunpack.c.l.bf16 %v6011_v15  ;;  %v6311_v18 = vunpack.c.l.bf16 %v6075_v44 }
 0xe2e   :  { %6405 = vmatprep.subr.mxu0 %v6220_v23  ;;  %6476 = vmatprep.subr.mxu1 %v6348_v26  ;;  %v6180_v23 = vunpack.c.h.bf16 %v6009_v11  ;;  %v6308_v26 = vunpack.c.h.bf16 %v6073_v12 }
 0xe2f   :  { %6406 = vmatpush2.msra.mxu0 %v6219_v27  ;;  %6477 = vmatpush2.msra.mxu1 %v6347_v28  ;;  %v6179_v27 = vunpack.c.l.bf16 %v6009_v11  ;;  %v6307_v28 = vunpack.c.l.bf16 %v6073_v12 }
 0xe30   :  { %6407 = vmatprep.subr.mxu0 %v6216_v31  ;;  %6478 = vmatprep.subr.mxu1 %v6344_v34  ;;  %v6175_v31 = vunpack.c.l.bf16 %v6007_v19  ;;  %v6303_v34 = vunpack.c.l.bf16 %v6071_v22 }
 0xe31   :  { %6408 = vmatpush2.msra.mxu0 %v6215_v35  ;;  %6479 = vmatpush2.msra.mxu1 %v6343_v38  ;;  %v6005_v35 = vld [vmem:[%s11496_s5 + $0x130] sm:$0xff] }
 0xe32   :  { %6409 = vmatprep.subr.mxu0 %v6212_v41  ;;  %6480 = vmatprep.subr.mxu1 %v6340_v46  ;;  %v6069_v38 = vld [vmem:[%s11496_s5 + $0x330] sm:$0xff]  ;;  %v6172_v39 = vunpack.c.h.bf16 %v6005_v35  ;;  %v6171_v41 = vunpack.c.l.bf16 %v6005_v35  ;;  %v5992_v35 = vld [vmem:[%s11496_s5 + $0xc8] sm:$0xff] }
 0xe33   :  { %6410 = vmatpush2.msra.mxu0 %v6211_v47  ;;  %6481 = vmatpush2.msra.mxu1 %v6339_v53  ;;  %v6300_v40 = vunpack.c.h.bf16 %v6069_v38  ;;  %v6299_v46 = vunpack.c.l.bf16 %v6069_v38  ;;  %v6003_v47 = vld [vmem:[%s11496_s5 + $0x120] sm:$0xff]  ;;  %v6056_v38 = vld [vmem:[%s11496_s5 + $0x2c8] sm:$0xff] }
 0xe34   :  { %6411 = vmatprep.subr.mxu0 %v6208_v56  ;;  %6482 = vmatprep.subr.mxu1 %v6336_v61  ;;  %v6067_v53 = vld [vmem:[%s11496_s5 + $0x320] sm:$0xff]  ;;  %v6167_v54 = vunpack.c.l.bf16 %v6003_v47  ;;  %v6168_v55 = vunpack.c.h.bf16 %v6003_v47  ;;  %v5990_v47 = vld [vmem:[%s11496_s5 + $0xb8] sm:$0xff] }
 0xe35   :  { %6412 = vmatpush2.msra.mxu0 %v6207_v62  ;;  %6483 = vmatpush2.msra.mxu1 %v6335_v59  ;;  %v6295_v56 = vunpack.c.l.bf16 %v6067_v53  ;;  %v6296_v61 = vunpack.c.h.bf16 %v6067_v53  ;;  %v6001_v62 = vld [vmem:[%s11496_s5 + $0x110] sm:$0xff]  ;;  %v6054_v53 = vld [vmem:[%s11496_s5 + $0x2b8] sm:$0xff] }
 0xe36   :  { %6413 = vmatprep.subr.mxu0 %v6204_v63  ;;  %6484 = vmatprep.subr.mxu1 %v6332_v37  ;;  %v6065_v59 = vld [vmem:[%s11496_s5 + $0x310] sm:$0xff]  ;;  %v6164_v6 = vunpack.c.h.bf16 %v6001_v62  ;;  %v6163_v63 = vunpack.c.l.bf16 %v6001_v62  ;;  %v5988_v62 = vld [vmem:[%s11496_s5 + $0xa8] sm:$0xff] }
 0xe37   :  { %6414 = vmatpush2.msra.mxu0 %v6203_v24  ;;  %6485 = vmatpush2.msra.mxu1 %v6331_v9  ;;  %v6292_v20 = vunpack.c.h.bf16 %v6065_v59  ;;  %v6291_v37 = vunpack.c.l.bf16 %v6065_v59  ;;  %v5999_v24 = vld [vmem:[%s11496_s5 + $0x100] sm:$0xff]  ;;  %v6052_v59 = vld [vmem:[%s11496_s5 + $0x2a8] sm:$0xff] }
 0xe38   :  { %6415 = vmatprep.subr.mxu0 %v6200_v0  ;;  %6486 = vmatprep.subr.mxu1 %v6328_v45  ;;  %v6063_v9 = vld [vmem:[%s11496_s5 + $0x300] sm:$0xff]  ;;  %v6160_v60 = vunpack.c.h.bf16 %v5999_v24  ;;  %v6159_v0 = vunpack.c.l.bf16 %v5999_v24  ;;  %v5986_v24 = vld [vmem:[%s11496_s5 + $0x98] sm:$0xff] }
 0xe39   :  { %6416 = vmatpush2.msra.mxu0 %v6199_v58  ;;  %6487 = vmatpush2.msra.mxu1 %v6327_v1  ;;  %v6288_v49 = vunpack.c.h.bf16 %v6063_v9  ;;  %v6287_v45 = vunpack.c.l.bf16 %v6063_v9  ;;  %v5998_v58 = vld [vmem:[%s11496_s5 + $0xf8] sm:$0xff] }
 0xe3a   :  { %6417 = vmatprep.subr.mxu0 %v6196_v32  ;;  %6488 = vmatprep.subr.mxu1 %v6324_v33  ;;  %v6062_v1 = vld [vmem:[%s11496_s5 + $0x2f8] sm:$0xff]  ;;  %v6158_v36 = vunpack.c.h.bf16 %v5998_v58  ;;  %v11954_v32 = vld [vmem:[#allocation9_spill] sm:$0xff] }
 0xe3b   :  { %6418 = vmatpush2.msra.mxu0 %v6195_v25  ;;  %6489 = vmatpush2.msra.mxu1 %v6323_v48  ;;  %v6286_v8 = vunpack.c.h.bf16 %v6062_v1  ;;  %v5941_v33 = vsub.s32 0, %v11954_v32  ;;  %v5949_v25 = vsub.s32 2, %v11954_v32  ;;  %v5937_v48 = vld [vmem:[%s11495_s4] sm:$0xf]  ;;  %v5945_v3 = vsub.s32 1, %v11954_v32  ;;  %v6050_v9 = vld [vmem:[%s11496_s5 + $0x298] sm:$0xff] }
 0xe3c   :  { %6419 = vmatprep.subr.mxu0 %v6192_v21  ;;  %6490 = vmatprep.subr.mxu1 %v6320_v57  ;;  %v5953_v4 = vsub.s32 3, %v11954_v32  ;;  %v6984_v32 = vld [vmem:[%s11499_s8] ss:$0 sm:$0xff] }
 0xe3d   :  { %6420 = vmatpush2.msra.mxu0 %v6191_v2  ;;  %6491 = vmatpush2.msra.mxu1 %v6319_v52  ;;  %v5942_v57 = vrot.slane %v5937_v48, %v5941_v33  ;;  %v5950_v52 = vrot.slane %v5937_v48, %v5949_v25 }
 0xe3e   :  { %6421 = vmatprep.subr.mxu0 %v6188_v14  ;;  %6492 = vmatprep.subr.mxu1 %v6316_v5  ;;  %v5946_v14 = vrot.slane %v5937_v48, %v5945_v3  ;;  %v5954_v5 = vrot.slane %v5937_v48, %v5953_v4  ;;  %v6133_v48 = vunpack.c.l.bf16 %v5986_v24 }
 0xe3f   :  { %6422 = vmatpush2.msra.mxu0 %v6187_v7  ;;  %6493 = vmatpush2.msra.mxu1 %v6315_v10 }
 0xe40   :  { %6423 = vmatprep.subr.mxu0 %v6184_v13  ;;  %6494 = vmatprep.subr.mxu1 %v6312_v16 }
 0xe41   :  { %6424 = vmatpush2.msra.mxu0 %v6183_v17  ;;  %6495 = vmatpush2.msra.mxu1 %v6311_v18  ;;  %v6060_v18 = vld [vmem:[%s11496_s5 + $0x2e8] sm:$0xff] }
 0xe42   :  { %6425 = vmatprep.subr.mxu0 %v6180_v23  ;;  %6496 = vmatprep.subr.mxu1 %v6308_v26  ;;  %v6157_v23 = vunpack.c.l.bf16 %v5998_v58  ;;  %v5984_v58 = vld [vmem:[%s11496_s5 + $0x88] sm:$0xff] }
 0xe43   :  { %6426 = vmatpush2.msra.mxu0 %v6179_v27  ;;  %6497 = vmatpush2.msra.mxu1 %v6307_v28  ;;  %v5994_v28 = vld [vmem:[%s11496_s5 + $0xd8] sm:$0xff] }
 0xe44   :  { %6427 = vmatprep.subr.mxu0 %v6176_v29  ;;  %6498 = vmatprep.subr.mxu1 %v6304_v30  ;;  %v6058_v29 = vld [vmem:[%s11496_s5 + $0x2d8] sm:$0xff]  ;;  %v6282_v30 = vunpack.c.h.bf16 %v6060_v18 }
 0xe45   :  { %6428 = vmatpush2.msra.mxu0 %v6175_v31  ;;  %6499 = vmatpush2.msra.mxu1 %v6303_v34  ;;  %v6281_v34 = vunpack.c.l.bf16 %v6060_v18 }
 0xe46   :  { %6429 = vmatprep.subr.mxu0 %v6172_v39  ;;  %6500 = vmatprep.subr.mxu1 %v6300_v40  ;;  %v6150_v39 = vunpack.c.h.bf16 %v5994_v28  ;;  %v6278_v40 = vunpack.c.h.bf16 %v6058_v29 }
 0xe47   :  { %6430 = vmatpush2.msra.mxu0 %v6171_v41  ;;  %6501 = vmatpush2.msra.mxu1 %v6299_v46  ;;  %v6149_v41 = vunpack.c.l.bf16 %v5994_v28  ;;  %v6277_v46 = vunpack.c.l.bf16 %v6058_v29 }
 0xe48   :  { %6431 = vmatprep.subr.mxu0 %v6168_v55  ;;  %6502 = vmatprep.subr.mxu1 %v6296_v61  ;;  %v6274_v55 = vunpack.c.h.bf16 %v6056_v38  ;;  %v6273_v61 = vunpack.c.l.bf16 %v6056_v38 }
 0xe49   :  { %6432 = vmatpush2.msra.mxu0 %v6167_v54  ;;  %6503 = vmatpush2.msra.mxu1 %v6295_v56  ;;  %v6146_v54 = vunpack.c.h.bf16 %v5992_v35  ;;  %v6145_v56 = vunpack.c.l.bf16 %v5992_v35  ;;  %v6038_v35 = vld [vmem:[%s11496_s5 + $0x238] sm:$0xff] }
 0xe4a   :  { %6433 = vmatprep.subr.mxu0 %v6164_v6  ;;  %6504 = vmatprep.subr.mxu1 %v6292_v20  ;;  %v6142_v6 = vunpack.c.h.bf16 %v5990_v47  ;;  %v6270_v20 = vunpack.c.h.bf16 %v6054_v53 }
 0xe4b   :  { %6434 = vmatpush2.msra.mxu0 %v6163_v63  ;;  %6505 = vmatpush2.msra.mxu1 %v6291_v37  ;;  %v6141_v63 = vunpack.c.l.bf16 %v5990_v47  ;;  %v6269_v37 = vunpack.c.l.bf16 %v6054_v53  ;;  %v6036_v47 = vld [vmem:[%s11496_s5 + $0x228] sm:$0xff] }
 0xe4c   :  { %6435 = vmatprep.subr.mxu0 %v6160_v60  ;;  %6506 = vmatprep.subr.mxu1 %v6288_v49  ;;  %v6138_v60 = vunpack.c.h.bf16 %v5988_v62  ;;  %v6266_v49 = vunpack.c.h.bf16 %v6052_v59 }
 0xe4d   :  { %6436 = vmatpush2.msra.mxu0 %v6159_v0  ;;  %6507 = vmatpush2.msra.mxu1 %v6287_v45  ;;  %v6137_v0 = vunpack.c.l.bf16 %v5988_v62  ;;  %v6265_v45 = vunpack.c.l.bf16 %v6052_v59  ;;  %v6034_v62 = vld [vmem:[%s11496_s5 + $0x218] sm:$0xff] }
 0xe4e   :  { %6515 = vmatprep.subr.mxu0 %v6158_v36  ;;  %6586 = vmatprep.subr.mxu1 %v6286_v8  ;;  %v6134_v36 = vunpack.c.h.bf16 %v5986_v24  ;;  %v6262_v8 = vunpack.c.h.bf16 %v6050_v9  ;;  %v6032_v24 = vld [vmem:[%s11496_s5 + $0x208] sm:$0xff] }
 0xece   :  { %v5857_v21 = vpop.f32.mrf.mxu0  ;;  %v5928_v2 = vpop.f32.mrf.mxu1 }
 0xecf   :  { %v5933_v15 = vadd.f32 %v5857_v21, %v10953_v42  ;;  %v5935_v44 = vadd.f32 %v5928_v2, %v10956_v43  ;;  %v5996_v43 = vld [vmem:[%s11496_s5 + $0xe8] sm:$0xff]  ;;  %v6261_v21 = vunpack.c.l.bf16 %v6050_v9  ;;  %v6046_v2 = vld [vmem:[%s11496_s5 + $0x278] sm:$0xff] }
 0xed0   :  { %v5859_v7 = vpop.f32.mrf.mxu0  ;;  %v5930_v10 = vpop.f32.mrf.mxu1  ;;  %v6154_v27 = vunpack.c.h.bf16 %v5996_v43  ;;  %v6153_v31 = vunpack.c.l.bf16 %v5996_v43  ;;  %v6042_v43 = vld [vmem:[%s11496_s5 + $0x258] sm:$0xff] }
 0xed1   :  { %v5934_v11 = vadd.f32 %v5859_v7, %v10959_v50  ;;  %v5936_v12 = vadd.f32 %v5930_v10, %v10962_v51  ;;  %v11178_v13 = vadd.f32 %v5942_v57, %v5933_v15  ;;  %v11180_v16 = vadd.f32 %v5950_v52, %v5935_v44  ;;  %v5982_v57 = vld [vmem:[%s11496_s5 + $0x78] sm:$0xff]  ;;  %v6044_v7 = vld [vmem:[%s11496_s5 + $0x268] sm:$0xff] }
 0xed2   :  { %v6285_v50 = vunpack.c.l.bf16 %v6062_v1  ;;  %v6048_v1 = vld [vmem:[%s11496_s5 + $0x288] sm:$0xff]  ;;  %v6130_v52 = vunpack.c.h.bf16 %v5984_v58  ;;  %v6129_v44 = vunpack.c.l.bf16 %v5984_v58  ;;  %v6126_v10 = vunpack.c.h.bf16 %v5982_v57  ;;  %v6094_v58 = vld [vmem:[%s11496_s5 + $0x3f8] sm:$0xff] }
 0xed3   :  { %v5960_v17 = vadd.f32 %v5946_v14, %v5934_v11  ;;  %v5962_v42 = vadd.f32 %v5954_v5, %v5936_v12  ;;  %v5963_v51 = vmax.f32 %v11178_v13, 0.0  ;;  %v5965_v26 = vmax.f32 %v11180_v16, 0.0  ;;  %v5980_v5 = vld [vmem:[%s11496_s5 + $0x68] sm:$0xff] }
 0xed4   :  { %v6258_v15 = vunpack.c.h.bf16 %v6048_v1  ;;  %v6257_v14 = vunpack.c.l.bf16 %v6048_v1  ;;  %v6254_v11 = vunpack.c.h.bf16 %v6046_v2  ;;  %v6125_v12 = vunpack.c.l.bf16 %v5982_v57  ;;  %v6092_v57 = vld [vmem:[%s11496_s5 + $0x3e8] sm:$0xff] }
 0xed5   :  { %v5964_v19 = vmax.f32 %v5960_v17, 0.0  ;;  %v5966_v22 = vmax.f32 %v5962_v42, 0.0  ;;  %v6253_v17 = vunpack.c.l.bf16 %v6046_v2  ;;  %v5978_v42 = vld [vmem:[%s11496_s5 + $0x58] sm:$0xff]  ;;  %v6122_v18 = vunpack.c.h.bf16 %v5980_v5 }
 0xed6   :  { %v6118_v28 = vunpack.c.h.bf16 %v5978_v42  ;;  %v6246_v29 = vunpack.c.h.bf16 %v6042_v43 }
 0xed7   :  { %6437 = vmatprep.mubr.f32.mxu0 %v5964_v19  ;;  %6508 = vmatprep.mubr.f32.mxu1 %v5966_v22 }
 0xed8   :  { %6438 = vmatmul.mubr.f32.vlgmr.msra.gmra.mxu0 %v5963_v51  ;;  %6509 = vmatmul.mubr.f32.vlgmr.msra.gmra.mxu1 %v5965_v26 }
 0xed9   :  { %6516 = vmatpush1.msra.mxu0 %v6157_v23  ;;  %6587 = vmatpush1.msra.mxu1 %v6285_v50  ;;  %v6249_v23 = vunpack.c.l.bf16 %v6044_v7  ;;  %v5976_v50 = vld [vmem:[%s11496_s5 + $0x48] sm:$0xff] }
 0xeda   :  { %6517 = vmatprep.subr.mxu0 %v6154_v27  ;;  %6579 = vmatprep.mubr.f32.mxu0 %v5964_v19  ;;  %v6250_v19 = vunpack.c.h.bf16 %v6044_v7  ;;  %v6040_v27 = vld [vmem:[%s11496_s5 + $0x248] sm:$0xff]  ;;  %v6114_v38 = vunpack.c.h.bf16 %v5976_v50 }
 0xedb   :  { %6588 = vmatprep.subr.mxu1 %v6282_v30  ;;  %6650 = vmatprep.mubr.f32.mxu1 %v5966_v22  ;;  %v6121_v22 = vunpack.c.l.bf16 %v5980_v5  ;;  %v6117_v30 = vunpack.c.l.bf16 %v5978_v42  ;;  %v6090_v5 = vld [vmem:[%s11496_s5 + $0x3d8] sm:$0xff]  ;;  %v6088_v42 = vld [vmem:[%s11496_s5 + $0x3c8] sm:$0xff] }
 0xedc   :  { %6518 = vmatpush1.msra.mxu0 %v6153_v31  ;;  %6589 = vmatpush1.msra.mxu1 %v6281_v34  ;;  %v6245_v31 = vunpack.c.l.bf16 %v6042_v43  ;;  %v5974_v34 = vld [vmem:[%s11496_s5 + $0x38] sm:$0xff] }
 0xedd   :  { %6519 = vmatprep.subr.mxu0 %v6150_v39  ;;  %6590 = vmatprep.subr.mxu1 %v6278_v40  ;;  %v6242_v39 = vunpack.c.h.bf16 %v6040_v27  ;;  %v6113_v40 = vunpack.c.l.bf16 %v5976_v50  ;;  %v6110_v53 = vunpack.c.h.bf16 %v5974_v34  ;;  %v6086_v50 = vld [vmem:[%s11496_s5 + $0x3b8] sm:$0xff] }
 0xede   :  { %6520 = vmatpush1.msra.mxu0 %v6149_v41  ;;  %6591 = vmatpush1.msra.mxu1 %v6277_v46  ;;  %v6241_v41 = vunpack.c.l.bf16 %v6040_v27  ;;  %v5972_v46 = vld [vmem:[%s11496_s5 + $0x28] sm:$0xff] }
 0xedf   :  { %6521 = vmatprep.subr.mxu0 %v6146_v54  ;;  %6592 = vmatprep.subr.mxu1 %v6274_v55  ;;  %v6238_v54 = vunpack.c.h.bf16 %v6038_v35  ;;  %v6109_v55 = vunpack.c.l.bf16 %v5974_v34  ;;  %v6106_v59 = vunpack.c.h.bf16 %v5972_v46  ;;  %v6084_v34 = vld [vmem:[%s11496_s5 + $0x3a8] sm:$0xff] }
 0xee0   :  { %6522 = vmatpush1.msra.mxu0 %v6145_v56  ;;  %6593 = vmatpush1.msra.mxu1 %v6273_v61  ;;  %v6237_v56 = vunpack.c.l.bf16 %v6038_v35  ;;  %v5970_v61 = vld [vmem:[%s11496_s5 + $0x18] sm:$0xff] }
 0xee1   :  { %6523 = vmatprep.subr.mxu0 %v6142_v6  ;;  %6594 = vmatprep.subr.mxu1 %v6270_v20  ;;  %v6234_v6 = vunpack.c.h.bf16 %v6036_v47  ;;  %v6105_v20 = vunpack.c.l.bf16 %v5972_v46  ;;  %v6102_v9 = vunpack.c.h.bf16 %v5970_v61  ;;  %v6082_v46 = vld [vmem:[%s11496_s5 + $0x398] sm:$0xff] }
 0xee2   :  { %6524 = vmatpush1.msra.mxu0 %v6141_v63  ;;  %6595 = vmatpush1.msra.mxu1 %v6269_v37  ;;  %v6233_v63 = vunpack.c.l.bf16 %v6036_v47  ;;  %v5968_v37 = vld [vmem:[%s11496_s5 + $0x8] sm:$0xff] }
 0xee3   :  { %6525 = vmatprep.subr.mxu0 %v6138_v60  ;;  %6596 = vmatprep.subr.mxu1 %v6266_v49  ;;  %v6230_v60 = vunpack.c.h.bf16 %v6034_v62  ;;  %v6101_v49 = vunpack.c.l.bf16 %v5970_v61  ;;  %v6098_v1 = vunpack.c.h.bf16 %v5968_v37  ;;  %v6080_v61 = vld [vmem:[%s11496_s5 + $0x388] sm:$0xff] }
 0xee4   :  { %6526 = vmatpush1.msra.mxu0 %v6137_v0  ;;  %6597 = vmatpush1.msra.mxu1 %v6265_v45  ;;  %v6229_v0 = vunpack.c.l.bf16 %v6034_v62  ;;  %v6030_v45 = vld [vmem:[%s11496_s5 + $0x1f8] sm:$0xff] }
 0xee5   :  { %6527 = vmatprep.subr.mxu0 %v6134_v36  ;;  %6598 = vmatprep.subr.mxu1 %v6262_v8  ;;  %v6226_v36 = vunpack.c.h.bf16 %v6032_v24  ;;  %v6097_v8 = vunpack.c.l.bf16 %v5968_v37  ;;  %v6222_v2 = vunpack.c.h.bf16 %v6030_v45  ;;  %v6078_v37 = vld [vmem:[%s11496_s5 + $0x378] sm:$0xff] }
 0xee6   :  { %6528 = vmatpush1.msra.mxu0 %v6133_v48  ;;  %6599 = vmatpush1.msra.mxu1 %v6261_v21  ;;  %v6225_v48 = vunpack.c.l.bf16 %v6032_v24  ;;  %v6028_v21 = vld [vmem:[%s11496_s5 + $0x1e8] sm:$0xff] }
 0xee7   :  { %6529 = vmatprep.subr.mxu0 %v6130_v52  ;;  %6600 = vmatprep.subr.mxu1 %v6258_v15  ;;  %v6350_v52 = vunpack.c.h.bf16 %v6094_v58  ;;  %v6221_v15 = vunpack.c.l.bf16 %v6030_v45  ;;  %v6218_v7 = vunpack.c.h.bf16 %v6028_v21  ;;  %v6076_v45 = vld [vmem:[%s11496_s5 + $0x368] sm:$0xff] }
 0xee8   :  { %6530 = vmatpush1.msra.mxu0 %v6129_v44  ;;  %6601 = vmatpush1.msra.mxu1 %v6257_v14  ;;  %v6349_v44 = vunpack.c.l.bf16 %v6094_v58  ;;  %v6026_v14 = vld [vmem:[%s11496_s5 + $0x1d8] sm:$0xff] }
 0xee9   :  { %6531 = vmatprep.subr.mxu0 %v6126_v10  ;;  %6602 = vmatprep.subr.mxu1 %v6254_v11  ;;  %v6346_v10 = vunpack.c.h.bf16 %v6092_v57  ;;  %v6217_v11 = vunpack.c.l.bf16 %v6028_v21  ;;  %v6214_v43 = vunpack.c.h.bf16 %v6026_v14  ;;  %v6074_v21 = vld [vmem:[%s11496_s5 + $0x358] sm:$0xff] }
 0xeea   :  { %6532 = vmatpush1.msra.mxu0 %v6125_v12  ;;  %6603 = vmatpush1.msra.mxu1 %v6253_v17  ;;  %v6345_v12 = vunpack.c.l.bf16 %v6092_v57  ;;  %v6024_v17 = vld [vmem:[%s11496_s5 + $0x1c8] sm:$0xff] }
 0xeeb   :  { %6533 = vmatprep.subr.mxu0 %v6122_v18  ;;  %6604 = vmatprep.subr.mxu1 %v6250_v19  ;;  %v6342_v18 = vunpack.c.h.bf16 %v6090_v5  ;;  %v6213_v19 = vunpack.c.l.bf16 %v6026_v14  ;;  %v6210_v27 = vunpack.c.h.bf16 %v6024_v17  ;;  %v6072_v14 = vld [vmem:[%s11496_s5 + $0x348] sm:$0xff] }
 0xeec   :  { %6534 = vmatpush1.msra.mxu0 %v6121_v22  ;;  %6605 = vmatpush1.msra.mxu1 %v6249_v23  ;;  %v6341_v22 = vunpack.c.l.bf16 %v6090_v5  ;;  %v6022_v23 = vld [vmem:[%s11496_s5 + $0x1b8] sm:$0xff] }
 0xeed   :  { %6535 = vmatprep.subr.mxu0 %v6118_v28  ;;  %6606 = vmatprep.subr.mxu1 %v6246_v29  ;;  %v6338_v28 = vunpack.c.h.bf16 %v6088_v42  ;;  %v6209_v29 = vunpack.c.l.bf16 %v6024_v17  ;;  %v6206_v35 = vunpack.c.h.bf16 %v6022_v23  ;;  %v6070_v17 = vld [vmem:[%s11496_s5 + $0x338] sm:$0xff] }
 0xeee   :  { %6536 = vmatpush1.msra.mxu0 %v6117_v30  ;;  %6607 = vmatpush1.msra.mxu1 %v6245_v31  ;;  %v6337_v30 = vunpack.c.l.bf16 %v6088_v42  ;;  %v6020_v31 = vld [vmem:[%s11496_s5 + $0x1a8] sm:$0xff] }
 0xeef   :  { %6537 = vmatprep.subr.mxu0 %v6114_v38  ;;  %6608 = vmatprep.subr.mxu1 %v6242_v39  ;;  %v6334_v38 = vunpack.c.h.bf16 %v6086_v50  ;;  %v6205_v39 = vunpack.c.l.bf16 %v6022_v23  ;;  %v6202_v47 = vunpack.c.h.bf16 %v6020_v31  ;;  %v6068_v23 = vld [vmem:[%s11496_s5 + $0x328] sm:$0xff] }
 0xef0   :  { %6538 = vmatpush1.msra.mxu0 %v6113_v40  ;;  %6609 = vmatpush1.msra.mxu1 %v6241_v41  ;;  %v6333_v40 = vunpack.c.l.bf16 %v6086_v50  ;;  %v6018_v41 = vld [vmem:[%s11496_s5 + $0x198] sm:$0xff] }
 0xef1   :  { %6539 = vmatprep.subr.mxu0 %v6110_v53  ;;  %6610 = vmatprep.subr.mxu1 %v6238_v54  ;;  %v6330_v53 = vunpack.c.h.bf16 %v6084_v34  ;;  %v6201_v54 = vunpack.c.l.bf16 %v6020_v31  ;;  %v6198_v62 = vunpack.c.h.bf16 %v6018_v41  ;;  %v6066_v31 = vld [vmem:[%s11496_s5 + $0x318] sm:$0xff] }
 0xef2   :  { %6540 = vmatpush1.msra.mxu0 %v6109_v55  ;;  %6611 = vmatpush1.msra.mxu1 %v6237_v56  ;;  %v6329_v55 = vunpack.c.l.bf16 %v6084_v34  ;;  %v6016_v56 = vld [vmem:[%s11496_s5 + $0x188] sm:$0xff] }
 0xef3   :  { %6541 = vmatprep.subr.mxu0 %v6106_v59  ;;  %6612 = vmatprep.subr.mxu1 %v6234_v6  ;;  %v6326_v59 = vunpack.c.h.bf16 %v6082_v46  ;;  %v6197_v6 = vunpack.c.l.bf16 %v6018_v41  ;;  %v6194_v24 = vunpack.c.h.bf16 %v6016_v56  ;;  %v6064_v41 = vld [vmem:[%s11496_s5 + $0x308] sm:$0xff] }
 0xef4   :  { %6542 = vmatpush1.msra.mxu0 %v6105_v20  ;;  %6613 = vmatpush1.msra.mxu1 %v6233_v63  ;;  %v6325_v20 = vunpack.c.l.bf16 %v6082_v46  ;;  %v6014_v63 = vld [vmem:[%s11496_s5 + $0x178] sm:$0xff] }
 0xef5   :  { %6543 = vmatprep.subr.mxu0 %v6102_v9  ;;  %6614 = vmatprep.subr.mxu1 %v6230_v60  ;;  %v6322_v9 = vunpack.c.h.bf16 %v6080_v61  ;;  %v6193_v60 = vunpack.c.l.bf16 %v6016_v56  ;;  %v6190_v58 = vunpack.c.h.bf16 %v6014_v63  ;;  %v6290_v56 = vunpack.c.h.bf16 %v6064_v41 }
 0xef6   :  { %6544 = vmatpush1.msra.mxu0 %v6101_v49  ;;  %6615 = vmatpush1.msra.mxu1 %v6229_v0  ;;  %v6321_v49 = vunpack.c.l.bf16 %v6080_v61  ;;  %v6012_v0 = vld [vmem:[%s11496_s5 + $0x168] sm:$0xff]  ;;  %v7286_v61 = vld [vmem:[%s11498_s7 + $0x78] sm:$0xff]  }
 0xef7   :  { %6545 = vmatprep.subr.mxu0 %v6098_v1  ;;  %6616 = vmatprep.subr.mxu1 %v6226_v36  ;;  %v6318_v1 = vunpack.c.h.bf16 %v6078_v37  ;;  %v6189_v36 = vunpack.c.l.bf16 %v6014_v63  ;;  %v6186_v57 = vunpack.c.h.bf16 %v6012_v0 }
 0xef8   :  { %6546 = vmatpush1.msra.mxu0 %v6097_v8  ;;  %6617 = vmatpush1.msra.mxu1 %v6225_v48  ;;  %v6317_v8 = vunpack.c.l.bf16 %v6078_v37  ;;  %v6010_v48 = vld [vmem:[%s11496_s5 + $0x158] sm:$0xff]  ;;  %v7285_v37 = vld [vmem:[%s11498_s7 + $0x70] sm:$0xff]  }
 0xef9   :  { %6547 = vmatprep.subr.mxu0 %v6222_v2  ;;  %6618 = vmatprep.subr.mxu1 %v6350_v52  ;;  %v6314_v2 = vunpack.c.h.bf16 %v6076_v45  ;;  %v6185_v52 = vunpack.c.l.bf16 %v6012_v0  ;;  %v6182_v5 = vunpack.c.h.bf16 %v6010_v48 }
 0xefa   :  { %6548 = vmatpush2.msra.mxu0 %v6221_v15  ;;  %6619 = vmatpush2.msra.mxu1 %v6349_v44  ;;  %v6313_v15 = vunpack.c.l.bf16 %v6076_v45  ;;  %v6008_v44 = vld [vmem:[%s11496_s5 + $0x148] sm:$0xff] }
 0xefb   :  { %6549 = vmatprep.subr.mxu0 %v6218_v7  ;;  %6620 = vmatprep.subr.mxu1 %v6346_v10  ;;  %v6310_v7 = vunpack.c.h.bf16 %v6074_v21  ;;  %v6181_v10 = vunpack.c.l.bf16 %v6010_v48  ;;  %v6178_v42 = vunpack.c.h.bf16 %v6008_v44  ;;  %v7284_v45 = vld [vmem:[%s11498_s7 + $0x68] sm:$0xff]  }
 0xefc   :  { %6550 = vmatpush2.msra.mxu0 %v6217_v11  ;;  %6621 = vmatpush2.msra.mxu1 %v6345_v12  ;;  %v6309_v11 = vunpack.c.l.bf16 %v6074_v21  ;;  %v6006_v12 = vld [vmem:[%s11496_s5 + $0x138] sm:$0xff]  ;;  %v7168_v16 = vunpack.c.h.bf16 %v7284_v45 }
 0xefd   :  { %6551 = vmatprep.subr.mxu0 %v6214_v43  ;;  %6622 = vmatprep.subr.mxu1 %v6342_v18  ;;  %v6306_v43 = vunpack.c.h.bf16 %v6072_v14  ;;  %v6177_v18 = vunpack.c.l.bf16 %v6008_v44  ;;  %v6174_v50 = vunpack.c.h.bf16 %v6006_v12  ;;  %v7282_v44 = vld [vmem:[%s11498_s7 + $0x58] sm:$0xff]  }
 0xefe   :  { %6552 = vmatpush2.msra.mxu0 %v6213_v19  ;;  %6623 = vmatpush2.msra.mxu1 %v6341_v22  ;;  %v6305_v19 = vunpack.c.l.bf16 %v6072_v14  ;;  %v6004_v22 = vld [vmem:[%s11496_s5 + $0x128] sm:$0xff] }
 0xeff   :  { %6553 = vmatprep.subr.mxu0 %v6210_v27  ;;  %6624 = vmatprep.subr.mxu1 %v6338_v28  ;;  %v6302_v27 = vunpack.c.h.bf16 %v6070_v17  ;;  %v6173_v28 = vunpack.c.l.bf16 %v6006_v12  ;;  %v6170_v34 = vunpack.c.h.bf16 %v6004_v22  ;;  %v7274_v12 = vld [vmem:[%s11498_s7 + $0x18] sm:$0xff]  }
 0xf00   :  { %6554 = vmatpush2.msra.mxu0 %v6209_v29  ;;  %6625 = vmatpush2.msra.mxu1 %v6337_v30  ;;  %v6301_v29 = vunpack.c.l.bf16 %v6070_v17  ;;  %v6002_v30 = vld [vmem:[%s11496_s5 + $0x118] sm:$0xff] }
 0xf01   :  { %6555 = vmatprep.subr.mxu0 %v6206_v35  ;;  %6626 = vmatprep.subr.mxu1 %v6334_v38  ;;  %v6298_v35 = vunpack.c.h.bf16 %v6068_v23  ;;  %v6169_v38 = vunpack.c.l.bf16 %v6004_v22  ;;  %v6166_v46 = vunpack.c.h.bf16 %v6002_v30  ;;  %v7300_v22 = vld [vmem:[%s11498_s7 + $0xe8] sm:$0xff]  }
 0xf02   :  { %6556 = vmatpush2.msra.mxu0 %v6205_v39  ;;  %6627 = vmatpush2.msra.mxu1 %v6333_v40  ;;  %v6297_v39 = vunpack.c.l.bf16 %v6068_v23  ;;  %v6000_v40 = vld [vmem:[%s11496_s5 + $0x108] sm:$0xff]  ;;  %v7128_v23 = vunpack.c.h.bf16 %v7274_v12 }
 0xf03   :  { %6557 = vmatprep.subr.mxu0 %v6202_v47  ;;  %6628 = vmatprep.subr.mxu1 %v6330_v53  ;;  %v6294_v47 = vunpack.c.h.bf16 %v6066_v31  ;;  %v6165_v53 = vunpack.c.l.bf16 %v6002_v30  ;;  %v7273_v30 = vld [vmem:[%s11498_s7 + $0x10] sm:$0xff]  }
 0xf04   :  { %6558 = vmatpush2.msra.mxu0 %v6201_v54  ;;  %6629 = vmatpush2.msra.mxu1 %v6329_v55  ;;  %v6293_v54 = vunpack.c.l.bf16 %v6066_v31  ;;  %v6162_v55 = vunpack.c.h.bf16 %v6000_v40 }
 0xf05   :  { %6559 = vmatprep.subr.mxu0 %v6198_v62  ;;  %6630 = vmatprep.subr.mxu1 %v6326_v59  ;;  %v6161_v62 = vunpack.c.l.bf16 %v6000_v40  ;;  %v6289_v59 = vunpack.c.l.bf16 %v6064_v41  ;;  %v7299_v40 = vld [vmem:[%s11498_s7 + $0xe0] sm:$0xff]   ;;  %v7124_v41 = vunpack.c.h.bf16 %v7273_v30 }
 0xf06   :  { %6560 = vmatpush2.msra.mxu0 %v6197_v6  ;;  %6631 = vmatpush2.msra.mxu1 %v6325_v20  ;;  %v7278_v6 = vld [vmem:[%s11498_s7 + $0x38] sm:$0xff]   ;;  %v7176_v20 = vunpack.c.h.bf16 %v7286_v61 }
 0xf07   :  { %6561 = vmatprep.subr.mxu0 %v6194_v24  ;;  %6632 = vmatprep.subr.mxu1 %v6322_v9  ;;  %v7144_v63 = vunpack.c.h.bf16 %v7278_v6  ;;  %v7175_v24 = vunpack.c.l.bf16 %v7286_v61  ;;  %v7277_v9 = vld [vmem:[%s11498_s7 + $0x30] sm:$0xff]   ;;  %v7123_v61 = vunpack.c.l.bf16 %v7273_v30 }
 0xf08   :  { %6562 = vmatpush2.msra.mxu0 %v6193_v60  ;;  %6633 = vmatpush2.msra.mxu1 %v6321_v49  ;;  %v7143_v60 = vunpack.c.l.bf16 %v7278_v6  ;;  %v7172_v49 = vunpack.c.h.bf16 %v7285_v37  ;;  %v7140_v0 = vunpack.c.h.bf16 %v7277_v9  ;;  %v7139_v13 = vunpack.c.l.bf16 %v7277_v9  ;;  %v7290_v9 = vld [vmem:[%s11498_s7 + $0x98] sm:$0xff]  }
 0xf09   :  { %6563 = vmatprep.subr.mxu0 %v6190_v58  ;;  %6634 = vmatprep.subr.mxu1 %v6318_v1  ;;  %v7171_v58 = vunpack.c.l.bf16 %v7285_v37  ;;  %v7276_v1 = vld [vmem:[%s11498_s7 + $0x28] sm:$0xff]   ;;  %v7279_v37 = vld [vmem:[%s11498_s7 + $0x40] sm:$0xff]  }
 0xf0a   :  { %6564 = vmatpush2.msra.mxu0 %v6189_v36  ;;  %6635 = vmatpush2.msra.mxu1 %v6317_v8  ;;  %v7167_v36 = vunpack.c.l.bf16 %v7284_v45  ;;  %v7275_v8 = vld [vmem:[%s11498_s7 + $0x20] sm:$0xff]   ;;  %v7135_v48 = vunpack.c.l.bf16 %v7276_v1 }
 0xf0b   :  { %6565 = vmatprep.subr.mxu0 %v6186_v57  ;;  %6636 = vmatprep.subr.mxu1 %v6314_v2  ;;  %v7302_v57 = vld [vmem:[%s11498_s7 + $0xf8] sm:$0xff]  }
 0xf0c   :  { %6566 = vmatpush2.msra.mxu0 %v6185_v52  ;;  %6637 = vmatpush2.msra.mxu1 %v6313_v15  ;;  %v7294_v2 = vld [vmem:[%s11498_s7 + $0xb8] sm:$0xff]   ;;  %v7301_v52 = vld [vmem:[%s11498_s7 + $0xf0] sm:$0xff]   ;;  %v7132_v15 = vunpack.c.h.bf16 %v7275_v8  ;;  %v7240_v14 = vunpack.c.h.bf16 %v7302_v57 }
 0xf0d   :  { %6567 = vmatprep.subr.mxu0 %v6182_v5  ;;  %6638 = vmatprep.subr.mxu1 %v6310_v7  ;;  %v7208_v5 = vunpack.c.h.bf16 %v7294_v2  ;;  %v7239_v7 = vunpack.c.l.bf16 %v7302_v57  ;;  %v7207_v17 = vunpack.c.l.bf16 %v7294_v2 }
 0xf0e   :  { %6568 = vmatpush2.msra.mxu0 %v6181_v10  ;;  %6639 = vmatpush2.msra.mxu1 %v6309_v11  ;;  %v7293_v10 = vld [vmem:[%s11498_s7 + $0xb0] sm:$0xff]  }
 0xf0f   :  { %6569 = vmatprep.subr.mxu0 %v6178_v42  ;;  %6640 = vmatprep.subr.mxu1 %v6306_v43  ;;  %v7131_v42 = vunpack.c.l.bf16 %v7275_v8  ;;  %v7236_v43 = vunpack.c.h.bf16 %v7301_v52  ;;  %v7203_v31 = vunpack.c.l.bf16 %v7293_v10  ;;  %v7147_v8 = vunpack.c.l.bf16 %v7279_v37 }
 0xf10   :  { %6570 = vmatpush2.msra.mxu0 %v6177_v18  ;;  %6641 = vmatpush2.msra.mxu1 %v6305_v19  ;;  %v7160_v18 = vunpack.c.h.bf16 %v7282_v44  ;;  %v7204_v19 = vunpack.c.h.bf16 %v7293_v10 }
 0xf11   :  { %6571 = vmatprep.subr.mxu0 %v6174_v50  ;;  %6642 = vmatprep.subr.mxu1 %v6302_v27  ;;  %v7281_v50 = vld [vmem:[%s11498_s7 + $0x50] sm:$0xff]   ;;  %v7235_v27 = vunpack.c.l.bf16 %v7301_v52 }
 0xf12   :  { %6572 = vmatpush2.msra.mxu0 %v6173_v28  ;;  %6643 = vmatpush2.msra.mxu1 %v6301_v29  ;;  %v7292_v28 = vld [vmem:[%s11498_s7 + $0xa8] sm:$0xff]   ;;  %v7159_v29 = vunpack.c.l.bf16 %v7282_v44 }
 0xf13   :  { %6573 = vmatprep.subr.mxu0 %v6170_v34  ;;  %6644 = vmatprep.subr.mxu1 %v6298_v35  ;;  %v7127_v34 = vunpack.c.l.bf16 %v7274_v12  ;;  %v7232_v35 = vunpack.c.h.bf16 %v7300_v22  ;;  %v7296_v44 = vld [vmem:[%s11498_s7 + $0xc8] sm:$0xff]   ;;  %v7295_v12 = vld [vmem:[%s11498_s7 + $0xc0] sm:$0xff]  }
 0xf14   :  { %6574 = vmatpush2.msra.mxu0 %v6169_v38  ;;  %6645 = vmatpush2.msra.mxu1 %v6297_v39  ;;  %v7156_v38 = vunpack.c.h.bf16 %v7281_v50  ;;  %v7200_v39 = vunpack.c.h.bf16 %v7292_v28  ;;  %v7215_v10 = vunpack.c.l.bf16 %v7296_v44 }
 0xf15   :  { %6575 = vmatprep.subr.mxu0 %v6166_v46  ;;  %6646 = vmatprep.subr.mxu1 %v6294_v47  ;;  %v7280_v46 = vld [vmem:[%s11498_s7 + $0x48] sm:$0xff]   ;;  %v7231_v47 = vunpack.c.l.bf16 %v7300_v22  ;;  %v6351_v22 = vld [vmem:[%s11497_s6] sm:$0xf] }
 0xf16   :  { %6576 = vmatpush2.msra.mxu0 %v6165_v53  ;;  %6647 = vmatpush2.msra.mxu1 %v6293_v54  ;;  %v7291_v53 = vld [vmem:[%s11498_s7 + $0xa0] sm:$0xff]   ;;  %v7155_v54 = vunpack.c.l.bf16 %v7281_v50  ;;  %v6360_v50 = vrot.slane %v6351_v22, %v5945_v3 }
 0xf17   :  { %6577 = vmatprep.subr.mxu0 %v6162_v55  ;;  %6648 = vmatprep.subr.mxu1 %v6290_v56  ;;  %v7272_v55 = vld [vmem:[%s11498_s7 + $0x8] sm:$0xff]   ;;  %v7199_v56 = vunpack.c.l.bf16 %v7292_v28  ;;  %v7196_v6 = vunpack.c.h.bf16 %v7291_v53 }
 0xf18   :  { %6578 = vmatpush2.msra.mxu0 %v6161_v62  ;;  %6649 = vmatpush2.msra.mxu1 %v6289_v59  ;;  %v7228_v62 = vunpack.c.h.bf16 %v7299_v40  ;;  %v7152_v59 = vunpack.c.h.bf16 %v7280_v46  ;;  %v7119_v45 = vunpack.c.l.bf16 %v7272_v55 }
 0xf19   :  { %6580 = vmatmul.mubr.f32.vlgmr.msra.gmra.mxu0 %v5963_v51  ;;  %6651 = vmatmul.mubr.f32.vlgmr.msra.gmra.mxu1 %v5965_v26  ;;  %v7136_v51 = vunpack.c.h.bf16 %v7276_v1  ;;  %v7283_v26 = vld [vmem:[%s11498_s7 + $0x60] sm:$0xff]   ;;  %v7148_v1 = vunpack.c.h.bf16 %v7279_v37 }
 0xf1a   :  { %8423 = vmatprep.subr.mxu0 %v7176_v20  ;;  %v7164_v21 = vunpack.c.h.bf16 %v7283_v26  ;;  %v7163_v11 = vunpack.c.l.bf16 %v7283_v26  ;;  %8458 = vmatprep.subr.mxu1 %v7240_v14  ;;  %v7298_v20 = vld [vmem:[%s11498_s7 + $0xd8] sm:$0xff]   ;;  %v7216_v14 = vunpack.c.h.bf16 %v7296_v44 }
 0xf1b   :  { %8424 = vmatpush3.msra.mxu0 %v7144_v63  ;;  %8459 = vmatpush3.msra.mxu1 %v7208_v5  ;;  %v7120_v63 = vunpack.c.h.bf16 %v7272_v55  ;;  %v7223_v26 = vunpack.c.l.bf16 %v7298_v20  ;;  %v7288_v5 = vld [vmem:[%s11498_s7 + $0x88] sm:$0xff]  }
 0xf1c   :  { %8425 = vmatprep.subr.mxu0 %v7175_v24  ;;  %8460 = vmatprep.subr.mxu1 %v7239_v7  ;;  %v7227_v24 = vunpack.c.l.bf16 %v7299_v40  ;;  %v7184_v7 = vunpack.c.h.bf16 %v7288_v5 }
 0xf1d   :  { %8426 = vmatpush3.msra.mxu0 %v7143_v60  ;;  %8461 = vmatpush3.msra.mxu1 %v7207_v17  ;;  %v7151_v60 = vunpack.c.l.bf16 %v7280_v46  ;;  %v7212_v17 = vunpack.c.h.bf16 %v7295_v12 }
 0xf1e   :  { %8427 = vmatprep.subr.mxu0 %v7172_v49  ;;  %8462 = vmatprep.subr.mxu1 %v7236_v43  ;;  %v7114_v49 = vld [vmem:[%s11498_s7] sm:$0xff]  }
 0xf1f   :  { %8428 = vmatpush3.msra.mxu0 %v7140_v0  ;;  %8463 = vmatpush3.msra.mxu1 %v7204_v19  ;;  %v7195_v0 = vunpack.c.l.bf16 %v7291_v53 }
 0xf20   :  { %8429 = vmatprep.subr.mxu0 %v7171_v58  ;;  %8464 = vmatprep.subr.mxu1 %v7235_v27  ;;  %v7224_v58 = vunpack.c.h.bf16 %v7298_v20 }
 0xf21   :  { %8430 = vmatpush3.msra.mxu0 %v7139_v13  ;;  %8465 = vmatpush3.msra.mxu1 %v7203_v31  ;;  %v7192_v13 = vunpack.c.h.bf16 %v7290_v9 }
 0xf22   :  { %8431 = vmatprep.subr.mxu0 %v7168_v16  ;;  %8466 = vmatprep.subr.mxu1 %v7232_v35  ;;  %v7297_v16 = vld [vmem:[%s11498_s7 + $0xd0] sm:$0xff]  }
 0xf23   :  { %8432 = vmatpush3.msra.mxu0 %v7136_v51  ;;  %8467 = vmatpush3.msra.mxu1 %v7200_v39  ;;  %v7116_v51 = vunpack.c.h.bf16 %v7114_v49  ;;  %v7220_v57 = vunpack.c.h.bf16 %v7297_v16  ;;  %v7219_v52 = vunpack.c.l.bf16 %v7297_v16 }
 0xf24   :  { %8433 = vmatprep.subr.mxu0 %v7167_v36  ;;  %8468 = vmatprep.subr.mxu1 %v7231_v47  ;;  %v7289_v36 = vld [vmem:[%s11498_s7 + $0x90] sm:$0xff]  }
 0xf25   :  { %8434 = vmatpush3.msra.mxu0 %v7135_v48  ;;  %8469 = vmatpush3.msra.mxu1 %v7199_v56  ;;  %v7191_v48 = vunpack.c.l.bf16 %v7290_v9  ;;  %v7188_v2 = vunpack.c.h.bf16 %v7289_v36 }
 0xf26   :  { %8435 = vmatprep.subr.mxu0 %v7164_v21  ;;  %8470 = vmatprep.subr.mxu1 %v7228_v62  ;;  %v7115_v21 = vunpack.c.l.bf16 %v7114_v49 }
 0xf27   :  { %8436 = vmatpush3.msra.mxu0 %v7132_v15  ;;  %8471 = vmatpush3.msra.mxu1 %v7196_v6  ;;  %v7187_v15 = vunpack.c.l.bf16 %v7289_v36 }
 0xf28   :  { %8437 = vmatprep.subr.mxu0 %v7163_v11  ;;  %8472 = vmatprep.subr.mxu1 %v7227_v24  ;;  %v7183_v11 = vunpack.c.l.bf16 %v7288_v5 }
 0xf29   :  { %8438 = vmatpush3.msra.mxu0 %v7131_v42  ;;  %8473 = vmatpush3.msra.mxu1 %v7195_v0  ;;  %v7287_v42 = vld [vmem:[%s11498_s7 + $0x80] sm:$0xff]  }
 0xf2a   :  { %8439 = vmatprep.subr.mxu0 %v7160_v18  ;;  %8474 = vmatprep.subr.mxu1 %v7224_v58  ;;  %v7180_v43 = vunpack.c.h.bf16 %v7287_v42  ;;  %v7211_v18 = vunpack.c.l.bf16 %v7295_v12  ;;  %v7179_v19 = vunpack.c.l.bf16 %v7287_v42 }
 0xf2b   :  { %8440 = vmatpush3.msra.mxu0 %v7128_v23  ;;  %8475 = vmatpush3.msra.mxu1 %v7192_v13  ;;  %v6356_v23 = vrot.slane %v6351_v22, %v5941_v33  ;;  %v6368_v33 = vrot.slane %v6351_v22, %v5953_v4 }
 0xf2c   :  { %8441 = vmatprep.subr.mxu0 %v7159_v29  ;;  %8476 = vmatprep.subr.mxu1 %v7223_v26 }
 0xf2d   :  { %8442 = vmatpush3.msra.mxu0 %v7127_v34  ;;  %8477 = vmatpush3.msra.mxu1 %v7191_v48 }
 0xf2e   :  { %8443 = vmatprep.subr.mxu0 %v7156_v38  ;;  %8478 = vmatprep.subr.mxu1 %v7220_v57 }
 0xf2f   :  { %8444 = vmatpush3.msra.mxu0 %v7124_v41  ;;  %8479 = vmatpush3.msra.mxu1 %v7188_v2  ;;  %v6364_v41 = vrot.slane %v6351_v22, %v5949_v25 }
 0xf30   :  { %8445 = vmatprep.subr.mxu0 %v7155_v54  ;;  %8480 = vmatprep.subr.mxu1 %v7219_v52 }
 0xf31   :  { %8446 = vmatpush3.msra.mxu0 %v7123_v61  ;;  %8481 = vmatpush3.msra.mxu1 %v7187_v15 }
 0xf32   :  { %8447 = vmatprep.subr.mxu0 %v7152_v59  ;;  %8482 = vmatprep.subr.mxu1 %v7216_v14 }
 0xf33   :  { %8448 = vmatpush3.msra.mxu0 %v7120_v63  ;;  %8483 = vmatpush3.msra.mxu1 %v7184_v7 }
 0xf34   :  { %8449 = vmatprep.subr.mxu0 %v7151_v60  ;;  %8484 = vmatprep.subr.mxu1 %v7215_v10 }
 0xf35   :  { %8450 = vmatpush3.msra.mxu0 %v7119_v45  ;;  %8485 = vmatpush3.msra.mxu1 %v7183_v11 }
 0xf36   :  { %8451 = vmatprep.subr.mxu0 %v7148_v1  ;;  %8486 = vmatprep.subr.mxu1 %v7212_v17 }
 0xf37   :  { %8452 = vmatpush3.msra.mxu0 %v7116_v51  ;;  %8487 = vmatpush3.msra.mxu1 %v7180_v43 }
 0xf38   :  { %8453 = vmatprep.subr.mxu0 %v7147_v8  ;;  %8488 = vmatprep.subr.mxu1 %v7211_v18 }
 0xf39   :  { %8454 = vmatpush3.msra.mxu0 %v7115_v21  ;;  %8489 = vmatpush3.msra.mxu1 %v7179_v19 }
 0xf98   :  { %v6439_v27 = vpop.f32.mrf.mxu0  ;;  %v6510_v28 = vpop.f32.mrf.mxu1 }
 0xf99   :  { %v6440_v29 = vadd.f32 %v6439_v27, %v6356_v23 }
 0xf9a   :  { %v6441_v30 = vpop.f32.mrf.mxu0  ;;  %v6512_v35 = vpop.f32.mrf.mxu1 }
 0xf9b   :  { %v6442_v31 = vadd.f32 %v6441_v30, %v6360_v50  ;;  %v6511_v34 = vadd.f32 %v6510_v28, %v6440_v29 }
 0xf9d   :  { %v6513_v38 = vadd.f32 %v6512_v35, %v6442_v31  ;;  %v6657_v40 = vmax.f32 %v6511_v34, 0.0 }
 0xf9f   :  { %v6658_v39 = vmax.f32 %v6513_v38, 0.0 }
 0xfa1   :  { %6860 = vmatprep.mubr.f32.mxu0 %v6658_v39 }
 0xfa2   :  { %6861 = vmatmul.mubr.f32.vlgmr.msra.gmra.mxu0 %v6657_v40 }
 0xfd9   :  { %v6581_v46 = vpop.f32.mrf.mxu0  ;;  %v6652_v3 = vpop.f32.mrf.mxu1 }
 0xfda   :  { %v6582_v47 = vadd.f32 %v6581_v46, %v6364_v41 }
 0xfdb   :  { %v6583_v53 = vpop.f32.mrf.mxu0  ;;  %v6654_v56 = vpop.f32.mrf.mxu1 }
 0xfdc   :  { %v6584_v54 = vadd.f32 %v6583_v53, %v6368_v33  ;;  %v6653_v55 = vadd.f32 %v6652_v3, %v6582_v47 }
 0xfde   :  { %v6655_v61 = vadd.f32 %v6654_v56, %v6584_v54  ;;  %v6659_v59 = vmax.f32 %v6653_v55, 0.0 }
 0xfe0   :  { %v6660_v62 = vmax.f32 %v6655_v61, 0.0 }
 0xfe2   :  { %6930 = vmatprep.mubr.f32.mxu1 %v6660_v62 }
 0xfe3   :  { %6931 = vmatmul.mubr.f32.vlgmr.msra.gmra.mxu1 %v6659_v59 }
0x1062   :  { %v8455_v6 = vpop.f32.mrf.mxu0 }
0x1064   :  { %v8456_v20 = vpop.f32.mrf.mxu0 }
0x1065   :  { %v8457_v63 = vadd.f32 %v8456_v20, %v8455_v6 }
0x1067   :  { %v6863_v37 = vadd.f32 %v8457_v63, %v6984_v32 }
0x10a3   :  { %v8490_v25 = vpop.f32.mrf.mxu1 }
0x10a5   :  { %v8491_v4 = vpop.f32.mrf.mxu1 }
0x10a6   :  { %v8492_v24 = vadd.f32 %v8491_v4, %v8490_v25 }
0x10a8   :  { %v6933_v9 = vadd.f32 %v8492_v24, %v6863_v37 }
0x10aa   :  { %6936 = vst [vmem:[#allocation2] sm:$0x3] %v6933_v9 }
0x10ab   :  { %8527 = shalt.err (!%p8524_p4)
}
0x10ac   :  { %6946 = dma.vmem_to_hbm [thread:$0]  %s6944_s20, 32, %s11500_s9, [#allocation3]  }
0x10ad   :  { %8536 = dma.done.wait [#allocation3], 32  }
0x10ae   :  { %8537 = vsyncadd [#allocation3], 4294967264 }
0x10af   :  { %6950 = vsyncpa [#allocation3], 1 }

</bundles_post_ra>
